<compile_context>
chip_gen: v6e
topology: v6e:2x2x1
jax: 0.10.0
libtpu: 0.0.40
codegen_flags: <defaults>
</compile_context>

<pallas_src>
import functools
import math

import jax
import jax.numpy as jnp
from jax.experimental import pallas as pl
from jax.experimental.pallas import tpu as pltpu

WIDTH = 16        # self.width (module default is 20; small value for the test)
MODES1 = 4
MODES2 = 4
EMBED_DIM = 32
SIGMA = 25.0


# ----------------------------------------------------------------------------
# activations (inside kernels)
# ----------------------------------------------------------------------------
def _apply_act(x, name):
    if name == "none":
        return x
    if name == "gelu":
        # TODO(synk): PyTorch F.gelu defaults to the exact erf form; tanh
        # approximation used here to guarantee Mosaic lowering.
        c = math.sqrt(2.0 / math.pi)
        return 0.5 * x * (1.0 + jnp.tanh(c * (x + 0.044715 * x * x * x)))
    if name == "silu":
        return x * jax.nn.sigmoid(x)
    raise ValueError(name)


def _row_tile(m, cap=1024):
    """Largest legal row tile (block == full array is always legal)."""
    if m <= cap:
        return m
    for t in (1024, 512, 256, 128):
        if t <= cap and m % t == 0:
            return t
    return m


# ----------------------------------------------------------------------------
# fused lift kernel:  [x, x_prev, w, gx, gy] (M,5) @ W_lift (5,48) + b  -> (M,48)
# ----------------------------------------------------------------------------
def _lift_kernel(x_ref, w_ref, b_ref, o_ref):
    o_ref[...] = (jnp.dot(x_ref[...], w_ref[...],
                          preferred_element_type=jnp.float32)
                  + b_ref[...]).astype(o_ref.dtype)


def pallas_lift(x5, w, b):
    M, K = x5.shape
    N = w.shape[1]
    tm = _row_tile(M)
    return pl.pallas_call(
        _lift_kernel,
        out_shape=jax.ShapeDtypeStruct((M, N), jnp.float32),
        grid=(M // tm,),
        in_specs=[pl.BlockSpec((tm, K), lambda i: (i, 0)),
                  pl.BlockSpec((K, N), lambda i: (0, 0)),
                  pl.BlockSpec((1, N), lambda i: (0, 0))],
        out_specs=pl.BlockSpec((tm, N), lambda i: (i, 0)),
        compiler_params=pltpu.CompilerParams(
            dimension_semantics=("parallel",)),
    )(x5, w, b.reshape(1, N))


# ----------------------------------------------------------------------------
# time-embedding kernel: silu(gfp @ We + be) @ Wd_pad + bd_pad  -> (B, 48)
# (only the x-branch channel segment of Wd_pad is non-zero)
# ----------------------------------------------------------------------------
def _tembed_kernel(g_ref, we_ref, be_ref, wd_ref, bd_ref, o_ref):
    e = jnp.dot(g_ref[...], we_ref[...],
                preferred_element_type=jnp.float32) + be_ref[...]
    e = _apply_act(e, "silu")
    o_ref[...] = (jnp.dot(e, wd_ref[...],
                          preferred_element_type=jnp.float32)
                  + bd_ref[...]).astype(o_ref.dtype)


def pallas_time_embed(gfp, we, be, wd_pad, bd_pad):
    B, E = gfp.shape
    C3 = wd_pad.shape[1]
    return pl.pallas_call(
        _tembed_kernel,
        out_shape=jax.ShapeDtypeStruct((B, C3), jnp.float32),
        grid=(1,),
        in_specs=[pl.BlockSpec((B, E), lambda i: (0, 0)),
                  pl.BlockSpec((E, E), lambda i: (0, 0)),
                  pl.BlockSpec((1, E), lambda i: (0, 0)),
                  pl.BlockSpec((E, C3), lambda i: (0, 0)),
                  pl.BlockSpec((1, C3), lambda i: (0, 0))],
        out_specs=pl.BlockSpec((B, C3), lambda i: (0, 0)),
    )(gfp, we, be.reshape(1, E), wd_pad, bd_pad.reshape(1, C3))


# ----------------------------------------------------------------------------
# spectral mixing: per retained frequency, one combined real/imag matmul
#   A_f (B, 2*C3) @ [[Wr, Wi], [-Wi, Wr]]_f (2*C3, 2*C3) = [real | imag]
# All frequencies in 1-2 grid steps; loop over F inside the kernel.
# ----------------------------------------------------------------------------
def _spec_kernel(nf, a_ref, w_ref, o_ref):
    for f in range(nf):                     # static unrolled loop (tiny F)
        o_ref[f] = jnp.dot(a_ref[f], w_ref[f],
                           preferred_element_type=jnp.float32
                           ).astype(o_ref.dtype)


def pallas_spectral_mix(a, w_big):
    F, B, K = a.shape
    G = 2 if F % 2 == 0 else 1              # 2 parallel steps -> both TCs on v7x
    fb = F // G
    return pl.pallas_call(
        functools.partial(_spec_kernel, fb),
        out_shape=jax.ShapeDtypeStruct((F, B, K), jnp.float32),
        grid=(G,),
        in_specs=[pl.BlockSpec((fb, B, K), lambda g: (g, 0, 0)),
                  pl.BlockSpec((fb, K, K), lambda g: (g, 0, 0))],
        out_specs=pl.BlockSpec((fb, B, K), lambda g: (g, 0, 0)),
        compiler_params=pltpu.CompilerParams(
            dimension_semantics=("parallel",)),
    )(a, w_big)


def spectral_conv_all(feat, w_big, m1, m2):
    """SpectralConv2d on all three branches at once (block-diag weights)."""
    B, S1, S2, C3 = feat.shape
    F = 2 * m1 * m2
    x_ft = jnp.fft.rfft2(feat, axes=(1, 2))              # (B,S1,S2//2+1,C3) c64
    c1 = x_ft[:, :m1, :m2, :]
    c2 = x_ft[:, S1 - m1:, :m2, :]
    corners = jnp.concatenate([c1, c2], axis=1)          # (B, 2*m1, m2, C3)
    a = jnp.concatenate([corners.real, corners.imag], axis=-1)
    a = a.reshape(B, F, 2 * C3).transpose(1, 0, 2)       # (F, B, 2*C3)
    o = pallas_spectral_mix(a, w_big)                    # (F, B, 2*C3)
    o = o.transpose(1, 0, 2).reshape(B, 2 * m1, m2, 2 * C3)
    o_c = o[..., :C3] + 1j * o[..., C3:]
    out_ft = jnp.zeros((B, S1, S2 // 2 + 1, C3), jnp.complex64)
    out_ft = out_ft.at[:, :m1, :m2, :].set(o_c[:, :m1])
    out_ft = out_ft.at[:, S1 - m1:, :m2, :].set(o_c[:, m1:])
    return jnp.fft.irfft2(out_ft, s=(S1, S2), axes=(1, 2)).astype(jnp.float32)


# ----------------------------------------------------------------------------
# per-layer fused op:  act( feat @ Wconv + b + spectral + t_embed )
# (Wconv block-diagonal over the three branches; t_embed zero outside x-branch)
# ----------------------------------------------------------------------------
def _conv_kernel(act, x_ref, s_ref, t_ref, w_ref, b_ref, o_ref):
    x = x_ref[0]                                          # (tp, C3)
    acc = jnp.dot(x, w_ref[...], preferred_element_type=jnp.float32)
    acc = acc + b_ref[...] + s_ref[0] + t_ref[0]          # in-kernel broadcast
    o_ref[0] = _apply_act(acc, act).astype(o_ref.dtype)


def pallas_fno_layer(feat, spec, t_pad, w, b, act):
    B, P, C3 = feat.shape
    tp = _row_tile(P)
    return pl.pallas_call(
        functools.partial(_conv_kernel, act),
        out_shape=jax.ShapeDtypeStruct((B, P, C3), jnp.float32),
        grid=(B, P // tp),
        in_specs=[
            pl.BlockSpec((1, tp, C3), lambda b_, p_: (b_, p_, 0)),
            pl.BlockSpec((1, tp, C3), lambda b_, p_: (b_, p_, 0)),
            pl.BlockSpec((1, 1, C3), lambda b_, p_: (b_, 0, 0)),
            pl.BlockSpec((C3, C3), lambda b_, p_: (0, 0)),
            pl.BlockSpec((1, C3), lambda b_, p_: (0, 0)),
        ],
        out_specs=pl.BlockSpec((1, tp, C3), lambda b_, p_: (b_, p_, 0)),
        compiler_params=pltpu.CompilerParams(
            dimension_semantics=("parallel", "parallel")),
    )(feat, spec, t_pad, w, b.reshape(1, C3))


# ----------------------------------------------------------------------------
# fused tail: attention(conv1x1->relu->conv1x1->softmax) -> weighted fold of
# the three streams (pre-folded into fc1 weight) -> fc1+gelu -> fc2 -> /std
# ----------------------------------------------------------------------------
def _tail_kernel(x_ref, aw1_ref, ab1_ref, aw2_ref, ab2_ref,
                 fw1_ref, fb1_ref, fw2_ref, fb2_ref, istd_ref, o_ref):
    x = x_ref[0]                                          # (tp, C3)
    h = jnp.dot(x, aw1_ref[...], preferred_element_type=jnp.float32) + ab1_ref[...]
    h = jnp.maximum(h, 0.0)
    logits = jnp.dot(h, aw2_ref[...],
                     preferred_element_type=jnp.float32) + ab2_ref[...]
    m = jnp.max(logits, axis=-1, keepdims=True)
    e = jnp.exp(logits - m)
    wts = e * pl.reciprocal(jnp.sum(e, axis=-1, keepdims=True), approx=True)
    y = x * wts                                           # (tp, C3)
    # fold of the three 16-wide streams is pre-multiplied into fw1 (48,128)
    h2 = jnp.dot(y, fw1_ref[...], preferred_element_type=jnp.float32) + fb1_ref[...]
    h2 = _apply_act(h2, "gelu")
    out = jnp.dot(h2, fw2_ref[...],
                  preferred_element_type=jnp.float32) + fb2_ref[...]
    o_ref[0] = (out * istd_ref[0]).astype(o_ref.dtype)


def pallas_tail(feat, aw1, ab1, aw2, ab2, fw1f, fb1, fw2, fb2, inv_std):
    B, P, C3 = feat.shape
    Ch = aw1.shape[1]
    H1 = fw1f.shape[1]
    tp = _row_tile(P)
    return pl.pallas_call(
        _tail_kernel,
        out_shape=jax.ShapeDtypeStruct((B, P, 1), jnp.float32),
        grid=(B, P // tp),
        in_specs=[
            pl.BlockSpec((1, tp, C3), lambda b_, p_: (b_, p_, 0)),
            pl.BlockSpec((C3, Ch), lambda b_, p_: (0, 0)),
            pl.BlockSpec((1, Ch), lambda b_, p_: (0, 0)),
            pl.BlockSpec((Ch, C3), lambda b_, p_: (0, 0)),
            pl.BlockSpec((1, C3), lambda b_, p_: (0, 0)),
            pl.BlockSpec((C3, H1), lambda b_, p_: (0, 0)),
            pl.BlockSpec((1, H1), lambda b_, p_: (0, 0)),
            pl.BlockSpec((H1, 1), lambda b_, p_: (0, 0)),
            pl.BlockSpec((1, 1), lambda b_, p_: (0, 0)),
            pl.BlockSpec((1, 1, 1), lambda b_, p_: (b_, 0, 0)),
        ],
        out_specs=pl.BlockSpec((1, tp, 1), lambda b_, p_: (b_, p_, 0)),
        compiler_params=pltpu.CompilerParams(
            dimension_semantics=("parallel", "parallel")),
    )(feat, aw1, ab1.reshape(1, Ch), aw2, ab2.reshape(1, C3),
      fw1f, fb1.reshape(1, H1), fw2, fb2.reshape(1, 1), inv_std)


# ----------------------------------------------------------------------------
# parameters (deterministic, synthetic) + one-time packing
# ----------------------------------------------------------------------------
def init_params(key):
    keys = iter(jax.random.split(key, 256))

    def lin(cin, cout):
        s = 1.0 / math.sqrt(cin)
        w = jax.random.uniform(next(keys), (cin, cout), jnp.float32, -s, s)
        b = jax.random.uniform(next(keys), (cout,), jnp.float32, -s, s)
        return w, b

    def spec(cin, cout, m1, m2):
        scale = 1.0 / (cin * cout)
        def one():
            wr = scale * jax.random.uniform(next(keys), (m1, m2, cin, cout), jnp.float32)
            wi = scale * jax.random.uniform(next(keys), (m1, m2, cin, cout), jnp.float32)
            return wr, wi
        w1r, w1i = one()
        w2r, w2i = one()
        return (w1r, w1i, w2r, w2i)

    def branch_layers():
        return [(spec(WIDTH, WIDTH, MODES1, MODES2), lin(WIDTH, WIDTH))
                for _ in range(4)]

    return {
        "fc0": lin(3, WIDTH),
        "fc0_prev": lin(3, WIDTH),
        "fc0_w": lin(3, WIDTH),
        "gfp_w": jax.random.normal(next(keys), (EMBED_DIM // 2,), jnp.float32) * 30.0,
        "embed_lin": lin(EMBED_DIM, EMBED_DIM),
        "dense0": lin(EMBED_DIM, WIDTH),
        "x_layers": branch_layers(),
        "xp_layers": branch_layers(),
        "w_layers": branch_layers(),
        "attn": (lin(3 * WIDTH, WIDTH), lin(WIDTH, 3 * WIDTH)),
        "fc1": lin(WIDTH, 128),
        "fc2": lin(128, 1),
    }


def pack_params(p):
    """One-time (outside jit) packing into the fused/block-diagonal layout."""
    C = WIDTH
    C3 = 3 * C

    # fused lift: input columns [x, x_prev, w, gridx, gridy]
    w_lift = jnp.zeros((5, C3), jnp.float32)
    for bi, name in enumerate(("fc0", "fc0_prev", "fc0_w")):
        wl, _ = p[name]                           # (3, C): rows [value, gx, gy]
        cols = slice(bi * C, (bi + 1) * C)
        w_lift = w_lift.at[bi, cols].set(wl[0])
        w_lift = w_lift.at[3, cols].set(wl[1])
        w_lift = w_lift.at[4, cols].set(wl[2])
    b_lift = jnp.concatenate([p["fc0"][1], p["fc0_prev"][1], p["fc0_w"][1]])

    def blockdiag3(a, b, c):                      # (..., C, C) x3 -> (..., 3C, 3C)
        z = jnp.zeros(a.shape, a.dtype)
        r0 = jnp.concatenate([a, z, z], axis=-1)
        r1 = jnp.concatenate([z, b, z], axis=-1)
        r2 = jnp.concatenate([z, z, c], axis=-1)
        return jnp.concatenate([r0, r1, r2], axis=-2)

    def freq_stack(spec_w):                       # -> (F, C, C) real / imag
        w1r, w1i, w2r, w2i = spec_w
        wr = jnp.concatenate([w1r.reshape(-1, C, C), w2r.reshape(-1, C, C)], 0)
        wi = jnp.concatenate([w1i.reshape(-1, C, C), w2i.reshape(-1, C, C)], 0)
        return wr, wi

    spec_w, conv_w, conv_b = [], [], []
    for li in range(4):
        xr, xi = freq_stack(p["x_layers"][li][0])
        pr, pi = freq_stack(p["xp_layers"][li][0])
        wr, wi = freq_stack(p["w_layers"][li][0])
        Wr = blockdiag3(xr, pr, wr)               # (F, C3, C3)
        Wi = blockdiag3(xi, pi, wi)
        spec_w.append(jnp.concatenate(            # combined real/imag (F,2C3,2C3)
            [jnp.concatenate([Wr, Wi], axis=-1),
             jnp.concatenate([-Wi, Wr], axis=-1)], axis=-2))

        cwx, cbx = p["x_layers"][li][1]
        cwp, cbp = p["xp_layers"][li][1]
        cww, cbw = p["w_layers"][li][1]
        conv_w.append(blockdiag3(cwx, cwp, cww))  # (C3, C3)
        conv_b.append(jnp.concatenate([cbx, cbp, cbw]))

    wd, bd = p["dense0"]
    wd_pad = jnp.zeros((EMBED_DIM, C3), jnp.float32).at[:, :C].set(wd)
    bd_pad = jnp.zeros((C3,), jnp.float32).at[:C].set(bd)

    (aw1, ab1), (aw2, ab2) = p["attn"]
    fw1, fb1 = p["fc1"]
    fw2, fb2 = p["fc2"]
    fw1_folded = jnp.concatenate([fw1, fw1, fw1], axis=0)   # [I;I;I] @ fc1

    return dict(
        w_lift=w_lift, b_lift=b_lift,
        gfp_w=p["gfp_w"],
        embed_we=p["embed_lin"][0], embed_be=p["embed_lin"][1],
        wd_pad=wd_pad, bd_pad=bd_pad,
        spec_w=spec_w, conv_w=conv_w, conv_b=conv_b,
        aw1=aw1, ab1=ab1, aw2=aw2, ab2=ab2,
        fw1f=fw1_folded, fb1=fb1, fw2=fw2, fb2=fb2,
    )


def marginal_prob_std(t, sigma=SIGMA):
    return jnp.sqrt((sigma ** (2.0 * t) - 1.0) / (2.0 * math.log(sigma)))


def get_grid(B, S1, S2):
    gx = jnp.broadcast_to(jnp.linspace(0.0, 1.0, S1).reshape(1, S1, 1, 1),
                          (B, S1, S2, 1))
    gy = jnp.broadcast_to(jnp.linspace(0.0, 1.0, S2).reshape(1, 1, S2, 1),
                          (B, S1, S2, 1))
    return jnp.concatenate([gx, gy], axis=-1)


# ----------------------------------------------------------------------------
# forward pass
# ----------------------------------------------------------------------------
def fno2d_prev_forward(pp, t, x, x_prev, w):
    B, S1, S2 = x.shape
    C3 = 3 * WIDTH
    P = S1 * S2

    # ---- fused lift of all three branches: (M,5) @ (5,48) ----
    grid = get_grid(B, S1, S2)
    x5 = jnp.concatenate([x[..., None], x_prev[..., None], w[..., None], grid],
                         axis=-1)                       # (B,S1,S2,5)
    feat = pallas_lift(x5.reshape(-1, 5), pp["w_lift"], pp["b_lift"])
    feat = feat.reshape(B, S1, S2, C3)

    # ---- time embedding (GFP -> Linear -> swish -> Dense), padded to 48 ----
    # Interpreted as a per-(batch, channel) bias broadcast over H, W — the
    # intent of Dense(...)[..., None, None] in the reference implementation.
    proj = t[:, None] * pp["gfp_w"][None, :] * (2.0 * math.pi)
    gfp = jnp.concatenate([jnp.sin(proj), jnp.cos(proj)], axis=-1)    # (B, E)
    t_pad = pallas_time_embed(gfp, pp["embed_we"], pp["embed_be"],
                              pp["wd_pad"], pp["bd_pad"])             # (B, C3)
    t_pad = t_pad.reshape(B, 1, C3)        # broadcast happens inside the kernel

    # ---- 4 FNO layers, all three branches fused (block-diagonal weights) ----
    for li in range(4):
        spec_sp = spectral_conv_all(feat, pp["spec_w"][li], MODES1, MODES2)
        act = "gelu" if li < 3 else "none"
        feat = pallas_fno_layer(feat.reshape(B, P, C3),
                                spec_sp.reshape(B, P, C3),
                                t_pad, pp["conv_w"][li], pp["conv_b"][li], act)
        feat = feat.reshape(B, S1, S2, C3)

    # ---- fused tail: attention + fold + fc1(gelu) + fc2 + /std ----
    inv_std = (1.0 / marginal_prob_std(t)).reshape(B, 1, 1)
    out = pallas_tail(feat.reshape(B, P, C3),
                      pp["aw1"], pp["ab1"], pp["aw2"], pp["ab2"],
                      pp["fw1f"], pp["fb1"], pp["fw2"], pp["fb2"], inv_std)
    return out.reshape(B, S1, S2)


# ----------------------------------------------------------------------------
if __name__ == "__main__":
    key = jax.random.PRNGKey(0)
    k_param, k_x, k_xp, k_w, k_t = jax.random.split(key, 5)

    B, S = 2, 16
    raw_params = init_params(k_param)
    packed = pack_params(raw_params)          # one-time packing, outside jit

    x = jax.random.normal(k_x, (B, S, S), jnp.float32)
    x_prev = jax.random.normal(k_xp, (B, S, S), jnp.float32)
    w = jax.random.normal(k_w, (B, S, S), jnp.float32)
    t = jax.random.uniform(k_t, (B,), jnp.float32, 0.1, 1.0)

    fwd = jax.jit(fno2d_prev_forward)
    out = jax.block_until_ready(fwd(packed, t, x, x_prev, w))

    assert out.shape == (B, S, S)
    assert bool(jnp.all(jnp.isfinite(out)))
    print("KERNEL_OK")
</pallas_src>

<mosaic_0001>
module attributes {stable_mosaic.version = 11 : i64} {
  func.func @_lift_kernel(%arg0: i32, %arg1: memref<512x5xf32, #tpu.memory_space<vmem>>, %arg2: memref<5x48xf32, #tpu.memory_space<vmem>>, %arg3: memref<1x48xf32, #tpu.memory_space<vmem>>, %arg4: memref<512x48xf32, #tpu.memory_space<vmem>>) attributes {dimension_semantics = [#tpu.dimension_semantics<parallel>], iteration_bounds = array<i64: 1>, scalar_prefetch = 0 : i64, scratch_operands = 0 : i64, tpu.core_type = #tpu.core_type<tc>, window_params = [{transform_indices = @transform_0, window_bounds = array<i64: 512, 5>}, {pipeline_mode = #tpu.pipeline_mode<synchronous>, transform_indices = @transform_1, window_bounds = array<i64: 5, 48>}, {pipeline_mode = #tpu.pipeline_mode<synchronous>, transform_indices = @transform_2, window_bounds = array<i64: 1, 48>}, {transform_indices = @transform_3, window_bounds = array<i64: 512, 48>}]} {
    %c0 = arith.constant 0 : index
    %c0_0 = arith.constant 0 : index
    %0 = vector.load %arg1[%c0, %c0_0] : memref<512x5xf32, #tpu.memory_space<vmem>>, vector<512x5xf32>
    %c0_1 = arith.constant 0 : index
    %c0_2 = arith.constant 0 : index
    %1 = vector.load %arg2[%c0_1, %c0_2] : memref<5x48xf32, #tpu.memory_space<vmem>>, vector<5x48xf32>
    %cst = arith.constant dense<0.000000e+00> : vector<512x48xf32>
    %2 = tpu.matmul %0, %1, %cst {dimension_numbers = #tpu.dot_dimension_numbers<[1], [0], [0], [1], [0, 0, 1, 1], [], []>} : vector<512x5xf32>, vector<5x48xf32>, vector<512x48xf32> -> vector<512x48xf32>
    %c0_3 = arith.constant 0 : index
    %c0_4 = arith.constant 0 : index
    %3 = vector.load %arg3[%c0_3, %c0_4] : memref<1x48xf32, #tpu.memory_space<vmem>>, vector<1x48xf32>
    %4 = vector.broadcast %3 : vector<1x48xf32> to vector<512x48xf32>
    %5 = arith.addf %2, %4 : vector<512x48xf32>
    %c0_5 = arith.constant 0 : index
    %c0_6 = arith.constant 0 : index
    %6 = vector.load %arg4[%c0_5, %c0_6] : memref<512x48xf32, #tpu.memory_space<vmem>>, vector<512x48xf32>
    tpu.vector_store %arg4[%c0_5, %c0_6], %5 {strides = array<i32>} : memref<512x48xf32, #tpu.memory_space<vmem>>, vector<512x48xf32>,
    return
  }
  func.func @transform_0(%arg0: i32) -> (i32, i32) {
    %c0_i32 = arith.constant 0 : i32
    %c0_i32_0 = arith.constant 0 : i32
    return %arg0, %c0_i32 : i32, i32
  }
  func.func @transform_1(%arg0: i32) -> (i32, i32) {
    %c0_i32 = arith.constant 0 : i32
    %c0_i32_0 = arith.constant 0 : i32
    %c0_i32_1 = arith.constant 0 : i32
    return %c0_i32, %c0_i32_0 : i32, i32
  }
  func.func @transform_2(%arg0: i32) -> (i32, i32) {
    %c0_i32 = arith.constant 0 : i32
    %c0_i32_0 = arith.constant 0 : i32
    %c0_i32_1 = arith.constant 0 : i32
    return %c0_i32, %c0_i32_0 : i32, i32
  }
  func.func @transform_3(%arg0: i32) -> (i32, i32) {
    %c0_i32 = arith.constant 0 : i32
    %c0_i32_0 = arith.constant 0 : i32
    return %arg0, %c0_i32 : i32, i32
  }
}

module attributes {stable_mosaic.version = 11 : i64} {
  func.func @_spec_kernel(%arg0: i32, %arg1: memref<16x2x96xf32, #tpu.memory_space<vmem>>, %arg2: memref<16x96x96xf32, #tpu.memory_space<vmem>>, %arg3: memref<16x2x96xf32, #tpu.memory_space<vmem>>) attributes {dimension_semantics = [#tpu.dimension_semantics<parallel>], iteration_bounds = array<i64: 2>, scalar_prefetch = 0 : i64, scratch_operands = 0 : i64, tpu.core_type = #tpu.core_type<tc>, window_params = [{transform_indices = @transform_0, window_bounds = array<i64: 16, 2, 96>}, {transform_indices = @transform_1, window_bounds = array<i64: 16, 96, 96>}, {transform_indices = @transform_2, window_bounds = array<i64: 16, 2, 96>}]} {
    %c0 = arith.constant 0 : index
    %c0_0 = arith.constant 0 : index
    %c0_1 = arith.constant 0 : index
    %0 = vector.load %arg1[%c0, %c0_0, %c0_1] : memref<16x2x96xf32, #tpu.memory_space<vmem>>, vector<1x2x96xf32>
    %1 = vector.shape_cast %0 : vector<1x2x96xf32> to vector<2x96xf32>
    %c0_2 = arith.constant 0 : index
    %c0_3 = arith.constant 0 : index
    %c0_4 = arith.constant 0 : index
    %2 = vector.load %arg2[%c0_2, %c0_3, %c0_4] : memref<16x96x96xf32, #tpu.memory_space<vmem>>, vector<1x96x96xf32>
    %3 = vector.shape_cast %2 : vector<1x96x96xf32> to vector<96x96xf32>
    %cst = arith.constant dense<0.000000e+00> : vector<2x96xf32>
    %4 = tpu.matmul %1, %3, %cst {dimension_numbers = #tpu.dot_dimension_numbers<[1], [0], [0], [1], [0, 0, 1, 1], [], []>} : vector<2x96xf32>, vector<96x96xf32>, vector<2x96xf32> -> vector<2x96xf32>
    %c0_5 = arith.constant 0 : index
    %c0_6 = arith.constant 0 : index
    %c0_7 = arith.constant 0 : index
    %5 = vector.load %arg3[%c0_5, %c0_6, %c0_7] : memref<16x2x96xf32, #tpu.memory_space<vmem>>, vector<1x2x96xf32>
    %6 = vector.shape_cast %5 : vector<1x2x96xf32> to vector<2x96xf32>
    %7 = vector.shape_cast %4 : vector<2x96xf32> to vector<1x2x96xf32>
    tpu.vector_store %arg3[%c0_5, %c0_6, %c0_7], %7 {strides = array<i32>} : memref<16x2x96xf32, #tpu.memory_space<vmem>>, vector<1x2x96xf32>,
    %c1 = arith.constant 1 : index
    %c0_8 = arith.constant 0 : index
    %c0_9 = arith.constant 0 : index
    %8 = vector.load %arg1[%c1, %c0_8, %c0_9] : memref<16x2x96xf32, #tpu.memory_space<vmem>>, vector<1x2x96xf32>
    %9 = vector.shape_cast %8 : vector<1x2x96xf32> to vector<2x96xf32>
    %c1_10 = arith.constant 1 : index
    %c0_11 = arith.constant 0 : index
    %c0_12 = arith.constant 0 : index
    %10 = vector.load %arg2[%c1_10, %c0_11, %c0_12] : memref<16x96x96xf32, #tpu.memory_space<vmem>>, vector<1x96x96xf32>
    %11 = vector.shape_cast %10 : vector<1x96x96xf32> to vector<96x96xf32>
    %cst_13 = arith.constant dense<0.000000e+00> : vector<2x96xf32>
    %12 = tpu.matmul %9, %11, %cst_13 {dimension_numbers = #tpu.dot_dimension_numbers<[1], [0], [0], [1], [0, 0, 1, 1], [], []>} : vector<2x96xf32>, vector<96x96xf32>, vector<2x96xf32> -> vector<2x96xf32>
    %c1_14 = arith.constant 1 : index
    %c0_15 = arith.constant 0 : index
    %c0_16 = arith.constant 0 : index
    %13 = vector.load %arg3[%c1_14, %c0_15, %c0_16] : memref<16x2x96xf32, #tpu.memory_space<vmem>>, vector<1x2x96xf32>
    %14 = vector.shape_cast %13 : vector<1x2x96xf32> to vector<2x96xf32>
    %15 = vector.shape_cast %12 : vector<2x96xf32> to vector<1x2x96xf32>
    tpu.vector_store %arg3[%c1_14, %c0_15, %c0_16], %15 {strides = array<i32>} : memref<16x2x96xf32, #tpu.memory_space<vmem>>, vector<1x2x96xf32>,
    %c2 = arith.constant 2 : index
    %c0_17 = arith.constant 0 : index
    %c0_18 = arith.constant 0 : index
    %16 = vector.load %arg1[%c2, %c0_17, %c0_18] : memref<16x2x96xf32, #tpu.memory_space<vmem>>, vector<1x2x96xf32>
    %17 = vector.shape_cast %16 : vector<1x2x96xf32> to vector<2x96xf32>
    %c2_19 = arith.constant 2 : index
    %c0_20 = arith.constant 0 : index
    %c0_21 = arith.constant 0 : index
    %18 = vector.load %arg2[%c2_19, %c0_20, %c0_21] : memref<16x96x96xf32, #tpu.memory_space<vmem>>, vector<1x96x96xf32>
    %19 = vector.shape_cast %18 : vector<1x96x96xf32> to vector<96x96xf32>
    %cst_22 = arith.constant dense<0.000000e+00> : vector<2x96xf32>
    %20 = tpu.matmul %17, %19, %cst_22 {dimension_numbers = #tpu.dot_dimension_numbers<[1], [0], [0], [1], [0, 0, 1, 1], [], []>} : vector<2x96xf32>, vector<96x96xf32>, vector<2x96xf32> -> vector<2x96xf32>
    %c2_23 = arith.constant 2 : index
    %c0_24 = arith.constant 0 : index
    %c0_25 = arith.constant 0 : index
    %21 = vector.load %arg3[%c2_23, %c0_24, %c0_25] : memref<16x2x96xf32, #tpu.memory_space<vmem>>, vector<1x2x96xf32>
    %22 = vector.shape_cast %21 : vector<1x2x96xf32> to vector<2x96xf32>
    %23 = vector.shape_cast %20 : vector<2x96xf32> to vector<1x2x96xf32>
    tpu.vector_store %arg3[%c2_23, %c0_24, %c0_25], %23 {strides = array<i32>} : memref<16x2x96xf32, #tpu.memory_space<vmem>>, vector<1x2x96xf32>,
    %c3 = arith.constant 3 : index
    %c0_26 = arith.constant 0 : index
    %c0_27 = arith.constant 0 : index
    %24 = vector.load %arg1[%c3, %c0_26, %c0_27] : memref<16x2x96xf32, #tpu.memory_space<vmem>>, vector<1x2x96xf32>
    %25 = vector.shape_cast %24 : vector<1x2x96xf32> to vector<2x96xf32>
    %c3_28 = arith.constant 3 : index
    %c0_29 = arith.constant 0 : index
    %c0_30 = arith.constant 0 : index
    %26 = vector.load %arg2[%c3_28, %c0_29, %c0_30] : memref<16x96x96xf32, #tpu.memory_space<vmem>>, vector<1x96x96xf32>
    %27 = vector.shape_cast %26 : vector<1x96x96xf32> to vector<96x96xf32>
    %cst_31 = arith.constant dense<0.000000e+00> : vector<2x96xf32>
    %28 = tpu.matmul %25, %27, %cst_31 {dimension_numbers = #tpu.dot_dimension_numbers<[1], [0], [0], [1], [0, 0, 1, 1], [], []>} : vector<2x96xf32>, vector<96x96xf32>, vector<2x96xf32> -> vector<2x96xf32>
    %c3_32 = arith.constant 3 : index
    %c0_33 = arith.constant 0 : index
    %c0_34 = arith.constant 0 : index
    %29 = vector.load %arg3[%c3_32, %c0_33, %c0_34] : memref<16x2x96xf32, #tpu.memory_space<vmem>>, vector<1x2x96xf32>
    %30 = vector.shape_cast %29 : vector<1x2x96xf32> to vector<2x96xf32>
    %31 = vector.shape_cast %28 : vector<2x96xf32> to vector<1x2x96xf32>
    tpu.vector_store %arg3[%c3_32, %c0_33, %c0_34], %31 {strides = array<i32>} : memref<16x2x96xf32, #tpu.memory_space<vmem>>, vector<1x2x96xf32>,
    %c4 = arith.constant 4 : index
    %c0_35 = arith.constant 0 : index
    %c0_36 = arith.constant 0 : index
    %32 = vector.load %arg1[%c4, %c0_35, %c0_36] : memref<16x2x96xf32, #tpu.memory_space<vmem>>, vector<1x2x96xf32>
    %33 = vector.shape_cast %32 : vector<1x2x96xf32> to vector<2x96xf32>
    %c4_37 = arith.constant 4 : index
    %c0_38 = arith.constant 0 : index
    %c0_39 = arith.constant 0 : index
    %34 = vector.load %arg2[%c4_37, %c0_38, %c0_39] : memref<16x96x96xf32, #tpu.memory_space<vmem>>, vector<1x96x96xf32>
    %35 = vector.shape_cast %34 : vector<1x96x96xf32> to vector<96x96xf32>
    %cst_40 = arith.constant dense<0.000000e+00> : vector<2x96xf32>
    %36 = tpu.matmul %33, %35, %cst_40 {dimension_numbers = #tpu.dot_dimension_numbers<[1], [0], [0], [1], [0, 0, 1, 1], [], []>} : vector<2x96xf32>, vector<96x96xf32>, vector<2x96xf32> -> vector<2x96xf32>
    %c4_41 = arith.constant 4 : index
    %c0_42 = arith.constant 0 : index
    %c0_43 = arith.constant 0 : index
    %37 = vector.load %arg3[%c4_41, %c0_42, %c0_43] : memref<16x2x96xf32, #tpu.memory_space<vmem>>, vector<1x2x96xf32>
    %38 = vector.shape_cast %37 : vector<1x2x96xf32> to vector<2x96xf32>
    %39 = vector.shape_cast %36 : vector<2x96xf32> to vector<1x2x96xf32>
    tpu.vector_store %arg3[%c4_41, %c0_42, %c0_43], %39 {strides = array<i32>} : memref<16x2x96xf32, #tpu.memory_space<vmem>>, vector<1x2x96xf32>,
    %c5 = arith.constant 5 : index
    %c0_44 = arith.constant 0 : index
    %c0_45 = arith.constant 0 : index
    %40 = vector.load %arg1[%c5, %c0_44, %c0_45] : memref<16x2x96xf32, #tpu.memory_space<vmem>>, vector<1x2x96xf32>
    %41 = vector.shape_cast %40 : vector<1x2x96xf32> to vector<2x96xf32>
    %c5_46 = arith.constant 5 : index
    %c0_47 = arith.constant 0 : index
    %c0_48 = arith.constant 0 : index
    %42 = vector.load %arg2[%c5_46, %c0_47, %c0_48] : memref<16x96x96xf32, #tpu.memory_space<vmem>>, vector<1x96x96xf32>
    %43 = vector.shape_cast %42 : vector<1x96x96xf32> to vector<96x96xf32>
    %cst_49 = arith.constant dense<0.000000e+00> : vector<2x96xf32>
    %44 = tpu.matmul %41, %43, %cst_49 {dimension_numbers = #tpu.dot_dimension_numbers<[1], [0], [0], [1], [0, 0, 1, 1], [], []>} : vector<2x96xf32>, vector<96x96xf32>, vector<2x96xf32> -> vector<2x96xf32>
    %c5_50 = arith.constant 5 : index
    %c0_51 = arith.constant 0 : index
    %c0_52 = arith.constant 0 : index
    %45 = vector.load %arg3[%c5_50, %c0_51, %c0_52] : memref<16x2x96xf32, #tpu.memory_space<vmem>>, vector<1x2x96xf32>
    %46 = vector.shape_cast %45 : vector<1x2x96xf32> to vector<2x96xf32>
    %47 = vector.shape_cast %44 : vector<2x96xf32> to vector<1x2x96xf32>
    tpu.vector_store %arg3[%c5_50, %c0_51, %c0_52], %47 {strides = array<i32>} : memref<16x2x96xf32, #tpu.memory_space<vmem>>, vector<1x2x96xf32>,
    %c6 = arith.constant 6 : index
    %c0_53 = arith.constant 0 : index
    %c0_54 = arith.constant 0 : index
    %48 = vector.load %arg1[%c6, %c0_53, %c0_54] : memref<16x2x96xf32, #tpu.memory_space<vmem>>, vector<1x2x96xf32>
    %49 = vector.shape_cast %48 : vector<1x2x96xf32> to vector<2x96xf32>
    %c6_55 = arith.constant 6 : index
    %c0_56 = arith.constant 0 : index
    %c0_57 = arith.constant 0 : index
    %50 = vector.load %arg2[%c6_55, %c0_56, %c0_57] : memref<16x96x96xf32, #tpu.memory_space<vmem>>, vector<1x96x96xf32>
    %51 = vector.shape_cast %50 : vector<1x96x96xf32> to vector<96x96xf32>
    %cst_58 = arith.constant dense<0.000000e+00> : vector<2x96xf32>
    %52 = tpu.matmul %49, %51, %cst_58 {dimension_numbers = #tpu.dot_dimension_numbers<[1], [0], [0], [1], [0, 0, 1, 1], [], []>} : vector<2x96xf32>, vector<96x96xf32>, vector<2x96xf32> -> vector<2x96xf32>
    %c6_59 = arith.constant 6 : index
    %c0_60 = arith.constant 0 : index
    %c0_61 = arith.constant 0 : index
    %53 = vector.load %arg3[%c6_59, %c0_60, %c0_61] : memref<16x2x96xf32, #tpu.memory_space<vmem>>, vector<1x2x96xf32>
    %54 = vector.shape_cast %53 : vector<1x2x96xf32> to vector<2x96xf32>
    %55 = vector.shape_cast %52 : vector<2x96xf32> to vector<1x2x96xf32>
    tpu.vector_store %arg3[%c6_59, %c0_60, %c0_61], %55 {strides = array<i32>} : memref<16x2x96xf32, #tpu.memory_space<vmem>>, vector<1x2x96xf32>,
    %c7 = arith.constant 7 : index
    %c0_62 = arith.constant 0 : index
    %c0_63 = arith.constant 0 : index
    %56 = vector.load %arg1[%c7, %c0_62, %c0_63] : memref<16x2x96xf32, #tpu.memory_space<vmem>>, vector<1x2x96xf32>
    %57 = vector.shape_cast %56 : vector<1x2x96xf32> to vector<2x96xf32>
    %c7_64 = arith.constant 7 : index
    %c0_65 = arith.constant 0 : index
    %c0_66 = arith.constant 0 : index
    %58 = vector.load %arg2[%c7_64, %c0_65, %c0_66] : memref<16x96x96xf32, #tpu.memory_space<vmem>>, vector<1x96x96xf32>
    %59 = vector.shape_cast %58 : vector<1x96x96xf32> to vector<96x96xf32>
    %cst_67 = arith.constant dense<0.000000e+00> : vector<2x96xf32>
    %60 = tpu.matmul %57, %59, %cst_67 {dimension_numbers = #tpu.dot_dimension_numbers<[1], [0], [0], [1], [0, 0, 1, 1], [], []>} : vector<2x96xf32>, vector<96x96xf32>, vector<2x96xf32> -> vector<2x96xf32>
    %c7_68 = arith.constant 7 : index
    %c0_69 = arith.constant 0 : index
    %c0_70 = arith.constant 0 : index
    %61 = vector.load %arg3[%c7_68, %c0_69, %c0_70] : memref<16x2x96xf32, #tpu.memory_space<vmem>>, vector<1x2x96xf32>
    %62 = vector.shape_cast %61 : vector<1x2x96xf32> to vector<2x96xf32>
    %63 = vector.shape_cast %60 : vector<2x96xf32> to vector<1x2x96xf32>
    tpu.vector_store %arg3[%c7_68, %c0_69, %c0_70], %63 {strides = array<i32>} : memref<16x2x96xf32, #tpu.memory_space<vmem>>, vector<1x2x96xf32>,
    %c8 = arith.constant 8 : index
    %c0_71 = arith.constant 0 : index
    %c0_72 = arith.constant 0 : index
    %64 = vector.load %arg1[%c8, %c0_71, %c0_72] : memref<16x2x96xf32, #tpu.memory_space<vmem>>, vector<1x2x96xf32>
    %65 = vector.shape_cast %64 : vector<1x2x96xf32> to vector<2x96xf32>
    %c8_73 = arith.constant 8 : index
    %c0_74 = arith.constant 0 : index
    %c0_75 = arith.constant 0 : index
    %66 = vector.load %arg2[%c8_73, %c0_74, %c0_75] : memref<16x96x96xf32, #tpu.memory_space<vmem>>, vector<1x96x96xf32>
    %67 = vector.shape_cast %66 : vector<1x96x96xf32> to vector<96x96xf32>
    %cst_76 = arith.constant dense<0.000000e+00> : vector<2x96xf32>
    %68 = tpu.matmul %65, %67, %cst_76 {dimension_numbers = #tpu.dot_dimension_numbers<[1], [0], [0], [1], [0, 0, 1, 1], [], []>} : vector<2x96xf32>, vector<96x96xf32>, vector<2x96xf32> -> vector<2x96xf32>
    %c8_77 = arith.constant 8 : index
    %c0_78 = arith.constant 0 : index
    %c0_79 = arith.constant 0 : index
    %69 = vector.load %arg3[%c8_77, %c0_78, %c0_79] : memref<16x2x96xf32, #tpu.memory_space<vmem>>, vector<1x2x96xf32>
    %70 = vector.shape_cast %69 : vector<1x2x96xf32> to vector<2x96xf32>
    %71 = vector.shape_cast %68 : vector<2x96xf32> to vector<1x2x96xf32>
    tpu.vector_store %arg3[%c8_77, %c0_78, %c0_79], %71 {strides = array<i32>} : memref<16x2x96xf32, #tpu.memory_space<vmem>>, vector<1x2x96xf32>,
    %c9 = arith.constant 9 : index
    %c0_80 = arith.constant 0 : index
    %c0_81 = arith.constant 0 : index
    %72 = vector.load %arg1[%c9, %c0_80, %c0_81] : memref<16x2x96xf32, #tpu.memory_space<vmem>>, vector<1x2x96xf32>
    %73 = vector.shape_cast %72 : vector<1x2x96xf32> to vector<2x96xf32>
    %c9_82 = arith.constant 9 : index
    %c0_83 = arith.constant 0 : index
    %c0_84 = arith.constant 0 : index
    %74 = vector.load %arg2[%c9_82, %c0_83, %c0_84] : memref<16x96x96xf32, #tpu.memory_space<vmem>>, vector<1x96x96xf32>
    %75 = vector.shape_cast %74 : vector<1x96x96xf32> to vector<96x96xf32>
    %cst_85 = arith.constant dense<0.000000e+00> : vector<2x96xf32>
    %76 = tpu.matmul %73, %75, %cst_85 {dimension_numbers = #tpu.dot_dimension_numbers<[1], [0], [0], [1], [0, 0, 1, 1], [], []>} : vector<2x96xf32>, vector<96x96xf32>, vector<2x96xf32> -> vector<2x96xf32>
    %c9_86 = arith.constant 9 : index
    %c0_87 = arith.constant 0 : index
    %c0_88 = arith.constant 0 : index
    %77 = vector.load %arg3[%c9_86, %c0_87, %c0_88] : memref<16x2x96xf32, #tpu.memory_space<vmem>>, vector<1x2x96xf32>
    %78 = vector.shape_cast %77 : vector<1x2x96xf32> to vector<2x96xf32>
    %79 = vector.shape_cast %76 : vector<2x96xf32> to vector<1x2x96xf32>
    tpu.vector_store %arg3[%c9_86, %c0_87, %c0_88], %79 {strides = array<i32>} : memref<16x2x96xf32, #tpu.memory_space<vmem>>, vector<1x2x96xf32>,
    %c10 = arith.constant 10 : index
    %c0_89 = arith.constant 0 : index
    %c0_90 = arith.constant 0 : index
    %80 = vector.load %arg1[%c10, %c0_89, %c0_90] : memref<16x2x96xf32, #tpu.memory_space<vmem>>, vector<1x2x96xf32>
    %81 = vector.shape_cast %80 : vector<1x2x96xf32> to vector<2x96xf32>
    %c10_91 = arith.constant 10 : index
    %c0_92 = arith.constant 0 : index
    %c0_93 = arith.constant 0 : index
    %82 = vector.load %arg2[%c10_91, %c0_92, %c0_93] : memref<16x96x96xf32, #tpu.memory_space<vmem>>, vector<1x96x96xf32>
    %83 = vector.shape_cast %82 : vector<1x96x96xf32> to vector<96x96xf32>
    %cst_94 = arith.constant dense<0.000000e+00> : vector<2x96xf32>
    %84 = tpu.matmul %81, %83, %cst_94 {dimension_numbers = #tpu.dot_dimension_numbers<[1], [0], [0], [1], [0, 0, 1, 1], [], []>} : vector<2x96xf32>, vector<96x96xf32>, vector<2x96xf32> -> vector<2x96xf32>
    %c10_95 = arith.constant 10 : index
    %c0_96 = arith.constant 0 : index
    %c0_97 = arith.constant 0 : index
    %85 = vector.load %arg3[%c10_95, %c0_96, %c0_97] : memref<16x2x96xf32, #tpu.memory_space<vmem>>, vector<1x2x96xf32>
    %86 = vector.shape_cast %85 : vector<1x2x96xf32> to vector<2x96xf32>
    %87 = vector.shape_cast %84 : vector<2x96xf32> to vector<1x2x96xf32>
    tpu.vector_store %arg3[%c10_95, %c0_96, %c0_97], %87 {strides = array<i32>} : memref<16x2x96xf32, #tpu.memory_space<vmem>>, vector<1x2x96xf32>,
    %c11 = arith.constant 11 : index
    %c0_98 = arith.constant 0 : index
    %c0_99 = arith.constant 0 : index
    %88 = vector.load %arg1[%c11, %c0_98, %c0_99] : memref<16x2x96xf32, #tpu.memory_space<vmem>>, vector<1x2x96xf32>
    %89 = vector.shape_cast %88 : vector<1x2x96xf32> to vector<2x96xf32>
    %c11_100 = arith.constant 11 : index
    %c0_101 = arith.constant 0 : index
    %c0_102 = arith.constant 0 : index
    %90 = vector.load %arg2[%c11_100, %c0_101, %c0_102] : memref<16x96x96xf32, #tpu.memory_space<vmem>>, vector<1x96x96xf32>
    %91 = vector.shape_cast %90 : vector<1x96x96xf32> to vector<96x96xf32>
    %cst_103 = arith.constant dense<0.000000e+00> : vector<2x96xf32>
    %92 = tpu.matmul %89, %91, %cst_103 {dimension_numbers = #tpu.dot_dimension_numbers<[1], [0], [0], [1], [0, 0, 1, 1], [], []>} : vector<2x96xf32>, vector<96x96xf32>, vector<2x96xf32> -> vector<2x96xf32>
    %c11_104 = arith.constant 11 : index
    %c0_105 = arith.constant 0 : index
    %c0_106 = arith.constant 0 : index
    %93 = vector.load %arg3[%c11_104, %c0_105, %c0_106] : memref<16x2x96xf32, #tpu.memory_space<vmem>>, vector<1x2x96xf32>
    %94 = vector.shape_cast %93 : vector<1x2x96xf32> to vector<2x96xf32>
    %95 = vector.shape_cast %92 : vector<2x96xf32> to vector<1x2x96xf32>
    tpu.vector_store %arg3[%c11_104, %c0_105, %c0_106], %95 {strides = array<i32>} : memref<16x2x96xf32, #tpu.memory_space<vmem>>, vector<1x2x96xf32>,
    %c12 = arith.constant 12 : index
    %c0_107 = arith.constant 0 : index
    %c0_108 = arith.constant 0 : index
    %96 = vector.load %arg1[%c12, %c0_107, %c0_108] : memref<16x2x96xf32, #tpu.memory_space<vmem>>, vector<1x2x96xf32>
    %97 = vector.shape_cast %96 : vector<1x2x96xf32> to vector<2x96xf32>
    %c12_109 = arith.constant 12 : index
    %c0_110 = arith.constant 0 : index
    %c0_111 = arith.constant 0 : index
    %98 = vector.load %arg2[%c12_109, %c0_110, %c0_111] : memref<16x96x96xf32, #tpu.memory_space<vmem>>, vector<1x96x96xf32>
    %99 = vector.shape_cast %98 : vector<1x96x96xf32> to vector<96x96xf32>
    %cst_112 = arith.constant dense<0.000000e+00> : vector<2x96xf32>
    %100 = tpu.matmul %97, %99, %cst_112 {dimension_numbers = #tpu.dot_dimension_numbers<[1], [0], [0], [1], [0, 0, 1, 1], [], []>} : vector<2x96xf32>, vector<96x96xf32>, vector<2x96xf32> -> vector<2x96xf32>
    %c12_113 = arith.constant 12 : index
    %c0_114 = arith.constant 0 : index
    %c0_115 = arith.constant 0 : index
    %101 = vector.load %arg3[%c12_113, %c0_114, %c0_115] : memref<16x2x96xf32, #tpu.memory_space<vmem>>, vector<1x2x96xf32>
    %102 = vector.shape_cast %101 : vector<1x2x96xf32> to vector<2x96xf32>
    %103 = vector.shape_cast %100 : vector<2x96xf32> to vector<1x2x96xf32>
    tpu.vector_store %arg3[%c12_113, %c0_114, %c0_115], %103 {strides = array<i32>} : memref<16x2x96xf32, #tpu.memory_space<vmem>>, vector<1x2x96xf32>,
    %c13 = arith.constant 13 : index
    %c0_116 = arith.constant 0 : index
    %c0_117 = arith.constant 0 : index
    %104 = vector.load %arg1[%c13, %c0_116, %c0_117] : memref<16x2x96xf32, #tpu.memory_space<vmem>>, vector<1x2x96xf32>
    %105 = vector.shape_cast %104 : vector<1x2x96xf32> to vector<2x96xf32>
    %c13_118 = arith.constant 13 : index
    %c0_119 = arith.constant 0 : index
    %c0_120 = arith.constant 0 : index
    %106 = vector.load %arg2[%c13_118, %c0_119, %c0_120] : memref<16x96x96xf32, #tpu.memory_space<vmem>>, vector<1x96x96xf32>
    %107 = vector.shape_cast %106 : vector<1x96x96xf32> to vector<96x96xf32>
    %cst_121 = arith.constant dense<0.000000e+00> : vector<2x96xf32>
    %108 = tpu.matmul %105, %107, %cst_121 {dimension_numbers = #tpu.dot_dimension_numbers<[1], [0], [0], [1], [0, 0, 1, 1], [], []>} : vector<2x96xf32>, vector<96x96xf32>, vector<2x96xf32> -> vector<2x96xf32>
    %c13_122 = arith.constant 13 : index
    %c0_123 = arith.constant 0 : index
    %c0_124 = arith.constant 0 : index
    %109 = vector.load %arg3[%c13_122, %c0_123, %c0_124] : memref<16x2x96xf32, #tpu.memory_space<vmem>>, vector<1x2x96xf32>
    %110 = vector.shape_cast %109 : vector<1x2x96xf32> to vector<2x96xf32>
    %111 = vector.shape_cast %108 : vector<2x96xf32> to vector<1x2x96xf32>
    tpu.vector_store %arg3[%c13_122, %c0_123, %c0_124], %111 {strides = array<i32>} : memref<16x2x96xf32, #tpu.memory_space<vmem>>, vector<1x2x96xf32>,
    %c14 = arith.constant 14 : index
    %c0_125 = arith.constant 0 : index
    %c0_126 = arith.constant 0 : index
    %112 = vector.load %arg1[%c14, %c0_125, %c0_126] : memref<16x2x96xf32, #tpu.memory_space<vmem>>, vector<1x2x96xf32>
    %113 = vector.shape_cast %112 : vector<1x2x96xf32> to vector<2x96xf32>
    %c14_127 = arith.constant 14 : index
    %c0_128 = arith.constant 0 : index
    %c0_129 = arith.constant 0 : index
    %114 = vector.load %arg2[%c14_127, %c0_128, %c0_129] : memref<16x96x96xf32, #tpu.memory_space<vmem>>, vector<1x96x96xf32>
    %115 = vector.shape_cast %114 : vector<1x96x96xf32> to vector<96x96xf32>
    %cst_130 = arith.constant dense<0.000000e+00> : vector<2x96xf32>
    %116 = tpu.matmul %113, %115, %cst_130 {dimension_numbers = #tpu.dot_dimension_numbers<[1], [0], [0], [1], [0, 0, 1, 1], [], []>} : vector<2x96xf32>, vector<96x96xf32>, vector<2x96xf32> -> vector<2x96xf32>
    %c14_131 = arith.constant 14 : index
    %c0_132 = arith.constant 0 : index
    %c0_133 = arith.constant 0 : index
    %117 = vector.load %arg3[%c14_131, %c0_132, %c0_133] : memref<16x2x96xf32, #tpu.memory_space<vmem>>, vector<1x2x96xf32>
    %118 = vector.shape_cast %117 : vector<1x2x96xf32> to vector<2x96xf32>
    %119 = vector.shape_cast %116 : vector<2x96xf32> to vector<1x2x96xf32>
    tpu.vector_store %arg3[%c14_131, %c0_132, %c0_133], %119 {strides = array<i32>} : memref<16x2x96xf32, #tpu.memory_space<vmem>>, vector<1x2x96xf32>,
    %c15 = arith.constant 15 : index
    %c0_134 = arith.constant 0 : index
    %c0_135 = arith.constant 0 : index
    %120 = vector.load %arg1[%c15, %c0_134, %c0_135] : memref<16x2x96xf32, #tpu.memory_space<vmem>>, vector<1x2x96xf32>
    %121 = vector.shape_cast %120 : vector<1x2x96xf32> to vector<2x96xf32>
    %c15_136 = arith.constant 15 : index
    %c0_137 = arith.constant 0 : index
    %c0_138 = arith.constant 0 : index
    %122 = vector.load %arg2[%c15_136, %c0_137, %c0_138] : memref<16x96x96xf32, #tpu.memory_space<vmem>>, vector<1x96x96xf32>
    %123 = vector.shape_cast %122 : vector<1x96x96xf32> to vector<96x96xf32>
    %cst_139 = arith.constant dense<0.000000e+00> : vector<2x96xf32>
    %124 = tpu.matmul %121, %123, %cst_139 {dimension_numbers = #tpu.dot_dimension_numbers<[1], [0], [0], [1], [0, 0, 1, 1], [], []>} : vector<2x96xf32>, vector<96x96xf32>, vector<2x96xf32> -> vector<2x96xf32>
    %c15_140 = arith.constant 15 : index
    %c0_141 = arith.constant 0 : index
    %c0_142 = arith.constant 0 : index
    %125 = vector.load %arg3[%c15_140, %c0_141, %c0_142] : memref<16x2x96xf32, #tpu.memory_space<vmem>>, vector<1x2x96xf32>
    %126 = vector.shape_cast %125 : vector<1x2x96xf32> to vector<2x96xf32>
    %127 = vector.shape_cast %124 : vector<2x96xf32> to vector<1x2x96xf32>
    tpu.vector_store %arg3[%c15_140, %c0_141, %c0_142], %127 {strides = array<i32>} : memref<16x2x96xf32, #tpu.memory_space<vmem>>, vector<1x2x96xf32>,
    return
  }
  func.func @transform_0(%arg0: i32) -> (i32, i32, i32) {
    %c0_i32 = arith.constant 0 : i32
    %c0_i32_0 = arith.constant 0 : i32
    %c0_i32_1 = arith.constant 0 : i32
    return %arg0, %c0_i32, %c0_i32_0 : i32, i32, i32
  }
  func.func @transform_1(%arg0: i32) -> (i32, i32, i32) {
    %c0_i32 = arith.constant 0 : i32
    %c0_i32_0 = arith.constant 0 : i32
    %c0_i32_1 = arith.constant 0 : i32
    return %arg0, %c0_i32, %c0_i32_0 : i32, i32, i32
  }
  func.func @transform_2(%arg0: i32) -> (i32, i32, i32) {
    %c0_i32 = arith.constant 0 : i32
    %c0_i32_0 = arith.constant 0 : i32
    %c0_i32_1 = arith.constant 0 : i32
    return %arg0, %c0_i32, %c0_i32_0 : i32, i32, i32
  }
}

module attributes {stable_mosaic.version = 11 : i64} {
  func.func @_tembed_kernel(%arg0: i32, %arg1: memref<2x32xf32, #tpu.memory_space<vmem>>, %arg2: memref<32x32xf32, #tpu.memory_space<vmem>>, %arg3: memref<1x32xf32, #tpu.memory_space<vmem>>, %arg4: memref<32x48xf32, #tpu.memory_space<vmem>>, %arg5: memref<1x48xf32, #tpu.memory_space<vmem>>, %arg6: memref<2x48xf32, #tpu.memory_space<vmem>>) attributes {dimension_semantics = [#tpu.dimension_semantics<arbitrary>], iteration_bounds = array<i64: 1>, scalar_prefetch = 0 : i64, scratch_operands = 0 : i64, tpu.core_type = #tpu.core_type<tc>, window_params = [{pipeline_mode = #tpu.pipeline_mode<synchronous>, transform_indices = @transform_0, window_bounds = array<i64: 2, 32>}, {pipeline_mode = #tpu.pipeline_mode<synchronous>, transform_indices = @transform_1, window_bounds = array<i64: 32, 32>}, {pipeline_mode = #tpu.pipeline_mode<synchronous>, transform_indices = @transform_2, window_bounds = array<i64: 1, 32>}, {pipeline_mode = #tpu.pipeline_mode<synchronous>, transform_indices = @transform_3, window_bounds = array<i64: 32, 48>}, {pipeline_mode = #tpu.pipeline_mode<synchronous>, transform_indices = @transform_4, window_bounds = array<i64: 1, 48>}, {pipeline_mode = #tpu.pipeline_mode<synchronous>, transform_indices = @transform_5, window_bounds = array<i64: 2, 48>}]} {
    %c0 = arith.constant 0 : index
    %c0_0 = arith.constant 0 : index
    %0 = vector.load %arg1[%c0, %c0_0] : memref<2x32xf32, #tpu.memory_space<vmem>>, vector<2x32xf32>
    %c0_1 = arith.constant 0 : index
    %c0_2 = arith.constant 0 : index
    %1 = vector.load %arg2[%c0_1, %c0_2] : memref<32x32xf32, #tpu.memory_space<vmem>>, vector<32x32xf32>
    %cst = arith.constant dense<0.000000e+00> : vector<2x32xf32>
    %2 = tpu.matmul %0, %1, %cst {dimension_numbers = #tpu.dot_dimension_numbers<[1], [0], [0], [1], [0, 0, 1, 1], [], []>} : vector<2x32xf32>, vector<32x32xf32>, vector<2x32xf32> -> vector<2x32xf32>
    %c0_3 = arith.constant 0 : index
    %c0_4 = arith.constant 0 : index
    %3 = vector.load %arg3[%c0_3, %c0_4] : memref<1x32xf32, #tpu.memory_space<vmem>>, vector<1x32xf32>
    %4 = vector.broadcast %3 : vector<1x32xf32> to vector<2x32xf32>
    %5 = arith.addf %2, %4 : vector<2x32xf32>
    %6 = arith.negf %5 : vector<2x32xf32>
    %7 = math.exp %6 : vector<2x32xf32>
    %cst_5 = arith.constant 1.000000e+00 : f32
    %8 = vector.broadcast %cst_5 : f32 to vector<2x32xf32>
    %9 = arith.addf %8, %7 : vector<2x32xf32>
    %10 = arith.divf %8, %9 : vector<2x32xf32>
    %11 = arith.mulf %5, %10 : vector<2x32xf32>
    %c0_6 = arith.constant 0 : index
    %c0_7 = arith.constant 0 : index
    %12 = vector.load %arg4[%c0_6, %c0_7] : memref<32x48xf32, #tpu.memory_space<vmem>>, vector<32x48xf32>
    %cst_8 = arith.constant dense<0.000000e+00> : vector<2x48xf32>
    %13 = tpu.matmul %11, %12, %cst_8 {dimension_numbers = #tpu.dot_dimension_numbers<[1], [0], [0], [1], [0, 0, 1, 1], [], []>} : vector<2x32xf32>, vector<32x48xf32>, vector<2x48xf32> -> vector<2x48xf32>
    %c0_9 = arith.constant 0 : index
    %c0_10 = arith.constant 0 : index
    %14 = vector.load %arg5[%c0_9, %c0_10] : memref<1x48xf32, #tpu.memory_space<vmem>>, vector<1x48xf32>
    %15 = vector.broadcast %14 : vector<1x48xf32> to vector<2x48xf32>
    %16 = arith.addf %13, %15 : vector<2x48xf32>
    %c0_11 = arith.constant 0 : index
    %c0_12 = arith.constant 0 : index
    %17 = vector.load %arg6[%c0_11, %c0_12] : memref<2x48xf32, #tpu.memory_space<vmem>>, vector<2x48xf32>
    tpu.vector_store %arg6[%c0_11, %c0_12], %16 {strides = array<i32>} : memref<2x48xf32, #tpu.memory_space<vmem>>, vector<2x48xf32>,
    return
  }
  func.func @transform_0(%arg0: i32) -> (i32, i32) {
    %c0_i32 = arith.constant 0 : i32
    %c0_i32_0 = arith.constant 0 : i32
    %c0_i32_1 = arith.constant 0 : i32
    return %c0_i32, %c0_i32_0 : i32, i32
  }
  func.func @transform_1(%arg0: i32) -> (i32, i32) {
    %c0_i32 = arith.constant 0 : i32
    %c0_i32_0 = arith.constant 0 : i32
    %c0_i32_1 = arith.constant 0 : i32
    return %c0_i32, %c0_i32_0 : i32, i32
  }
  func.func @transform_2(%arg0: i32) -> (i32, i32) {
    %c0_i32 = arith.constant 0 : i32
    %c0_i32_0 = arith.constant 0 : i32
    %c0_i32_1 = arith.constant 0 : i32
    return %c0_i32, %c0_i32_0 : i32, i32
  }
  func.func @transform_3(%arg0: i32) -> (i32, i32) {
    %c0_i32 = arith.constant 0 : i32
    %c0_i32_0 = arith.constant 0 : i32
    %c0_i32_1 = arith.constant 0 : i32
    return %c0_i32, %c0_i32_0 : i32, i32
  }
  func.func @transform_4(%arg0: i32) -> (i32, i32) {
    %c0_i32 = arith.constant 0 : i32
    %c0_i32_0 = arith.constant 0 : i32
    %c0_i32_1 = arith.constant 0 : i32
    return %c0_i32, %c0_i32_0 : i32, i32
  }
  func.func @transform_5(%arg0: i32) -> (i32, i32) {
    %c0_i32 = arith.constant 0 : i32
    %c0_i32_0 = arith.constant 0 : i32
    %c0_i32_1 = arith.constant 0 : i32
    return %c0_i32, %c0_i32_0 : i32, i32
  }
}

module attributes {stable_mosaic.version = 11 : i64} {
  func.func @_conv_kernel(%arg0: i32, %arg1: i32, %arg2: memref<1x256x48xf32, #tpu.memory_space<vmem>>, %arg3: memref<1x256x48xf32, #tpu.memory_space<vmem>>, %arg4: memref<1x1x48xf32, #tpu.memory_space<vmem>>, %arg5: memref<48x48xf32, #tpu.memory_space<vmem>>, %arg6: memref<1x48xf32, #tpu.memory_space<vmem>>, %arg7: memref<1x256x48xf32, #tpu.memory_space<vmem>>) attributes {dimension_semantics = [#tpu.dimension_semantics<parallel>, #tpu.dimension_semantics<parallel>], iteration_bounds = array<i64: 2, 1>, scalar_prefetch = 0 : i64, scratch_operands = 0 : i64, tpu.core_type = #tpu.core_type<tc>, window_params = [{transform_indices = @transform_0, window_bounds = array<i64: 1, 256, 48>}, {transform_indices = @transform_1, window_bounds = array<i64: 1, 256, 48>}, {transform_indices = @transform_2, window_bounds = array<i64: 1, 1, 48>}, {pipeline_mode = #tpu.pipeline_mode<synchronous>, transform_indices = @transform_3, window_bounds = array<i64: 48, 48>}, {pipeline_mode = #tpu.pipeline_mode<synchronous>, transform_indices = @transform_4, window_bounds = array<i64: 1, 48>}, {transform_indices = @transform_5, window_bounds = array<i64: 1, 256, 48>}]} {
    %c0 = arith.constant 0 : index
    %c0_0 = arith.constant 0 : index
    %c0_1 = arith.constant 0 : index
    %0 = vector.load %arg2[%c0, %c0_0, %c0_1] : memref<1x256x48xf32, #tpu.memory_space<vmem>>, vector<1x256x48xf32>
    %1 = vector.shape_cast %0 : vector<1x256x48xf32> to vector<256x48xf32>
    %c0_2 = arith.constant 0 : index
    %c0_3 = arith.constant 0 : index
    %2 = vector.load %arg5[%c0_2, %c0_3] : memref<48x48xf32, #tpu.memory_space<vmem>>, vector<48x48xf32>
    %cst = arith.constant dense<0.000000e+00> : vector<256x48xf32>
    %3 = tpu.matmul %1, %2, %cst {dimension_numbers = #tpu.dot_dimension_numbers<[1], [0], [0], [1], [0, 0, 1, 1], [], []>} : vector<256x48xf32>, vector<48x48xf32>, vector<256x48xf32> -> vector<256x48xf32>
    %c0_4 = arith.constant 0 : index
    %c0_5 = arith.constant 0 : index
    %4 = vector.load %arg6[%c0_4, %c0_5] : memref<1x48xf32, #tpu.memory_space<vmem>>, vector<1x48xf32>
    %5 = vector.broadcast %4 : vector<1x48xf32> to vector<256x48xf32>
    %6 = arith.addf %3, %5 : vector<256x48xf32>
    %c0_6 = arith.constant 0 : index
    %c0_7 = arith.constant 0 : index
    %c0_8 = arith.constant 0 : index
    %7 = vector.load %arg3[%c0_6, %c0_7, %c0_8] : memref<1x256x48xf32, #tpu.memory_space<vmem>>, vector<1x256x48xf32>
    %8 = vector.shape_cast %7 : vector<1x256x48xf32> to vector<256x48xf32>
    %9 = arith.addf %6, %8 : vector<256x48xf32>
    %c0_9 = arith.constant 0 : index
    %c0_10 = arith.constant 0 : index
    %c0_11 = arith.constant 0 : index
    %10 = vector.load %arg4[%c0_9, %c0_10, %c0_11] : memref<1x1x48xf32, #tpu.memory_space<vmem>>, vector<1x1x48xf32>
    %11 = vector.shape_cast %10 : vector<1x1x48xf32> to vector<1x48xf32>
    %12 = vector.broadcast %11 : vector<1x48xf32> to vector<256x48xf32>
    %13 = arith.addf %9, %12 : vector<256x48xf32>
    %cst_12 = arith.constant 5.000000e-01 : f32
    %14 = vector.broadcast %cst_12 : f32 to vector<256x48xf32>
    %15 = arith.mulf %14, %13 : vector<256x48xf32>
    %cst_13 = arith.constant 4.471500e-02 : f32
    %16 = vector.broadcast %cst_13 : f32 to vector<256x48xf32>
    %17 = arith.mulf %16, %13 : vector<256x48xf32>
    %18 = arith.mulf %17, %13 : vector<256x48xf32>
    %19 = arith.mulf %18, %13 : vector<256x48xf32>
    %20 = arith.addf %13, %19 : vector<256x48xf32>
    %cst_14 = arith.constant 0.797884583 : f32
    %21 = vector.broadcast %cst_14 : f32 to vector<256x48xf32>
    %22 = arith.mulf %21, %20 : vector<256x48xf32>
    %23 = math.tanh %22 : vector<256x48xf32>
    %cst_15 = arith.constant 1.000000e+00 : f32
    %24 = vector.broadcast %cst_15 : f32 to vector<256x48xf32>
    %25 = arith.addf %24, %23 : vector<256x48xf32>
    %26 = arith.mulf %15, %25 : vector<256x48xf32>
    %c0_16 = arith.constant 0 : index
    %c0_17 = arith.constant 0 : index
    %c0_18 = arith.constant 0 : index
    %27 = vector.load %arg7[%c0_16, %c0_17, %c0_18] : memref<1x256x48xf32, #tpu.memory_space<vmem>>, vector<1x256x48xf32>
    %28 = vector.shape_cast %27 : vector<1x256x48xf32> to vector<256x48xf32>
    %29 = vector.shape_cast %26 : vector<256x48xf32> to vector<1x256x48xf32>
    tpu.vector_store %arg7[%c0_16, %c0_17, %c0_18], %29 {strides = array<i32>} : memref<1x256x48xf32, #tpu.memory_space<vmem>>, vector<1x256x48xf32>,
    return
  }
  func.func @transform_0(%arg0: i32, %arg1: i32) -> (i32, i32, i32) {
    %c0_i32 = arith.constant 0 : i32
    %c0_i32_0 = arith.constant 0 : i32
    return %arg0, %arg1, %c0_i32 : i32, i32, i32
  }
  func.func @transform_1(%arg0: i32, %arg1: i32) -> (i32, i32, i32) {
    %c0_i32 = arith.constant 0 : i32
    %c0_i32_0 = arith.constant 0 : i32
    return %arg0, %arg1, %c0_i32 : i32, i32, i32
  }
  func.func @transform_2(%arg0: i32, %arg1: i32) -> (i32, i32, i32) {
    %c0_i32 = arith.constant 0 : i32
    %c0_i32_0 = arith.constant 0 : i32
    %c0_i32_1 = arith.constant 0 : i32
    return %arg0, %c0_i32, %c0_i32_0 : i32, i32, i32
  }
  func.func @transform_3(%arg0: i32, %arg1: i32) -> (i32, i32) {
    %c0_i32 = arith.constant 0 : i32
    %c0_i32_0 = arith.constant 0 : i32
    %c0_i32_1 = arith.constant 0 : i32
    return %c0_i32, %c0_i32_0 : i32, i32
  }
  func.func @transform_4(%arg0: i32, %arg1: i32) -> (i32, i32) {
    %c0_i32 = arith.constant 0 : i32
    %c0_i32_0 = arith.constant 0 : i32
    %c0_i32_1 = arith.constant 0 : i32
    return %c0_i32, %c0_i32_0 : i32, i32
  }
  func.func @transform_5(%arg0: i32, %arg1: i32) -> (i32, i32, i32) {
    %c0_i32 = arith.constant 0 : i32
    %c0_i32_0 = arith.constant 0 : i32
    return %arg0, %arg1, %c0_i32 : i32, i32, i32
  }
}

module attributes {stable_mosaic.version = 11 : i64} {
  func.func @_conv_kernel(%arg0: i32, %arg1: i32, %arg2: memref<1x256x48xf32, #tpu.memory_space<vmem>>, %arg3: memref<1x256x48xf32, #tpu.memory_space<vmem>>, %arg4: memref<1x1x48xf32, #tpu.memory_space<vmem>>, %arg5: memref<48x48xf32, #tpu.memory_space<vmem>>, %arg6: memref<1x48xf32, #tpu.memory_space<vmem>>, %arg7: memref<1x256x48xf32, #tpu.memory_space<vmem>>) attributes {dimension_semantics = [#tpu.dimension_semantics<parallel>, #tpu.dimension_semantics<parallel>], iteration_bounds = array<i64: 2, 1>, scalar_prefetch = 0 : i64, scratch_operands = 0 : i64, tpu.core_type = #tpu.core_type<tc>, window_params = [{transform_indices = @transform_0, window_bounds = array<i64: 1, 256, 48>}, {transform_indices = @transform_1, window_bounds = array<i64: 1, 256, 48>}, {transform_indices = @transform_2, window_bounds = array<i64: 1, 1, 48>}, {pipeline_mode = #tpu.pipeline_mode<synchronous>, transform_indices = @transform_3, window_bounds = array<i64: 48, 48>}, {pipeline_mode = #tpu.pipeline_mode<synchronous>, transform_indices = @transform_4, window_bounds = array<i64: 1, 48>}, {transform_indices = @transform_5, window_bounds = array<i64: 1, 256, 48>}]} {
    %c0 = arith.constant 0 : index
    %c0_0 = arith.constant 0 : index
    %c0_1 = arith.constant 0 : index
    %0 = vector.load %arg2[%c0, %c0_0, %c0_1] : memref<1x256x48xf32, #tpu.memory_space<vmem>>, vector<1x256x48xf32>
    %1 = vector.shape_cast %0 : vector<1x256x48xf32> to vector<256x48xf32>
    %c0_2 = arith.constant 0 : index
    %c0_3 = arith.constant 0 : index
    %2 = vector.load %arg5[%c0_2, %c0_3] : memref<48x48xf32, #tpu.memory_space<vmem>>, vector<48x48xf32>
    %cst = arith.constant dense<0.000000e+00> : vector<256x48xf32>
    %3 = tpu.matmul %1, %2, %cst {dimension_numbers = #tpu.dot_dimension_numbers<[1], [0], [0], [1], [0, 0, 1, 1], [], []>} : vector<256x48xf32>, vector<48x48xf32>, vector<256x48xf32> -> vector<256x48xf32>
    %c0_4 = arith.constant 0 : index
    %c0_5 = arith.constant 0 : index
    %4 = vector.load %arg6[%c0_4, %c0_5] : memref<1x48xf32, #tpu.memory_space<vmem>>, vector<1x48xf32>
    %5 = vector.broadcast %4 : vector<1x48xf32> to vector<256x48xf32>
    %6 = arith.addf %3, %5 : vector<256x48xf32>
    %c0_6 = arith.constant 0 : index
    %c0_7 = arith.constant 0 : index
    %c0_8 = arith.constant 0 : index
    %7 = vector.load %arg3[%c0_6, %c0_7, %c0_8] : memref<1x256x48xf32, #tpu.memory_space<vmem>>, vector<1x256x48xf32>
    %8 = vector.shape_cast %7 : vector<1x256x48xf32> to vector<256x48xf32>
    %9 = arith.addf %6, %8 : vector<256x48xf32>
    %c0_9 = arith.constant 0 : index
    %c0_10 = arith.constant 0 : index
    %c0_11 = arith.constant 0 : index
    %10 = vector.load %arg4[%c0_9, %c0_10, %c0_11] : memref<1x1x48xf32, #tpu.memory_space<vmem>>, vector<1x1x48xf32>
    %11 = vector.shape_cast %10 : vector<1x1x48xf32> to vector<1x48xf32>
    %12 = vector.broadcast %11 : vector<1x48xf32> to vector<256x48xf32>
    %13 = arith.addf %9, %12 : vector<256x48xf32>
    %c0_12 = arith.constant 0 : index
    %c0_13 = arith.constant 0 : index
    %c0_14 = arith.constant 0 : index
    %14 = vector.load %arg7[%c0_12, %c0_13, %c0_14] : memref<1x256x48xf32, #tpu.memory_space<vmem>>, vector<1x256x48xf32>
    %15 = vector.shape_cast %14 : vector<1x256x48xf32> to vector<256x48xf32>
    %16 = vector.shape_cast %13 : vector<256x48xf32> to vector<1x256x48xf32>
    tpu.vector_store %arg7[%c0_12, %c0_13, %c0_14], %16 {strides = array<i32>} : memref<1x256x48xf32, #tpu.memory_space<vmem>>, vector<1x256x48xf32>,
    return
  }
  func.func @transform_0(%arg0: i32, %arg1: i32) -> (i32, i32, i32) {
    %c0_i32 = arith.constant 0 : i32
    %c0_i32_0 = arith.constant 0 : i32
    return %arg0, %arg1, %c0_i32 : i32, i32, i32
  }
  func.func @transform_1(%arg0: i32, %arg1: i32) -> (i32, i32, i32) {
    %c0_i32 = arith.constant 0 : i32
    %c0_i32_0 = arith.constant 0 : i32
    return %arg0, %arg1, %c0_i32 : i32, i32, i32
  }
  func.func @transform_2(%arg0: i32, %arg1: i32) -> (i32, i32, i32) {
    %c0_i32 = arith.constant 0 : i32
    %c0_i32_0 = arith.constant 0 : i32
    %c0_i32_1 = arith.constant 0 : i32
    return %arg0, %c0_i32, %c0_i32_0 : i32, i32, i32
  }
  func.func @transform_3(%arg0: i32, %arg1: i32) -> (i32, i32) {
    %c0_i32 = arith.constant 0 : i32
    %c0_i32_0 = arith.constant 0 : i32
    %c0_i32_1 = arith.constant 0 : i32
    return %c0_i32, %c0_i32_0 : i32, i32
  }
  func.func @transform_4(%arg0: i32, %arg1: i32) -> (i32, i32) {
    %c0_i32 = arith.constant 0 : i32
    %c0_i32_0 = arith.constant 0 : i32
    %c0_i32_1 = arith.constant 0 : i32
    return %c0_i32, %c0_i32_0 : i32, i32
  }
  func.func @transform_5(%arg0: i32, %arg1: i32) -> (i32, i32, i32) {
    %c0_i32 = arith.constant 0 : i32
    %c0_i32_0 = arith.constant 0 : i32
    return %arg0, %arg1, %c0_i32 : i32, i32, i32
  }
}

module attributes {stable_mosaic.version = 11 : i64} {
  func.func @_tail_kernel(%arg0: i32, %arg1: i32, %arg2: memref<1x256x48xf32, #tpu.memory_space<vmem>>, %arg3: memref<48x16xf32, #tpu.memory_space<vmem>>, %arg4: memref<1x16xf32, #tpu.memory_space<vmem>>, %arg5: memref<16x48xf32, #tpu.memory_space<vmem>>, %arg6: memref<1x48xf32, #tpu.memory_space<vmem>>, %arg7: memref<48x128xf32, #tpu.memory_space<vmem>>, %arg8: memref<1x128xf32, #tpu.memory_space<vmem>>, %arg9: memref<128x1xf32, #tpu.memory_space<vmem>>, %arg10: memref<1x1xf32, #tpu.memory_space<vmem>>, %arg11: memref<1x1x1xf32, #tpu.memory_space<vmem>>, %arg12: memref<1x256x1xf32, #tpu.memory_space<vmem>>) attributes {dimension_semantics = [#tpu.dimension_semantics<parallel>, #tpu.dimension_semantics<parallel>], iteration_bounds = array<i64: 2, 1>, scalar_prefetch = 0 : i64, scratch_operands = 0 : i64, tpu.core_type = #tpu.core_type<tc>, window_params = [{transform_indices = @transform_0, window_bounds = array<i64: 1, 256, 48>}, {pipeline_mode = #tpu.pipeline_mode<synchronous>, transform_indices = @transform_1, window_bounds = array<i64: 48, 16>}, {pipeline_mode = #tpu.pipeline_mode<synchronous>, transform_indices = @transform_2, window_bounds = array<i64: 1, 16>}, {pipeline_mode = #tpu.pipeline_mode<synchronous>, transform_indices = @transform_3, window_bounds = array<i64: 16, 48>}, {pipeline_mode = #tpu.pipeline_mode<synchronous>, transform_indices = @transform_4, window_bounds = array<i64: 1, 48>}, {pipeline_mode = #tpu.pipeline_mode<synchronous>, transform_indices = @transform_5, window_bounds = array<i64: 48, 128>}, {pipeline_mode = #tpu.pipeline_mode<synchronous>, transform_indices = @transform_6, window_bounds = array<i64: 1, 128>}, {pipeline_mode = #tpu.pipeline_mode<synchronous>, transform_indices = @transform_7, window_bounds = array<i64: 128, 1>}, {pipeline_mode = #tpu.pipeline_mode<synchronous>, transform_indices = @transform_8, window_bounds = array<i64: 1, 1>}, {transform_indices = @transform_9, window_bounds = array<i64: 1, 1, 1>}, {transform_indices = @transform_10, window_bounds = array<i64: 1, 256, 1>}]} {
    %c0 = arith.constant 0 : index
    %c0_0 = arith.constant 0 : index
    %c0_1 = arith.constant 0 : index
    %0 = vector.load %arg2[%c0, %c0_0, %c0_1] : memref<1x256x48xf32, #tpu.memory_space<vmem>>, vector<1x256x48xf32>
    %1 = vector.shape_cast %0 : vector<1x256x48xf32> to vector<256x48xf32>
    %c0_2 = arith.constant 0 : index
    %c0_3 = arith.constant 0 : index
    %2 = vector.load %arg3[%c0_2, %c0_3] : memref<48x16xf32, #tpu.memory_space<vmem>>, vector<48x16xf32>
    %cst = arith.constant dense<0.000000e+00> : vector<256x16xf32>
    %3 = tpu.matmul %1, %2, %cst {dimension_numbers = #tpu.dot_dimension_numbers<[1], [0], [0], [1], [0, 0, 1, 1], [], []>} : vector<256x48xf32>, vector<48x16xf32>, vector<256x16xf32> -> vector<256x16xf32>
    %c0_4 = arith.constant 0 : index
    %c0_5 = arith.constant 0 : index
    %4 = vector.load %arg4[%c0_4, %c0_5] : memref<1x16xf32, #tpu.memory_space<vmem>>, vector<1x16xf32>
    %5 = vector.broadcast %4 : vector<1x16xf32> to vector<256x16xf32>
    %6 = arith.addf %3, %5 : vector<256x16xf32>
    %cst_6 = arith.constant 0.000000e+00 : f32
    %7 = vector.broadcast %cst_6 : f32 to vector<256x16xf32>
    %8 = arith.maximumf %6, %7 : vector<256x16xf32>
    %c0_7 = arith.constant 0 : index
    %c0_8 = arith.constant 0 : index
    %9 = vector.load %arg5[%c0_7, %c0_8] : memref<16x48xf32, #tpu.memory_space<vmem>>, vector<16x48xf32>
    %cst_9 = arith.constant dense<0.000000e+00> : vector<256x48xf32>
    %10 = tpu.matmul %8, %9, %cst_9 {dimension_numbers = #tpu.dot_dimension_numbers<[1], [0], [0], [1], [0, 0, 1, 1], [], []>} : vector<256x16xf32>, vector<16x48xf32>, vector<256x48xf32> -> vector<256x48xf32>
    %c0_10 = arith.constant 0 : index
    %c0_11 = arith.constant 0 : index
    %11 = vector.load %arg6[%c0_10, %c0_11] : memref<1x48xf32, #tpu.memory_space<vmem>>, vector<1x48xf32>
    %12 = vector.broadcast %11 : vector<1x48xf32> to vector<256x48xf32>
    %13 = arith.addf %10, %12 : vector<256x48xf32>
    %cst_12 = arith.constant dense<0xFF800000> : vector<256xf32>
    %14 = vector.multi_reduction <maximumf>, %13, %cst_12 [1] : vector<256x48xf32> to vector<256xf32>
    %15 = vector.shape_cast %14 : vector<256xf32> to vector<256x1xf32>
    %16 = vector.broadcast %15 : vector<256x1xf32> to vector<256x48xf32>
    %17 = arith.subf %13, %16 : vector<256x48xf32>
    %18 = math.exp %17 : vector<256x48xf32>
    %cst_13 = arith.constant dense<0.000000e+00> : vector<256xf32>
    %19 = vector.multi_reduction <add>, %18, %cst_13 [1] : vector<256x48xf32> to vector<256xf32>
    %20 = vector.shape_cast %19 : vector<256xf32> to vector<256x1xf32>
    %21 = tpu.reciprocal %20 {approx = true} : vector<256x1xf32> -> vector<256x1xf32>
    %22 = vector.broadcast %21 : vector<256x1xf32> to vector<256x48xf32>
    %23 = arith.mulf %18, %22 : vector<256x48xf32>
    %24 = arith.mulf %1, %23 : vector<256x48xf32>
    %c0_14 = arith.constant 0 : index
    %c0_15 = arith.constant 0 : index
    %25 = vector.load %arg7[%c0_14, %c0_15] : memref<48x128xf32, #tpu.memory_space<vmem>>, vector<48x128xf32>
    %cst_16 = arith.constant dense<0.000000e+00> : vector<256x128xf32>
    %26 = tpu.matmul %24, %25, %cst_16 {dimension_numbers = #tpu.dot_dimension_numbers<[1], [0], [0], [1], [0, 0, 1, 1], [], []>} : vector<256x48xf32>, vector<48x128xf32>, vector<256x128xf32> -> vector<256x128xf32>
    %c0_17 = arith.constant 0 : index
    %c0_18 = arith.constant 0 : index
    %27 = vector.load %arg8[%c0_17, %c0_18] : memref<1x128xf32, #tpu.memory_space<vmem>>, vector<1x128xf32>
    %28 = vector.broadcast %27 : vector<1x128xf32> to vector<256x128xf32>
    %29 = arith.addf %26, %28 : vector<256x128xf32>
    %cst_19 = arith.constant 5.000000e-01 : f32
    %30 = vector.broadcast %cst_19 : f32 to vector<256x128xf32>
    %31 = arith.mulf %30, %29 : vector<256x128xf32>
    %cst_20 = arith.constant 4.471500e-02 : f32
    %32 = vector.broadcast %cst_20 : f32 to vector<256x128xf32>
    %33 = arith.mulf %32, %29 : vector<256x128xf32>
    %34 = arith.mulf %33, %29 : vector<256x128xf32>
    %35 = arith.mulf %34, %29 : vector<256x128xf32>
    %36 = arith.addf %29, %35 : vector<256x128xf32>
    %cst_21 = arith.constant 0.797884583 : f32
    %37 = vector.broadcast %cst_21 : f32 to vector<256x128xf32>
    %38 = arith.mulf %37, %36 : vector<256x128xf32>
    %39 = math.tanh %38 : vector<256x128xf32>
    %cst_22 = arith.constant 1.000000e+00 : f32
    %40 = vector.broadcast %cst_22 : f32 to vector<256x128xf32>
    %41 = arith.addf %40, %39 : vector<256x128xf32>
    %42 = arith.mulf %31, %41 : vector<256x128xf32>
    %c0_23 = arith.constant 0 : index
    %c0_24 = arith.constant 0 : index
    %43 = vector.load %arg9[%c0_23, %c0_24] : memref<128x1xf32, #tpu.memory_space<vmem>>, vector<128x1xf32>
    %cst_25 = arith.constant dense<0.000000e+00> : vector<256x1xf32>
    %44 = tpu.matmul %42, %43, %cst_25 {dimension_numbers = #tpu.dot_dimension_numbers<[1], [0], [0], [1], [0, 0, 1, 1], [], []>} : vector<256x128xf32>, vector<128x1xf32>, vector<256x1xf32> -> vector<256x1xf32>
    %c0_26 = arith.constant 0 : index
    %c0_27 = arith.constant 0 : index
    %45 = vector.load %arg10[%c0_26, %c0_27] : memref<1x1xf32, #tpu.memory_space<vmem>>, vector<1x1xf32>
    %46 = vector.broadcast %45 : vector<1x1xf32> to vector<256x1xf32>
    %47 = arith.addf %44, %46 : vector<256x1xf32>
    %c0_28 = arith.constant 0 : index
    %c0_29 = arith.constant 0 : index
    %c0_30 = arith.constant 0 : index
    %48 = vector.load %arg11[%c0_28, %c0_29, %c0_30] : memref<1x1x1xf32, #tpu.memory_space<vmem>>, vector<1x1x1xf32>
    %49 = vector.shape_cast %48 : vector<1x1x1xf32> to vector<1x1xf32>
    %50 = vector.broadcast %49 : vector<1x1xf32> to vector<256x1xf32>
    %51 = arith.mulf %47, %50 : vector<256x1xf32>
    %c0_31 = arith.constant 0 : index
    %c0_32 = arith.constant 0 : index
    %c0_33 = arith.constant 0 : index
    %52 = vector.load %arg12[%c0_31, %c0_32, %c0_33] : memref<1x256x1xf32, #tpu.memory_space<vmem>>, vector<1x256x1xf32>
    %53 = vector.shape_cast %52 : vector<1x256x1xf32> to vector<256x1xf32>
    %54 = vector.shape_cast %51 : vector<256x1xf32> to vector<1x256x1xf32>
    tpu.vector_store %arg12[%c0_31, %c0_32, %c0_33], %54 {strides = array<i32>} : memref<1x256x1xf32, #tpu.memory_space<vmem>>, vector<1x256x1xf32>,
    return
  }
  func.func @transform_0(%arg0: i32, %arg1: i32) -> (i32, i32, i32) {
    %c0_i32 = arith.constant 0 : i32
    %c0_i32_0 = arith.constant 0 : i32
    return %arg0, %arg1, %c0_i32 : i32, i32, i32
  }
  func.func @transform_1(%arg0: i32, %arg1: i32) -> (i32, i32) {
    %c0_i32 = arith.constant 0 : i32
    %c0_i32_0 = arith.constant 0 : i32
    %c0_i32_1 = arith.constant 0 : i32
    return %c0_i32, %c0_i32_0 : i32, i32
  }
  func.func @transform_2(%arg0: i32, %arg1: i32) -> (i32, i32) {
    %c0_i32 = arith.constant 0 : i32
    %c0_i32_0 = arith.constant 0 : i32
    %c0_i32_1 = arith.constant 0 : i32
    return %c0_i32, %c0_i32_0 : i32, i32
  }
  func.func @transform_3(%arg0: i32, %arg1: i32) -> (i32, i32) {
    %c0_i32 = arith.constant 0 : i32
    %c0_i32_0 = arith.constant 0 : i32
    %c0_i32_1 = arith.constant 0 : i32
    return %c0_i32, %c0_i32_0 : i32, i32
  }
  func.func @transform_4(%arg0: i32, %arg1: i32) -> (i32, i32) {
    %c0_i32 = arith.constant 0 : i32
    %c0_i32_0 = arith.constant 0 : i32
    %c0_i32_1 = arith.constant 0 : i32
    return %c0_i32, %c0_i32_0 : i32, i32
  }
  func.func @transform_5(%arg0: i32, %arg1: i32) -> (i32, i32) {
    %c0_i32 = arith.constant 0 : i32
    %c0_i32_0 = arith.constant 0 : i32
    %c0_i32_1 = arith.constant 0 : i32
    return %c0_i32, %c0_i32_0 : i32, i32
  }
  func.func @transform_6(%arg0: i32, %arg1: i32) -> (i32, i32) {
    %c0_i32 = arith.constant 0 : i32
    %c0_i32_0 = arith.constant 0 : i32
    %c0_i32_1 = arith.constant 0 : i32
    return %c0_i32, %c0_i32_0 : i32, i32
  }
  func.func @transform_7(%arg0: i32, %arg1: i32) -> (i32, i32) {
    %c0_i32 = arith.constant 0 : i32
    %c0_i32_0 = arith.constant 0 : i32
    %c0_i32_1 = arith.constant 0 : i32
    return %c0_i32, %c0_i32_0 : i32, i32
  }
  func.func @transform_8(%arg0: i32, %arg1: i32) -> (i32, i32) {
    %c0_i32 = arith.constant 0 : i32
    %c0_i32_0 = arith.constant 0 : i32
    %c0_i32_1 = arith.constant 0 : i32
    return %c0_i32, %c0_i32_0 : i32, i32
  }
  func.func @transform_9(%arg0: i32, %arg1: i32) -> (i32, i32, i32) {
    %c0_i32 = arith.constant 0 : i32
    %c0_i32_0 = arith.constant 0 : i32
    %c0_i32_1 = arith.constant 0 : i32
    return %arg0, %c0_i32, %c0_i32_0 : i32, i32, i32
  }
  func.func @transform_10(%arg0: i32, %arg1: i32) -> (i32, i32, i32) {
    %c0_i32 = arith.constant 0 : i32
    %c0_i32_0 = arith.constant 0 : i32
    return %arg0, %arg1, %c0_i32 : i32, i32, i32
  }
}

</mosaic_0001>

<bundles_post_ra>
// kernel: fno2d_prev_forward.11
= control target key start
LH: loop header
LB: loop body
LE: loop exit
PB: predicated region body
PF: predicated region fallthrough
CT: control target
= control target key end

     0   :  { %8 = vsyncpa [#allocation3], 0  ;;  %s1646_s0 = inlined_call_operand.vmem [shape: f32[512,5], index: 0, kind: input, shape index: {}]   ;;  %s1647_s1 = inlined_call_operand.hbm [shape: f32[5,48], index: 1, kind: input, shape index: {}]   ;;  %s1648_s2 = inlined_call_operand.hbm [shape: f32[1,48], index: 2, kind: input, shape index: {}]   ;;  %s1649_s3 = inlined_call_operand.vmem [shape: f32[512,48], index: 3, kind: output, shape index: {}]  }
   0x1   :  { %9 = vsyncpa [#allocation5], 0  ;;  %s1040_s12 = smov [#allocation2]   ;;  %s1041_s14 = smov [#allocation4]  }
   0x2   :  { %s18_s13 = sshll.u32 %s1040_s12, 4  ;;  %s28_s15 = sshll.u32 %s1041_s14, 4  ;;  %s19_s13 = int_to_ptr.vmem [resolvable:$true] %s18_s13  ;;  %s29_s15 = int_to_ptr.vmem [resolvable:$true] %s28_s15 }
   0x3   :  { %s1004_s16 = scalar_lea.vmem %s19_s13, 128  ;;  %p1009_p1 = scmp.lt.s32.totalorder %s19_s13, %s19_s13 }
   0x4   :  { %p1005_p0 = scmp.ne.s32.totalorder %s19_s13, %s1004_s16  ;;  %p1010_p2 = scmp.lt.s32.totalorder %s1004_s16, %s1004_s16 }
   0x6   :  { %p1011_p3 = por %p1010_p2, %p1009_p1 }
   0x8   :  { %p1012_p4 = pnand %p1011_p3, %p1005_p0 }
   0xa   :  { %1015 = shalt.err (!%p1012_p4)
}
   0xb   :  { %21 = dma.hbm_to_vmem [thread:$0]  %s1647_s1, 128, %s19_s13, [#allocation3]  }
   0xc   :  { %s1024_s19 = scalar_lea.vmem %s29_s15, 16  ;;  %s1028_s20 = scalar_lea.vmem %s29_s15, 32 }
   0xd   :  { %p1025_p5 = scmp.ne.s32.totalorder %s29_s15, %s1024_s19  ;;  %p1029_p6 = scmp.lt.s32.totalorder %s29_s15, %s29_s15 }
   0xe   :  { %p1030_p7 = scmp.lt.s32.totalorder %s1028_s20, %s1024_s19 }
  0x10   :  { %p1031_p8 = por %p1030_p7, %p1029_p6 }
  0x12   :  { %p1032_p9 = pnand %p1031_p8, %p1025_p5 }
  0x14   :  { %1035 = shalt.err (!%p1032_p9)
}
  0x15   :  { %31 = dma.hbm_to_vmem [thread:$0]  %s1648_s2, 16, %s29_s15, [#allocation5]  }
  0x16   :  { %1036 = dma.done.wait [#allocation3], 128  }
  0x17   :  { %1037 = vsyncadd [#allocation3], 4294967168 }
  0x18   :  { %1038 = dma.done.wait [#allocation5], 16  }
  0x19   :  { %1039 = vsyncadd [#allocation5], 4294967280  ;;  %vm303_vm0 = vcmask 1044480   ;;  %v102_v0 = vld [vmem:[#allocation2] sm:$0x1f]  ;;  %vm110_vm1 = vcmask 39936  }
  0x1a   :  { %v38_v1 = vld [vmem:[%s1646_s0] sm:$0xff]  ;;  %894 = vmatprep.subr.msk.mxu0 %vm303_vm0, %v102_v0  ;;  %992 = vmatprep.subr.msk.mxu1 %vm303_vm0, %v102_v0  ;;  %v39_v3 = vld [vmem:[%s1646_s0 + $0x8] sm:$0xff]  ;;  %v40_v5 = vld [vmem:[%s1646_s0 + $0x10] sm:$0xff]  ;;  %vm692_vm2 = vcmask 392192  }
  0x1b   :  { %v70_v2 = vld [vmem:[%s1646_s0 + $0x100] sm:$0xff]  ;;  %v71_v4 = vld [vmem:[%s1646_s0 + $0x108] sm:$0xff]  ;;  %895 = vmatpush3.msk.msra.mxu0 %vm303_vm0, %v102_v0  ;;  %993 = vmatpush3.msk.msra.mxu1 %vm303_vm0, %v102_v0  ;;  %v72_v6 = vld [vmem:[%s1646_s0 + $0x110] sm:$0xff] }
  0x1c   :  { %896 = vmatprep.mubr.msk.f32.mxu0 %vm110_vm1, %v38_v1  ;;  %944 = vmatprep.mubr.msk.f32.mxu1 %vm110_vm1, %v70_v2  ;;  %v41_v7 = vld [vmem:[%s1646_s0 + $0x18] sm:$0xff]  ;;  %v42_v9 = vld [vmem:[%s1646_s0 + $0x20] sm:$0xff]  ;;  %v43_v11 = vld [vmem:[%s1646_s0 + $0x28] sm:$0xff] }
  0x1d   :  { %897 = vmatmul.mubr.msk.f32.vlgmr.msra.gmra.mxu0 %vm110_vm1, %v39_v3  ;;  %945 = vmatmul.mubr.msk.f32.vlgmr.msra.gmra.mxu1 %vm110_vm1, %v71_v4  ;;  %v73_v8 = vld [vmem:[%s1646_s0 + $0x118] sm:$0xff]  ;;  %v74_v10 = vld [vmem:[%s1646_s0 + $0x120] sm:$0xff]  ;;  %v75_v12 = vld [vmem:[%s1646_s0 + $0x128] sm:$0xff] }
  0x1e   :  { %899 = vmatprep.mubr.msk.f32.mxu0 %vm110_vm1, %v40_v5  ;;  %947 = vmatprep.mubr.msk.f32.mxu1 %vm110_vm1, %v72_v6  ;;  %v44_v13 = vld [vmem:[%s1646_s0 + $0x30] sm:$0xff]  ;;  %v45_v15 = vld [vmem:[%s1646_s0 + $0x38] sm:$0xff]  ;;  %v46_v17 = vld [vmem:[%s1646_s0 + $0x40] sm:$0xff] }
  0x1f   :  { %v76_v14 = vld [vmem:[%s1646_s0 + $0x130] sm:$0xff]  ;;  %v77_v16 = vld [vmem:[%s1646_s0 + $0x138] sm:$0xff]  ;;  %v78_v18 = vld [vmem:[%s1646_s0 + $0x140] sm:$0xff] }
  0x20   :  { %v47_v19 = vld [vmem:[%s1646_s0 + $0x48] sm:$0xff]  ;;  %v48_v21 = vld [vmem:[%s1646_s0 + $0x50] sm:$0xff]  ;;  %v49_v23 = vld [vmem:[%s1646_s0 + $0x58] sm:$0xff] }
  0x21   :  { %900 = vmatmul.mubr.msk.f32.gmra.mxu0 %vm110_vm1, %v41_v7  ;;  %948 = vmatmul.mubr.msk.f32.gmra.mxu1 %vm110_vm1, %v73_v8  ;;  %v79_v20 = vld [vmem:[%s1646_s0 + $0x148] sm:$0xff]  ;;  %v80_v22 = vld [vmem:[%s1646_s0 + $0x150] sm:$0xff]  ;;  %v81_v24 = vld [vmem:[%s1646_s0 + $0x158] sm:$0xff] }
  0x22   :  { %902 = vmatprep.mubr.msk.f32.mxu0 %vm110_vm1, %v42_v9  ;;  %950 = vmatprep.mubr.msk.f32.mxu1 %vm110_vm1, %v74_v10  ;;  %v50_v25 = vld [vmem:[%s1646_s0 + $0x60] sm:$0xff]  ;;  %v51_v27 = vld [vmem:[%s1646_s0 + $0x68] sm:$0xff]  ;;  %v52_v29 = vld [vmem:[%s1646_s0 + $0x70] sm:$0xff] }
  0x23   :  { %v82_v26 = vld [vmem:[%s1646_s0 + $0x160] sm:$0xff]  ;;  %v83_v28 = vld [vmem:[%s1646_s0 + $0x168] sm:$0xff]  ;;  %v84_v30 = vld [vmem:[%s1646_s0 + $0x170] sm:$0xff] }
  0x24   :  { %v53_v31 = vld [vmem:[%s1646_s0 + $0x78] sm:$0xff]  ;;  %v54_v33 = vld [vmem:[%s1646_s0 + $0x80] sm:$0xff]  ;;  %v55_v35 = vld [vmem:[%s1646_s0 + $0x88] sm:$0xff] }
  0x25   :  { %903 = vmatmul.mubr.msk.f32.gmra.mxu0 %vm110_vm1, %v43_v11  ;;  %951 = vmatmul.mubr.msk.f32.gmra.mxu1 %vm110_vm1, %v75_v12  ;;  %v85_v32 = vld [vmem:[%s1646_s0 + $0x178] sm:$0xff]  ;;  %v86_v34 = vld [vmem:[%s1646_s0 + $0x180] sm:$0xff]  ;;  %v87_v36 = vld [vmem:[%s1646_s0 + $0x188] sm:$0xff] }
  0x26   :  { %905 = vmatprep.mubr.msk.f32.mxu0 %vm110_vm1, %v44_v13  ;;  %953 = vmatprep.mubr.msk.f32.mxu1 %vm110_vm1, %v76_v14  ;;  %v56_v37 = vld [vmem:[%s1646_s0 + $0x90] sm:$0xff]  ;;  %v57_v39 = vld [vmem:[%s1646_s0 + $0x98] sm:$0xff]  ;;  %v58_v41 = vld [vmem:[%s1646_s0 + $0xa0] sm:$0xff] }
  0x27   :  { %v88_v38 = vld [vmem:[%s1646_s0 + $0x190] sm:$0xff]  ;;  %v89_v40 = vld [vmem:[%s1646_s0 + $0x198] sm:$0xff]  ;;  %v90_v42 = vld [vmem:[%s1646_s0 + $0x1a0] sm:$0xff] }
  0x28   :  { %v59_v43 = vld [vmem:[%s1646_s0 + $0xa8] sm:$0xff]  ;;  %v60_v45 = vld [vmem:[%s1646_s0 + $0xb0] sm:$0xff]  ;;  %v61_v47 = vld [vmem:[%s1646_s0 + $0xb8] sm:$0xff] }
  0x29   :  { %906 = vmatmul.mubr.msk.f32.gmra.mxu0 %vm110_vm1, %v45_v15  ;;  %954 = vmatmul.mubr.msk.f32.gmra.mxu1 %vm110_vm1, %v77_v16  ;;  %v91_v44 = vld [vmem:[%s1646_s0 + $0x1a8] sm:$0xff]  ;;  %v92_v46 = vld [vmem:[%s1646_s0 + $0x1b0] sm:$0xff]  ;;  %v93_v48 = vld [vmem:[%s1646_s0 + $0x1b8] sm:$0xff] }
  0x2a   :  { %908 = vmatprep.mubr.msk.f32.mxu0 %vm110_vm1, %v46_v17  ;;  %956 = vmatprep.mubr.msk.f32.mxu1 %vm110_vm1, %v78_v18  ;;  %v62_v49 = vld [vmem:[%s1646_s0 + $0xc0] sm:$0xff]  ;;  %v63_v51 = vld [vmem:[%s1646_s0 + $0xc8] sm:$0xff]  ;;  %v64_v53 = vld [vmem:[%s1646_s0 + $0xd0] sm:$0xff] }
  0x2b   :  { %v94_v50 = vld [vmem:[%s1646_s0 + $0x1c0] sm:$0xff]  ;;  %v95_v52 = vld [vmem:[%s1646_s0 + $0x1c8] sm:$0xff]  ;;  %v96_v54 = vld [vmem:[%s1646_s0 + $0x1d0] sm:$0xff] }
  0x2c   :  { %v65_v55 = vld [vmem:[%s1646_s0 + $0xd8] sm:$0xff]  ;;  %v66_v57 = vld [vmem:[%s1646_s0 + $0xe0] sm:$0xff]  ;;  %v67_v59 = vld [vmem:[%s1646_s0 + $0xe8] sm:$0xff] }
  0x2d   :  { %909 = vmatmul.mubr.msk.f32.gmra.mxu0 %vm110_vm1, %v47_v19  ;;  %957 = vmatmul.mubr.msk.f32.gmra.mxu1 %vm110_vm1, %v79_v20  ;;  %v97_v56 = vld [vmem:[%s1646_s0 + $0x1d8] sm:$0xff]  ;;  %v98_v58 = vld [vmem:[%s1646_s0 + $0x1e0] sm:$0xff]  ;;  %v99_v60 = vld [vmem:[%s1646_s0 + $0x1e8] sm:$0xff] }
  0x2e   :  { %911 = vmatprep.mubr.msk.f32.mxu0 %vm110_vm1, %v48_v21  ;;  %959 = vmatprep.mubr.msk.f32.mxu1 %vm110_vm1, %v80_v22  ;;  %v68_v61 = vld [vmem:[%s1646_s0 + $0xf0] sm:$0xff]  ;;  %v69_v63 = vld [vmem:[%s1646_s0 + $0xf8] sm:$0xff]  ;;  %v1324_v1 = vld [vmem:[#allocation4] ss:$0 sm:$0xff] }
  0x2f   :  { %v100_v62 = vld [vmem:[%s1646_s0 + $0x1f0] sm:$0xff]  ;;  %v101_v0 = vld [vmem:[%s1646_s0 + $0x1f8] sm:$0xff] }
  0x31   :  { %912 = vmatmul.mubr.msk.f32.gmra.mxu0 %vm110_vm1, %v49_v23  ;;  %960 = vmatmul.mubr.msk.f32.gmra.mxu1 %vm110_vm1, %v81_v24 }
  0x32   :  { %914 = vmatprep.mubr.msk.f32.mxu0 %vm110_vm1, %v50_v25  ;;  %962 = vmatprep.mubr.msk.f32.mxu1 %vm110_vm1, %v82_v26 }
  0x35   :  { %915 = vmatmul.mubr.msk.f32.gmra.mxu0 %vm110_vm1, %v51_v27  ;;  %963 = vmatmul.mubr.msk.f32.gmra.mxu1 %vm110_vm1, %v83_v28 }
  0x36   :  { %917 = vmatprep.mubr.msk.f32.mxu0 %vm110_vm1, %v52_v29  ;;  %965 = vmatprep.mubr.msk.f32.mxu1 %vm110_vm1, %v84_v30 }
  0x39   :  { %918 = vmatmul.mubr.msk.f32.gmra.mxu0 %vm110_vm1, %v53_v31  ;;  %966 = vmatmul.mubr.msk.f32.gmra.mxu1 %vm110_vm1, %v85_v32 }
  0x3a   :  { %920 = vmatprep.mubr.msk.f32.mxu0 %vm110_vm1, %v54_v33  ;;  %968 = vmatprep.mubr.msk.f32.mxu1 %vm110_vm1, %v86_v34 }
  0x3d   :  { %921 = vmatmul.mubr.msk.f32.gmra.mxu0 %vm110_vm1, %v55_v35  ;;  %969 = vmatmul.mubr.msk.f32.gmra.mxu1 %vm110_vm1, %v87_v36 }
  0x3e   :  { %923 = vmatprep.mubr.msk.f32.mxu0 %vm110_vm1, %v56_v37  ;;  %971 = vmatprep.mubr.msk.f32.mxu1 %vm110_vm1, %v88_v38 }
  0x41   :  { %924 = vmatmul.mubr.msk.f32.gmra.mxu0 %vm110_vm1, %v57_v39  ;;  %972 = vmatmul.mubr.msk.f32.gmra.mxu1 %vm110_vm1, %v89_v40 }
  0x42   :  { %926 = vmatprep.mubr.msk.f32.mxu0 %vm110_vm1, %v58_v41  ;;  %974 = vmatprep.mubr.msk.f32.mxu1 %vm110_vm1, %v90_v42 }
  0x45   :  { %927 = vmatmul.mubr.msk.f32.gmra.mxu0 %vm110_vm1, %v59_v43  ;;  %975 = vmatmul.mubr.msk.f32.gmra.mxu1 %vm110_vm1, %v91_v44 }
  0x46   :  { %929 = vmatprep.mubr.msk.f32.mxu0 %vm110_vm1, %v60_v45  ;;  %977 = vmatprep.mubr.msk.f32.mxu1 %vm110_vm1, %v92_v46 }
  0x49   :  { %930 = vmatmul.mubr.msk.f32.gmra.mxu0 %vm110_vm1, %v61_v47  ;;  %978 = vmatmul.mubr.msk.f32.gmra.mxu1 %vm110_vm1, %v93_v48 }
  0x4a   :  { %932 = vmatprep.mubr.msk.f32.mxu0 %vm110_vm1, %v62_v49  ;;  %980 = vmatprep.mubr.msk.f32.mxu1 %vm110_vm1, %v94_v50 }
  0x4d   :  { %933 = vmatmul.mubr.msk.f32.gmra.mxu0 %vm110_vm1, %v63_v51  ;;  %981 = vmatmul.mubr.msk.f32.gmra.mxu1 %vm110_vm1, %v95_v52 }
  0x4e   :  { %935 = vmatprep.mubr.msk.f32.mxu0 %vm110_vm1, %v64_v53  ;;  %983 = vmatprep.mubr.msk.f32.mxu1 %vm110_vm1, %v96_v54 }
  0x51   :  { %936 = vmatmul.mubr.msk.f32.gmra.mxu0 %vm110_vm1, %v65_v55  ;;  %984 = vmatmul.mubr.msk.f32.gmra.mxu1 %vm110_vm1, %v97_v56 }
  0x52   :  { %938 = vmatprep.mubr.msk.f32.mxu0 %vm110_vm1, %v66_v57  ;;  %986 = vmatprep.mubr.msk.f32.mxu1 %vm110_vm1, %v98_v58 }
  0x55   :  { %939 = vmatmul.mubr.msk.f32.gmra.mxu0 %vm110_vm1, %v67_v59  ;;  %987 = vmatmul.mubr.msk.f32.gmra.mxu1 %vm110_vm1, %v99_v60 }
  0x56   :  { %941 = vmatprep.mubr.msk.f32.mxu0 %vm110_vm1, %v68_v61  ;;  %989 = vmatprep.mubr.msk.f32.mxu1 %vm110_vm1, %v100_v62 }
  0x59   :  { %942 = vmatmul.mubr.msk.f32.gmra.mxu0 %vm110_vm1, %v69_v63  ;;  %990 = vmatmul.mubr.msk.f32.gmra.mxu1 %vm110_vm1, %v101_v0 }
  0xdd   :  { %v898_v2 = vpop.f32.mrf.mxu0  ;;  %v946_v3 = vpop.f32.mrf.mxu1 }
  0xde   :  { %v379_v4 = vadd.f32 %v898_v2, %v1324_v1  ;;  %v539_v5 = vadd.f32 %v946_v3, %v1324_v1 }
  0xdf   :  { %v373_v6 = vpop.f32.mrf.mxu0  ;;  %v533_v7 = vpop.f32.mrf.mxu1 }
  0xe0   :  { %694 = vst.msk [vmem:[%s1649_s3 + $0x8] sm:$0xff] %vm692_vm2, %v379_v4  ;;  %726 = vst.msk [vmem:[%s1649_s3 + $0x108] sm:$0xff] %vm692_vm2, %v539_v5  ;;  %v374_v8 = vadd.f32 %v1324_v1, %v373_v6  ;;  %v534_v9 = vadd.f32 %v1324_v1, %v533_v7 }
  0xe1   :  { %v901_v10 = vpop.f32.mrf.mxu0  ;;  %v949_v11 = vpop.f32.mrf.mxu1 }
  0xe2   :  { %693 = vst.msk [vmem:[%s1649_s3] sm:$0xff] %vm692_vm2, %v374_v8  ;;  %725 = vst.msk [vmem:[%s1649_s3 + $0x100] sm:$0xff] %vm692_vm2, %v534_v9  ;;  %v389_v12 = vadd.f32 %v901_v10, %v1324_v1  ;;  %v549_v13 = vadd.f32 %v949_v11, %v1324_v1 }
  0xe3   :  { %v383_v14 = vpop.f32.mrf.mxu0  ;;  %v543_v15 = vpop.f32.mrf.mxu1 }
  0xe4   :  { %696 = vst.msk [vmem:[%s1649_s3 + $0x18] sm:$0xff] %vm692_vm2, %v389_v12  ;;  %728 = vst.msk [vmem:[%s1649_s3 + $0x118] sm:$0xff] %vm692_vm2, %v549_v13  ;;  %v384_v16 = vadd.f32 %v1324_v1, %v383_v14  ;;  %v544_v17 = vadd.f32 %v1324_v1, %v543_v15 }
  0xe5   :  { %v904_v18 = vpop.f32.mrf.mxu0  ;;  %v952_v19 = vpop.f32.mrf.mxu1 }
  0xe6   :  { %695 = vst.msk [vmem:[%s1649_s3 + $0x10] sm:$0xff] %vm692_vm2, %v384_v16  ;;  %727 = vst.msk [vmem:[%s1649_s3 + $0x110] sm:$0xff] %vm692_vm2, %v544_v17  ;;  %v399_v20 = vadd.f32 %v904_v18, %v1324_v1  ;;  %v559_v21 = vadd.f32 %v952_v19, %v1324_v1 }
  0xe7   :  { %v393_v22 = vpop.f32.mrf.mxu0  ;;  %v553_v23 = vpop.f32.mrf.mxu1 }
  0xe8   :  { %698 = vst.msk [vmem:[%s1649_s3 + $0x28] sm:$0xff] %vm692_vm2, %v399_v20  ;;  %730 = vst.msk [vmem:[%s1649_s3 + $0x128] sm:$0xff] %vm692_vm2, %v559_v21  ;;  %v394_v24 = vadd.f32 %v1324_v1, %v393_v22  ;;  %v554_v25 = vadd.f32 %v1324_v1, %v553_v23 }
  0xe9   :  { %v907_v26 = vpop.f32.mrf.mxu0  ;;  %v955_v27 = vpop.f32.mrf.mxu1 }
  0xea   :  { %697 = vst.msk [vmem:[%s1649_s3 + $0x20] sm:$0xff] %vm692_vm2, %v394_v24  ;;  %729 = vst.msk [vmem:[%s1649_s3 + $0x120] sm:$0xff] %vm692_vm2, %v554_v25  ;;  %v409_v28 = vadd.f32 %v907_v26, %v1324_v1  ;;  %v569_v29 = vadd.f32 %v955_v27, %v1324_v1 }
  0xeb   :  { %v403_v30 = vpop.f32.mrf.mxu0  ;;  %v563_v31 = vpop.f32.mrf.mxu1 }
  0xec   :  { %700 = vst.msk [vmem:[%s1649_s3 + $0x38] sm:$0xff] %vm692_vm2, %v409_v28  ;;  %732 = vst.msk [vmem:[%s1649_s3 + $0x138] sm:$0xff] %vm692_vm2, %v569_v29  ;;  %v404_v32 = vadd.f32 %v1324_v1, %v403_v30  ;;  %v564_v33 = vadd.f32 %v1324_v1, %v563_v31 }
  0xed   :  { %v910_v34 = vpop.f32.mrf.mxu0  ;;  %v958_v35 = vpop.f32.mrf.mxu1 }
  0xee   :  { %699 = vst.msk [vmem:[%s1649_s3 + $0x30] sm:$0xff] %vm692_vm2, %v404_v32  ;;  %731 = vst.msk [vmem:[%s1649_s3 + $0x130] sm:$0xff] %vm692_vm2, %v564_v33  ;;  %v419_v36 = vadd.f32 %v910_v34, %v1324_v1  ;;  %v579_v37 = vadd.f32 %v958_v35, %v1324_v1 }
  0xef   :  { %v413_v38 = vpop.f32.mrf.mxu0  ;;  %v573_v39 = vpop.f32.mrf.mxu1 }
  0xf0   :  { %702 = vst.msk [vmem:[%s1649_s3 + $0x48] sm:$0xff] %vm692_vm2, %v419_v36  ;;  %734 = vst.msk [vmem:[%s1649_s3 + $0x148] sm:$0xff] %vm692_vm2, %v579_v37  ;;  %v414_v40 = vadd.f32 %v1324_v1, %v413_v38  ;;  %v574_v41 = vadd.f32 %v1324_v1, %v573_v39 }
  0xf1   :  { %v913_v42 = vpop.f32.mrf.mxu0  ;;  %v961_v43 = vpop.f32.mrf.mxu1 }
  0xf2   :  { %701 = vst.msk [vmem:[%s1649_s3 + $0x40] sm:$0xff] %vm692_vm2, %v414_v40  ;;  %733 = vst.msk [vmem:[%s1649_s3 + $0x140] sm:$0xff] %vm692_vm2, %v574_v41  ;;  %v429_v44 = vadd.f32 %v913_v42, %v1324_v1  ;;  %v589_v45 = vadd.f32 %v961_v43, %v1324_v1 }
  0xf3   :  { %v423_v46 = vpop.f32.mrf.mxu0  ;;  %v583_v47 = vpop.f32.mrf.mxu1 }
  0xf4   :  { %704 = vst.msk [vmem:[%s1649_s3 + $0x58] sm:$0xff] %vm692_vm2, %v429_v44  ;;  %736 = vst.msk [vmem:[%s1649_s3 + $0x158] sm:$0xff] %vm692_vm2, %v589_v45  ;;  %v424_v48 = vadd.f32 %v1324_v1, %v423_v46  ;;  %v584_v49 = vadd.f32 %v1324_v1, %v583_v47 }
  0xf5   :  { %v916_v50 = vpop.f32.mrf.mxu0  ;;  %v964_v51 = vpop.f32.mrf.mxu1 }
  0xf6   :  { %703 = vst.msk [vmem:[%s1649_s3 + $0x50] sm:$0xff] %vm692_vm2, %v424_v48  ;;  %735 = vst.msk [vmem:[%s1649_s3 + $0x150] sm:$0xff] %vm692_vm2, %v584_v49  ;;  %v439_v52 = vadd.f32 %v916_v50, %v1324_v1  ;;  %v599_v53 = vadd.f32 %v964_v51, %v1324_v1 }
  0xf7   :  { %v433_v54 = vpop.f32.mrf.mxu0  ;;  %v593_v55 = vpop.f32.mrf.mxu1 }
  0xf8   :  { %706 = vst.msk [vmem:[%s1649_s3 + $0x68] sm:$0xff] %vm692_vm2, %v439_v52  ;;  %738 = vst.msk [vmem:[%s1649_s3 + $0x168] sm:$0xff] %vm692_vm2, %v599_v53  ;;  %v434_v56 = vadd.f32 %v1324_v1, %v433_v54  ;;  %v594_v57 = vadd.f32 %v1324_v1, %v593_v55 }
  0xf9   :  { %v919_v58 = vpop.f32.mrf.mxu0  ;;  %v967_v59 = vpop.f32.mrf.mxu1 }
  0xfa   :  { %705 = vst.msk [vmem:[%s1649_s3 + $0x60] sm:$0xff] %vm692_vm2, %v434_v56  ;;  %737 = vst.msk [vmem:[%s1649_s3 + $0x160] sm:$0xff] %vm692_vm2, %v594_v57  ;;  %v449_v60 = vadd.f32 %v919_v58, %v1324_v1  ;;  %v609_v61 = vadd.f32 %v967_v59, %v1324_v1 }
  0xfb   :  { %v443_v62 = vpop.f32.mrf.mxu0  ;;  %v603_v63 = vpop.f32.mrf.mxu1 }
  0xfc   :  { %708 = vst.msk [vmem:[%s1649_s3 + $0x78] sm:$0xff] %vm692_vm2, %v449_v60  ;;  %740 = vst.msk [vmem:[%s1649_s3 + $0x178] sm:$0xff] %vm692_vm2, %v609_v61  ;;  %v444_v0 = vadd.f32 %v1324_v1, %v443_v62  ;;  %v604_v2 = vadd.f32 %v1324_v1, %v603_v63 }
  0xfd   :  { %v922_v3 = vpop.f32.mrf.mxu0  ;;  %v970_v4 = vpop.f32.mrf.mxu1 }
  0xfe   :  { %707 = vst.msk [vmem:[%s1649_s3 + $0x70] sm:$0xff] %vm692_vm2, %v444_v0  ;;  %739 = vst.msk [vmem:[%s1649_s3 + $0x170] sm:$0xff] %vm692_vm2, %v604_v2  ;;  %v459_v5 = vadd.f32 %v922_v3, %v1324_v1  ;;  %v619_v6 = vadd.f32 %v970_v4, %v1324_v1 }
  0xff   :  { %v453_v7 = vpop.f32.mrf.mxu0  ;;  %v613_v8 = vpop.f32.mrf.mxu1 }
 0x100   :  { %710 = vst.msk [vmem:[%s1649_s3 + $0x88] sm:$0xff] %vm692_vm2, %v459_v5  ;;  %742 = vst.msk [vmem:[%s1649_s3 + $0x188] sm:$0xff] %vm692_vm2, %v619_v6  ;;  %v454_v9 = vadd.f32 %v1324_v1, %v453_v7  ;;  %v614_v10 = vadd.f32 %v1324_v1, %v613_v8 }
 0x101   :  { %v925_v11 = vpop.f32.mrf.mxu0  ;;  %v973_v12 = vpop.f32.mrf.mxu1 }
 0x102   :  { %709 = vst.msk [vmem:[%s1649_s3 + $0x80] sm:$0xff] %vm692_vm2, %v454_v9  ;;  %741 = vst.msk [vmem:[%s1649_s3 + $0x180] sm:$0xff] %vm692_vm2, %v614_v10  ;;  %v469_v13 = vadd.f32 %v925_v11, %v1324_v1  ;;  %v629_v14 = vadd.f32 %v973_v12, %v1324_v1 }
 0x103   :  { %v463_v15 = vpop.f32.mrf.mxu0  ;;  %v623_v16 = vpop.f32.mrf.mxu1 }
 0x104   :  { %712 = vst.msk [vmem:[%s1649_s3 + $0x98] sm:$0xff] %vm692_vm2, %v469_v13  ;;  %744 = vst.msk [vmem:[%s1649_s3 + $0x198] sm:$0xff] %vm692_vm2, %v629_v14  ;;  %v464_v17 = vadd.f32 %v1324_v1, %v463_v15  ;;  %v624_v18 = vadd.f32 %v1324_v1, %v623_v16 }
 0x105   :  { %v928_v19 = vpop.f32.mrf.mxu0  ;;  %v976_v20 = vpop.f32.mrf.mxu1 }
 0x106   :  { %711 = vst.msk [vmem:[%s1649_s3 + $0x90] sm:$0xff] %vm692_vm2, %v464_v17  ;;  %743 = vst.msk [vmem:[%s1649_s3 + $0x190] sm:$0xff] %vm692_vm2, %v624_v18  ;;  %v479_v21 = vadd.f32 %v928_v19, %v1324_v1  ;;  %v639_v22 = vadd.f32 %v976_v20, %v1324_v1 }
 0x107   :  { %v473_v23 = vpop.f32.mrf.mxu0  ;;  %v633_v24 = vpop.f32.mrf.mxu1 }
 0x108   :  { %714 = vst.msk [vmem:[%s1649_s3 + $0xa8] sm:$0xff] %vm692_vm2, %v479_v21  ;;  %746 = vst.msk [vmem:[%s1649_s3 + $0x1a8] sm:$0xff] %vm692_vm2, %v639_v22  ;;  %v474_v25 = vadd.f32 %v1324_v1, %v473_v23  ;;  %v634_v26 = vadd.f32 %v1324_v1, %v633_v24 }
 0x109   :  { %v931_v27 = vpop.f32.mrf.mxu0  ;;  %v979_v28 = vpop.f32.mrf.mxu1 }
 0x10a   :  { %713 = vst.msk [vmem:[%s1649_s3 + $0xa0] sm:$0xff] %vm692_vm2, %v474_v25  ;;  %745 = vst.msk [vmem:[%s1649_s3 + $0x1a0] sm:$0xff] %vm692_vm2, %v634_v26  ;;  %v489_v29 = vadd.f32 %v931_v27, %v1324_v1  ;;  %v649_v30 = vadd.f32 %v979_v28, %v1324_v1 }
 0x10b   :  { %v483_v31 = vpop.f32.mrf.mxu0  ;;  %v643_v32 = vpop.f32.mrf.mxu1 }
 0x10c   :  { %716 = vst.msk [vmem:[%s1649_s3 + $0xb8] sm:$0xff] %vm692_vm2, %v489_v29  ;;  %748 = vst.msk [vmem:[%s1649_s3 + $0x1b8] sm:$0xff] %vm692_vm2, %v649_v30  ;;  %v484_v33 = vadd.f32 %v1324_v1, %v483_v31  ;;  %v644_v34 = vadd.f32 %v1324_v1, %v643_v32 }
 0x10d   :  { %v934_v35 = vpop.f32.mrf.mxu0  ;;  %v982_v36 = vpop.f32.mrf.mxu1 }
 0x10e   :  { %715 = vst.msk [vmem:[%s1649_s3 + $0xb0] sm:$0xff] %vm692_vm2, %v484_v33  ;;  %747 = vst.msk [vmem:[%s1649_s3 + $0x1b0] sm:$0xff] %vm692_vm2, %v644_v34  ;;  %v499_v37 = vadd.f32 %v934_v35, %v1324_v1  ;;  %v659_v38 = vadd.f32 %v982_v36, %v1324_v1 }
 0x10f   :  { %v493_v39 = vpop.f32.mrf.mxu0  ;;  %v653_v40 = vpop.f32.mrf.mxu1 }
 0x110   :  { %718 = vst.msk [vmem:[%s1649_s3 + $0xc8] sm:$0xff] %vm692_vm2, %v499_v37  ;;  %750 = vst.msk [vmem:[%s1649_s3 + $0x1c8] sm:$0xff] %vm692_vm2, %v659_v38  ;;  %v494_v41 = vadd.f32 %v1324_v1, %v493_v39  ;;  %v654_v42 = vadd.f32 %v1324_v1, %v653_v40 }
 0x111   :  { %v937_v43 = vpop.f32.mrf.mxu0  ;;  %v985_v44 = vpop.f32.mrf.mxu1 }
 0x112   :  { %717 = vst.msk [vmem:[%s1649_s3 + $0xc0] sm:$0xff] %vm692_vm2, %v494_v41  ;;  %749 = vst.msk [vmem:[%s1649_s3 + $0x1c0] sm:$0xff] %vm692_vm2, %v654_v42  ;;  %v509_v45 = vadd.f32 %v937_v43, %v1324_v1  ;;  %v669_v46 = vadd.f32 %v985_v44, %v1324_v1 }
 0x113   :  { %v503_v47 = vpop.f32.mrf.mxu0  ;;  %v663_v48 = vpop.f32.mrf.mxu1 }
 0x114   :  { %720 = vst.msk [vmem:[%s1649_s3 + $0xd8] sm:$0xff] %vm692_vm2, %v509_v45  ;;  %752 = vst.msk [vmem:[%s1649_s3 + $0x1d8] sm:$0xff] %vm692_vm2, %v669_v46  ;;  %v504_v49 = vadd.f32 %v1324_v1, %v503_v47  ;;  %v664_v50 = vadd.f32 %v1324_v1, %v663_v48 }
 0x115   :  { %v940_v51 = vpop.f32.mrf.mxu0  ;;  %v988_v52 = vpop.f32.mrf.mxu1 }
 0x116   :  { %719 = vst.msk [vmem:[%s1649_s3 + $0xd0] sm:$0xff] %vm692_vm2, %v504_v49  ;;  %751 = vst.msk [vmem:[%s1649_s3 + $0x1d0] sm:$0xff] %vm692_vm2, %v664_v50  ;;  %v519_v53 = vadd.f32 %v940_v51, %v1324_v1  ;;  %v679_v54 = vadd.f32 %v988_v52, %v1324_v1 }
 0x117   :  { %v513_v55 = vpop.f32.mrf.mxu0  ;;  %v673_v56 = vpop.f32.mrf.mxu1 }
 0x118   :  { %722 = vst.msk [vmem:[%s1649_s3 + $0xe8] sm:$0xff] %vm692_vm2, %v519_v53  ;;  %754 = vst.msk [vmem:[%s1649_s3 + $0x1e8] sm:$0xff] %vm692_vm2, %v679_v54  ;;  %v514_v57 = vadd.f32 %v1324_v1, %v513_v55  ;;  %v674_v58 = vadd.f32 %v1324_v1, %v673_v56 }
 0x119   :  { %v943_v59 = vpop.f32.mrf.mxu0  ;;  %v991_v60 = vpop.f32.mrf.mxu1 }
 0x11a   :  { %721 = vst.msk [vmem:[%s1649_s3 + $0xe0] sm:$0xff] %vm692_vm2, %v514_v57  ;;  %753 = vst.msk [vmem:[%s1649_s3 + $0x1e0] sm:$0xff] %vm692_vm2, %v674_v58  ;;  %v529_v61 = vadd.f32 %v943_v59, %v1324_v1  ;;  %v689_v62 = vadd.f32 %v991_v60, %v1324_v1 }
 0x11b   :  { %v523_v63 = vpop.f32.mrf.mxu0  ;;  %v683_v0 = vpop.f32.mrf.mxu1 }
 0x11c   :  { %724 = vst.msk [vmem:[%s1649_s3 + $0xf8] sm:$0xff] %vm692_vm2, %v529_v61  ;;  %756 = vst.msk [vmem:[%s1649_s3 + $0x1f8] sm:$0xff] %vm692_vm2, %v689_v62  ;;  %v524_v2 = vadd.f32 %v1324_v1, %v523_v63  ;;  %v684_v3 = vadd.f32 %v1324_v1, %v683_v0 }
 0x11e   :  { %723 = vst.msk [vmem:[%s1649_s3 + $0xf0] sm:$0xff] %vm692_vm2, %v524_v2  ;;  %755 = vst.msk [vmem:[%s1649_s3 + $0x1f0] sm:$0xff] %vm692_vm2, %v684_v3 }
 0x11f   :  { %761 = vsyncpa [#allocation3], 1 }
 0x120   :  { %762 = vsyncpa [#allocation5], 1 }

// kernel: fno2d_prev_forward.12
= control target key start
LH: loop header
LB: loop body
LE: loop exit
PB: predicated region body
PF: predicated region fallthrough
CT: control target
= control target key end

     0   :  { %s2594_s9 = smov 0   ;;  %s3108_s0 = inlined_call_operand.vmem [shape: f32[32,2,96], index: 0, kind: input, shape index: {}]   ;;  %s3109_s1 = inlined_call_operand.vmem [shape: f32[32,96,96], index: 1, kind: input, shape index: {}]   ;;  %s3110_s2 = inlined_call_operand.vmem [shape: f32[32,2,96], index: 2, kind: output, shape index: {}]  }
   0x1 LB: > { %s1679_s10 = sadd.s32 4294967295, %s2575_s9   ;;  %p1683_p0 = scmp.ge.s32.totalorder %s2575_s9, 1  ;;  %s2575_s9 = sphi %s2594_s9, %s12_s9  }
   0x2   : > { %p125_p1 = scmp.lt.s32.totalorder %s2575_s9, 3 }
   0x4   : > { %p126_p2 = pnand %p1683_p0, %p125_p1 }
   0x5   : > { %s1684_s11 = sshll.u32 (!%p126_p2), %s1679_s10, 4 }
   0x6   : > { %129 = sbr.rel (%p126_p2) target bundleno = 417 (0x1a1), region = 28  ;;  %p154_p3 = scmp.lt.s32.totalorder (!%p126_p2), %s1684_s11, 31 }
   0xb   : > { %v2577_v0 = vmov 0.0   ;;  %vm2578_vm0 = vmmov 0   ;;  %s3112_s11 = smov (!%p154_p3, %s1684_s11), 31  ;;  %vm185_vm1 = vcmask 785408   ;;  %vm259_vm2 = vcmask 779264  }
   0xc   : > { %2126 = vmatprep.subr.mxu0 %v2577_v0  ;;  %2153 = vmatprep.subr.mxu1 %v2577_v0  ;;  %s2558_s12 = smul.u32 96, %s3112_s11  ;;  %s1685_s16 = sshll.u32 %s3112_s11, 1 }
   0xd   : > { %2150 = vmatprep.mubr.msk.f32.mxu0 %vm2578_vm0, %v2577_v0  ;;  %2177 = vmatprep.mubr.msk.f32.mxu1 %vm2578_vm0, %v2577_v0  ;;  %s2662_s19 = scalar_lea.vmem %s3108_s0, %s1685_s16  ;;  %s3071_s22 = scalar_lea.vmem %s3110_s2, %s1685_s16 }
   0xe   : > { %s2614_s15 = scalar_lea.vmem %s3109_s1, %s2558_s12  ;;  %v172_v25 = vld [vmem:[%s2662_s19] sm:$0x3]  ;;  %v1691_v26 = vld [vmem:[%s2662_s19 + $0x2] sm:$0x3]  ;;  %v1706_v51 = vld [vmem:[%s2662_s19 + $0x4] sm:$0x3] }
   0xf   : > { %v184_v1 = vld [vmem:[%s2614_s15 + $0x58] sm:$0xff]  ;;  %v183_v3 = vld [vmem:[%s2614_s15 + $0x50] sm:$0xff]  ;;  %v182_v5 = vld [vmem:[%s2614_s15 + $0x48] sm:$0xff] }
  0x10   : > { %v1703_v2 = vld [vmem:[%s2614_s15 + $0xb8] sm:$0xff]  ;;  %2127 = vmatpush3.msra.mxu0 %v184_v1  ;;  %v1702_v4 = vld [vmem:[%s2614_s15 + $0xb0] sm:$0xff]  ;;  %v1701_v6 = vld [vmem:[%s2614_s15 + $0xa8] sm:$0xff] }
  0x11   : > { %2154 = vmatpush3.msra.mxu1 %v1703_v2  ;;  %2128 = vmatprep.subr.mxu0 %v2577_v0  ;;  %v181_v7 = vld [vmem:[%s2614_s15 + $0x40] sm:$0xff]  ;;  %v180_v9 = vld [vmem:[%s2614_s15 + $0x38] sm:$0xff]  ;;  %v179_v11 = vld [vmem:[%s2614_s15 + $0x30] sm:$0xff] }
  0x12   : > { %2155 = vmatprep.subr.mxu1 %v2577_v0  ;;  %2129 = vmatpush3.msra.mxu0 %v183_v3  ;;  %v1700_v8 = vld [vmem:[%s2614_s15 + $0xa0] sm:$0xff]  ;;  %v1699_v10 = vld [vmem:[%s2614_s15 + $0x98] sm:$0xff]  ;;  %v1698_v12 = vld [vmem:[%s2614_s15 + $0x90] sm:$0xff] }
  0x13   : > { %2156 = vmatpush3.msra.mxu1 %v1702_v4  ;;  %2130 = vmatprep.subr.mxu0 %v2577_v0  ;;  %v178_v13 = vld [vmem:[%s2614_s15 + $0x28] sm:$0xff]  ;;  %v177_v15 = vld [vmem:[%s2614_s15 + $0x20] sm:$0xff]  ;;  %v176_v17 = vld [vmem:[%s2614_s15 + $0x18] sm:$0xff] }
  0x14   : > { %2157 = vmatprep.subr.mxu1 %v2577_v0  ;;  %2131 = vmatpush3.msra.mxu0 %v182_v5  ;;  %v1697_v14 = vld [vmem:[%s2614_s15 + $0x88] sm:$0xff]  ;;  %v1696_v16 = vld [vmem:[%s2614_s15 + $0x80] sm:$0xff]  ;;  %v1695_v18 = vld [vmem:[%s2614_s15 + $0x78] sm:$0xff] }
  0x15   : > { %2158 = vmatpush3.msra.mxu1 %v1701_v6  ;;  %2132 = vmatprep.subr.mxu0 %v2577_v0  ;;  %v175_v19 = vld [vmem:[%s2614_s15 + $0x10] sm:$0xff]  ;;  %v174_v21 = vld [vmem:[%s2614_s15 + $0x8] sm:$0xff]  ;;  %v173_v23 = vld [vmem:[%s2614_s15] sm:$0xff] }
  0x16   : > { %2159 = vmatprep.subr.mxu1 %v2577_v0  ;;  %2133 = vmatpush3.msra.mxu0 %v181_v7  ;;  %v1694_v20 = vld [vmem:[%s2614_s15 + $0x70] sm:$0xff]  ;;  %v1693_v22 = vld [vmem:[%s2614_s15 + $0x68] sm:$0xff]  ;;  %v1692_v24 = vld [vmem:[%s2614_s15 + $0x60] sm:$0xff] }
  0x17   : > { %2160 = vmatpush3.msra.mxu1 %v1700_v8  ;;  %2134 = vmatprep.subr.mxu0 %v2577_v0  ;;  %v1718_v27 = vld [vmem:[%s2614_s15 + $0x118] sm:$0xff]  ;;  %v1717_v29 = vld [vmem:[%s2614_s15 + $0x110] sm:$0xff]  ;;  %v1716_v31 = vld [vmem:[%s2614_s15 + $0x108] sm:$0xff] }
  0x18   : > { %2161 = vmatprep.subr.mxu1 %v2577_v0  ;;  %2135 = vmatpush3.msra.mxu0 %v180_v9  ;;  %v1733_v28 = vld [vmem:[%s2614_s15 + $0x178] sm:$0xff]  ;;  %v1732_v30 = vld [vmem:[%s2614_s15 + $0x170] sm:$0xff]  ;;  %v1731_v32 = vld [vmem:[%s2614_s15 + $0x168] sm:$0xff] }
  0x19   : > { %2162 = vmatpush3.msra.mxu1 %v1699_v10  ;;  %2136 = vmatprep.subr.mxu0 %v2577_v0  ;;  %v1715_v33 = vld [vmem:[%s2614_s15 + $0x100] sm:$0xff]  ;;  %v1714_v35 = vld [vmem:[%s2614_s15 + $0xf8] sm:$0xff]  ;;  %v1713_v37 = vld [vmem:[%s2614_s15 + $0xf0] sm:$0xff] }
  0x1a   : > { %2163 = vmatprep.subr.mxu1 %v2577_v0  ;;  %2137 = vmatpush3.msra.mxu0 %v179_v11  ;;  %v1730_v34 = vld [vmem:[%s2614_s15 + $0x160] sm:$0xff]  ;;  %v1729_v36 = vld [vmem:[%s2614_s15 + $0x158] sm:$0xff]  ;;  %v1728_v38 = vld [vmem:[%s2614_s15 + $0x150] sm:$0xff] }
  0x1b   : > { %2164 = vmatpush3.msra.mxu1 %v1698_v12  ;;  %2138 = vmatprep.subr.mxu0 %v2577_v0  ;;  %v1712_v39 = vld [vmem:[%s2614_s15 + $0xe8] sm:$0xff]  ;;  %v1711_v41 = vld [vmem:[%s2614_s15 + $0xe0] sm:$0xff]  ;;  %v1710_v43 = vld [vmem:[%s2614_s15 + $0xd8] sm:$0xff] }
  0x1c   : > { %2165 = vmatprep.subr.mxu1 %v2577_v0  ;;  %2139 = vmatpush3.msra.mxu0 %v178_v13  ;;  %v1727_v40 = vld [vmem:[%s2614_s15 + $0x148] sm:$0xff]  ;;  %v1726_v42 = vld [vmem:[%s2614_s15 + $0x140] sm:$0xff]  ;;  %v1725_v44 = vld [vmem:[%s2614_s15 + $0x138] sm:$0xff] }
  0x1d   : > { %2166 = vmatpush3.msra.mxu1 %v1697_v14  ;;  %2140 = vmatprep.subr.mxu0 %v2577_v0  ;;  %v1709_v45 = vld [vmem:[%s2614_s15 + $0xd0] sm:$0xff]  ;;  %v1708_v47 = vld [vmem:[%s2614_s15 + $0xc8] sm:$0xff]  ;;  %v1707_v49 = vld [vmem:[%s2614_s15 + $0xc0] sm:$0xff] }
  0x1e   : > { %2167 = vmatprep.subr.mxu1 %v2577_v0  ;;  %2141 = vmatpush3.msra.mxu0 %v177_v15  ;;  %v1724_v46 = vld [vmem:[%s2614_s15 + $0x130] sm:$0xff]  ;;  %v1723_v48 = vld [vmem:[%s2614_s15 + $0x128] sm:$0xff]  ;;  %v1722_v50 = vld [vmem:[%s2614_s15 + $0x120] sm:$0xff] }
  0x1f   : > { %2168 = vmatpush3.msra.mxu1 %v1696_v16  ;;  %2142 = vmatprep.subr.mxu0 %v2577_v0  ;;  %v1721_v52 = vld [vmem:[%s2662_s19 + $0x6] sm:$0x3]  ;;  %v1748_v53 = vld [vmem:[%s2614_s15 + $0x1d8] sm:$0xff]  ;;  %v1747_v55 = vld [vmem:[%s2614_s15 + $0x1d0] sm:$0xff] }
  0x20   : > { %2169 = vmatprep.subr.mxu1 %v2577_v0  ;;  %2143 = vmatpush3.msra.mxu0 %v176_v17  ;;  %v1763_v54 = vld [vmem:[%s2614_s15 + $0x238] sm:$0xff]  ;;  %v1762_v56 = vld [vmem:[%s2614_s15 + $0x230] sm:$0xff]  ;;  %v1746_v57 = vld [vmem:[%s2614_s15 + $0x1c8] sm:$0xff] }
  0x21   : > { %2170 = vmatpush3.msra.mxu1 %v1695_v18  ;;  %2144 = vmatprep.subr.mxu0 %v2577_v0  ;;  %v1761_v58 = vld [vmem:[%s2614_s15 + $0x228] sm:$0xff]  ;;  %v1745_v59 = vld [vmem:[%s2614_s15 + $0x1c0] sm:$0xff]  ;;  %v1744_v61 = vld [vmem:[%s2614_s15 + $0x1b8] sm:$0xff] }
  0x22   : > { %2171 = vmatprep.subr.mxu1 %v2577_v0  ;;  %2145 = vmatpush3.msra.mxu0 %v175_v19  ;;  %v1760_v60 = vld [vmem:[%s2614_s15 + $0x220] sm:$0xff]  ;;  %v1759_v62 = vld [vmem:[%s2614_s15 + $0x218] sm:$0xff]  ;;  %v1743_v63 = vld [vmem:[%s2614_s15 + $0x1b0] sm:$0xff] }
  0x23   : > { %2172 = vmatpush3.msra.mxu1 %v1694_v20  ;;  %2146 = vmatprep.subr.mxu0 %v2577_v0  ;;  %v1758_v1 = vld [vmem:[%s2614_s15 + $0x210] sm:$0xff]  ;;  %v1742_v2 = vld [vmem:[%s2614_s15 + $0x1a8] sm:$0xff]  ;;  %v1741_v4 = vld [vmem:[%s2614_s15 + $0x1a0] sm:$0xff] }
  0x24   : > { %2173 = vmatprep.subr.mxu1 %v2577_v0  ;;  %2147 = vmatpush3.msra.mxu0 %v174_v21  ;;  %v1757_v3 = vld [vmem:[%s2614_s15 + $0x208] sm:$0xff]  ;;  %v1756_v5 = vld [vmem:[%s2614_s15 + $0x200] sm:$0xff]  ;;  %v1740_v6 = vld [vmem:[%s2614_s15 + $0x198] sm:$0xff] }
  0x25   : > { %2174 = vmatpush3.msra.mxu1 %v1693_v22  ;;  %2148 = vmatprep.subr.mxu0 %v2577_v0  ;;  %v1755_v7 = vld [vmem:[%s2614_s15 + $0x1f8] sm:$0xff]  ;;  %v1739_v8 = vld [vmem:[%s2614_s15 + $0x190] sm:$0xff]  ;;  %v1738_v10 = vld [vmem:[%s2614_s15 + $0x188] sm:$0xff] }
  0x26   : > { %2175 = vmatprep.subr.mxu1 %v2577_v0  ;;  %2149 = vmatpush3.msra.mxu0 %v173_v23  ;;  %v1754_v9 = vld [vmem:[%s2614_s15 + $0x1f0] sm:$0xff]  ;;  %v1753_v11 = vld [vmem:[%s2614_s15 + $0x1e8] sm:$0xff]  ;;  %v1737_v12 = vld [vmem:[%s2614_s15 + $0x180] sm:$0xff] }
  0x27   : > { %2176 = vmatpush3.msra.mxu1 %v1692_v24  ;;  %2151 = vmatmul.mubr.msk.f32.vlgmr.msra.gmra.mxu0 %vm185_vm1, %v172_v25  ;;  %v1752_v13 = vld [vmem:[%s2614_s15 + $0x1e0] sm:$0xff]  ;;  %v1736_v14 = vld [vmem:[%s2662_s19 + $0x8] sm:$0x3]  ;;  %v1751_v15 = vld [vmem:[%s2662_s19 + $0xa] sm:$0x3] }
  0x28   : > { %2178 = vmatmul.mubr.msk.f32.vlgmr.msra.gmra.mxu1 %vm185_vm1, %v1691_v26  ;;  %2180 = vmatprep.subr.mxu0 %v2577_v0  ;;  %v1778_v16 = vld [vmem:[%s2614_s15 + $0x298] sm:$0xff]  ;;  %v1777_v18 = vld [vmem:[%s2614_s15 + $0x290] sm:$0xff]  ;;  %v1776_v20 = vld [vmem:[%s2614_s15 + $0x288] sm:$0xff] }
  0x29   : > { %2207 = vmatprep.subr.mxu1 %v2577_v0  ;;  %2181 = vmatpush3.msra.mxu0 %v1718_v27  ;;  %v1793_v17 = vld [vmem:[%s2614_s15 + $0x2f8] sm:$0xff]  ;;  %v1792_v19 = vld [vmem:[%s2614_s15 + $0x2f0] sm:$0xff]  ;;  %v1791_v21 = vld [vmem:[%s2614_s15 + $0x2e8] sm:$0xff] }
  0x2a   : > { %2208 = vmatpush3.msra.mxu1 %v1733_v28  ;;  %2182 = vmatprep.subr.mxu0 %v2577_v0  ;;  %v1775_v22 = vld [vmem:[%s2614_s15 + $0x280] sm:$0xff]  ;;  %v1774_v24 = vld [vmem:[%s2614_s15 + $0x278] sm:$0xff]  ;;  %v1773_v26 = vld [vmem:[%s2614_s15 + $0x270] sm:$0xff] }
  0x2b   : > { %2209 = vmatprep.subr.mxu1 %v2577_v0  ;;  %2183 = vmatpush3.msra.mxu0 %v1717_v29  ;;  %v1790_v23 = vld [vmem:[%s2614_s15 + $0x2e0] sm:$0xff]  ;;  %v1789_v25 = vld [vmem:[%s2614_s15 + $0x2d8] sm:$0xff]  ;;  %v1788_v27 = vld [vmem:[%s2614_s15 + $0x2d0] sm:$0xff] }
  0x2c   : > { %2210 = vmatpush3.msra.mxu1 %v1732_v30  ;;  %2184 = vmatprep.subr.mxu0 %v2577_v0  ;;  %v1772_v28 = vld [vmem:[%s2614_s15 + $0x268] sm:$0xff]  ;;  %v1771_v30 = vld [vmem:[%s2614_s15 + $0x260] sm:$0xff] }
  0x2d   : > { %2211 = vmatprep.subr.mxu1 %v2577_v0  ;;  %2185 = vmatpush3.msra.mxu0 %v1716_v31  ;;  %v1787_v29 = vld [vmem:[%s2614_s15 + $0x2c8] sm:$0xff]  ;;  %v1786_v31 = vld [vmem:[%s2614_s15 + $0x2c0] sm:$0xff] }
  0x2e   : > { %2212 = vmatpush3.msra.mxu1 %v1731_v32  ;;  %2186 = vmatprep.subr.mxu0 %v2577_v0  ;;  %v1770_v32 = vld [vmem:[%s2614_s15 + $0x258] sm:$0xff] }
  0x2f   : > { %2213 = vmatprep.subr.mxu1 %v2577_v0  ;;  %2187 = vmatpush3.msra.mxu0 %v1715_v33  ;;  %v1785_v33 = vld [vmem:[%s2614_s15 + $0x2b8] sm:$0xff] }
  0x30   : > { %2214 = vmatpush3.msra.mxu1 %v1730_v34  ;;  %2188 = vmatprep.subr.mxu0 %v2577_v0  ;;  %v1769_v34 = vld [vmem:[%s2614_s15 + $0x250] sm:$0xff] }
  0x31   : > { %2215 = vmatprep.subr.mxu1 %v2577_v0  ;;  %2189 = vmatpush3.msra.mxu0 %v1714_v35  ;;  %v1784_v35 = vld [vmem:[%s2614_s15 + $0x2b0] sm:$0xff] }
  0x32   : > { %2216 = vmatpush3.msra.mxu1 %v1729_v36  ;;  %2190 = vmatprep.subr.mxu0 %v2577_v0  ;;  %v1768_v36 = vld [vmem:[%s2614_s15 + $0x248] sm:$0xff] }
  0x33   : > { %2217 = vmatprep.subr.mxu1 %v2577_v0  ;;  %2191 = vmatpush3.msra.mxu0 %v1713_v37  ;;  %v1783_v37 = vld [vmem:[%s2614_s15 + $0x2a8] sm:$0xff] }
  0x34   : > { %2218 = vmatpush3.msra.mxu1 %v1728_v38  ;;  %2192 = vmatprep.subr.mxu0 %v2577_v0  ;;  %v1767_v38 = vld [vmem:[%s2614_s15 + $0x240] sm:$0xff] }
  0x35   : > { %2219 = vmatprep.subr.mxu1 %v2577_v0  ;;  %2193 = vmatpush3.msra.mxu0 %v1712_v39  ;;  %v1782_v39 = vld [vmem:[%s2614_s15 + $0x2a0] sm:$0xff] }
  0x36   : > { %2220 = vmatpush3.msra.mxu1 %v1727_v40  ;;  %2194 = vmatprep.subr.mxu0 %v2577_v0  ;;  %v1766_v40 = vld [vmem:[%s2662_s19 + $0xc] sm:$0x3] }
  0x37   : > { %2221 = vmatprep.subr.mxu1 %v2577_v0  ;;  %2195 = vmatpush3.msra.mxu0 %v1711_v41  ;;  %v1781_v41 = vld [vmem:[%s2662_s19 + $0xe] sm:$0x3] }
  0x38   : > { %2222 = vmatpush3.msra.mxu1 %v1726_v42  ;;  %2196 = vmatprep.subr.mxu0 %v2577_v0  ;;  %v1808_v42 = vld [vmem:[%s2614_s15 + $0x358] sm:$0xff] }
  0x39   : > { %2223 = vmatprep.subr.mxu1 %v2577_v0  ;;  %2197 = vmatpush3.msra.mxu0 %v1710_v43  ;;  %v1823_v43 = vld [vmem:[%s2614_s15 + $0x3b8] sm:$0xff] }
  0x3a   : > { %2224 = vmatpush3.msra.mxu1 %v1725_v44  ;;  %2198 = vmatprep.subr.mxu0 %v2577_v0  ;;  %v1807_v44 = vld [vmem:[%s2614_s15 + $0x350] sm:$0xff] }
  0x3b   : > { %2225 = vmatprep.subr.mxu1 %v2577_v0  ;;  %2199 = vmatpush3.msra.mxu0 %v1709_v45  ;;  %v1822_v45 = vld [vmem:[%s2614_s15 + $0x3b0] sm:$0xff] }
  0x3c   : > { %2226 = vmatpush3.msra.mxu1 %v1724_v46  ;;  %2200 = vmatprep.subr.mxu0 %v2577_v0  ;;  %v1806_v46 = vld [vmem:[%s2614_s15 + $0x348] sm:$0xff] }
  0x3d   : > { %2227 = vmatprep.subr.mxu1 %v2577_v0  ;;  %2201 = vmatpush3.msra.mxu0 %v1708_v47  ;;  %v1821_v47 = vld [vmem:[%s2614_s15 + $0x3a8] sm:$0xff] }
  0x3e   : > { %2228 = vmatpush3.msra.mxu1 %v1723_v48  ;;  %2202 = vmatprep.subr.mxu0 %v2577_v0  ;;  %v1805_v48 = vld [vmem:[%s2614_s15 + $0x340] sm:$0xff] }
  0x3f   : > { %2229 = vmatprep.subr.mxu1 %v2577_v0  ;;  %2203 = vmatpush3.msra.mxu0 %v1707_v49  ;;  %v1820_v49 = vld [vmem:[%s2614_s15 + $0x3a0] sm:$0xff] }
  0x40   : > { %2204 = vmatprep.mubr.msk.f32.mxu0 %vm2578_vm0, %v2577_v0  ;;  %2230 = vmatpush3.msra.mxu1 %v1722_v50  ;;  %v1804_v50 = vld [vmem:[%s2614_s15 + $0x338] sm:$0xff] }
  0x41   : > { %2231 = vmatprep.mubr.msk.f32.mxu1 %vm2578_vm0, %v2577_v0  ;;  %2205 = vmatmul.mubr.msk.f32.vlgmr.msra.gmra.mxu0 %vm185_vm1, %v1706_v51  ;;  %v1819_v51 = vld [vmem:[%s2614_s15 + $0x398] sm:$0xff] }
  0x42   : > { %2232 = vmatmul.mubr.msk.f32.vlgmr.msra.gmra.mxu1 %vm185_vm1, %v1721_v52  ;;  %2234 = vmatprep.subr.mxu0 %v2577_v0  ;;  %v1803_v52 = vld [vmem:[%s2614_s15 + $0x330] sm:$0xff] }
  0x43   : > { %2261 = vmatprep.subr.mxu1 %v2577_v0  ;;  %2235 = vmatpush3.msra.mxu0 %v1748_v53  ;;  %v1818_v53 = vld [vmem:[%s2614_s15 + $0x390] sm:$0xff] }
  0x44   : > { %2262 = vmatpush3.msra.mxu1 %v1763_v54  ;;  %2236 = vmatprep.subr.mxu0 %v2577_v0  ;;  %v1802_v54 = vld [vmem:[%s2614_s15 + $0x328] sm:$0xff] }
  0x45   : > { %2263 = vmatprep.subr.mxu1 %v2577_v0  ;;  %2237 = vmatpush3.msra.mxu0 %v1747_v55  ;;  %v1817_v55 = vld [vmem:[%s2614_s15 + $0x388] sm:$0xff] }
  0x46   : > { %2264 = vmatpush3.msra.mxu1 %v1762_v56  ;;  %2238 = vmatprep.subr.mxu0 %v2577_v0  ;;  %v1801_v56 = vld [vmem:[%s2614_s15 + $0x320] sm:$0xff] }
  0x47   : > { %2265 = vmatprep.subr.mxu1 %v2577_v0  ;;  %2239 = vmatpush3.msra.mxu0 %v1746_v57  ;;  %v1816_v57 = vld [vmem:[%s2614_s15 + $0x380] sm:$0xff] }
  0x48   : > { %2266 = vmatpush3.msra.mxu1 %v1761_v58  ;;  %2240 = vmatprep.subr.mxu0 %v2577_v0  ;;  %v1800_v58 = vld [vmem:[%s2614_s15 + $0x318] sm:$0xff] }
  0x49   : > { %2267 = vmatprep.subr.mxu1 %v2577_v0  ;;  %2241 = vmatpush3.msra.mxu0 %v1745_v59  ;;  %v1815_v59 = vld [vmem:[%s2614_s15 + $0x378] sm:$0xff] }
  0x4a   : > { %2268 = vmatpush3.msra.mxu1 %v1760_v60  ;;  %2242 = vmatprep.subr.mxu0 %v2577_v0  ;;  %v1799_v60 = vld [vmem:[%s2614_s15 + $0x310] sm:$0xff] }
  0x4b   : > { %2269 = vmatprep.subr.mxu1 %v2577_v0  ;;  %2243 = vmatpush3.msra.mxu0 %v1744_v61  ;;  %v1814_v61 = vld [vmem:[%s2614_s15 + $0x370] sm:$0xff] }
  0x4c   : > { %2270 = vmatpush3.msra.mxu1 %v1759_v62  ;;  %2244 = vmatprep.subr.mxu0 %v2577_v0  ;;  %v1798_v62 = vld [vmem:[%s2614_s15 + $0x308] sm:$0xff] }
  0x4d   : > { %2271 = vmatprep.subr.mxu1 %v2577_v0  ;;  %2245 = vmatpush3.msra.mxu0 %v1743_v63  ;;  %v1813_v63 = vld [vmem:[%s2614_s15 + $0x368] sm:$0xff] }
  0x4e   : > { %2272 = vmatpush3.msra.mxu1 %v1758_v1  ;;  %2246 = vmatprep.subr.mxu0 %v2577_v0  ;;  %v1797_v1 = vld [vmem:[%s2614_s15 + $0x300] sm:$0xff] }
  0x4f   : > { %2273 = vmatprep.subr.mxu1 %v2577_v0  ;;  %2247 = vmatpush3.msra.mxu0 %v1742_v2  ;;  %v1812_v2 = vld [vmem:[%s2614_s15 + $0x360] sm:$0xff] }
  0x50   : > { %2274 = vmatpush3.msra.mxu1 %v1757_v3  ;;  %2248 = vmatprep.subr.mxu0 %v2577_v0  ;;  %v1796_v3 = vld [vmem:[%s2662_s19 + $0x10] sm:$0x3] }
  0x51   : > { %2275 = vmatprep.subr.mxu1 %v2577_v0  ;;  %2249 = vmatpush3.msra.mxu0 %v1741_v4  ;;  %v1811_v4 = vld [vmem:[%s2662_s19 + $0x12] sm:$0x3] }
  0x52   : > { %2276 = vmatpush3.msra.mxu1 %v1756_v5  ;;  %2250 = vmatprep.subr.mxu0 %v2577_v0  ;;  %v1838_v5 = vld [vmem:[%s2614_s15 + $0x418] sm:$0xff] }
  0x53   : > { %2277 = vmatprep.subr.mxu1 %v2577_v0  ;;  %2251 = vmatpush3.msra.mxu0 %v1740_v6  ;;  %v1853_v6 = vld [vmem:[%s2614_s15 + $0x478] sm:$0xff] }
  0x54   : > { %2278 = vmatpush3.msra.mxu1 %v1755_v7  ;;  %2252 = vmatprep.subr.mxu0 %v2577_v0  ;;  %v1837_v7 = vld [vmem:[%s2614_s15 + $0x410] sm:$0xff] }
  0x55   : > { %2279 = vmatprep.subr.mxu1 %v2577_v0  ;;  %2253 = vmatpush3.msra.mxu0 %v1739_v8  ;;  %v1852_v8 = vld [vmem:[%s2614_s15 + $0x470] sm:$0xff] }
  0x56   : > { %2280 = vmatpush3.msra.mxu1 %v1754_v9  ;;  %2254 = vmatprep.subr.mxu0 %v2577_v0  ;;  %v1836_v9 = vld [vmem:[%s2614_s15 + $0x408] sm:$0xff] }
  0x57   : > { %2281 = vmatprep.subr.mxu1 %v2577_v0  ;;  %2255 = vmatpush3.msra.mxu0 %v1738_v10  ;;  %v1851_v10 = vld [vmem:[%s2614_s15 + $0x468] sm:$0xff] }
  0x58   : > { %2282 = vmatpush3.msra.mxu1 %v1753_v11  ;;  %2256 = vmatprep.subr.mxu0 %v2577_v0  ;;  %v1835_v11 = vld [vmem:[%s2614_s15 + $0x400] sm:$0xff] }
  0x59   : > { %2283 = vmatprep.subr.mxu1 %v2577_v0  ;;  %2257 = vmatpush3.msra.mxu0 %v1737_v12  ;;  %v1850_v12 = vld [vmem:[%s2614_s15 + $0x460] sm:$0xff] }
  0x5a   : > { %2258 = vmatprep.mubr.msk.f32.mxu0 %vm2578_vm0, %v2577_v0  ;;  %2284 = vmatpush3.msra.mxu1 %v1752_v13  ;;  %v1834_v13 = vld [vmem:[%s2614_s15 + $0x3f8] sm:$0xff] }
  0x5b   : > { %2285 = vmatprep.mubr.msk.f32.mxu1 %vm2578_vm0, %v2577_v0  ;;  %2259 = vmatmul.mubr.msk.f32.vlgmr.msra.gmra.mxu0 %vm185_vm1, %v1736_v14  ;;  %v1849_v14 = vld [vmem:[%s2614_s15 + $0x458] sm:$0xff] }
  0x5c   : > { %2286 = vmatmul.mubr.msk.f32.vlgmr.msra.gmra.mxu1 %vm185_vm1, %v1751_v15  ;;  %2288 = vmatprep.subr.mxu0 %v2577_v0  ;;  %v1833_v15 = vld [vmem:[%s2614_s15 + $0x3f0] sm:$0xff] }
  0x5d   : > { %2315 = vmatprep.subr.mxu1 %v2577_v0  ;;  %2289 = vmatpush3.msra.mxu0 %v1778_v16  ;;  %v1848_v16 = vld [vmem:[%s2614_s15 + $0x450] sm:$0xff] }
  0x5e   : > { %2316 = vmatpush3.msra.mxu1 %v1793_v17  ;;  %2290 = vmatprep.subr.mxu0 %v2577_v0  ;;  %v1832_v17 = vld [vmem:[%s2614_s15 + $0x3e8] sm:$0xff] }
  0x5f   : > { %2317 = vmatprep.subr.mxu1 %v2577_v0  ;;  %2291 = vmatpush3.msra.mxu0 %v1777_v18  ;;  %v1847_v18 = vld [vmem:[%s2614_s15 + $0x448] sm:$0xff] }
  0x60   : > { %2318 = vmatpush3.msra.mxu1 %v1792_v19  ;;  %2292 = vmatprep.subr.mxu0 %v2577_v0  ;;  %v1831_v19 = vld [vmem:[%s2614_s15 + $0x3e0] sm:$0xff] }
  0x61   : > { %2319 = vmatprep.subr.mxu1 %v2577_v0  ;;  %2293 = vmatpush3.msra.mxu0 %v1776_v20  ;;  %v1846_v20 = vld [vmem:[%s2614_s15 + $0x440] sm:$0xff] }
  0x62   : > { %2320 = vmatpush3.msra.mxu1 %v1791_v21  ;;  %2294 = vmatprep.subr.mxu0 %v2577_v0  ;;  %v1830_v21 = vld [vmem:[%s2614_s15 + $0x3d8] sm:$0xff] }
  0x63   : > { %2321 = vmatprep.subr.mxu1 %v2577_v0  ;;  %2295 = vmatpush3.msra.mxu0 %v1775_v22  ;;  %v1845_v22 = vld [vmem:[%s2614_s15 + $0x438] sm:$0xff] }
  0x64   : > { %2322 = vmatpush3.msra.mxu1 %v1790_v23  ;;  %2296 = vmatprep.subr.mxu0 %v2577_v0  ;;  %v1829_v23 = vld [vmem:[%s2614_s15 + $0x3d0] sm:$0xff] }
  0x65   : > { %2323 = vmatprep.subr.mxu1 %v2577_v0  ;;  %2297 = vmatpush3.msra.mxu0 %v1774_v24  ;;  %v1844_v24 = vld [vmem:[%s2614_s15 + $0x430] sm:$0xff] }
  0x66   : > { %2324 = vmatpush3.msra.mxu1 %v1789_v25  ;;  %2298 = vmatprep.subr.mxu0 %v2577_v0  ;;  %v1828_v25 = vld [vmem:[%s2614_s15 + $0x3c8] sm:$0xff] }
  0x67   : > { %2325 = vmatprep.subr.mxu1 %v2577_v0  ;;  %2299 = vmatpush3.msra.mxu0 %v1773_v26  ;;  %v1843_v26 = vld [vmem:[%s2614_s15 + $0x428] sm:$0xff] }
  0x68   : > { %2326 = vmatpush3.msra.mxu1 %v1788_v27  ;;  %2300 = vmatprep.subr.mxu0 %v2577_v0  ;;  %v1827_v27 = vld [vmem:[%s2614_s15 + $0x3c0] sm:$0xff] }
  0x69   : > { %2327 = vmatprep.subr.mxu1 %v2577_v0  ;;  %2301 = vmatpush3.msra.mxu0 %v1772_v28  ;;  %v1842_v28 = vld [vmem:[%s2614_s15 + $0x420] sm:$0xff] }
  0x6a   : > { %2328 = vmatpush3.msra.mxu1 %v1787_v29  ;;  %2302 = vmatprep.subr.mxu0 %v2577_v0  ;;  %v1826_v29 = vld [vmem:[%s2662_s19 + $0x14] sm:$0x3] }
  0x6b   : > { %2329 = vmatprep.subr.mxu1 %v2577_v0  ;;  %2303 = vmatpush3.msra.mxu0 %v1771_v30  ;;  %v1841_v30 = vld [vmem:[%s2662_s19 + $0x16] sm:$0x3] }
  0x6c   : > { %2330 = vmatpush3.msra.mxu1 %v1786_v31  ;;  %2304 = vmatprep.subr.mxu0 %v2577_v0  ;;  %v1868_v31 = vld [vmem:[%s2614_s15 + $0x4d8] sm:$0xff] }
  0x6d   : > { %2331 = vmatprep.subr.mxu1 %v2577_v0  ;;  %2305 = vmatpush3.msra.mxu0 %v1770_v32  ;;  %v1883_v32 = vld [vmem:[%s2614_s15 + $0x538] sm:$0xff] }
  0x6e   : > { %2332 = vmatpush3.msra.mxu1 %v1785_v33  ;;  %2306 = vmatprep.subr.mxu0 %v2577_v0  ;;  %v1867_v33 = vld [vmem:[%s2614_s15 + $0x4d0] sm:$0xff] }
  0x6f   : > { %2333 = vmatprep.subr.mxu1 %v2577_v0  ;;  %2307 = vmatpush3.msra.mxu0 %v1769_v34  ;;  %v1882_v34 = vld [vmem:[%s2614_s15 + $0x530] sm:$0xff] }
  0x70   : > { %2334 = vmatpush3.msra.mxu1 %v1784_v35  ;;  %2308 = vmatprep.subr.mxu0 %v2577_v0  ;;  %v1866_v35 = vld [vmem:[%s2614_s15 + $0x4c8] sm:$0xff] }
  0x71   : > { %2335 = vmatprep.subr.mxu1 %v2577_v0  ;;  %2309 = vmatpush3.msra.mxu0 %v1768_v36  ;;  %v1881_v36 = vld [vmem:[%s2614_s15 + $0x528] sm:$0xff] }
  0x72   : > { %2336 = vmatpush3.msra.mxu1 %v1783_v37  ;;  %2310 = vmatprep.subr.mxu0 %v2577_v0  ;;  %v1865_v37 = vld [vmem:[%s2614_s15 + $0x4c0] sm:$0xff] }
  0x73   : > { %2337 = vmatprep.subr.mxu1 %v2577_v0  ;;  %2311 = vmatpush3.msra.mxu0 %v1767_v38  ;;  %v1880_v38 = vld [vmem:[%s2614_s15 + $0x520] sm:$0xff] }
  0x74   : > { %2312 = vmatprep.mubr.msk.f32.mxu0 %vm2578_vm0, %v2577_v0  ;;  %2338 = vmatpush3.msra.mxu1 %v1782_v39  ;;  %v1864_v39 = vld [vmem:[%s2614_s15 + $0x4b8] sm:$0xff] }
  0x75   : > { %2339 = vmatprep.mubr.msk.f32.mxu1 %vm2578_vm0, %v2577_v0  ;;  %2313 = vmatmul.mubr.msk.f32.vlgmr.msra.gmra.mxu0 %vm185_vm1, %v1766_v40  ;;  %v1879_v40 = vld [vmem:[%s2614_s15 + $0x518] sm:$0xff] }
  0x76   : > { %2340 = vmatmul.mubr.msk.f32.vlgmr.msra.gmra.mxu1 %vm185_vm1, %v1781_v41  ;;  %2342 = vmatprep.subr.mxu0 %v2577_v0  ;;  %v1863_v41 = vld [vmem:[%s2614_s15 + $0x4b0] sm:$0xff] }
  0x77   : > { %2369 = vmatprep.subr.mxu1 %v2577_v0  ;;  %2343 = vmatpush3.msra.mxu0 %v1808_v42  ;;  %v1878_v42 = vld [vmem:[%s2614_s15 + $0x510] sm:$0xff] }
  0x78   : > { %2370 = vmatpush3.msra.mxu1 %v1823_v43  ;;  %2344 = vmatprep.subr.mxu0 %v2577_v0  ;;  %v1862_v43 = vld [vmem:[%s2614_s15 + $0x4a8] sm:$0xff] }
  0x79   : > { %2371 = vmatprep.subr.mxu1 %v2577_v0  ;;  %2345 = vmatpush3.msra.mxu0 %v1807_v44  ;;  %v1877_v44 = vld [vmem:[%s2614_s15 + $0x508] sm:$0xff] }
  0x7a   : > { %2372 = vmatpush3.msra.mxu1 %v1822_v45  ;;  %2346 = vmatprep.subr.mxu0 %v2577_v0  ;;  %v1861_v45 = vld [vmem:[%s2614_s15 + $0x4a0] sm:$0xff] }
  0x7b   : > { %2373 = vmatprep.subr.mxu1 %v2577_v0  ;;  %2347 = vmatpush3.msra.mxu0 %v1806_v46  ;;  %v1876_v46 = vld [vmem:[%s2614_s15 + $0x500] sm:$0xff] }
  0x7c   : > { %2374 = vmatpush3.msra.mxu1 %v1821_v47  ;;  %2348 = vmatprep.subr.mxu0 %v2577_v0  ;;  %v1860_v47 = vld [vmem:[%s2614_s15 + $0x498] sm:$0xff] }
  0x7d   : > { %2375 = vmatprep.subr.mxu1 %v2577_v0  ;;  %2349 = vmatpush3.msra.mxu0 %v1805_v48  ;;  %v1875_v48 = vld [vmem:[%s2614_s15 + $0x4f8] sm:$0xff] }
  0x7e   : > { %2376 = vmatpush3.msra.mxu1 %v1820_v49  ;;  %2350 = vmatprep.subr.mxu0 %v2577_v0  ;;  %v1859_v49 = vld [vmem:[%s2614_s15 + $0x490] sm:$0xff] }
  0x7f   : > { %2377 = vmatprep.subr.mxu1 %v2577_v0  ;;  %2351 = vmatpush3.msra.mxu0 %v1804_v50  ;;  %v1874_v50 = vld [vmem:[%s2614_s15 + $0x4f0] sm:$0xff] }
  0x80   : > { %2378 = vmatpush3.msra.mxu1 %v1819_v51  ;;  %2352 = vmatprep.subr.mxu0 %v2577_v0  ;;  %v1858_v51 = vld [vmem:[%s2614_s15 + $0x488] sm:$0xff] }
  0x81   : > { %2379 = vmatprep.subr.mxu1 %v2577_v0  ;;  %2353 = vmatpush3.msra.mxu0 %v1803_v52  ;;  %v1873_v52 = vld [vmem:[%s2614_s15 + $0x4e8] sm:$0xff] }
  0x82   : > { %2380 = vmatpush3.msra.mxu1 %v1818_v53  ;;  %2354 = vmatprep.subr.mxu0 %v2577_v0  ;;  %v1857_v53 = vld [vmem:[%s2614_s15 + $0x480] sm:$0xff] }
  0x83   : > { %2381 = vmatprep.subr.mxu1 %v2577_v0  ;;  %2355 = vmatpush3.msra.mxu0 %v1802_v54  ;;  %v1872_v54 = vld [vmem:[%s2614_s15 + $0x4e0] sm:$0xff] }
  0x84   : > { %2382 = vmatpush3.msra.mxu1 %v1817_v55  ;;  %2356 = vmatprep.subr.mxu0 %v2577_v0  ;;  %v1856_v55 = vld [vmem:[%s2662_s19 + $0x18] sm:$0x3] }
  0x85   : > { %2383 = vmatprep.subr.mxu1 %v2577_v0  ;;  %2357 = vmatpush3.msra.mxu0 %v1801_v56  ;;  %v1871_v56 = vld [vmem:[%s2662_s19 + $0x1a] sm:$0x3] }
  0x86   : > { %2384 = vmatpush3.msra.mxu1 %v1816_v57  ;;  %2358 = vmatprep.subr.mxu0 %v2577_v0  ;;  %v1898_v57 = vld [vmem:[%s2614_s15 + $0x598] sm:$0xff] }
  0x87   : > { %2385 = vmatprep.subr.mxu1 %v2577_v0  ;;  %2359 = vmatpush3.msra.mxu0 %v1800_v58  ;;  %v1913_v58 = vld [vmem:[%s2614_s15 + $0x5f8] sm:$0xff] }
  0x88   : > { %2386 = vmatpush3.msra.mxu1 %v1815_v59  ;;  %2360 = vmatprep.subr.mxu0 %v2577_v0  ;;  %v1897_v59 = vld [vmem:[%s2614_s15 + $0x590] sm:$0xff] }
  0x89   : > { %2387 = vmatprep.subr.mxu1 %v2577_v0  ;;  %2361 = vmatpush3.msra.mxu0 %v1799_v60  ;;  %v1912_v60 = vld [vmem:[%s2614_s15 + $0x5f0] sm:$0xff] }
  0x8a   : > { %2388 = vmatpush3.msra.mxu1 %v1814_v61  ;;  %2362 = vmatprep.subr.mxu0 %v2577_v0  ;;  %v1896_v61 = vld [vmem:[%s2614_s15 + $0x588] sm:$0xff] }
  0x8b   : > { %2389 = vmatprep.subr.mxu1 %v2577_v0  ;;  %2363 = vmatpush3.msra.mxu0 %v1798_v62  ;;  %v1911_v62 = vld [vmem:[%s2614_s15 + $0x5e8] sm:$0xff] }
  0x8c   : > { %2390 = vmatpush3.msra.mxu1 %v1813_v63  ;;  %2364 = vmatprep.subr.mxu0 %v2577_v0  ;;  %v1895_v63 = vld [vmem:[%s2614_s15 + $0x580] sm:$0xff] }
  0x8d   : > { %2391 = vmatprep.subr.mxu1 %v2577_v0  ;;  %2365 = vmatpush3.msra.mxu0 %v1797_v1  ;;  %v1910_v1 = vld [vmem:[%s2614_s15 + $0x5e0] sm:$0xff] }
  0x8e   : > { %2366 = vmatprep.mubr.msk.f32.mxu0 %vm2578_vm0, %v2577_v0  ;;  %2392 = vmatpush3.msra.mxu1 %v1812_v2  ;;  %v1894_v2 = vld [vmem:[%s2614_s15 + $0x578] sm:$0xff] }
  0x8f   : > { %2393 = vmatprep.mubr.msk.f32.mxu1 %vm2578_vm0, %v2577_v0  ;;  %2367 = vmatmul.mubr.msk.f32.vlgmr.msra.gmra.mxu0 %vm185_vm1, %v1796_v3  ;;  %v1909_v3 = vld [vmem:[%s2614_s15 + $0x5d8] sm:$0xff] }
  0x90   : > { %2394 = vmatmul.mubr.msk.f32.vlgmr.msra.gmra.mxu1 %vm185_vm1, %v1811_v4  ;;  %2396 = vmatprep.subr.mxu0 %v2577_v0  ;;  %v1893_v4 = vld [vmem:[%s2614_s15 + $0x570] sm:$0xff] }
  0x91   : > { %2423 = vmatprep.subr.mxu1 %v2577_v0  ;;  %2397 = vmatpush3.msra.mxu0 %v1838_v5  ;;  %v1908_v5 = vld [vmem:[%s2614_s15 + $0x5d0] sm:$0xff] }
  0x92   : > { %2424 = vmatpush3.msra.mxu1 %v1853_v6  ;;  %2398 = vmatprep.subr.mxu0 %v2577_v0  ;;  %v1892_v6 = vld [vmem:[%s2614_s15 + $0x568] sm:$0xff] }
  0x93   : > { %2425 = vmatprep.subr.mxu1 %v2577_v0  ;;  %2399 = vmatpush3.msra.mxu0 %v1837_v7  ;;  %v1907_v7 = vld [vmem:[%s2614_s15 + $0x5c8] sm:$0xff] }
  0x94   : > { %2426 = vmatpush3.msra.mxu1 %v1852_v8  ;;  %2400 = vmatprep.subr.mxu0 %v2577_v0  ;;  %v1891_v8 = vld [vmem:[%s2614_s15 + $0x560] sm:$0xff] }
  0x95   : > { %2427 = vmatprep.subr.mxu1 %v2577_v0  ;;  %2401 = vmatpush3.msra.mxu0 %v1836_v9  ;;  %v1906_v9 = vld [vmem:[%s2614_s15 + $0x5c0] sm:$0xff] }
  0x96   : > { %2428 = vmatpush3.msra.mxu1 %v1851_v10  ;;  %2402 = vmatprep.subr.mxu0 %v2577_v0  ;;  %v1890_v10 = vld [vmem:[%s2614_s15 + $0x558] sm:$0xff] }
  0x97   : > { %2429 = vmatprep.subr.mxu1 %v2577_v0  ;;  %2403 = vmatpush3.msra.mxu0 %v1835_v11  ;;  %v1905_v11 = vld [vmem:[%s2614_s15 + $0x5b8] sm:$0xff] }
  0x98   : > { %2430 = vmatpush3.msra.mxu1 %v1850_v12  ;;  %2404 = vmatprep.subr.mxu0 %v2577_v0  ;;  %v1889_v12 = vld [vmem:[%s2614_s15 + $0x550] sm:$0xff] }
  0x99   : > { %2431 = vmatprep.subr.mxu1 %v2577_v0  ;;  %2405 = vmatpush3.msra.mxu0 %v1834_v13  ;;  %v1904_v13 = vld [vmem:[%s2614_s15 + $0x5b0] sm:$0xff] }
  0x9a   : > { %2432 = vmatpush3.msra.mxu1 %v1849_v14  ;;  %2406 = vmatprep.subr.mxu0 %v2577_v0  ;;  %v1888_v14 = vld [vmem:[%s2614_s15 + $0x548] sm:$0xff] }
  0x9b   : > { %2433 = vmatprep.subr.mxu1 %v2577_v0  ;;  %2407 = vmatpush3.msra.mxu0 %v1833_v15  ;;  %v1903_v15 = vld [vmem:[%s2614_s15 + $0x5a8] sm:$0xff] }
  0x9c   : > { %2434 = vmatpush3.msra.mxu1 %v1848_v16  ;;  %2408 = vmatprep.subr.mxu0 %v2577_v0  ;;  %v1887_v16 = vld [vmem:[%s2614_s15 + $0x540] sm:$0xff] }
  0x9d   : > { %2435 = vmatprep.subr.mxu1 %v2577_v0  ;;  %2409 = vmatpush3.msra.mxu0 %v1832_v17  ;;  %v1902_v17 = vld [vmem:[%s2614_s15 + $0x5a0] sm:$0xff] }
  0x9e   : > { %2436 = vmatpush3.msra.mxu1 %v1847_v18  ;;  %2410 = vmatprep.subr.mxu0 %v2577_v0  ;;  %v1886_v18 = vld [vmem:[%s2662_s19 + $0x1c] sm:$0x3] }
  0x9f   : > { %2437 = vmatprep.subr.mxu1 %v2577_v0  ;;  %2411 = vmatpush3.msra.mxu0 %v1831_v19  ;;  %v1901_v19 = vld [vmem:[%s2662_s19 + $0x1e] sm:$0x3] }
  0xa0   : > { %2438 = vmatpush3.msra.mxu1 %v1846_v20  ;;  %2412 = vmatprep.subr.mxu0 %v2577_v0 }
  0xa1   : > { %2439 = vmatprep.subr.mxu1 %v2577_v0  ;;  %2413 = vmatpush3.msra.mxu0 %v1830_v21 }
  0xa2   : > { %2440 = vmatpush3.msra.mxu1 %v1845_v22  ;;  %2414 = vmatprep.subr.mxu0 %v2577_v0 }
  0xa3   : > { %2441 = vmatprep.subr.mxu1 %v2577_v0  ;;  %2415 = vmatpush3.msra.mxu0 %v1829_v23 }
  0xa4   : > { %2442 = vmatpush3.msra.mxu1 %v1844_v24  ;;  %2416 = vmatprep.subr.mxu0 %v2577_v0 }
  0xa5   : > { %2443 = vmatprep.subr.mxu1 %v2577_v0  ;;  %2417 = vmatpush3.msra.mxu0 %v1828_v25 }
  0xa6   : > { %2444 = vmatpush3.msra.mxu1 %v1843_v26  ;;  %2418 = vmatprep.subr.mxu0 %v2577_v0 }
  0xa7   : > { %2445 = vmatprep.subr.mxu1 %v2577_v0  ;;  %2419 = vmatpush3.msra.mxu0 %v1827_v27 }
  0xa8   : > { %2420 = vmatprep.mubr.msk.f32.mxu0 %vm2578_vm0, %v2577_v0  ;;  %2446 = vmatpush3.msra.mxu1 %v1842_v28 }
  0xa9   : > { %2447 = vmatprep.mubr.msk.f32.mxu1 %vm2578_vm0, %v2577_v0  ;;  %2421 = vmatmul.mubr.msk.f32.vlgmr.msra.gmra.mxu0 %vm185_vm1, %v1826_v29 }
  0xaa   : > { %2448 = vmatmul.mubr.msk.f32.vlgmr.msra.gmra.mxu1 %vm185_vm1, %v1841_v30  ;;  %2450 = vmatprep.subr.mxu0 %v2577_v0 }
  0xab   : > { %2477 = vmatprep.subr.mxu1 %v2577_v0  ;;  %2451 = vmatpush3.msra.mxu0 %v1868_v31 }
  0xac   : > { %2478 = vmatpush3.msra.mxu1 %v1883_v32  ;;  %2452 = vmatprep.subr.mxu0 %v2577_v0 }
  0xad   : > { %2479 = vmatprep.subr.mxu1 %v2577_v0  ;;  %2453 = vmatpush3.msra.mxu0 %v1867_v33 }
  0xae   : > { %2480 = vmatpush3.msra.mxu1 %v1882_v34  ;;  %2454 = vmatprep.subr.mxu0 %v2577_v0 }
  0xaf   : > { %2481 = vmatprep.subr.mxu1 %v2577_v0  ;;  %2455 = vmatpush3.msra.mxu0 %v1866_v35 }
  0xb0   : > { %2482 = vmatpush3.msra.mxu1 %v1881_v36  ;;  %2456 = vmatprep.subr.mxu0 %v2577_v0 }
  0xb1   : > { %2483 = vmatprep.subr.mxu1 %v2577_v0  ;;  %2457 = vmatpush3.msra.mxu0 %v1865_v37 }
  0xb2   : > { %2484 = vmatpush3.msra.mxu1 %v1880_v38  ;;  %2458 = vmatprep.subr.mxu0 %v2577_v0 }
  0xb3   : > { %2485 = vmatprep.subr.mxu1 %v2577_v0  ;;  %2459 = vmatpush3.msra.mxu0 %v1864_v39 }
  0xb4   : > { %2486 = vmatpush3.msra.mxu1 %v1879_v40  ;;  %2460 = vmatprep.subr.mxu0 %v2577_v0 }
  0xb5   : > { %2487 = vmatprep.subr.mxu1 %v2577_v0  ;;  %2461 = vmatpush3.msra.mxu0 %v1863_v41 }
  0xb6   : > { %2488 = vmatpush3.msra.mxu1 %v1878_v42  ;;  %2462 = vmatprep.subr.mxu0 %v2577_v0 }
  0xb7   : > { %2489 = vmatprep.subr.mxu1 %v2577_v0  ;;  %2463 = vmatpush3.msra.mxu0 %v1862_v43 }
  0xb8   : > { %2490 = vmatpush3.msra.mxu1 %v1877_v44  ;;  %2464 = vmatprep.subr.mxu0 %v2577_v0 }
  0xb9   : > { %2491 = vmatprep.subr.mxu1 %v2577_v0  ;;  %2465 = vmatpush3.msra.mxu0 %v1861_v45 }
  0xba   : > { %2492 = vmatpush3.msra.mxu1 %v1876_v46  ;;  %2466 = vmatprep.subr.mxu0 %v2577_v0 }
  0xbb   : > { %2493 = vmatprep.subr.mxu1 %v2577_v0  ;;  %2467 = vmatpush3.msra.mxu0 %v1860_v47 }
  0xbc   : > { %2494 = vmatpush3.msra.mxu1 %v1875_v48  ;;  %2468 = vmatprep.subr.mxu0 %v2577_v0 }
  0xbd   : > { %2495 = vmatprep.subr.mxu1 %v2577_v0  ;;  %2469 = vmatpush3.msra.mxu0 %v1859_v49 }
  0xbe   : > { %2496 = vmatpush3.msra.mxu1 %v1874_v50  ;;  %2470 = vmatprep.subr.mxu0 %v2577_v0 }
  0xbf   : > { %2497 = vmatprep.subr.mxu1 %v2577_v0  ;;  %2471 = vmatpush3.msra.mxu0 %v1858_v51 }
  0xc0   : > { %2498 = vmatpush3.msra.mxu1 %v1873_v52  ;;  %2472 = vmatprep.subr.mxu0 %v2577_v0 }
  0xc1   : > { %2499 = vmatprep.subr.mxu1 %v2577_v0  ;;  %2473 = vmatpush3.msra.mxu0 %v1857_v53 }
  0xc2   : > { %2474 = vmatprep.mubr.msk.f32.mxu0 %vm2578_vm0, %v2577_v0  ;;  %2500 = vmatpush3.msra.mxu1 %v1872_v54 }
  0xc3   : > { %2501 = vmatprep.mubr.msk.f32.mxu1 %vm2578_vm0, %v2577_v0  ;;  %2475 = vmatmul.mubr.msk.f32.vlgmr.msra.gmra.mxu0 %vm185_vm1, %v1856_v55 }
  0xc4   : > { %2502 = vmatmul.mubr.msk.f32.vlgmr.msra.gmra.mxu1 %vm185_vm1, %v1871_v56  ;;  %2504 = vmatprep.subr.mxu0 %v2577_v0 }
  0xc5   : > { %2531 = vmatprep.subr.mxu1 %v2577_v0  ;;  %2505 = vmatpush3.msra.mxu0 %v1898_v57 }
  0xc6   : > { %2532 = vmatpush3.msra.mxu1 %v1913_v58  ;;  %2506 = vmatprep.subr.mxu0 %v2577_v0 }
  0xc7   : > { %2533 = vmatprep.subr.mxu1 %v2577_v0  ;;  %2507 = vmatpush3.msra.mxu0 %v1897_v59 }
  0xc8   : > { %2534 = vmatpush3.msra.mxu1 %v1912_v60  ;;  %2508 = vmatprep.subr.mxu0 %v2577_v0 }
  0xc9   : > { %2535 = vmatprep.subr.mxu1 %v2577_v0  ;;  %2509 = vmatpush3.msra.mxu0 %v1896_v61 }
  0xca   : > { %2536 = vmatpush3.msra.mxu1 %v1911_v62  ;;  %2510 = vmatprep.subr.mxu0 %v2577_v0 }
  0xcb   : > { %2537 = vmatprep.subr.mxu1 %v2577_v0  ;;  %2511 = vmatpush3.msra.mxu0 %v1895_v63 }
  0xcc   : > { %2538 = vmatpush3.msra.mxu1 %v1910_v1  ;;  %2512 = vmatprep.subr.mxu0 %v2577_v0 }
  0xcd   : > { %2539 = vmatprep.subr.mxu1 %v2577_v0  ;;  %2513 = vmatpush3.msra.mxu0 %v1894_v2 }
  0xce   : > { %2540 = vmatpush3.msra.mxu1 %v1909_v3  ;;  %2514 = vmatprep.subr.mxu0 %v2577_v0 }
  0xcf   : > { %2541 = vmatprep.subr.mxu1 %v2577_v0  ;;  %2515 = vmatpush3.msra.mxu0 %v1893_v4 }
  0xd0   : > { %2542 = vmatpush3.msra.mxu1 %v1908_v5  ;;  %2516 = vmatprep.subr.mxu0 %v2577_v0 }
  0xd1   : > { %2543 = vmatprep.subr.mxu1 %v2577_v0  ;;  %2517 = vmatpush3.msra.mxu0 %v1892_v6 }
  0xd2   : > { %2544 = vmatpush3.msra.mxu1 %v1907_v7  ;;  %2518 = vmatprep.subr.mxu0 %v2577_v0 }
  0xd3   : > { %2545 = vmatprep.subr.mxu1 %v2577_v0  ;;  %2519 = vmatpush3.msra.mxu0 %v1891_v8 }
  0xd4   : > { %2546 = vmatpush3.msra.mxu1 %v1906_v9  ;;  %2520 = vmatprep.subr.mxu0 %v2577_v0 }
  0xd5   : > { %2547 = vmatprep.subr.mxu1 %v2577_v0  ;;  %2521 = vmatpush3.msra.mxu0 %v1890_v10 }
  0xd6   : > { %2548 = vmatpush3.msra.mxu1 %v1905_v11  ;;  %2522 = vmatprep.subr.mxu0 %v2577_v0 }
  0xd7   : > { %2549 = vmatprep.subr.mxu1 %v2577_v0  ;;  %2523 = vmatpush3.msra.mxu0 %v1889_v12 }
  0xd8   : > { %2550 = vmatpush3.msra.mxu1 %v1904_v13  ;;  %2524 = vmatprep.subr.mxu0 %v2577_v0 }
  0xd9   : > { %2551 = vmatprep.subr.mxu1 %v2577_v0  ;;  %2525 = vmatpush3.msra.mxu0 %v1888_v14 }
  0xda   : > { %2552 = vmatpush3.msra.mxu1 %v1903_v15  ;;  %2526 = vmatprep.subr.mxu0 %v2577_v0 }
  0xdb   : > { %2553 = vmatprep.subr.mxu1 %v2577_v0  ;;  %2527 = vmatpush3.msra.mxu0 %v1887_v16 }
  0xdc   : > { %2528 = vmatprep.mubr.msk.f32.mxu0 %vm2578_vm0, %v2577_v0  ;;  %2554 = vmatpush3.msra.mxu1 %v1902_v17 }
  0xdd   : > { %2555 = vmatprep.mubr.msk.f32.mxu1 %vm2578_vm0, %v2577_v0  ;;  %2529 = vmatmul.mubr.msk.f32.vlgmr.msra.gmra.mxu0 %vm185_vm1, %v1886_v18 }
  0xde   : > { %2556 = vmatmul.mubr.msk.f32.vlgmr.msra.gmra.mxu1 %vm185_vm1, %v1901_v19 }
  0xe7   : > { %v255_v20 = vpop.f32.mrf.mxu0 }
  0xe8   : > { %v345_v21 = vpop.f32.mrf.mxu1  ;;  %260 = vst.msk [vmem:[%s3071_s22] sm:$0x3] %vm259_vm2, %v255_v20 }
  0xe9   : > { %1705 = vst.msk [vmem:[%s3071_s22 + $0x2] sm:$0x3] %vm259_vm2, %v345_v21  ;;  %v2152_v0 = vpop.f32.mrf.mxu0 }
  0xea   : > { %v2179_v22 = vpop.f32.mrf.mxu1 }
 0x101   : > { %v435_v23 = vpop.f32.mrf.mxu0 }
 0x102   : > { %v525_v24 = vpop.f32.mrf.mxu1  ;;  %1720 = vst.msk [vmem:[%s3071_s22 + $0x4] sm:$0x3] %vm259_vm2, %v435_v23 }
 0x103   : > { %1735 = vst.msk [vmem:[%s3071_s22 + $0x6] sm:$0x3] %vm259_vm2, %v525_v24  ;;  %v2206_v25 = vpop.f32.mrf.mxu0 }
 0x104   : > { %v2233_v26 = vpop.f32.mrf.mxu1 }
 0x11b   : > { %v615_v27 = vpop.f32.mrf.mxu0 }
 0x11c   : > { %v705_v28 = vpop.f32.mrf.mxu1  ;;  %1750 = vst.msk [vmem:[%s3071_s22 + $0x8] sm:$0x3] %vm259_vm2, %v615_v27 }
 0x11d   : > { %1765 = vst.msk [vmem:[%s3071_s22 + $0xa] sm:$0x3] %vm259_vm2, %v705_v28  ;;  %v2260_v29 = vpop.f32.mrf.mxu0 }
 0x11e   : > { %v2287_v30 = vpop.f32.mrf.mxu1 }
 0x135   : > { %v795_v31 = vpop.f32.mrf.mxu0 }
 0x136   : > { %v885_v32 = vpop.f32.mrf.mxu1  ;;  %1780 = vst.msk [vmem:[%s3071_s22 + $0xc] sm:$0x3] %vm259_vm2, %v795_v31 }
 0x137   : > { %1795 = vst.msk [vmem:[%s3071_s22 + $0xe] sm:$0x3] %vm259_vm2, %v885_v32  ;;  %v2314_v33 = vpop.f32.mrf.mxu0 }
 0x138   : > { %v2341_v34 = vpop.f32.mrf.mxu1 }
 0x14f   : > { %v975_v35 = vpop.f32.mrf.mxu0 }
 0x150   : > { %v1065_v36 = vpop.f32.mrf.mxu1  ;;  %1810 = vst.msk [vmem:[%s3071_s22 + $0x10] sm:$0x3] %vm259_vm2, %v975_v35 }
 0x151   : > { %1825 = vst.msk [vmem:[%s3071_s22 + $0x12] sm:$0x3] %vm259_vm2, %v1065_v36  ;;  %v2368_v37 = vpop.f32.mrf.mxu0 }
 0x152   : > { %v2395_v38 = vpop.f32.mrf.mxu1 }
 0x169   : > { %v1155_v39 = vpop.f32.mrf.mxu0 }
 0x16a   : > { %v1245_v40 = vpop.f32.mrf.mxu1  ;;  %1840 = vst.msk [vmem:[%s3071_s22 + $0x14] sm:$0x3] %vm259_vm2, %v1155_v39 }
 0x16b   : > { %1855 = vst.msk [vmem:[%s3071_s22 + $0x16] sm:$0x3] %vm259_vm2, %v1245_v40  ;;  %v2422_v41 = vpop.f32.mrf.mxu0 }
 0x16c   : > { %v2449_v42 = vpop.f32.mrf.mxu1 }
 0x183   : > { %v1335_v43 = vpop.f32.mrf.mxu0 }
 0x184   : > { %v1425_v44 = vpop.f32.mrf.mxu1  ;;  %1870 = vst.msk [vmem:[%s3071_s22 + $0x18] sm:$0x3] %vm259_vm2, %v1335_v43 }
 0x185   : > { %1885 = vst.msk [vmem:[%s3071_s22 + $0x1a] sm:$0x3] %vm259_vm2, %v1425_v44  ;;  %v2476_v45 = vpop.f32.mrf.mxu0 }
 0x186   : > { %v2503_v46 = vpop.f32.mrf.mxu1 }
 0x19d   : > { %v1515_v47 = vpop.f32.mrf.mxu0 }
 0x19e   : > { %v1605_v48 = vpop.f32.mrf.mxu1  ;;  %1900 = vst.msk [vmem:[%s3071_s22 + $0x1c] sm:$0x3] %vm259_vm2, %v1515_v47 }
 0x19f   : > { %1915 = vst.msk [vmem:[%s3071_s22 + $0x1e] sm:$0x3] %vm259_vm2, %v1605_v48  ;;  %v2530_v49 = vpop.f32.mrf.mxu0 }
 0x1a0   : > { %v2557_v50 = vpop.f32.mrf.mxu1 }
 0x1a1 PF: > { %s12_s9 = sadd.s32 1, %s2575_s9  }
 0x1a2   : > { %p9_p4 = scmp.ge.s32.totalorder %s12_s9, 4  }
 0x1a4   :  { %11 = sbr.rel (!%p9_p4) target bundleno = 1 (0x1), region = 106 }

// kernel: reverse.8
= control target key start
LH: loop header
LB: loop body
LE: loop exit
PB: predicated region body
PF: predicated region fallthrough
CT: control target
= control target key end

     0   :  { %s344_s0 = inlined_call_operand.vmem [shape: f32[2,48,16,7], index: 0, kind: input, shape index: {}]   ;;  %s345_s1 = inlined_call_operand.vmem [shape: f32[2,48,16,7], index: 1, kind: output, shape index: {}]  }
   0x1   :  { %v112_v0 = vld [vmem:[%s344_s0 + $0x60] sm:$0xff]  ;;  %v113_v1 = vld [vmem:[%s344_s0 + $0xd0] sm:$0xff]  ;;  %v138_v14 = vld [vmem:[%s344_s0 + $0x68] sm:$0xff] }
   0x2   :  { %v115_v2 = vld [vmem:[%s344_s0 + $0x50] sm:$0xff]  ;;  %4 = vst [vmem:[%s345_s1] sm:$0xff] %v112_v0  ;;  %114 = vst [vmem:[%s345_s1 + $0x70] sm:$0xff] %v113_v1  ;;  %v117_v3 = vld [vmem:[%s344_s0 + $0xc0] sm:$0xff] }
   0x3   :  { %116 = vst [vmem:[%s345_s1 + $0x10] sm:$0xff] %v115_v2  ;;  %v119_v4 = vld [vmem:[%s344_s0 + $0x40] sm:$0xff]  ;;  %v121_v5 = vld [vmem:[%s344_s0 + $0xb0] sm:$0xff]  ;;  %118 = vst [vmem:[%s345_s1 + $0x80] sm:$0xff] %v117_v3 }
   0x4   :  { %120 = vst [vmem:[%s345_s1 + $0x20] sm:$0xff] %v119_v4  ;;  %122 = vst [vmem:[%s345_s1 + $0x90] sm:$0xff] %v121_v5  ;;  %v123_v6 = vld [vmem:[%s344_s0 + $0x30] sm:$0xff]  ;;  %v125_v7 = vld [vmem:[%s344_s0 + $0xa0] sm:$0xff] }
   0x5   :  { %v127_v8 = vld [vmem:[%s344_s0 + $0x20] sm:$0xff]  ;;  %124 = vst [vmem:[%s345_s1 + $0x30] sm:$0xff] %v123_v6  ;;  %126 = vst [vmem:[%s345_s1 + $0xa0] sm:$0xff] %v125_v7  ;;  %v129_v9 = vld [vmem:[%s344_s0 + $0x90] sm:$0xff] }
   0x6   :  { %128 = vst [vmem:[%s345_s1 + $0x40] sm:$0xff] %v127_v8  ;;  %v131_v10 = vld [vmem:[%s344_s0 + $0x10] sm:$0xff]  ;;  %v133_v11 = vld [vmem:[%s344_s0 + $0x80] sm:$0xff]  ;;  %130 = vst [vmem:[%s345_s1 + $0xb0] sm:$0xff] %v129_v9 }
   0x7   :  { %132 = vst [vmem:[%s345_s1 + $0x50] sm:$0xff] %v131_v10  ;;  %134 = vst [vmem:[%s345_s1 + $0xc0] sm:$0xff] %v133_v11  ;;  %v49_v12 = vld [vmem:[%s344_s0] sm:$0xff]  ;;  %v136_v13 = vld [vmem:[%s344_s0 + $0x70] sm:$0xff] }
   0x8   :  { %135 = vst [vmem:[%s345_s1 + $0x60] sm:$0xff] %v49_v12  ;;  %137 = vst [vmem:[%s345_s1 + $0xd0] sm:$0xff] %v136_v13  ;;  %v140_v15 = vld [vmem:[%s344_s0 + $0xd8] sm:$0xff]  ;;  %v144_v17 = vld [vmem:[%s344_s0 + $0xc8] sm:$0xff] }
   0x9   :  { %139 = vst [vmem:[%s345_s1 + $0x8] sm:$0xff] %v138_v14  ;;  %v142_v16 = vld [vmem:[%s344_s0 + $0x58] sm:$0xff]  ;;  %141 = vst [vmem:[%s345_s1 + $0x78] sm:$0xff] %v140_v15  ;;  %v146_v18 = vld [vmem:[%s344_s0 + $0x48] sm:$0xff] }
   0xa   :  { %143 = vst [vmem:[%s345_s1 + $0x18] sm:$0xff] %v142_v16  ;;  %145 = vst [vmem:[%s345_s1 + $0x88] sm:$0xff] %v144_v17  ;;  %v148_v19 = vld [vmem:[%s344_s0 + $0xb8] sm:$0xff]  ;;  %v152_v21 = vld [vmem:[%s344_s0 + $0xa8] sm:$0xff] }
   0xb   :  { %v150_v20 = vld [vmem:[%s344_s0 + $0x38] sm:$0xff]  ;;  %147 = vst [vmem:[%s345_s1 + $0x28] sm:$0xff] %v146_v18  ;;  %149 = vst [vmem:[%s345_s1 + $0x98] sm:$0xff] %v148_v19  ;;  %v154_v22 = vld [vmem:[%s344_s0 + $0x28] sm:$0xff] }
   0xc   :  { %151 = vst [vmem:[%s345_s1 + $0x38] sm:$0xff] %v150_v20  ;;  %v156_v23 = vld [vmem:[%s344_s0 + $0x98] sm:$0xff]  ;;  %153 = vst [vmem:[%s345_s1 + $0xa8] sm:$0xff] %v152_v21  ;;  %v160_v25 = vld [vmem:[%s344_s0 + $0x88] sm:$0xff] }
   0xd   :  { %155 = vst [vmem:[%s345_s1 + $0x48] sm:$0xff] %v154_v22  ;;  %157 = vst [vmem:[%s345_s1 + $0xb8] sm:$0xff] %v156_v23  ;;  %v158_v24 = vld [vmem:[%s344_s0 + $0x18] sm:$0xff]  ;;  %v162_v26 = vld [vmem:[%s344_s0 + $0x8] sm:$0xff] }
   0xe   :  { %159 = vst [vmem:[%s345_s1 + $0x58] sm:$0xff] %v158_v24  ;;  %161 = vst [vmem:[%s345_s1 + $0xc8] sm:$0xff] %v160_v25  ;;  %v164_v27 = vld [vmem:[%s344_s0 + $0x78] sm:$0xff] }
   0xf   :  { %163 = vst [vmem:[%s345_s1 + $0x68] sm:$0xff] %v162_v26  ;;  %165 = vst [vmem:[%s345_s1 + $0xd8] sm:$0xff] %v164_v27 }

// kernel: fno2d_prev_forward.13
= control target key start
LH: loop header
LB: loop body
LE: loop exit
PB: predicated region body
PF: predicated region fallthrough
CT: control target
= control target key end

     0   :  { %v246_v0 = vmov 0.0   ;;  %vm247_vm0 = vmmov 0   ;;  %vm32_vm1 = vcmask 261120   ;;  %vm197_vm2 = vcmask 386048   ;;  %s316_s1 = inlined_call_operand.vmem [shape: f32[32,32], index: 1, kind: input, shape index: {}]   ;;  %s317_s0 = inlined_call_operand.vmem [shape: f32[2,32], index: 0, kind: input, shape index: {}]   ;;  %s318_s3 = inlined_call_operand.vmem [shape: f32[32,48], index: 3, kind: input, shape index: {}]   ;;  %s319_s2 = inlined_call_operand.vmem [shape: f32[1,32], index: 2, kind: input, shape index: {}]   ;;  %s320_s4 = inlined_call_operand.vmem [shape: f32[1,48], index: 4, kind: input, shape index: {}]   ;;  %s321_s5 = inlined_call_operand.vmem [shape: f32[2,48], index: 5, kind: output, shape index: {}]  }
   0x1   :  { %218 = vmatprep.subr.mxu0 %v246_v0  ;;  %v24_v1 = vld [vmem:[%s316_s1 + $0x18] sm:$0xff]  ;;  %v23_v2 = vld [vmem:[%s316_s1 + $0x10] sm:$0xff]  ;;  %226 = vmatprep.mubr.msk.f32.mxu0 %vm247_vm0, %v246_v0  ;;  %v22_v3 = vld [vmem:[%s316_s1 + $0x8] sm:$0xff] }
   0x2   :  { %219 = vmatpush3.msra.mxu0 %v24_v1  ;;  %229 = vmatprep.subr.mxu1 %v246_v0  ;;  %v21_v4 = vld [vmem:[%s316_s1] sm:$0xff]  ;;  %v116_v6 = vld [vmem:[%s318_s3 + $0x18] sm:$0xff]  ;;  %v115_v7 = vld [vmem:[%s318_s3 + $0x10] sm:$0xff] }
   0x3   :  { %220 = vmatprep.subr.mxu0 %v246_v0  ;;  %237 = vmatprep.mubr.msk.f32.mxu1 %vm247_vm0, %v246_v0  ;;  %v20_v5 = vld [vmem:[%s317_s0] sm:$0x3]  ;;  %v114_v8 = vld [vmem:[%s318_s3 + $0x8] sm:$0xff] }
   0x4   :  { %221 = vmatpush3.msra.mxu0 %v23_v2  ;;  %230 = vmatpush3.msra.mxu1 %v116_v6  ;;  %v113_v9 = vld [vmem:[%s318_s3] sm:$0xff] }
   0x5   :  { %222 = vmatprep.subr.mxu0 %v246_v0  ;;  %231 = vmatprep.subr.mxu1 %v246_v0  ;;  %v203_v10 = vld [vmem:[%s319_s2] ss:$0 sm:$0xff] }
   0x6   :  { %223 = vmatpush3.msra.mxu0 %v22_v3  ;;  %232 = vmatpush3.msra.mxu1 %v115_v7  ;;  %v206_v19 = vld [vmem:[%s320_s4] ss:$0 sm:$0xff] }
   0x7   :  { %224 = vmatprep.subr.mxu0 %v246_v0  ;;  %233 = vmatprep.subr.mxu1 %v246_v0 }
   0x8   :  { %225 = vmatpush3.msra.mxu0 %v21_v4  ;;  %234 = vmatpush3.msra.mxu1 %v114_v8 }
   0x9   :  { %227 = vmatmul.mubr.msk.f32.vlgmr.msra.gmra.mxu0 %vm32_vm1, %v20_v5  ;;  %235 = vmatprep.subr.mxu1 %v246_v0 }
   0xa   :  { %236 = vmatpush3.msra.mxu1 %v113_v9 }
  0xc9   :  { %v102_v11 = vpop.f32.mrf.mxu0 }
  0xca   :  { %v103_v12 = vadd.f32 %v203_v10, %v102_v11 }
  0xcb   :  { %v228_v13 = vpop.f32.mrf.mxu0 }
  0xcc   :  { %v205_v14 = vmul.f32 -1.442695, %v103_v12 }
  0xce   :  { %242 = vpow2.f32 %v205_v14 }
  0xdb   :  { %v243_v15 = vpop.eup %242 }
  0xdc   :  { %v109_v16 = vadd.f32 1.0, %v243_v15 }
  0xde   :  { %244 = vrcp.f32 %v109_v16 }
  0xeb   :  { %v245_v17 = vpop.eup %244 }
  0xec   :  { %v112_v18 = vmul.f32 %v245_v17, %v103_v12 }
  0xee   :  { %238 = vmatmul.mubr.msk.f32.vlgmr.msra.gmra.mxu1 %vm32_vm1, %v112_v18 }
 0x1ae   :  { %v193_v20 = vpop.f32.mrf.mxu1 }
 0x1af   :  { %v194_v21 = vadd.f32 %v206_v19, %v193_v20 }
 0x1b0   :  { %v239_v22 = vpop.f32.mrf.mxu1 }
 0x1b1   :  { %198 = vst.msk [vmem:[%s321_s5] sm:$0x3] %vm197_vm2, %v194_v21 }

// kernel: fno2d_prev_forward.14
= control target key start
LH: loop header
LB: loop body
LE: loop exit
PB: predicated region body
PF: predicated region fallthrough
CT: control target
= control target key end

     0   :  { %s1520_s18 = smov 0   ;;  %s1522_s19 = smov 0   ;;  %s2043_s0 = inlined_call_operand.vmem [shape: f32[2,256,48], index: 0, kind: input, shape index: {}]   ;;  %s2044_s1 = inlined_call_operand.vmem [shape: f32[2,256,48], index: 1, kind: input, shape index: {}]   ;;  %s2045_s2 = inlined_call_operand.vmem [shape: f32[2,1,48], index: 2, kind: input, shape index: {}]   ;;  %s2046_s3 = inlined_call_operand.vmem [shape: f32[48,48], index: 3, kind: input, shape index: {}]   ;;  %s2047_s4 = inlined_call_operand.vmem [shape: f32[1,48], index: 4, kind: input, shape index: {}]   ;;  %s2048_s5 = inlined_call_operand.vmem [shape: f32[2,256,48], index: 5, kind: output, shape index: {}]  }
   0x1   :  { %s1524_s20 = smov 0  }
   0x2 LB: > { %s27_s21 = sadd.s32 1, %s1484_s19  ;;  %p1222_p0 = scmp.ge.s32.totalorder %s1488_s20, 1  ;;  %s1488_s20 = sphi %s1524_s20, %s15_s20   ;;  %s1484_s19 = sphi %s1522_s19, %s2050_s19   ;;  %s1480_s18 = sphi %s1520_s18, %s2049_s18  }
   0x3   : > { %p29_p1 = scmp.ge.s32.totalorder %s27_s21, 2  ;;  %p233_p2 = scmp.lt.s32.totalorder %s1488_s20, 3 }
   0x5   : > { %s2052_s21 = smov (%p29_p1, %s27_s21), 0  ;;  %p234_p3 = pnand %p1222_p0, %p233_p2 }
   0x6   : > { %p282_p4 = scmp.lt.s32.totalorder (!%p234_p3), %s1480_s18, 1 }
   0x7   : > { %237 = sbr.rel (%p234_p3) target bundleno = 336 (0x150), region = 40 }
   0xc   : > { %v351_v0 = vld [vmem:[%s2046_s3 + $0x28] sm:$0xff]  ;;  %v350_v1 = vld [vmem:[%s2046_s3 + $0x20] sm:$0xff]  ;;  %v349_v2 = vld [vmem:[%s2046_s3 + $0x18] sm:$0xff]  ;;  %s2054_s18 = smov (!%p282_p4, %s1480_s18), 1  ;;  %vm359_vm0 = vcmask 392192  }
   0xd   : > { %1306 = vmatprep.subr.mxu0 %v351_v0  ;;  %1366 = vmatprep.subr.mxu1 %v351_v0  ;;  %v348_v3 = vld [vmem:[%s2046_s3 + $0x10] sm:$0xff]  ;;  %s1553_s30 = sshll.u32 %s2054_s18, 8  ;;  %v347_v4 = vld [vmem:[%s2046_s3 + $0x8] sm:$0xff]  ;;  %v346_v5 = vld [vmem:[%s2046_s3] sm:$0xff]  ;;  %s303_s24 = scalar_lea.vmem %s2045_s2, %s2054_s18 }
   0xe   : > { %1307 = vmatpush3.msra.mxu0 %v351_v0  ;;  %1372 = vmatpush3.msra.mxu1 %v351_v0  ;;  %s1562_s10 = scalar_lea.vmem %s2043_s0, %s1553_s30  ;;  %s1635_s15 = scalar_lea.vmem %s2044_s1, %s1553_s30  ;;  %v1640_v38 = vld [vmem:[%s2047_s4] ss:$0 sm:$0xff] }
   0xf   : > { %1308 = vmatprep.subr.mxu0 %v350_v1  ;;  %1367 = vmatprep.subr.mxu1 %v350_v1  ;;  %v314_v6 = vld [vmem:[%s1562_s10] sm:$0xff]  ;;  %v315_v8 = vld [vmem:[%s1562_s10 + $0x8] sm:$0xff]  ;;  %v316_v10 = vld [vmem:[%s1562_s10 + $0x10] sm:$0xff]  ;;  %s1761_s26 = scalar_lea.vmem %s2048_s5, %s1553_s30 }
  0x10   : > { %1309 = vmatpush3.msra.mxu0 %v350_v1  ;;  %1373 = vmatpush3.msra.mxu1 %v350_v1  ;;  %v330_v7 = vld [vmem:[%s1562_s10 + $0x80] sm:$0xff]  ;;  %v331_v9 = vld [vmem:[%s1562_s10 + $0x88] sm:$0xff]  ;;  %v332_v11 = vld [vmem:[%s1562_s10 + $0x90] sm:$0xff] }
  0x11   : > { %1310 = vmatprep.subr.mxu0 %v349_v2  ;;  %1368 = vmatprep.subr.mxu1 %v349_v2  ;;  %v317_v12 = vld [vmem:[%s1562_s10 + $0x18] sm:$0xff]  ;;  %v318_v14 = vld [vmem:[%s1562_s10 + $0x20] sm:$0xff]  ;;  %v319_v16 = vld [vmem:[%s1562_s10 + $0x28] sm:$0xff] }
  0x12   : > { %1311 = vmatpush3.msra.mxu0 %v349_v2  ;;  %1374 = vmatpush3.msra.mxu1 %v349_v2  ;;  %v333_v13 = vld [vmem:[%s1562_s10 + $0x98] sm:$0xff]  ;;  %v334_v15 = vld [vmem:[%s1562_s10 + $0xa0] sm:$0xff]  ;;  %v335_v17 = vld [vmem:[%s1562_s10 + $0xa8] sm:$0xff] }
  0x13   : > { %1312 = vmatprep.subr.mxu0 %v348_v3  ;;  %1369 = vmatprep.subr.mxu1 %v348_v3  ;;  %v320_v18 = vld [vmem:[%s1562_s10 + $0x30] sm:$0xff]  ;;  %v321_v20 = vld [vmem:[%s1562_s10 + $0x38] sm:$0xff]  ;;  %v322_v22 = vld [vmem:[%s1562_s10 + $0x40] sm:$0xff] }
  0x14   : > { %1313 = vmatpush3.msra.mxu0 %v348_v3  ;;  %1375 = vmatpush3.msra.mxu1 %v348_v3  ;;  %v336_v19 = vld [vmem:[%s1562_s10 + $0xb0] sm:$0xff]  ;;  %v337_v21 = vld [vmem:[%s1562_s10 + $0xb8] sm:$0xff]  ;;  %v338_v23 = vld [vmem:[%s1562_s10 + $0xc0] sm:$0xff] }
  0x15   : > { %1314 = vmatprep.subr.mxu0 %v347_v4  ;;  %1370 = vmatprep.subr.mxu1 %v347_v4  ;;  %v323_v24 = vld [vmem:[%s1562_s10 + $0x48] sm:$0xff]  ;;  %v324_v26 = vld [vmem:[%s1562_s10 + $0x50] sm:$0xff]  ;;  %v325_v28 = vld [vmem:[%s1562_s10 + $0x58] sm:$0xff] }
  0x16   : > { %1315 = vmatpush3.msra.mxu0 %v347_v4  ;;  %1376 = vmatpush3.msra.mxu1 %v347_v4  ;;  %v339_v25 = vld [vmem:[%s1562_s10 + $0xc8] sm:$0xff]  ;;  %v340_v27 = vld [vmem:[%s1562_s10 + $0xd0] sm:$0xff]  ;;  %v341_v29 = vld [vmem:[%s1562_s10 + $0xd8] sm:$0xff] }
  0x17   : > { %1316 = vmatprep.subr.mxu0 %v346_v5  ;;  %1371 = vmatprep.subr.mxu1 %v346_v5  ;;  %v326_v30 = vld [vmem:[%s1562_s10 + $0x60] sm:$0xff]  ;;  %v327_v32 = vld [vmem:[%s1562_s10 + $0x68] sm:$0xff]  ;;  %v328_v34 = vld [vmem:[%s1562_s10 + $0x70] sm:$0xff] }
  0x18   : > { %1317 = vmatpush3.msra.mxu0 %v346_v5  ;;  %1377 = vmatpush3.msra.mxu1 %v346_v5  ;;  %v342_v31 = vld [vmem:[%s1562_s10 + $0xe0] sm:$0xff]  ;;  %v343_v33 = vld [vmem:[%s1562_s10 + $0xe8] sm:$0xff]  ;;  %v344_v35 = vld [vmem:[%s1562_s10 + $0xf0] sm:$0xff] }
  0x19   : > { %1318 = vmatprep.mubr.msk.f32.mxu0 %vm359_vm0, %v314_v6  ;;  %1342 = vmatprep.mubr.msk.f32.mxu1 %vm359_vm0, %v330_v7  ;;  %v329_v36 = vld [vmem:[%s1562_s10 + $0x78] sm:$0xff]  ;;  %v682_v40 = vld [vmem:[%s1635_s15 + $0x8] sm:$0xff]  ;;  %v1650_v45 = vld [vmem:[%s303_s24] ss:$0 sm:$0xff] }
  0x1a   : > { %1319 = vmatmul.mubr.msk.f32.vlgmr.msra.gmra.mxu0 %vm359_vm0, %v315_v8  ;;  %1343 = vmatmul.mubr.msk.f32.vlgmr.msra.gmra.mxu1 %vm359_vm0, %v331_v9  ;;  %v345_v37 = vld [vmem:[%s1562_s10 + $0xf8] sm:$0xff]  ;;  %v698_v42 = vld [vmem:[%s1635_s15 + $0x88] sm:$0xff]  ;;  %v681_v47 = vld [vmem:[%s1635_s15] sm:$0xff] }
  0x1b   : > { %1321 = vmatprep.mubr.msk.f32.mxu0 %vm359_vm0, %v316_v10  ;;  %1345 = vmatprep.mubr.msk.f32.mxu1 %vm359_vm0, %v332_v11  ;;  %v697_v49 = vld [vmem:[%s1635_s15 + $0x80] sm:$0xff]  ;;  %v684_v60 = vld [vmem:[%s1635_s15 + $0x18] sm:$0xff]  ;;  %v683_v11 = vld [vmem:[%s1635_s15 + $0x10] sm:$0xff] }
  0x1c   : > { %v700_v61 = vld [vmem:[%s1635_s15 + $0x98] sm:$0xff] }
  0x1e   : > { %1322 = vmatmul.mubr.msk.f32.gmra.mxu0 %vm359_vm0, %v317_v12  ;;  %1346 = vmatmul.mubr.msk.f32.gmra.mxu1 %vm359_vm0, %v333_v13  ;;  %v699_v13 = vld [vmem:[%s1635_s15 + $0x90] sm:$0xff] }
  0x1f   : > { %1324 = vmatprep.mubr.msk.f32.mxu0 %vm359_vm0, %v318_v14  ;;  %1348 = vmatprep.mubr.msk.f32.mxu1 %vm359_vm0, %v334_v15 }
  0x22   : > { %1325 = vmatmul.mubr.msk.f32.gmra.mxu0 %vm359_vm0, %v319_v16  ;;  %1349 = vmatmul.mubr.msk.f32.gmra.mxu1 %vm359_vm0, %v335_v17 }
  0x23   : > { %1327 = vmatprep.mubr.msk.f32.mxu0 %vm359_vm0, %v320_v18  ;;  %1351 = vmatprep.mubr.msk.f32.mxu1 %vm359_vm0, %v336_v19 }
  0x26   : > { %1328 = vmatmul.mubr.msk.f32.gmra.mxu0 %vm359_vm0, %v321_v20  ;;  %1352 = vmatmul.mubr.msk.f32.gmra.mxu1 %vm359_vm0, %v337_v21 }
  0x27   : > { %1330 = vmatprep.mubr.msk.f32.mxu0 %vm359_vm0, %v322_v22  ;;  %1354 = vmatprep.mubr.msk.f32.mxu1 %vm359_vm0, %v338_v23 }
  0x2a   : > { %1331 = vmatmul.mubr.msk.f32.gmra.mxu0 %vm359_vm0, %v323_v24  ;;  %1355 = vmatmul.mubr.msk.f32.gmra.mxu1 %vm359_vm0, %v339_v25 }
  0x2b   : > { %1333 = vmatprep.mubr.msk.f32.mxu0 %vm359_vm0, %v324_v26  ;;  %1357 = vmatprep.mubr.msk.f32.mxu1 %vm359_vm0, %v340_v27 }
  0x2e   : > { %1334 = vmatmul.mubr.msk.f32.gmra.mxu0 %vm359_vm0, %v325_v28  ;;  %1358 = vmatmul.mubr.msk.f32.gmra.mxu1 %vm359_vm0, %v341_v29 }
  0x2f   : > { %1336 = vmatprep.mubr.msk.f32.mxu0 %vm359_vm0, %v326_v30  ;;  %1360 = vmatprep.mubr.msk.f32.mxu1 %vm359_vm0, %v342_v31 }
  0x32   : > { %1337 = vmatmul.mubr.msk.f32.gmra.mxu0 %vm359_vm0, %v327_v32  ;;  %1361 = vmatmul.mubr.msk.f32.gmra.mxu1 %vm359_vm0, %v343_v33 }
  0x33   : > { %1339 = vmatprep.mubr.msk.f32.mxu0 %vm359_vm0, %v328_v34  ;;  %1363 = vmatprep.mubr.msk.f32.mxu1 %vm359_vm0, %v344_v35 }
  0x36   : > { %1340 = vmatmul.mubr.msk.f32.gmra.mxu0 %vm359_vm0, %v329_v36  ;;  %1364 = vmatmul.mubr.msk.f32.gmra.mxu1 %vm359_vm0, %v345_v37 }
  0xda   : > { %v1320_v39 = vpop.f32.mrf.mxu0  ;;  %v1344_v41 = vpop.f32.mrf.mxu1 }
  0xdb   : > { %v528_v43 = vadd.f32 %v1320_v39, %v1640_v38  ;;  %v608_v44 = vadd.f32 %v1344_v41, %v1640_v38 }
  0xdc   : > { %v522_v46 = vpop.f32.mrf.mxu0  ;;  %v602_v48 = vpop.f32.mrf.mxu1 }
  0xdd   : > { %v714_v50 = vadd.f32 %v682_v40, %v528_v43  ;;  %v730_v51 = vadd.f32 %v698_v42, %v608_v44  ;;  %v523_v52 = vadd.f32 %v1640_v38, %v522_v46  ;;  %v603_v53 = vadd.f32 %v1640_v38, %v602_v48 }
  0xde   : > { %v1323_v54 = vpop.f32.mrf.mxu0  ;;  %v1347_v55 = vpop.f32.mrf.mxu1 }
  0xdf   : > { %v753_v56 = vadd.f32 %v1650_v45, %v714_v50  ;;  %v1658_v57 = vadd.f32 %v1650_v45, %v730_v51  ;;  %v713_v58 = vadd.f32 %v681_v47, %v523_v52  ;;  %v729_v59 = vadd.f32 %v697_v49, %v603_v53  ;;  %v686_v52 = vld [vmem:[%s1635_s15 + $0x28] sm:$0xff] }
  0xe0   : > { %v538_v62 = vadd.f32 %v1323_v54, %v1640_v38  ;;  %v618_v63 = vadd.f32 %v1347_v55, %v1640_v38  ;;  %v532_v0 = vpop.f32.mrf.mxu0  ;;  %v612_v1 = vpop.f32.mrf.mxu1  ;;  %v702_v53 = vld [vmem:[%s1635_s15 + $0xa8] sm:$0xff] }
  0xe1   : > { %v817_v2 = vmul.f32 0.044715, %v753_v56  ;;  %v833_v3 = vmul.f32 0.044715, %v1658_v57  ;;  %v1666_v4 = vadd.f32 %v1650_v45, %v713_v58  ;;  %v1669_v5 = vadd.f32 %v1650_v45, %v729_v59 }
  0xe2   : > { %v716_v6 = vadd.f32 %v684_v60, %v538_v62  ;;  %v732_v7 = vadd.f32 %v700_v61, %v618_v63  ;;  %v533_v10 = vadd.f32 %v1640_v38, %v532_v0  ;;  %v613_v12 = vadd.f32 %v1640_v38, %v612_v1  ;;  %v1326_v30 = vpop.f32.mrf.mxu0  ;;  %v1350_v40 = vpop.f32.mrf.mxu1  ;;  %v685_v62 = vld [vmem:[%s1635_s15 + $0x20] sm:$0xff] }
  0xe3   : > { %v849_v8 = vmul.f32 %v817_v2, %v753_v56  ;;  %v865_v9 = vmul.f32 %v833_v3, %v1658_v57  ;;  %v816_v14 = vmul.f32 0.044715, %v1666_v4  ;;  %v832_v15 = vmul.f32 0.044715, %v1669_v5  ;;  %v701_v3 = vld [vmem:[%s1635_s15 + $0xa0] sm:$0xff] }
  0xe4   : > { %v1680_v18 = vadd.f32 %v1650_v45, %v716_v6  ;;  %v1683_v19 = vadd.f32 %v1650_v45, %v732_v7  ;;  %v715_v22 = vadd.f32 %v683_v11, %v533_v10  ;;  %v731_v23 = vadd.f32 %v699_v13, %v613_v12  ;;  %v542_v47 = vpop.f32.mrf.mxu0  ;;  %v622_v59 = vpop.f32.mrf.mxu1 }
  0xe5   : > { %v881_v16 = vmul.f32 %v849_v8, %v753_v56  ;;  %v897_v17 = vmul.f32 %v865_v9, %v1658_v57  ;;  %v848_v20 = vmul.f32 %v816_v14, %v1666_v4  ;;  %v864_v21 = vmul.f32 %v832_v15, %v1669_v5 }
  0xe6   : > { %v819_v26 = vmul.f32 0.044715, %v1680_v18  ;;  %v835_v29 = vmul.f32 0.044715, %v1683_v19  ;;  %v1694_v34 = vadd.f32 %v1650_v45, %v715_v22  ;;  %v1700_v39 = vadd.f32 %v1650_v45, %v731_v23  ;;  %v1329_v6 = vpop.f32.mrf.mxu0 }
  0xe7   : > { %v913_v24 = vadd.f32 %v881_v16, %v753_v56  ;;  %v929_v25 = vadd.f32 %v897_v17, %v1658_v57  ;;  %v880_v27 = vmul.f32 %v848_v20, %v1666_v4  ;;  %v896_v28 = vmul.f32 %v864_v21, %v1669_v5  ;;  %v688_v17 = vld [vmem:[%s1635_s15 + $0x38] sm:$0xff]  ;;  %v1353_v20 = vpop.f32.mrf.mxu1 }
  0xe8   : > { %v851_v33 = vmul.f32 %v819_v26, %v1680_v18  ;;  %v867_v37 = vmul.f32 %v835_v29, %v1683_v19  ;;  %v818_v42 = vmul.f32 0.044715, %v1694_v34  ;;  %v1705_v48 = vmul.f32 0.5, %v753_v56 }
  0xe9   : > { %v945_v31 = vmul.f32 0.7978846, %v913_v24  ;;  %v961_v32 = vmul.f32 0.7978846, %v929_v25  ;;  %v912_v35 = vadd.f32 %v880_v27, %v1666_v4  ;;  %v928_v36 = vadd.f32 %v896_v28, %v1669_v5 }
  0xea   : > { %v883_v41 = vmul.f32 %v851_v33, %v1680_v18  ;;  %v899_v46 = vmul.f32 %v867_v37, %v1683_v19  ;;  %v850_v50 = vmul.f32 %v818_v42, %v1694_v34  ;;  %v834_v51 = vmul.f32 0.044715, %v1700_v39 }
  0xeb   : > { %1402 = vtanh.f32 %v945_v31  ;;  %v944_v43 = vmul.f32 0.7978846, %v912_v35  ;;  %v960_v44 = vmul.f32 0.7978846, %v928_v36  ;;  %v548_v55 = vadd.f32 %v1326_v30, %v1640_v38  ;;  %v552_v31 = vpop.f32.mrf.mxu0 }
  0xec   : > { %1404 = vtanh.f32 %v961_v32  ;;  %v915_v49 = vadd.f32 %v883_v41, %v1680_v18  ;;  %v931_v54 = vadd.f32 %v899_v46, %v1683_v19  ;;  %v628_v58 = vadd.f32 %v1350_v40, %v1640_v38 }
  0xed   : > { %1406 = vtanh.f32 %v944_v43  ;;  %v882_v60 = vmul.f32 %v850_v50, %v1694_v34  ;;  %v866_v61 = vmul.f32 %v834_v51, %v1700_v39  ;;  %v718_v0 = vadd.f32 %v686_v52, %v548_v55 }
  0xee   : > { %1408 = vtanh.f32 %v960_v44  ;;  %v947_v56 = vmul.f32 0.7978846, %v915_v49  ;;  %v963_v63 = vmul.f32 0.7978846, %v931_v54  ;;  %v734_v1 = vadd.f32 %v702_v53, %v628_v58 }
  0xef   : > { %v543_v2 = vadd.f32 %v1640_v38, %v542_v47  ;;  %v914_v7 = vadd.f32 %v882_v60, %v1694_v34  ;;  %v898_v8 = vmul.f32 %v866_v61, %v1700_v39  ;;  %v623_v9 = vadd.f32 %v1640_v38, %v622_v59  ;;  %v687_v59 = vld [vmem:[%s1635_s15 + $0x30] sm:$0xff] }
  0xf0   : > { %1410 = vtanh.f32 %v947_v56  ;;  %v1724_v10 = vadd.f32 %v1650_v45, %v718_v0  ;;  %v1727_v11 = vadd.f32 %v1650_v45, %v734_v1  ;;  %v558_v16 = vadd.f32 %v1329_v6, %v1640_v38 }
  0xf1   : > { %1412 = vtanh.f32 %v963_v63  ;;  %v717_v12 = vadd.f32 %v685_v62, %v543_v2  ;;  %v946_v13 = vmul.f32 0.7978846, %v914_v7  ;;  %v930_v14 = vadd.f32 %v898_v8, %v1700_v39  ;;  %v632_v8 = vpop.f32.mrf.mxu1 }
  0xf2   : > { %v733_v15 = vadd.f32 %v701_v3, %v623_v9  ;;  %v801_v21 = vmul.f32 0.5, %v1658_v57  ;;  %v784_v22 = vmul.f32 0.5, %v1666_v4  ;;  %v821_v23 = vmul.f32 0.044715, %v1724_v10  ;;  %v704_v4 = vld [vmem:[%s1635_s15 + $0xb8] sm:$0xff] }
  0xf3   : > { %v837_v24 = vmul.f32 0.044715, %v1727_v11  ;;  %1414 = vtanh.f32 %v946_v13  ;;  %v962_v25 = vmul.f32 0.7978846, %v930_v14  ;;  %v1737_v26 = vadd.f32 %v1650_v45, %v717_v12 }
  0xf4   : > { %v1740_v27 = vadd.f32 %v1650_v45, %v733_v15  ;;  %v853_v28 = vmul.f32 %v821_v23, %v1724_v10  ;;  %v720_v30 = vadd.f32 %v688_v17, %v558_v16  ;;  %v638_v57 = vadd.f32 %v1353_v20, %v1640_v38 }
  0xf5   : > { %v869_v29 = vmul.f32 %v837_v24, %v1727_v11  ;;  %v800_v32 = vmul.f32 0.5, %v1669_v5  ;;  %v787_v33 = vmul.f32 0.5, %v1680_v18  ;;  %1416 = vtanh.f32 %v962_v25  ;;  %v703_v25 = vld [vmem:[%s1635_s15 + $0xb0] sm:$0xff] }
  0xf6   : > { %v820_v35 = vmul.f32 0.044715, %v1737_v26  ;;  %v885_v37 = vmul.f32 %v853_v28, %v1724_v10  ;;  %v836_v41 = vmul.f32 0.044715, %v1740_v27  ;;  %v1753_v42 = vadd.f32 %v1650_v45, %v720_v30 }
  0xf7   : > { %v901_v40 = vmul.f32 %v869_v29, %v1727_v11  ;;  %v736_v46 = vadd.f32 %v704_v4, %v638_v57  ;;  %v553_v18 = vadd.f32 %v1640_v38, %v552_v31  ;;  %v803_v54 = vmul.f32 0.5, %v1683_v19  ;;  %v1356_v4 = vpop.f32.mrf.mxu1 }
  0xf8   : > { %v1403_v36 = vpop.eup %1402  ;;  %v852_v5 = vmul.f32 %v820_v35, %v1737_v26  ;;  %v917_v49 = vadd.f32 %v885_v37, %v1724_v10  ;;  %v868_v51 = vmul.f32 %v836_v41, %v1740_v27  ;;  %v823_v58 = vmul.f32 0.044715, %v1753_v42 }
  0xf9   : > { %v1405_v43 = vpop.eup %1404  ;;  %v1009_v44 = vadd.f32 1.0, %v1403_v36  ;;  %v933_v50 = vadd.f32 %v901_v40, %v1727_v11  ;;  %v1779_v6 = vadd.f32 %v1650_v45, %v736_v46  ;;  %v719_v7 = vadd.f32 %v687_v59, %v553_v18  ;;  %v690_v36 = vld [vmem:[%s1635_s15 + $0x48] sm:$0xff] }
  0xfa   : > { %v1025_v47 = vadd.f32 1.0, %v1405_v43  ;;  %v1407_v52 = vpop.eup %1406  ;;  %v884_v55 = vmul.f32 %v852_v5, %v1737_v26  ;;  %v949_v62 = vmul.f32 0.7978846, %v917_v49  ;;  %v855_v19 = vmul.f32 %v823_v58, %v1753_v42 }
  0xfb   : > { %v1041_v53 = vmul.f32 %v1009_v44, %v1705_v48  ;;  %v1409_v56 = vpop.eup %1408  ;;  %v1008_v61 = vadd.f32 1.0, %v1407_v52  ;;  %v965_v63 = vmul.f32 0.7978846, %v933_v50  ;;  %v900_v48 = vmul.f32 %v868_v51, %v1740_v27  ;;  %v689_v52 = vld [vmem:[%s1635_s15 + $0x40] sm:$0xff] }
  0xfc   : > { %v1057_v60 = vmul.f32 %v1025_v47, %v801_v21  ;;  %v1024_v0 = vadd.f32 1.0, %v1409_v56  ;;  %v916_v1 = vadd.f32 %v884_v55, %v1737_v26  ;;  %1418 = vtanh.f32 %v949_v62  ;;  %v1332_v21 = vpop.f32.mrf.mxu0  ;;  %v706_v47 = vld [vmem:[%s1635_s15 + $0xc8] sm:$0xff] }
  0xfd   : > { %1073 = vst.msk [vmem:[%s1761_s26 + $0x8] sm:$0xff] %vm359_vm0, %v1041_v53  ;;  %v1411_v2 = vpop.eup %1410  ;;  %v1040_v3 = vmul.f32 %v1008_v61, %v784_v22  ;;  %1420 = vtanh.f32 %v965_v63  ;;  %v786_v16 = vmul.f32 0.5, %v1694_v34  ;;  %v932_v17 = vadd.f32 %v900_v48, %v1740_v27  ;;  %v642_v53 = vpop.f32.mrf.mxu1  ;;  %v705_v63 = vld [vmem:[%s1635_s15 + $0xc0] sm:$0xff] }
  0xfe   : > { %1089 = vst.msk [vmem:[%s1761_s26 + $0x88] sm:$0xff] %vm359_vm0, %v1057_v60  ;;  %v1413_v9 = vpop.eup %1412  ;;  %v1056_v12 = vmul.f32 %v1024_v0, %v800_v32  ;;  %v1011_v13 = vadd.f32 1.0, %v1411_v2  ;;  %v948_v14 = vmul.f32 0.7978846, %v916_v1  ;;  %v887_v20 = vmul.f32 %v855_v19, %v1753_v42  ;;  %v562_v44 = vpop.f32.mrf.mxu0 }
  0xff   : > { %1072 = vst.msk [vmem:[%s1761_s26] sm:$0xff] %vm359_vm0, %v1040_v3  ;;  %v1027_v15 = vadd.f32 1.0, %v1413_v9  ;;  %v839_v23 = vmul.f32 0.044715, %v1779_v6  ;;  %v1790_v24 = vadd.f32 %v1650_v45, %v719_v7  ;;  %v964_v29 = vmul.f32 0.7978846, %v932_v17 }
 0x100   : > { %1088 = vst.msk [vmem:[%s1761_s26 + $0x80] sm:$0xff] %vm359_vm0, %v1056_v12  ;;  %v1043_v22 = vmul.f32 %v1011_v13, %v787_v33  ;;  %1422 = vtanh.f32 %v948_v14  ;;  %v1415_v28 = vpop.eup %1414  ;;  %v919_v30 = vadd.f32 %v887_v20, %v1753_v42  ;;  %v633_v57 = vadd.f32 %v1640_v38, %v632_v8 }
 0x101   : > { %v1059_v34 = vmul.f32 %v1027_v15, %v803_v54  ;;  %v1010_v31 = vadd.f32 1.0, %v1415_v28  ;;  %v802_v32 = vmul.f32 0.5, %v1700_v39  ;;  %v871_v33 = vmul.f32 %v839_v23, %v1779_v6  ;;  %v1335_v23 = vpop.f32.mrf.mxu0 }
 0x102   : > { %1075 = vst.msk [vmem:[%s1761_s26 + $0x18] sm:$0xff] %vm359_vm0, %v1043_v22  ;;  %v822_v35 = vmul.f32 0.044715, %v1790_v24  ;;  %v1417_v37 = vpop.eup %1416  ;;  %1424 = vtanh.f32 %v964_v29  ;;  %v951_v40 = vmul.f32 0.7978846, %v919_v30  ;;  %v735_v41 = vadd.f32 %v703_v25, %v633_v57 }
 0x103   : > { %1091 = vst.msk [vmem:[%s1761_s26 + $0x98] sm:$0xff] %vm359_vm0, %v1059_v34  ;;  %v568_v43 = vadd.f32 %v1332_v21, %v1640_v38  ;;  %v1042_v5 = vmul.f32 %v1010_v31, %v786_v16  ;;  %v1026_v46 = vadd.f32 1.0, %v1417_v37  ;;  %v903_v39 = vmul.f32 %v871_v33, %v1779_v6  ;;  %v1359_v31 = vpop.f32.mrf.mxu1  ;;  %v692_v37 = vld [vmem:[%s1635_s15 + $0x58] sm:$0xff] }
 0x104   : > { %v854_v18 = vmul.f32 %v822_v35, %v1790_v24  ;;  %1426 = vtanh.f32 %v951_v40  ;;  %v1808_v49 = vadd.f32 %v1650_v45, %v735_v41  ;;  %v648_v51 = vadd.f32 %v1356_v4, %v1640_v38 }
 0x105   : > { %v722_v50 = vadd.f32 %v690_v36, %v568_v43  ;;  %1074 = vst.msk [vmem:[%s1761_s26 + $0x10] sm:$0xff] %vm359_vm0, %v1042_v5  ;;  %v1058_v54 = vmul.f32 %v1026_v46, %v802_v32  ;;  %v935_v55 = vadd.f32 %v903_v39, %v1779_v6  ;;  %v563_v59 = vadd.f32 %v1640_v38, %v562_v44 }
 0x106   : > { %v886_v58 = vmul.f32 %v854_v18, %v1790_v24  ;;  %v789_v56 = vmul.f32 0.5, %v1724_v10  ;;  %v838_v60 = vmul.f32 0.044715, %v1808_v49  ;;  %v738_v62 = vadd.f32 %v706_v47, %v648_v51  ;;  %v708_v47 = vld [vmem:[%s1635_s15 + $0xd8] sm:$0xff] }
 0x107   : > { %v1820_v61 = vadd.f32 %v1650_v45, %v722_v50  ;;  %1090 = vst.msk [vmem:[%s1761_s26 + $0x90] sm:$0xff] %vm359_vm0, %v1058_v54  ;;  %v967_v0 = vmul.f32 0.7978846, %v935_v55  ;;  %v721_v48 = vadd.f32 %v689_v52, %v563_v59  ;;  %v643_v19 = vadd.f32 %v1640_v38, %v642_v53  ;;  %v572_v50 = vpop.f32.mrf.mxu0  ;;  %v652_v55 = vpop.f32.mrf.mxu1 }
 0x108   : > { %v918_v1 = vadd.f32 %v886_v58, %v1790_v24  ;;  %v805_v2 = vmul.f32 0.5, %v1727_v11  ;;  %v870_v3 = vmul.f32 %v838_v60, %v1808_v49  ;;  %v1831_v7 = vadd.f32 %v1650_v45, %v738_v62 }
 0x109   : > { %v825_v10 = vmul.f32 0.044715, %v1820_v61  ;;  %v1419_v8 = vpop.eup %1418  ;;  %1428 = vtanh.f32 %v967_v0  ;;  %v1834_v12 = vadd.f32 %v1650_v45, %v721_v48  ;;  %v737_v13 = vadd.f32 %v705_v63, %v643_v19  ;;  %v707_v48 = vld [vmem:[%s1635_s15 + $0xd0] sm:$0xff] }
 0x10a   : > { %v950_v9 = vmul.f32 0.7978846, %v918_v1  ;;  %v1421_v14 = vpop.eup %1420  ;;  %v1013_v15 = vadd.f32 1.0, %v1419_v8  ;;  %v788_v16 = vmul.f32 0.5, %v1737_v26  ;;  %v902_v11 = vmul.f32 %v870_v3, %v1808_v49  ;;  %v691_v1 = vld [vmem:[%s1635_s15 + $0x50] sm:$0xff]  ;;  %v1338_v8 = vpop.f32.mrf.mxu0 }
 0x10b   : > { %v857_v17 = vmul.f32 %v825_v10, %v1820_v61  ;;  %v1029_v20 = vadd.f32 1.0, %v1421_v14  ;;  %v804_v21 = vmul.f32 0.5, %v1740_v27  ;;  %v841_v22 = vmul.f32 0.044715, %v1831_v7 }
 0x10c   : > { %1430 = vtanh.f32 %v950_v9  ;;  %v1045_v28 = vmul.f32 %v1013_v15, %v789_v56  ;;  %v934_v34 = vadd.f32 %v902_v11, %v1808_v49  ;;  %v824_v29 = vmul.f32 0.044715, %v1834_v12 }
 0x10d   : > { %v1423_v25 = vpop.eup %1422  ;;  %v889_v26 = vmul.f32 %v857_v17, %v1820_v61  ;;  %v1061_v30 = vmul.f32 %v1029_v20, %v805_v2  ;;  %v873_v4 = vmul.f32 %v841_v22, %v1831_v7  ;;  %v1846_v27 = vadd.f32 %v1650_v45, %v737_v13  ;;  %v1362_v20 = vpop.f32.mrf.mxu1 }
 0x10e   : > { %v1012_v57 = vadd.f32 1.0, %v1423_v25  ;;  %1077 = vst.msk [vmem:[%s1761_s26 + $0x28] sm:$0xff] %vm359_vm0, %v1045_v28  ;;  %v966_v32 = vmul.f32 0.7978846, %v934_v34  ;;  %v856_v35 = vmul.f32 %v824_v29, %v1834_v12  ;;  %v578_v36 = vadd.f32 %v1335_v23, %v1640_v38 }
 0x10f   : > { %v921_v33 = vadd.f32 %v889_v26, %v1820_v61  ;;  %v1425_v40 = vpop.eup %1424  ;;  %1093 = vst.msk [vmem:[%s1761_s26 + $0xa8] sm:$0xff] %vm359_vm0, %v1061_v30  ;;  %v791_v43 = vmul.f32 0.5, %v1753_v42  ;;  %v905_v44 = vmul.f32 %v873_v4, %v1831_v7  ;;  %v840_v5 = vmul.f32 0.044715, %v1846_v27  ;;  %v694_v30 = vld [vmem:[%s1635_s15 + $0x68] sm:$0xff] }
 0x110   : > { %v1044_v41 = vmul.f32 %v1012_v57, %v788_v16  ;;  %v1028_v46 = vadd.f32 1.0, %v1425_v40  ;;  %1432 = vtanh.f32 %v966_v32  ;;  %v888_v18 = vmul.f32 %v856_v35, %v1834_v12  ;;  %v582_v32 = vpop.f32.mrf.mxu0 }
 0x111   : > { %v953_v39 = vmul.f32 0.7978846, %v921_v33  ;;  %v1427_v51 = vpop.eup %1426  ;;  %v937_v52 = vadd.f32 %v905_v44, %v1831_v7  ;;  %v872_v42 = vmul.f32 %v840_v5, %v1846_v27  ;;  %v724_v53 = vadd.f32 %v692_v37, %v578_v36  ;;  %v662_v37 = vpop.f32.mrf.mxu1  ;;  %v710_v5 = vld [vmem:[%s1635_s15 + $0xe8] sm:$0xff] }
 0x112   : > { %1076 = vst.msk [vmem:[%s1761_s26 + $0x20] sm:$0xff] %vm359_vm0, %v1044_v41  ;;  %v658_v54 = vadd.f32 %v1359_v31, %v1640_v38  ;;  %v1060_v58 = vmul.f32 %v1028_v46, %v804_v21  ;;  %v1015_v59 = vadd.f32 1.0, %v1427_v51  ;;  %v920_v56 = vadd.f32 %v888_v18, %v1834_v12 }
 0x113   : > { %1434 = vtanh.f32 %v953_v39  ;;  %v969_v60 = vmul.f32 0.7978846, %v937_v52  ;;  %v904_v62 = vmul.f32 %v872_v42, %v1846_v27  ;;  %v1869_v63 = vadd.f32 %v1650_v45, %v724_v53 }
 0x114   : > { %v740_v0 = vadd.f32 %v708_v47, %v658_v54  ;;  %1092 = vst.msk [vmem:[%s1761_s26 + $0xa0] sm:$0xff] %vm359_vm0, %v1060_v58  ;;  %v1047_v19 = vmul.f32 %v1015_v59, %v791_v43  ;;  %v952_v2 = vmul.f32 0.7978846, %v920_v56  ;;  %v573_v3 = vadd.f32 %v1640_v38, %v572_v50  ;;  %v693_v58 = vld [vmem:[%s1635_s15 + $0x60] sm:$0xff] }
 0x115   : > { %v653_v10 = vadd.f32 %v1640_v38, %v652_v55  ;;  %v807_v9 = vmul.f32 0.5, %v1779_v6  ;;  %1436 = vtanh.f32 %v969_v60  ;;  %v936_v13 = vadd.f32 %v904_v62, %v1846_v27 }
 0x116   : > { %v827_v14 = vmul.f32 0.044715, %v1869_v63  ;;  %v1429_v15 = vpop.eup %1428  ;;  %1079 = vst.msk [vmem:[%s1761_s26 + $0x38] sm:$0xff] %vm359_vm0, %v1047_v19  ;;  %1438 = vtanh.f32 %v952_v2  ;;  %v1883_v16 = vadd.f32 %v1650_v45, %v740_v0  ;;  %v723_v11 = vadd.f32 %v691_v1, %v573_v3  ;;  %v709_v0 = vld [vmem:[%s1635_s15 + $0xe0] sm:$0xff] }
 0x117   : > { %v739_v17 = vadd.f32 %v707_v48, %v653_v10  ;;  %v1031_v21 = vadd.f32 1.0, %v1429_v15  ;;  %v968_v22 = vmul.f32 0.7978846, %v936_v13  ;;  %v588_v23 = vadd.f32 %v1338_v8, %v1640_v38 }
 0x118   : > { %v859_v6 = vmul.f32 %v827_v14, %v1869_v63  ;;  %v790_v28 = vmul.f32 0.5, %v1790_v24  ;;  %v843_v34 = vmul.f32 0.044715, %v1883_v16  ;;  %v1890_v26 = vadd.f32 %v1650_v45, %v723_v11  ;;  %v1341_v11 = vpop.f32.mrf.mxu0 }
 0x119   : > { %v1431_v25 = vpop.eup %1430  ;;  %v1893_v29 = vadd.f32 %v1650_v45, %v739_v17  ;;  %v1063_v57 = vmul.f32 %v1031_v21, %v807_v9  ;;  %1440 = vtanh.f32 %v968_v22  ;;  %v806_v33 = vmul.f32 0.5, %v1808_v49 }
 0x11a   : > { %v1014_v4 = vadd.f32 1.0, %v1431_v25  ;;  %v891_v31 = vmul.f32 %v859_v6, %v1869_v63  ;;  %v793_v24 = vmul.f32 0.5, %v1820_v61  ;;  %v875_v35 = vmul.f32 %v843_v34, %v1883_v16  ;;  %v1365_v34 = vpop.f32.mrf.mxu1 }
 0x11b   : > { %v826_v36 = vmul.f32 0.044715, %v1890_v26  ;;  %1095 = vst.msk [vmem:[%s1761_s26 + $0xb8] sm:$0xff] %vm359_vm0, %v1063_v57  ;;  %v842_v43 = vmul.f32 0.044715, %v1893_v29  ;;  %v726_v44 = vadd.f32 %v694_v30, %v588_v23  ;;  %v668_v61 = vadd.f32 %v1362_v20, %v1640_v38 }
 0x11c   : > { %v1046_v40 = vmul.f32 %v1014_v4, %v790_v28  ;;  %v923_v41 = vadd.f32 %v891_v31, %v1869_v63  ;;  %v907_v49 = vmul.f32 %v875_v35, %v1883_v16  ;;  %v583_v39 = vadd.f32 %v1640_v38, %v582_v32  ;;  %v712_v35 = vld [vmem:[%s1635_s15 + $0xf8] sm:$0xff] }
 0x11d   : > { %v858_v46 = vmul.f32 %v826_v36, %v1890_v26  ;;  %v1433_v18 = vpop.eup %1432  ;;  %v874_v50 = vmul.f32 %v842_v43, %v1893_v29  ;;  %v1914_v51 = vadd.f32 %v1650_v45, %v726_v44  ;;  %v663_v52 = vadd.f32 %v1640_v38, %v662_v37  ;;  %v592_v36 = vpop.f32.mrf.mxu0 }
 0x11e   : > { %1078 = vst.msk [vmem:[%s1761_s26 + $0x30] sm:$0xff] %vm359_vm0, %v1046_v40  ;;  %v955_v47 = vmul.f32 0.7978846, %v923_v41  ;;  %v1030_v42 = vadd.f32 1.0, %v1433_v18  ;;  %v939_v53 = vadd.f32 %v907_v49, %v1883_v16  ;;  %v742_v55 = vadd.f32 %v710_v5, %v668_v61  ;;  %v695_v61 = vld [vmem:[%s1635_s15 + $0x70] sm:$0xff] }
 0x11f   : > { %v890_v54 = vmul.f32 %v858_v46, %v1890_v26  ;;  %v809_v56 = vmul.f32 0.5, %v1831_v7  ;;  %v906_v60 = vmul.f32 %v874_v50, %v1893_v29  ;;  %v829_v62 = vmul.f32 0.044715, %v1914_v51 }
 0x120   : > { %v1435_v59 = vpop.eup %1434  ;;  %1442 = vtanh.f32 %v955_v47  ;;  %v1062_v1 = vmul.f32 %v1030_v42, %v806_v33  ;;  %v971_v19 = vmul.f32 0.7978846, %v939_v53  ;;  %v1928_v8 = vadd.f32 %v1650_v45, %v742_v55 }
 0x121   : > { %v1017_v48 = vadd.f32 1.0, %v1435_v59  ;;  %v922_v2 = vadd.f32 %v890_v54, %v1890_v26  ;;  %v938_v3 = vadd.f32 %v906_v60, %v1893_v29  ;;  %v861_v10 = vmul.f32 %v829_v62, %v1914_v51  ;;  %v711_v54 = vld [vmem:[%s1635_s15 + $0xf0] sm:$0xff] }
 0x122   : > { %v725_v7 = vadd.f32 %v693_v58, %v583_v39  ;;  %v1437_v9 = vpop.eup %1436  ;;  %1094 = vst.msk [vmem:[%s1761_s26 + $0xb0] sm:$0xff] %vm359_vm0, %v1062_v1  ;;  %1444 = vtanh.f32 %v971_v19  ;;  %v741_v15 = vadd.f32 %v709_v0, %v663_v52  ;;  %v792_v21 = vmul.f32 0.5, %v1834_v12  ;;  %v672_v39 = vpop.f32.mrf.mxu1 }
 0x123   : > { %v1049_v13 = vmul.f32 %v1017_v48, %v793_v24  ;;  %v954_v14 = vmul.f32 0.7978846, %v922_v2  ;;  %v1439_v17 = vpop.eup %1438  ;;  %v1033_v20 = vadd.f32 1.0, %v1437_v9  ;;  %v970_v22 = vmul.f32 0.7978846, %v938_v3  ;;  %v696_v24 = vld [vmem:[%s1635_s15 + $0x78] sm:$0xff] }
 0x124   : > { %v893_v6 = vmul.f32 %v861_v10, %v1914_v51  ;;  %v1016_v23 = vadd.f32 1.0, %v1439_v17  ;;  %v845_v25 = vmul.f32 0.044715, %v1928_v8  ;;  %v1938_v28 = vadd.f32 %v1650_v45, %v725_v7 }
 0x125   : > { %1081 = vst.msk [vmem:[%s1761_s26 + $0x48] sm:$0xff] %vm359_vm0, %v1049_v13  ;;  %1446 = vtanh.f32 %v954_v14  ;;  %v1065_v30 = vmul.f32 %v1033_v20, %v809_v56  ;;  %v1942_v57 = vadd.f32 %v1650_v45, %v741_v15  ;;  %v808_v37 = vmul.f32 0.5, %v1846_v27 }
 0x126   : > { %1448 = vtanh.f32 %v970_v22  ;;  %v925_v12 = vadd.f32 %v893_v6, %v1914_v51  ;;  %v1441_v4 = vpop.eup %1440  ;;  %v1048_v31 = vmul.f32 %v1016_v23, %v792_v21  ;;  %v877_v32 = vmul.f32 %v845_v25, %v1928_v8 }
 0x127   : > { %v828_v33 = vmul.f32 0.044715, %v1938_v28  ;;  %1097 = vst.msk [vmem:[%s1761_s26 + $0xc8] sm:$0xff] %vm359_vm0, %v1065_v30  ;;  %v1032_v40 = vadd.f32 1.0, %v1441_v4  ;;  %v844_v43 = vmul.f32 0.044715, %v1942_v57  ;;  %v598_v49 = vadd.f32 %v1341_v11, %v1640_v38 }
 0x128   : > { %v957_v41 = vmul.f32 0.7978846, %v925_v12  ;;  %1080 = vst.msk [vmem:[%s1761_s26 + $0x40] sm:$0xff] %vm359_vm0, %v1048_v31  ;;  %v909_v44 = vmul.f32 %v877_v32, %v1928_v8  ;;  %v678_v46 = vadd.f32 %v1365_v34, %v1640_v38  ;;  %v593_v47 = vadd.f32 %v1640_v38, %v592_v36 }
 0x129   : > { %v860_v5 = vmul.f32 %v828_v33, %v1938_v28  ;;  %v1064_v18 = vmul.f32 %v1032_v40, %v808_v37  ;;  %v876_v27 = vmul.f32 %v844_v43, %v1942_v57  ;;  %v728_v42 = vadd.f32 %v696_v24, %v598_v49 }
 0x12a   : > { %1450 = vtanh.f32 %v957_v41  ;;  %v941_v50 = vadd.f32 %v909_v44, %v1928_v8  ;;  %v744_v53 = vadd.f32 %v712_v35, %v678_v46  ;;  %v795_v55 = vmul.f32 0.5, %v1869_v63 }
 0x12b   : > { %v892_v52 = vmul.f32 %v860_v5, %v1938_v28  ;;  %1096 = vst.msk [vmem:[%s1761_s26 + $0xc0] sm:$0xff] %vm359_vm0, %v1064_v18  ;;  %v908_v58 = vmul.f32 %v876_v27, %v1942_v57  ;;  %v727_v59 = vadd.f32 %v695_v61, %v593_v47  ;;  %v673_v56 = vadd.f32 %v1640_v38, %v672_v39 }
 0x12c   : > { %v973_v62 = vmul.f32 0.7978846, %v941_v50  ;;  %v1971_v1 = vadd.f32 %v1650_v45, %v728_v42  ;;  %v1974_v48 = vadd.f32 %v1650_v45, %v744_v53  ;;  %v811_v15 = vmul.f32 0.5, %v1883_v16 }
 0x12d   : > { %v1443_v60 = vpop.eup %1442  ;;  %v924_v0 = vadd.f32 %v892_v52, %v1938_v28  ;;  %v940_v2 = vadd.f32 %v908_v58, %v1942_v57  ;;  %v1978_v63 = vadd.f32 %v1650_v45, %v727_v59  ;;  %v743_v3 = vadd.f32 %v711_v54, %v673_v56 }
 0x12e   : > { %v1019_v19 = vadd.f32 1.0, %v1443_v60  ;;  %1452 = vtanh.f32 %v973_v62  ;;  %v831_v10 = vmul.f32 0.044715, %v1971_v1  ;;  %v847_v14 = vmul.f32 0.044715, %v1974_v48 }
 0x12f   : > { %v956_v38 = vmul.f32 0.7978846, %v924_v0  ;;  %v1445_v7 = vpop.eup %1444  ;;  %v972_v13 = vmul.f32 0.7978846, %v940_v2  ;;  %v830_v22 = vmul.f32 0.044715, %v1978_v63  ;;  %v1989_v6 = vadd.f32 %v1650_v45, %v743_v3 }
 0x130   : > { %v1051_v9 = vmul.f32 %v1019_v19, %v795_v55  ;;  %v1035_v11 = vadd.f32 1.0, %v1445_v7  ;;  %v863_v17 = vmul.f32 %v831_v10, %v1971_v1  ;;  %v879_v21 = vmul.f32 %v847_v14, %v1974_v48 }
 0x131   : > { %1454 = vtanh.f32 %v956_v38  ;;  %v794_v16 = vmul.f32 0.5, %v1890_v26  ;;  %v810_v12 = vmul.f32 0.5, %v1893_v29  ;;  %v862_v32 = vmul.f32 %v830_v22, %v1978_v63 }
 0x132   : > { %v1447_v20 = vpop.eup %1446  ;;  %1083 = vst.msk [vmem:[%s1761_s26 + $0x58] sm:$0xff] %vm359_vm0, %v1051_v9  ;;  %1456 = vtanh.f32 %v972_v13  ;;  %v1067_v25 = vmul.f32 %v1035_v11, %v811_v15  ;;  %v895_v30 = vmul.f32 %v863_v17, %v1971_v1  ;;  %v911_v31 = vmul.f32 %v879_v21, %v1974_v48 }
 0x133   : > { %v1449_v23 = vpop.eup %1448  ;;  %v1018_v34 = vadd.f32 1.0, %v1447_v20  ;;  %v846_v24 = vmul.f32 0.044715, %v1989_v6  ;;  %v894_v36 = vmul.f32 %v862_v32, %v1978_v63  ;;  %v797_v41 = vmul.f32 0.5, %v1914_v51 }
 0x134   : > { %v1034_v4 = vadd.f32 1.0, %v1449_v23  ;;  %1099 = vst.msk [vmem:[%s1761_s26 + $0xd8] sm:$0xff] %vm359_vm0, %v1067_v25  ;;  %v927_v33 = vadd.f32 %v895_v30, %v1971_v1  ;;  %v943_v26 = vadd.f32 %v911_v31, %v1974_v48  ;;  %v813_v51 = vmul.f32 0.5, %v1928_v8 }
 0x135   : > { %v1050_v45 = vmul.f32 %v1018_v34, %v794_v16  ;;  %v878_v40 = vmul.f32 %v846_v24, %v1989_v6  ;;  %v926_v5 = vadd.f32 %v894_v36, %v1978_v63  ;;  %v796_v53 = vmul.f32 0.5, %v1938_v28 }
 0x136   : > { %v1066_v35 = vmul.f32 %v1034_v4, %v810_v12  ;;  %v959_v29 = vmul.f32 0.7978846, %v927_v33  ;;  %v975_v44 = vmul.f32 0.7978846, %v943_v26  ;;  %v812_v55 = vmul.f32 0.5, %v1942_v57 }
 0x137   : > { %v1451_v37 = vpop.eup %1450  ;;  %1082 = vst.msk [vmem:[%s1761_s26 + $0x50] sm:$0xff] %vm359_vm0, %v1050_v45  ;;  %v910_v49 = vmul.f32 %v878_v40, %v1989_v6  ;;  %v958_v61 = vmul.f32 0.7978846, %v926_v5  ;;  %v799_v28 = vmul.f32 0.5, %v1971_v1  ;;  %v815_v57 = vmul.f32 0.5, %v1974_v48 }
 0x138   : > { %1098 = vst.msk [vmem:[%s1761_s26 + $0xd0] sm:$0xff] %vm359_vm0, %v1066_v35  ;;  %v1021_v43 = vadd.f32 1.0, %v1451_v37  ;;  %1458 = vtanh.f32 %v959_v29  ;;  %v798_v38 = vmul.f32 0.5, %v1978_v63  ;;  %v814_v13 = vmul.f32 0.5, %v1989_v6 }
 0x139   : > { %1460 = vtanh.f32 %v975_v44  ;;  %v942_v39 = vadd.f32 %v910_v49, %v1989_v6 }
 0x13a   : > { %v1053_v46 = vmul.f32 %v1021_v43, %v797_v41  ;;  %1462 = vtanh.f32 %v958_v61 }
 0x13b   : > { %v1453_v18 = vpop.eup %1452  ;;  %v974_v47 = vmul.f32 0.7978846, %v942_v39 }
 0x13c   : > { %1085 = vst.msk [vmem:[%s1761_s26 + $0x68] sm:$0xff] %vm359_vm0, %v1053_v46  ;;  %v1037_v27 = vadd.f32 1.0, %v1453_v18 }
 0x13d   : > { %1464 = vtanh.f32 %v974_v47 }
 0x13e   : > { %v1455_v50 = vpop.eup %1454  ;;  %v1069_v42 = vmul.f32 %v1037_v27, %v813_v51 }
 0x13f   : > { %v1457_v52 = vpop.eup %1456  ;;  %v1020_v54 = vadd.f32 1.0, %v1455_v50 }
 0x140   : > { %v1036_v58 = vadd.f32 1.0, %v1457_v52  ;;  %1101 = vst.msk [vmem:[%s1761_s26 + $0xe8] sm:$0xff] %vm359_vm0, %v1069_v42 }
 0x141   : > { %v1052_v59 = vmul.f32 %v1020_v54, %v796_v53 }
 0x142   : > { %v1068_v56 = vmul.f32 %v1036_v58, %v812_v55 }
 0x143   : > { %1084 = vst.msk [vmem:[%s1761_s26 + $0x60] sm:$0xff] %vm359_vm0, %v1052_v59 }
 0x144   : > { %1100 = vst.msk [vmem:[%s1761_s26 + $0xe0] sm:$0xff] %vm359_vm0, %v1068_v56 }
 0x145   : > { %v1459_v8 = vpop.eup %1458 }
 0x146   : > { %v1461_v60 = vpop.eup %1460  ;;  %v1023_v62 = vadd.f32 1.0, %v1459_v8 }
 0x147   : > { %v1039_v0 = vadd.f32 1.0, %v1461_v60  ;;  %v1463_v19 = vpop.eup %1462 }
 0x148   : > { %v1055_v2 = vmul.f32 %v1023_v62, %v799_v28  ;;  %v1022_v10 = vadd.f32 1.0, %v1463_v19 }
 0x149   : > { %v1071_v3 = vmul.f32 %v1039_v0, %v815_v57 }
 0x14a   : > { %1087 = vst.msk [vmem:[%s1761_s26 + $0x78] sm:$0xff] %vm359_vm0, %v1055_v2  ;;  %v1465_v7 = vpop.eup %1464  ;;  %v1054_v9 = vmul.f32 %v1022_v10, %v798_v38 }
 0x14b   : > { %1103 = vst.msk [vmem:[%s1761_s26 + $0xf8] sm:$0xff] %vm359_vm0, %v1071_v3  ;;  %v1038_v1 = vadd.f32 1.0, %v1465_v7 }
 0x14c   : > { %1086 = vst.msk [vmem:[%s1761_s26 + $0x70] sm:$0xff] %vm359_vm0, %v1054_v9 }
 0x14d   : > { %v1070_v14 = vmul.f32 %v1038_v1, %v814_v13 }
 0x14f   : > { %1102 = vst.msk [vmem:[%s1761_s26 + $0xf0] sm:$0xff] %vm359_vm0, %v1070_v14 }
 0x150 PF: > { %s15_s20 = sadd.s32 1, %s1488_s20   ;;  %s2049_s18 = smov %s1484_s19 }
 0x151   : > { %p12_p5 = scmp.ge.s32.totalorder %s15_s20, 4   ;;  %s2050_s19 = smov %s2052_s21 }
 0x153   :  { %14 = sbr.rel (!%p12_p5) target bundleno = 2 (0x2), region = 76 }

// kernel: fno2d_prev_forward.20
= control target key start
LH: loop header
LB: loop body
LE: loop exit
PB: predicated region body
PF: predicated region fallthrough
CT: control target
= control target key end

     0   :  { %s1168_s18 = smov 0   ;;  %s1170_s19 = smov 0   ;;  %s1471_s0 = inlined_call_operand.vmem [shape: f32[2,256,48], index: 0, kind: input, shape index: {}]   ;;  %s1472_s1 = inlined_call_operand.vmem [shape: f32[2,256,48], index: 1, kind: input, shape index: {}]   ;;  %s1473_s2 = inlined_call_operand.vmem [shape: f32[2,1,48], index: 2, kind: input, shape index: {}]   ;;  %s1474_s3 = inlined_call_operand.vmem [shape: f32[48,48], index: 3, kind: input, shape index: {}]   ;;  %s1475_s4 = inlined_call_operand.vmem [shape: f32[1,48], index: 4, kind: input, shape index: {}]   ;;  %s1476_s5 = inlined_call_operand.vmem [shape: f32[2,256,48], index: 5, kind: output, shape index: {}]  }
   0x1   :  { %s1172_s20 = smov 0  }
   0x2 LB: > { %s27_s21 = sadd.s32 1, %s1132_s19  ;;  %p934_p0 = scmp.ge.s32.totalorder %s1136_s20, 1  ;;  %s1136_s20 = sphi %s1172_s20, %s15_s20   ;;  %s1132_s19 = sphi %s1170_s19, %s1478_s19   ;;  %s1128_s18 = sphi %s1168_s18, %s1477_s18  }
   0x3   : > { %p29_p1 = scmp.ge.s32.totalorder %s27_s21, 2  ;;  %p233_p2 = scmp.lt.s32.totalorder %s1136_s20, 3 }
   0x5   : > { %s1480_s21 = smov (%p29_p1, %s27_s21), 0  ;;  %p234_p3 = pnand %p934_p0, %p233_p2 }
   0x6   : > { %p282_p4 = scmp.lt.s32.totalorder (!%p234_p3), %s1128_s18, 1 }
   0x7   : > { %237 = sbr.rel (%p234_p3) target bundleno = 256 (0x100), region = 40 }
   0xc   : > { %v351_v0 = vld [vmem:[%s1474_s3 + $0x28] sm:$0xff]  ;;  %v350_v1 = vld [vmem:[%s1474_s3 + $0x20] sm:$0xff]  ;;  %v349_v2 = vld [vmem:[%s1474_s3 + $0x18] sm:$0xff]  ;;  %s1482_s18 = smov (!%p282_p4, %s1128_s18), 1  ;;  %vm359_vm0 = vcmask 392192  }
   0xd   : > { %1018 = vmatprep.subr.mxu0 %v351_v0  ;;  %1078 = vmatprep.subr.mxu1 %v351_v0  ;;  %v348_v3 = vld [vmem:[%s1474_s3 + $0x10] sm:$0xff]  ;;  %s1201_s30 = sshll.u32 %s1482_s18, 8  ;;  %v347_v4 = vld [vmem:[%s1474_s3 + $0x8] sm:$0xff]  ;;  %v346_v5 = vld [vmem:[%s1474_s3] sm:$0xff]  ;;  %s303_s24 = scalar_lea.vmem %s1473_s2, %s1482_s18 }
   0xe   : > { %1019 = vmatpush3.msra.mxu0 %v351_v0  ;;  %1084 = vmatpush3.msra.mxu1 %v351_v0  ;;  %s1210_s10 = scalar_lea.vmem %s1471_s0, %s1201_s30  ;;  %s1283_s15 = scalar_lea.vmem %s1472_s1, %s1201_s30  ;;  %v1288_v38 = vld [vmem:[%s1475_s4] ss:$0 sm:$0xff] }
   0xf   : > { %1020 = vmatprep.subr.mxu0 %v350_v1  ;;  %1079 = vmatprep.subr.mxu1 %v350_v1  ;;  %v314_v6 = vld [vmem:[%s1210_s10] sm:$0xff]  ;;  %v315_v8 = vld [vmem:[%s1210_s10 + $0x8] sm:$0xff]  ;;  %v316_v10 = vld [vmem:[%s1210_s10 + $0x10] sm:$0xff]  ;;  %s1308_s26 = scalar_lea.vmem %s1476_s5, %s1201_s30 }
  0x10   : > { %1021 = vmatpush3.msra.mxu0 %v350_v1  ;;  %1085 = vmatpush3.msra.mxu1 %v350_v1  ;;  %v330_v7 = vld [vmem:[%s1210_s10 + $0x80] sm:$0xff]  ;;  %v331_v9 = vld [vmem:[%s1210_s10 + $0x88] sm:$0xff]  ;;  %v332_v11 = vld [vmem:[%s1210_s10 + $0x90] sm:$0xff] }
  0x11   : > { %1022 = vmatprep.subr.mxu0 %v349_v2  ;;  %1080 = vmatprep.subr.mxu1 %v349_v2  ;;  %v317_v12 = vld [vmem:[%s1210_s10 + $0x18] sm:$0xff]  ;;  %v318_v14 = vld [vmem:[%s1210_s10 + $0x20] sm:$0xff]  ;;  %v319_v16 = vld [vmem:[%s1210_s10 + $0x28] sm:$0xff] }
  0x12   : > { %1023 = vmatpush3.msra.mxu0 %v349_v2  ;;  %1086 = vmatpush3.msra.mxu1 %v349_v2  ;;  %v333_v13 = vld [vmem:[%s1210_s10 + $0x98] sm:$0xff]  ;;  %v334_v15 = vld [vmem:[%s1210_s10 + $0xa0] sm:$0xff]  ;;  %v335_v17 = vld [vmem:[%s1210_s10 + $0xa8] sm:$0xff] }
  0x13   : > { %1024 = vmatprep.subr.mxu0 %v348_v3  ;;  %1081 = vmatprep.subr.mxu1 %v348_v3  ;;  %v320_v18 = vld [vmem:[%s1210_s10 + $0x30] sm:$0xff]  ;;  %v321_v20 = vld [vmem:[%s1210_s10 + $0x38] sm:$0xff]  ;;  %v322_v22 = vld [vmem:[%s1210_s10 + $0x40] sm:$0xff] }
  0x14   : > { %1025 = vmatpush3.msra.mxu0 %v348_v3  ;;  %1087 = vmatpush3.msra.mxu1 %v348_v3  ;;  %v336_v19 = vld [vmem:[%s1210_s10 + $0xb0] sm:$0xff]  ;;  %v337_v21 = vld [vmem:[%s1210_s10 + $0xb8] sm:$0xff]  ;;  %v338_v23 = vld [vmem:[%s1210_s10 + $0xc0] sm:$0xff] }
  0x15   : > { %1026 = vmatprep.subr.mxu0 %v347_v4  ;;  %1082 = vmatprep.subr.mxu1 %v347_v4  ;;  %v323_v24 = vld [vmem:[%s1210_s10 + $0x48] sm:$0xff]  ;;  %v324_v26 = vld [vmem:[%s1210_s10 + $0x50] sm:$0xff]  ;;  %v325_v28 = vld [vmem:[%s1210_s10 + $0x58] sm:$0xff] }
  0x16   : > { %1027 = vmatpush3.msra.mxu0 %v347_v4  ;;  %1088 = vmatpush3.msra.mxu1 %v347_v4  ;;  %v339_v25 = vld [vmem:[%s1210_s10 + $0xc8] sm:$0xff]  ;;  %v340_v27 = vld [vmem:[%s1210_s10 + $0xd0] sm:$0xff]  ;;  %v341_v29 = vld [vmem:[%s1210_s10 + $0xd8] sm:$0xff] }
  0x17   : > { %1028 = vmatprep.subr.mxu0 %v346_v5  ;;  %1083 = vmatprep.subr.mxu1 %v346_v5  ;;  %v326_v30 = vld [vmem:[%s1210_s10 + $0x60] sm:$0xff]  ;;  %v327_v32 = vld [vmem:[%s1210_s10 + $0x68] sm:$0xff]  ;;  %v328_v34 = vld [vmem:[%s1210_s10 + $0x70] sm:$0xff] }
  0x18   : > { %1029 = vmatpush3.msra.mxu0 %v346_v5  ;;  %1089 = vmatpush3.msra.mxu1 %v346_v5  ;;  %v342_v31 = vld [vmem:[%s1210_s10 + $0xe0] sm:$0xff]  ;;  %v343_v33 = vld [vmem:[%s1210_s10 + $0xe8] sm:$0xff]  ;;  %v344_v35 = vld [vmem:[%s1210_s10 + $0xf0] sm:$0xff] }
  0x19   : > { %1030 = vmatprep.mubr.msk.f32.mxu0 %vm359_vm0, %v314_v6  ;;  %1054 = vmatprep.mubr.msk.f32.mxu1 %vm359_vm0, %v330_v7  ;;  %v329_v36 = vld [vmem:[%s1210_s10 + $0x78] sm:$0xff]  ;;  %v682_v40 = vld [vmem:[%s1283_s15 + $0x8] sm:$0xff]  ;;  %v1298_v45 = vld [vmem:[%s303_s24] ss:$0 sm:$0xff] }
  0x1a   : > { %1031 = vmatmul.mubr.msk.f32.vlgmr.msra.gmra.mxu0 %vm359_vm0, %v315_v8  ;;  %1055 = vmatmul.mubr.msk.f32.vlgmr.msra.gmra.mxu1 %vm359_vm0, %v331_v9  ;;  %v345_v37 = vld [vmem:[%s1210_s10 + $0xf8] sm:$0xff]  ;;  %v698_v42 = vld [vmem:[%s1283_s15 + $0x88] sm:$0xff]  ;;  %v681_v47 = vld [vmem:[%s1283_s15] sm:$0xff] }
  0x1b   : > { %1033 = vmatprep.mubr.msk.f32.mxu0 %vm359_vm0, %v316_v10  ;;  %1057 = vmatprep.mubr.msk.f32.mxu1 %vm359_vm0, %v332_v11  ;;  %v697_v49 = vld [vmem:[%s1283_s15 + $0x80] sm:$0xff]  ;;  %v684_v60 = vld [vmem:[%s1283_s15 + $0x18] sm:$0xff]  ;;  %v683_v1 = vld [vmem:[%s1283_s15 + $0x10] sm:$0xff] }
  0x1c   : > { %v700_v61 = vld [vmem:[%s1283_s15 + $0x98] sm:$0xff]  ;;  %v699_v3 = vld [vmem:[%s1283_s15 + $0x90] sm:$0xff]  ;;  %v686_v11 = vld [vmem:[%s1283_s15 + $0x28] sm:$0xff] }
  0x1e   : > { %1034 = vmatmul.mubr.msk.f32.gmra.mxu0 %vm359_vm0, %v317_v12  ;;  %1058 = vmatmul.mubr.msk.f32.gmra.mxu1 %vm359_vm0, %v333_v13  ;;  %v702_v13 = vld [vmem:[%s1283_s15 + $0xa8] sm:$0xff] }
  0x1f   : > { %1036 = vmatprep.mubr.msk.f32.mxu0 %vm359_vm0, %v318_v14  ;;  %1060 = vmatprep.mubr.msk.f32.mxu1 %vm359_vm0, %v334_v15 }
  0x22   : > { %1037 = vmatmul.mubr.msk.f32.gmra.mxu0 %vm359_vm0, %v319_v16  ;;  %1061 = vmatmul.mubr.msk.f32.gmra.mxu1 %vm359_vm0, %v335_v17 }
  0x23   : > { %1039 = vmatprep.mubr.msk.f32.mxu0 %vm359_vm0, %v320_v18  ;;  %1063 = vmatprep.mubr.msk.f32.mxu1 %vm359_vm0, %v336_v19 }
  0x26   : > { %1040 = vmatmul.mubr.msk.f32.gmra.mxu0 %vm359_vm0, %v321_v20  ;;  %1064 = vmatmul.mubr.msk.f32.gmra.mxu1 %vm359_vm0, %v337_v21 }
  0x27   : > { %1042 = vmatprep.mubr.msk.f32.mxu0 %vm359_vm0, %v322_v22  ;;  %1066 = vmatprep.mubr.msk.f32.mxu1 %vm359_vm0, %v338_v23 }
  0x2a   : > { %1043 = vmatmul.mubr.msk.f32.gmra.mxu0 %vm359_vm0, %v323_v24  ;;  %1067 = vmatmul.mubr.msk.f32.gmra.mxu1 %vm359_vm0, %v339_v25 }
  0x2b   : > { %1045 = vmatprep.mubr.msk.f32.mxu0 %vm359_vm0, %v324_v26  ;;  %1069 = vmatprep.mubr.msk.f32.mxu1 %vm359_vm0, %v340_v27  ;;  %v685_v26 = vld [vmem:[%s1283_s15 + $0x20] sm:$0xff] }
  0x2c   : > { %v701_v27 = vld [vmem:[%s1283_s15 + $0xa0] sm:$0xff] }
  0x2e   : > { %1046 = vmatmul.mubr.msk.f32.gmra.mxu0 %vm359_vm0, %v325_v28  ;;  %1070 = vmatmul.mubr.msk.f32.gmra.mxu1 %vm359_vm0, %v341_v29 }
  0x2f   : > { %1048 = vmatprep.mubr.msk.f32.mxu0 %vm359_vm0, %v326_v30  ;;  %1072 = vmatprep.mubr.msk.f32.mxu1 %vm359_vm0, %v342_v31  ;;  %v688_v31 = vld [vmem:[%s1283_s15 + $0x38] sm:$0xff] }
  0x32   : > { %1049 = vmatmul.mubr.msk.f32.gmra.mxu0 %vm359_vm0, %v327_v32  ;;  %1073 = vmatmul.mubr.msk.f32.gmra.mxu1 %vm359_vm0, %v343_v33  ;;  %v704_v33 = vld [vmem:[%s1283_s15 + $0xb8] sm:$0xff] }
  0x33   : > { %1051 = vmatprep.mubr.msk.f32.mxu0 %vm359_vm0, %v328_v34  ;;  %1075 = vmatprep.mubr.msk.f32.mxu1 %vm359_vm0, %v344_v35 }
  0x36   : > { %1052 = vmatmul.mubr.msk.f32.gmra.mxu0 %vm359_vm0, %v329_v36  ;;  %1076 = vmatmul.mubr.msk.f32.gmra.mxu1 %vm359_vm0, %v345_v37 }
  0xda   : > { %v1032_v39 = vpop.f32.mrf.mxu0  ;;  %v1056_v41 = vpop.f32.mrf.mxu1 }
  0xdb   : > { %v528_v43 = vadd.f32 %v1032_v39, %v1288_v38  ;;  %v608_v44 = vadd.f32 %v1056_v41, %v1288_v38 }
  0xdc   : > { %v522_v46 = vpop.f32.mrf.mxu0  ;;  %v602_v48 = vpop.f32.mrf.mxu1 }
  0xdd   : > { %v714_v50 = vadd.f32 %v682_v40, %v528_v43  ;;  %v730_v51 = vadd.f32 %v698_v42, %v608_v44  ;;  %v523_v52 = vadd.f32 %v1288_v38, %v522_v46  ;;  %v603_v53 = vadd.f32 %v1288_v38, %v602_v48  ;;  %v687_v42 = vld [vmem:[%s1283_s15 + $0x30] sm:$0xff] }
  0xde   : > { %v1035_v54 = vpop.f32.mrf.mxu0  ;;  %v1059_v55 = vpop.f32.mrf.mxu1  ;;  %v703_v44 = vld [vmem:[%s1283_s15 + $0xb0] sm:$0xff] }
  0xdf   : > { %v753_v56 = vadd.f32 %v1298_v45, %v714_v50  ;;  %v769_v57 = vadd.f32 %v1298_v45, %v730_v51  ;;  %v713_v58 = vadd.f32 %v681_v47, %v523_v52  ;;  %v729_v59 = vadd.f32 %v697_v49, %v603_v53 }
  0xe0   : > { %v538_v62 = vadd.f32 %v1035_v54, %v1288_v38  ;;  %v618_v63 = vadd.f32 %v1059_v55, %v1288_v38  ;;  %v532_v0 = vpop.f32.mrf.mxu0  ;;  %v612_v2 = vpop.f32.mrf.mxu1 }
  0xe1   : > { %785 = vst.msk [vmem:[%s1308_s26 + $0x8] sm:$0xff] %vm359_vm0, %v753_v56  ;;  %801 = vst.msk [vmem:[%s1308_s26 + $0x88] sm:$0xff] %vm359_vm0, %v769_v57  ;;  %v752_v4 = vadd.f32 %v1298_v45, %v713_v58  ;;  %v768_v5 = vadd.f32 %v1298_v45, %v729_v59  ;;  %v533_v6 = vadd.f32 %v1288_v38, %v532_v0  ;;  %v690_v58 = vld [vmem:[%s1283_s15 + $0x48] sm:$0xff] }
  0xe2   : > { %v613_v7 = vadd.f32 %v1288_v38, %v612_v2  ;;  %v716_v8 = vadd.f32 %v684_v60, %v538_v62  ;;  %v732_v9 = vadd.f32 %v700_v61, %v618_v63  ;;  %v1038_v10 = vpop.f32.mrf.mxu0  ;;  %v1062_v12 = vpop.f32.mrf.mxu1  ;;  %v706_v59 = vld [vmem:[%s1283_s15 + $0xc8] sm:$0xff]  ;;  %v689_v63 = vld [vmem:[%s1283_s15 + $0x40] sm:$0xff] }
  0xe3   : > { %784 = vst.msk [vmem:[%s1308_s26] sm:$0xff] %vm359_vm0, %v752_v4  ;;  %800 = vst.msk [vmem:[%s1308_s26 + $0x80] sm:$0xff] %vm359_vm0, %v768_v5  ;;  %v715_v14 = vadd.f32 %v683_v1, %v533_v6  ;;  %v548_v16 = vadd.f32 %v1038_v10, %v1288_v38  ;;  %v628_v17 = vadd.f32 %v1062_v12, %v1288_v38  ;;  %v705_v1 = vld [vmem:[%s1283_s15 + $0xc0] sm:$0xff] }
  0xe4   : > { %v731_v15 = vadd.f32 %v699_v3, %v613_v7  ;;  %v755_v18 = vadd.f32 %v1298_v45, %v716_v8  ;;  %v771_v19 = vadd.f32 %v1298_v45, %v732_v9  ;;  %v542_v20 = vpop.f32.mrf.mxu0  ;;  %v622_v21 = vpop.f32.mrf.mxu1  ;;  %v692_v9 = vld [vmem:[%s1283_s15 + $0x58] sm:$0xff] }
  0xe5   : > { %v754_v22 = vadd.f32 %v1298_v45, %v715_v14  ;;  %v718_v24 = vadd.f32 %v686_v11, %v548_v16  ;;  %v734_v25 = vadd.f32 %v702_v13, %v628_v17  ;;  %v543_v28 = vadd.f32 %v1288_v38, %v542_v20  ;;  %v708_v11 = vld [vmem:[%s1283_s15 + $0xd8] sm:$0xff] }
  0xe6   : > { %v770_v23 = vadd.f32 %v1298_v45, %v731_v15  ;;  %787 = vst.msk [vmem:[%s1308_s26 + $0x18] sm:$0xff] %vm359_vm0, %v755_v18  ;;  %803 = vst.msk [vmem:[%s1308_s26 + $0x98] sm:$0xff] %vm359_vm0, %v771_v19  ;;  %v623_v29 = vadd.f32 %v1288_v38, %v622_v21  ;;  %v1041_v30 = vpop.f32.mrf.mxu0  ;;  %v1065_v32 = vpop.f32.mrf.mxu1 }
  0xe7   : > { %786 = vst.msk [vmem:[%s1308_s26 + $0x10] sm:$0xff] %vm359_vm0, %v754_v22  ;;  %v757_v34 = vadd.f32 %v1298_v45, %v718_v24  ;;  %v773_v35 = vadd.f32 %v1298_v45, %v734_v25  ;;  %v558_v36 = vadd.f32 %v1041_v30, %v1288_v38  ;;  %v638_v37 = vadd.f32 %v1065_v32, %v1288_v38  ;;  %v691_v24 = vld [vmem:[%s1283_s15 + $0x50] sm:$0xff] }
  0xe8   : > { %802 = vst.msk [vmem:[%s1308_s26 + $0x90] sm:$0xff] %vm359_vm0, %v770_v23  ;;  %v717_v39 = vadd.f32 %v685_v26, %v543_v28  ;;  %v733_v40 = vadd.f32 %v701_v27, %v623_v29  ;;  %v552_v41 = vpop.f32.mrf.mxu0  ;;  %v632_v43 = vpop.f32.mrf.mxu1  ;;  %v707_v25 = vld [vmem:[%s1283_s15 + $0xd0] sm:$0xff]  ;;  %v694_v29 = vld [vmem:[%s1283_s15 + $0x68] sm:$0xff] }
  0xe9   : > { %789 = vst.msk [vmem:[%s1308_s26 + $0x28] sm:$0xff] %vm359_vm0, %v757_v34  ;;  %805 = vst.msk [vmem:[%s1308_s26 + $0xa8] sm:$0xff] %vm359_vm0, %v773_v35  ;;  %v720_v46 = vadd.f32 %v688_v31, %v558_v36  ;;  %v736_v47 = vadd.f32 %v704_v33, %v638_v37  ;;  %v553_v48 = vadd.f32 %v1288_v38, %v552_v41  ;;  %v710_v31 = vld [vmem:[%s1283_s15 + $0xe8] sm:$0xff] }
  0xea   : > { %v633_v49 = vadd.f32 %v1288_v38, %v632_v43  ;;  %v756_v50 = vadd.f32 %v1298_v45, %v717_v39  ;;  %v772_v51 = vadd.f32 %v1298_v45, %v733_v40  ;;  %v1044_v52 = vpop.f32.mrf.mxu0  ;;  %v1068_v53 = vpop.f32.mrf.mxu1  ;;  %v693_v40 = vld [vmem:[%s1283_s15 + $0x60] sm:$0xff] }
  0xeb   : > { %v759_v54 = vadd.f32 %v1298_v45, %v720_v46  ;;  %v775_v55 = vadd.f32 %v1298_v45, %v736_v47  ;;  %v719_v56 = vadd.f32 %v687_v42, %v553_v48  ;;  %v568_v60 = vadd.f32 %v1044_v52, %v1288_v38  ;;  %v709_v42 = vld [vmem:[%s1283_s15 + $0xe0] sm:$0xff] }
  0xec   : > { %v735_v57 = vadd.f32 %v703_v44, %v633_v49  ;;  %788 = vst.msk [vmem:[%s1308_s26 + $0x20] sm:$0xff] %vm359_vm0, %v756_v50  ;;  %804 = vst.msk [vmem:[%s1308_s26 + $0xa0] sm:$0xff] %vm359_vm0, %v772_v51  ;;  %v648_v61 = vadd.f32 %v1068_v53, %v1288_v38  ;;  %v562_v62 = vpop.f32.mrf.mxu0  ;;  %v642_v0 = vpop.f32.mrf.mxu1 }
  0xed   : > { %791 = vst.msk [vmem:[%s1308_s26 + $0x38] sm:$0xff] %vm359_vm0, %v759_v54  ;;  %807 = vst.msk [vmem:[%s1308_s26 + $0xb8] sm:$0xff] %vm359_vm0, %v775_v55  ;;  %v758_v2 = vadd.f32 %v1298_v45, %v719_v56  ;;  %v563_v4 = vadd.f32 %v1288_v38, %v562_v62  ;;  %v643_v5 = vadd.f32 %v1288_v38, %v642_v0  ;;  %v696_v56 = vld [vmem:[%s1283_s15 + $0x78] sm:$0xff] }
  0xee   : > { %v774_v3 = vadd.f32 %v1298_v45, %v735_v57  ;;  %v722_v6 = vadd.f32 %v690_v58, %v568_v60  ;;  %v738_v7 = vadd.f32 %v706_v59, %v648_v61  ;;  %v1047_v8 = vpop.f32.mrf.mxu0  ;;  %v1071_v10 = vpop.f32.mrf.mxu1  ;;  %v712_v57 = vld [vmem:[%s1283_s15 + $0xf8] sm:$0xff]  ;;  %v695_v61 = vld [vmem:[%s1283_s15 + $0x70] sm:$0xff] }
  0xef   : > { %790 = vst.msk [vmem:[%s1308_s26 + $0x30] sm:$0xff] %vm359_vm0, %v758_v2  ;;  %v721_v12 = vadd.f32 %v689_v63, %v563_v4  ;;  %v737_v13 = vadd.f32 %v705_v1, %v643_v5  ;;  %v578_v14 = vadd.f32 %v1047_v8, %v1288_v38  ;;  %v658_v15 = vadd.f32 %v1071_v10, %v1288_v38  ;;  %v711_v63 = vld [vmem:[%s1283_s15 + $0xf0] sm:$0xff] }
  0xf0   : > { %806 = vst.msk [vmem:[%s1308_s26 + $0xb0] sm:$0xff] %vm359_vm0, %v774_v3  ;;  %v761_v16 = vadd.f32 %v1298_v45, %v722_v6  ;;  %v777_v17 = vadd.f32 %v1298_v45, %v738_v7  ;;  %v572_v18 = vpop.f32.mrf.mxu0  ;;  %v652_v19 = vpop.f32.mrf.mxu1 }
  0xf1   : > { %v760_v20 = vadd.f32 %v1298_v45, %v721_v12  ;;  %v776_v21 = vadd.f32 %v1298_v45, %v737_v13  ;;  %v724_v22 = vadd.f32 %v692_v9, %v578_v14  ;;  %v740_v23 = vadd.f32 %v708_v11, %v658_v15 }
  0xf2   : > { %793 = vst.msk [vmem:[%s1308_s26 + $0x48] sm:$0xff] %vm359_vm0, %v761_v16  ;;  %809 = vst.msk [vmem:[%s1308_s26 + $0xc8] sm:$0xff] %vm359_vm0, %v777_v17  ;;  %v573_v26 = vadd.f32 %v1288_v38, %v572_v18  ;;  %v653_v27 = vadd.f32 %v1288_v38, %v652_v19  ;;  %v1050_v28 = vpop.f32.mrf.mxu0  ;;  %v1074_v30 = vpop.f32.mrf.mxu1 }
  0xf3   : > { %792 = vst.msk [vmem:[%s1308_s26 + $0x40] sm:$0xff] %vm359_vm0, %v760_v20  ;;  %808 = vst.msk [vmem:[%s1308_s26 + $0xc0] sm:$0xff] %vm359_vm0, %v776_v21  ;;  %v763_v32 = vadd.f32 %v1298_v45, %v724_v22  ;;  %v779_v33 = vadd.f32 %v1298_v45, %v740_v23  ;;  %v588_v34 = vadd.f32 %v1050_v28, %v1288_v38 }
  0xf4   : > { %v668_v35 = vadd.f32 %v1074_v30, %v1288_v38  ;;  %v723_v36 = vadd.f32 %v691_v24, %v573_v26  ;;  %v739_v37 = vadd.f32 %v707_v25, %v653_v27  ;;  %v582_v39 = vpop.f32.mrf.mxu0  ;;  %v662_v41 = vpop.f32.mrf.mxu1 }
  0xf5   : > { %795 = vst.msk [vmem:[%s1308_s26 + $0x58] sm:$0xff] %vm359_vm0, %v763_v32  ;;  %811 = vst.msk [vmem:[%s1308_s26 + $0xd8] sm:$0xff] %vm359_vm0, %v779_v33  ;;  %v726_v43 = vadd.f32 %v694_v29, %v588_v34  ;;  %v583_v46 = vadd.f32 %v1288_v38, %v582_v39  ;;  %v663_v47 = vadd.f32 %v1288_v38, %v662_v41 }
  0xf6   : > { %v742_v44 = vadd.f32 %v710_v31, %v668_v35  ;;  %v762_v48 = vadd.f32 %v1298_v45, %v723_v36  ;;  %v778_v49 = vadd.f32 %v1298_v45, %v739_v37  ;;  %v1053_v50 = vpop.f32.mrf.mxu0  ;;  %v1077_v51 = vpop.f32.mrf.mxu1 }
  0xf7   : > { %v765_v52 = vadd.f32 %v1298_v45, %v726_v43  ;;  %v725_v54 = vadd.f32 %v693_v40, %v583_v46  ;;  %v741_v55 = vadd.f32 %v709_v42, %v663_v47  ;;  %v598_v58 = vadd.f32 %v1053_v50, %v1288_v38 }
  0xf8   : > { %v781_v53 = vadd.f32 %v1298_v45, %v742_v44  ;;  %794 = vst.msk [vmem:[%s1308_s26 + $0x50] sm:$0xff] %vm359_vm0, %v762_v48  ;;  %810 = vst.msk [vmem:[%s1308_s26 + $0xd0] sm:$0xff] %vm359_vm0, %v778_v49  ;;  %v678_v59 = vadd.f32 %v1077_v51, %v1288_v38  ;;  %v592_v60 = vpop.f32.mrf.mxu0  ;;  %v672_v62 = vpop.f32.mrf.mxu1 }
  0xf9   : > { %797 = vst.msk [vmem:[%s1308_s26 + $0x68] sm:$0xff] %vm359_vm0, %v765_v52  ;;  %v764_v0 = vadd.f32 %v1298_v45, %v725_v54  ;;  %v780_v1 = vadd.f32 %v1298_v45, %v741_v55  ;;  %v593_v2 = vadd.f32 %v1288_v38, %v592_v60  ;;  %v673_v3 = vadd.f32 %v1288_v38, %v672_v62 }
  0xfa   : > { %813 = vst.msk [vmem:[%s1308_s26 + $0xe8] sm:$0xff] %vm359_vm0, %v781_v53  ;;  %v728_v4 = vadd.f32 %v696_v56, %v598_v58  ;;  %v744_v5 = vadd.f32 %v712_v57, %v678_v59 }
  0xfb   : > { %796 = vst.msk [vmem:[%s1308_s26 + $0x60] sm:$0xff] %vm359_vm0, %v764_v0  ;;  %812 = vst.msk [vmem:[%s1308_s26 + $0xe0] sm:$0xff] %vm359_vm0, %v780_v1  ;;  %v727_v6 = vadd.f32 %v695_v61, %v593_v2  ;;  %v743_v7 = vadd.f32 %v711_v63, %v673_v3 }
  0xfc   : > { %v767_v8 = vadd.f32 %v1298_v45, %v728_v4  ;;  %v783_v9 = vadd.f32 %v1298_v45, %v744_v5 }
  0xfd   : > { %v766_v10 = vadd.f32 %v1298_v45, %v727_v6  ;;  %v782_v11 = vadd.f32 %v1298_v45, %v743_v7 }
  0xfe   : > { %799 = vst.msk [vmem:[%s1308_s26 + $0x78] sm:$0xff] %vm359_vm0, %v767_v8  ;;  %815 = vst.msk [vmem:[%s1308_s26 + $0xf8] sm:$0xff] %vm359_vm0, %v783_v9 }
  0xff   : > { %798 = vst.msk [vmem:[%s1308_s26 + $0x70] sm:$0xff] %vm359_vm0, %v766_v10  ;;  %814 = vst.msk [vmem:[%s1308_s26 + $0xf0] sm:$0xff] %vm359_vm0, %v782_v11 }
 0x100 PF: > { %s15_s20 = sadd.s32 1, %s1136_s20   ;;  %s1477_s18 = smov %s1132_s19 }
 0x101   : > { %p12_p5 = scmp.ge.s32.totalorder %s15_s20, 4   ;;  %s1478_s19 = smov %s1480_s21 }
 0x103   :  { %14 = sbr.rel (!%p12_p5) target bundleno = 2 (0x2), region = 76 }

// kernel: fno2d_prev_forward.21
= control target key start
LH: loop header
LB: loop body
LE: loop exit
PB: predicated region body
PF: predicated region fallthrough
CT: control target
= control target key end

     0   :  { %s3453_s15 = smov 0   ;;  %s3455_s16 = smov 0   ;;  %s4604_s0 = inlined_call_operand.vmem [shape: f32[2,256,48], index: 0, kind: input, shape index: {}]   ;;  %s4605_s1 = inlined_call_operand.vmem [shape: f32[48,16], index: 1, kind: input, shape index: {}]   ;;  %s4606_s2 = inlined_call_operand.vmem [shape: f32[1,16], index: 2, kind: input, shape index: {}]   ;;  %s4607_s3 = inlined_call_operand.vmem [shape: f32[16,48], index: 3, kind: input, shape index: {}]   ;;  %s4608_s4 = inlined_call_operand.vmem [shape: f32[1,48], index: 4, kind: input, shape index: {}]   ;;  %s4609_s5 = inlined_call_operand.vmem [shape: f32[48,128], index: 5, kind: input, shape index: {}]   ;;  %s4610_s6 = inlined_call_operand.vmem [shape: f32[1,128], index: 6, kind: input, shape index: {}]   ;;  %s4611_s7 = inlined_call_operand.vmem [shape: f32[128,1], index: 7, kind: input, shape index: {}]   ;;  %s4612_s8 = inlined_call_operand.<no memory space> [shape: f32[1,1], index: 8, kind: input, shape index: {}]   ;;  %s4613_s9 = inlined_call_operand.vmem [shape: f32[2,1,1], index: 9, kind: input, shape index: {}]   ;;  %s4614_s10 = inlined_call_operand.vmem [shape: f32[2,256,1], index: 10, kind: output, shape index: {}]  }
   0x1   :  { %v15_v0 = vstv %s4612_s8  ;;  %s3457_s17 = smov 0  }
   0x2   :  { %16 = vst [vmem:[#allocation2] sm:$0x1] %v15_v0 }
   0x3 LB: > { %s34_s8 = sadd.s32 1, %s3389_s16  ;;  %p2571_p0 = scmp.ge.s32.totalorder %s3393_s17, 1  ;;  %s3393_s17 = sphi %s3457_s17, %s22_s17   ;;  %s3389_s16 = sphi %s3455_s16, %s4616_s16   ;;  %s3385_s15 = sphi %s3453_s15, %s4615_s15  }
   0x4   : > { %p36_p1 = scmp.ge.s32.totalorder %s34_s8, 2  ;;  %p343_p2 = scmp.lt.s32.totalorder %s3393_s17, 3 }
   0x6   : > { %s4618_s8 = smov (%p36_p1, %s34_s8), 0  ;;  %p344_p3 = pnand %p2571_p0, %p343_p2 }
   0x7   : > { %p393_p4 = scmp.lt.s32.totalorder (!%p344_p3), %s3385_s15, 1 }
   0x8   : > { %347 = sbr.rel (%p344_p3) target bundleno = 1236 (0x4d4), region = 60 }
   0xd   : > { %v452_v1 = vld [vmem:[%s4605_s1 + $0x28] sm:$0xff]  ;;  %v451_v2 = vld [vmem:[%s4605_s1 + $0x20] sm:$0xff]  ;;  %v450_v3 = vld [vmem:[%s4605_s1 + $0x18] sm:$0xff]  ;;  %s4620_s15 = smov (!%p393_p4, %s3385_s15), 1  ;;  %vm460_vm0 = vcmask 392192   ;;  %vm823_vm1 = vcmask 130048  }
   0xe   : > { %2839 = vmatprep.subr.mxu0 %v452_v1  ;;  %v449_v4 = vld [vmem:[%s4605_s1 + $0x10] sm:$0xff]  ;;  %s2679_s26 = sshll.u32 %s4620_s15, 8  ;;  %v448_v5 = vld [vmem:[%s4605_s1 + $0x8] sm:$0xff]  ;;  %v447_v7 = vld [vmem:[%s4605_s1] sm:$0xff]  ;;  %vm2438_vm2 = vcmask 7168  }
   0xf   : > { %2840 = vmatpush3.msra.mxu0 %v452_v1  ;;  %s3491_s29 = scalar_lea.vmem %s4604_s0, %s2679_s26  ;;  %v815_v39 = vld [vmem:[%s4607_s3 + $0x8] sm:$0xff]  ;;  %v814_v40 = vld [vmem:[%s4607_s3] sm:$0xff]  ;;  %s4466_s11 = scalar_lea.vmem %s4614_s10, %s2679_s26 }
  0x10   : > { %2841 = vmatprep.subr.mxu0 %v451_v2  ;;  %v415_v6 = vld [vmem:[%s3491_s29] sm:$0xff]  ;;  %v416_v8 = vld [vmem:[%s3491_s29 + $0x8] sm:$0xff]  ;;  %v417_v9 = vld [vmem:[%s3491_s29 + $0x10] sm:$0xff]  ;;  %2899 = vmatprep.subr.mxu1 %v815_v39 }
  0x11   : > { %2842 = vmatpush3.msra.mxu0 %v451_v2  ;;  %2851 = vmatprep.mubr.msk.f32.mxu0 %vm460_vm0, %v415_v6  ;;  %v418_v10 = vld [vmem:[%s3491_s29 + $0x18] sm:$0xff]  ;;  %v419_v11 = vld [vmem:[%s3491_s29 + $0x20] sm:$0xff]  ;;  %v420_v12 = vld [vmem:[%s3491_s29 + $0x28] sm:$0xff] }
  0x12   : > { %2843 = vmatprep.subr.mxu0 %v450_v3  ;;  %v421_v13 = vld [vmem:[%s3491_s29 + $0x30] sm:$0xff]  ;;  %v422_v14 = vld [vmem:[%s3491_s29 + $0x38] sm:$0xff]  ;;  %v423_v15 = vld [vmem:[%s3491_s29 + $0x40] sm:$0xff]  ;;  %2900 = vmatpush3.msra.mxu1 %v815_v39 }
  0x13   : > { %2844 = vmatpush3.msra.mxu0 %v450_v3  ;;  %v424_v16 = vld [vmem:[%s3491_s29 + $0x48] sm:$0xff]  ;;  %v425_v17 = vld [vmem:[%s3491_s29 + $0x50] sm:$0xff]  ;;  %v426_v18 = vld [vmem:[%s3491_s29 + $0x58] sm:$0xff]  ;;  %2901 = vmatprep.subr.mxu1 %v814_v40 }
  0x14   : > { %2845 = vmatprep.subr.mxu0 %v449_v4  ;;  %v427_v19 = vld [vmem:[%s3491_s29 + $0x60] sm:$0xff]  ;;  %v428_v20 = vld [vmem:[%s3491_s29 + $0x68] sm:$0xff]  ;;  %v429_v21 = vld [vmem:[%s3491_s29 + $0x70] sm:$0xff]  ;;  %2902 = vmatpush3.msra.mxu1 %v814_v40 }
  0x15   : > { %2846 = vmatpush3.msra.mxu0 %v449_v4  ;;  %v430_v22 = vld [vmem:[%s3491_s29 + $0x78] sm:$0xff]  ;;  %v431_v23 = vld [vmem:[%s3491_s29 + $0x80] sm:$0xff]  ;;  %v432_v24 = vld [vmem:[%s3491_s29 + $0x88] sm:$0xff] }
  0x16   : > { %2847 = vmatprep.subr.mxu0 %v448_v5  ;;  %v433_v25 = vld [vmem:[%s3491_s29 + $0x90] sm:$0xff]  ;;  %v434_v26 = vld [vmem:[%s3491_s29 + $0x98] sm:$0xff]  ;;  %v435_v27 = vld [vmem:[%s3491_s29 + $0xa0] sm:$0xff] }
  0x17   : > { %2848 = vmatpush3.msra.mxu0 %v448_v5  ;;  %v436_v28 = vld [vmem:[%s3491_s29 + $0xa8] sm:$0xff]  ;;  %v437_v29 = vld [vmem:[%s3491_s29 + $0xb0] sm:$0xff]  ;;  %v438_v30 = vld [vmem:[%s3491_s29 + $0xb8] sm:$0xff] }
  0x18   : > { %2849 = vmatprep.subr.mxu0 %v447_v7  ;;  %v439_v31 = vld [vmem:[%s3491_s29 + $0xc0] sm:$0xff]  ;;  %v440_v32 = vld [vmem:[%s3491_s29 + $0xc8] sm:$0xff]  ;;  %v441_v33 = vld [vmem:[%s3491_s29 + $0xd0] sm:$0xff] }
  0x19   : > { %2850 = vmatpush3.msra.mxu0 %v447_v7  ;;  %v442_v34 = vld [vmem:[%s3491_s29 + $0xd8] sm:$0xff]  ;;  %v443_v35 = vld [vmem:[%s3491_s29 + $0xe0] sm:$0xff]  ;;  %v444_v36 = vld [vmem:[%s3491_s29 + $0xe8] sm:$0xff] }
  0x1a   : > { %2852 = vmatmul.mubr.msk.f32.vlgmr.msra.gmra.mxu0 %vm460_vm0, %v416_v8  ;;  %v445_v37 = vld [vmem:[%s3491_s29 + $0xf0] sm:$0xff]  ;;  %v446_v38 = vld [vmem:[%s3491_s29 + $0xf8] sm:$0xff]  ;;  %v3572_v41 = vld [vmem:[%s4606_s2] ss:$0 sm:$0xff] }
  0x1b   : > { %2854 = vmatprep.mubr.msk.f32.mxu0 %vm460_vm0, %v417_v9 }
  0x1e   : > { %2855 = vmatmul.mubr.msk.f32.gmra.mxu0 %vm460_vm0, %v418_v10 }
  0x1f   : > { %2857 = vmatprep.mubr.msk.f32.mxu0 %vm460_vm0, %v419_v11 }
  0x22   : > { %2858 = vmatmul.mubr.msk.f32.gmra.mxu0 %vm460_vm0, %v420_v12 }
  0x23   : > { %2860 = vmatprep.mubr.msk.f32.mxu0 %vm460_vm0, %v421_v13 }
  0x26   : > { %2861 = vmatmul.mubr.msk.f32.gmra.mxu0 %vm460_vm0, %v422_v14 }
  0x27   : > { %2863 = vmatprep.mubr.msk.f32.mxu0 %vm460_vm0, %v423_v15 }
  0x2a   : > { %2864 = vmatmul.mubr.msk.f32.gmra.mxu0 %vm460_vm0, %v424_v16 }
  0x2b   : > { %2866 = vmatprep.mubr.msk.f32.mxu0 %vm460_vm0, %v425_v17 }
  0x2e   : > { %2867 = vmatmul.mubr.msk.f32.gmra.mxu0 %vm460_vm0, %v426_v18 }
  0x2f   : > { %2869 = vmatprep.mubr.msk.f32.mxu0 %vm460_vm0, %v427_v19 }
  0x32   : > { %2870 = vmatmul.mubr.msk.f32.gmra.mxu0 %vm460_vm0, %v428_v20 }
  0x33   : > { %2872 = vmatprep.mubr.msk.f32.mxu0 %vm460_vm0, %v429_v21 }
  0x36   : > { %2873 = vmatmul.mubr.msk.f32.gmra.mxu0 %vm460_vm0, %v430_v22 }
  0x37   : > { %2875 = vmatprep.mubr.msk.f32.mxu0 %vm460_vm0, %v431_v23 }
  0x3a   : > { %2876 = vmatmul.mubr.msk.f32.gmra.mxu0 %vm460_vm0, %v432_v24 }
  0x3b   : > { %2878 = vmatprep.mubr.msk.f32.mxu0 %vm460_vm0, %v433_v25 }
  0x3e   : > { %2879 = vmatmul.mubr.msk.f32.gmra.mxu0 %vm460_vm0, %v434_v26 }
  0x3f   : > { %2881 = vmatprep.mubr.msk.f32.mxu0 %vm460_vm0, %v435_v27 }
  0x42   : > { %2882 = vmatmul.mubr.msk.f32.gmra.mxu0 %vm460_vm0, %v436_v28 }
  0x43   : > { %2884 = vmatprep.mubr.msk.f32.mxu0 %vm460_vm0, %v437_v29 }
  0x46   : > { %2885 = vmatmul.mubr.msk.f32.gmra.mxu0 %vm460_vm0, %v438_v30 }
  0x47   : > { %2887 = vmatprep.mubr.msk.f32.mxu0 %vm460_vm0, %v439_v31 }
  0x4a   : > { %2888 = vmatmul.mubr.msk.f32.gmra.mxu0 %vm460_vm0, %v440_v32 }
  0x4b   : > { %2890 = vmatprep.mubr.msk.f32.mxu0 %vm460_vm0, %v441_v33 }
  0x4e   : > { %2891 = vmatmul.mubr.msk.f32.gmra.mxu0 %vm460_vm0, %v442_v34 }
  0x4f   : > { %2893 = vmatprep.mubr.msk.f32.mxu0 %vm460_vm0, %v443_v35 }
  0x52   : > { %2894 = vmatmul.mubr.msk.f32.gmra.mxu0 %vm460_vm0, %v444_v36 }
  0x53   : > { %2896 = vmatprep.mubr.msk.f32.mxu0 %vm460_vm0, %v445_v37 }
  0x56   : > { %2897 = vmatmul.mubr.msk.f32.gmra.mxu0 %vm460_vm0, %v446_v38 }
  0xda   : > { %v2853_v42 = vpop.f32.mrf.mxu0 }
  0xdb   : > { %v629_v43 = vadd.f32 %v2853_v42, %v3572_v41 }
  0xdc   : > { %v623_v44 = vpop.f32.mrf.mxu0 }
  0xdd   : > { %v624_v45 = vadd.f32 %v3572_v41, %v623_v44  ;;  %v783_v48 = vmax.f32 %v629_v43, 0.0 }
  0xde   : > { %v2856_v46 = vpop.f32.mrf.mxu0 }
  0xdf   : > { %v782_v47 = vmax.f32 %v624_v45, 0.0  ;;  %v639_v49 = vadd.f32 %v2856_v46, %v3572_v41 }
  0xe0   : > { %v633_v50 = vpop.f32.mrf.mxu0 }
  0xe1   : > { %v634_v51 = vadd.f32 %v3572_v41, %v633_v50  ;;  %2903 = vmatprep.mubr.msk.f32.mxu1 %vm823_vm1, %v782_v47  ;;  %v785_v55 = vmax.f32 %v639_v49, 0.0 }
  0xe2   : > { %v2859_v52 = vpop.f32.mrf.mxu0  ;;  %2904 = vmatmul.mubr.msk.f32.vlgmr.msra.gmra.mxu1 %vm823_vm1, %v783_v48 }
  0xe3   : > { %v784_v53 = vmax.f32 %v634_v51, 0.0  ;;  %v649_v54 = vadd.f32 %v2859_v52, %v3572_v41 }
  0xe4   : > { %v643_v56 = vpop.f32.mrf.mxu0 }
  0xe5   : > { %v644_v57 = vadd.f32 %v3572_v41, %v643_v56  ;;  %2906 = vmatprep.mubr.msk.f32.mxu1 %vm823_vm1, %v784_v53  ;;  %v787_v58 = vmax.f32 %v649_v54, 0.0 }
  0xe6   : > { %v2862_v59 = vpop.f32.mrf.mxu0  ;;  %2907 = vmatmul.mubr.msk.f32.gmra.mxu1 %vm823_vm1, %v785_v55 }
  0xe7   : > { %v786_v60 = vmax.f32 %v644_v57, 0.0  ;;  %v659_v61 = vadd.f32 %v2862_v59, %v3572_v41 }
  0xe8   : > { %v653_v62 = vpop.f32.mrf.mxu0 }
  0xe9   : > { %v654_v63 = vadd.f32 %v3572_v41, %v653_v62  ;;  %2909 = vmatprep.mubr.msk.f32.mxu1 %vm823_vm1, %v786_v60  ;;  %v789_v0 = vmax.f32 %v659_v61, 0.0 }
  0xea   : > { %v2865_v1 = vpop.f32.mrf.mxu0  ;;  %2910 = vmatmul.mubr.msk.f32.gmra.mxu1 %vm823_vm1, %v787_v58 }
  0xeb   : > { %v788_v2 = vmax.f32 %v654_v63, 0.0  ;;  %v669_v3 = vadd.f32 %v2865_v1, %v3572_v41 }
  0xec   : > { %v663_v4 = vpop.f32.mrf.mxu0 }
  0xed   : > { %v664_v5 = vadd.f32 %v3572_v41, %v663_v4  ;;  %2912 = vmatprep.mubr.msk.f32.mxu1 %vm823_vm1, %v788_v2  ;;  %v791_v6 = vmax.f32 %v669_v3, 0.0 }
  0xee   : > { %v2868_v7 = vpop.f32.mrf.mxu0  ;;  %2913 = vmatmul.mubr.msk.f32.gmra.mxu1 %vm823_vm1, %v789_v0 }
  0xef   : > { %v790_v8 = vmax.f32 %v664_v5, 0.0  ;;  %v679_v9 = vadd.f32 %v2868_v7, %v3572_v41 }
  0xf0   : > { %v673_v10 = vpop.f32.mrf.mxu0 }
  0xf1   : > { %v674_v11 = vadd.f32 %v3572_v41, %v673_v10  ;;  %2915 = vmatprep.mubr.msk.f32.mxu1 %vm823_vm1, %v790_v8  ;;  %v793_v12 = vmax.f32 %v679_v9, 0.0 }
  0xf2   : > { %v2871_v13 = vpop.f32.mrf.mxu0  ;;  %2916 = vmatmul.mubr.msk.f32.gmra.mxu1 %vm823_vm1, %v791_v6 }
  0xf3   : > { %v792_v14 = vmax.f32 %v674_v11, 0.0  ;;  %v689_v15 = vadd.f32 %v2871_v13, %v3572_v41 }
  0xf4   : > { %v683_v16 = vpop.f32.mrf.mxu0 }
  0xf5   : > { %v684_v17 = vadd.f32 %v3572_v41, %v683_v16  ;;  %2918 = vmatprep.mubr.msk.f32.mxu1 %vm823_vm1, %v792_v14  ;;  %v795_v18 = vmax.f32 %v689_v15, 0.0 }
  0xf6   : > { %v2874_v19 = vpop.f32.mrf.mxu0  ;;  %2919 = vmatmul.mubr.msk.f32.gmra.mxu1 %vm823_vm1, %v793_v12  ;;  %v3641_v12 = vld [vmem:[%s4608_s4] ss:$0 sm:$0xff] }
  0xf7   : > { %v794_v20 = vmax.f32 %v684_v17, 0.0  ;;  %v699_v21 = vadd.f32 %v2874_v19, %v3572_v41 }
  0xf8   : > { %v693_v22 = vpop.f32.mrf.mxu0 }
  0xf9   : > { %v694_v23 = vadd.f32 %v3572_v41, %v693_v22  ;;  %2921 = vmatprep.mubr.msk.f32.mxu1 %vm823_vm1, %v794_v20  ;;  %v797_v24 = vmax.f32 %v699_v21, 0.0 }
  0xfa   : > { %v2877_v25 = vpop.f32.mrf.mxu0  ;;  %2922 = vmatmul.mubr.msk.f32.gmra.mxu1 %vm823_vm1, %v795_v18 }
  0xfb   : > { %v796_v26 = vmax.f32 %v694_v23, 0.0  ;;  %v709_v27 = vadd.f32 %v2877_v25, %v3572_v41 }
  0xfc   : > { %v703_v28 = vpop.f32.mrf.mxu0 }
  0xfd   : > { %v704_v29 = vadd.f32 %v3572_v41, %v703_v28  ;;  %2924 = vmatprep.mubr.msk.f32.mxu1 %vm823_vm1, %v796_v26  ;;  %v799_v30 = vmax.f32 %v709_v27, 0.0 }
  0xfe   : > { %v2880_v31 = vpop.f32.mrf.mxu0  ;;  %2925 = vmatmul.mubr.msk.f32.gmra.mxu1 %vm823_vm1, %v797_v24 }
  0xff   : > { %v798_v32 = vmax.f32 %v704_v29, 0.0  ;;  %v719_v33 = vadd.f32 %v2880_v31, %v3572_v41 }
 0x100   : > { %v713_v34 = vpop.f32.mrf.mxu0 }
 0x101   : > { %v714_v35 = vadd.f32 %v3572_v41, %v713_v34  ;;  %2927 = vmatprep.mubr.msk.f32.mxu1 %vm823_vm1, %v798_v32  ;;  %v801_v36 = vmax.f32 %v719_v33, 0.0 }
 0x102   : > { %v2883_v37 = vpop.f32.mrf.mxu0  ;;  %2928 = vmatmul.mubr.msk.f32.gmra.mxu1 %vm823_vm1, %v799_v30 }
 0x103   : > { %v800_v38 = vmax.f32 %v714_v35, 0.0  ;;  %v729_v39 = vadd.f32 %v2883_v37, %v3572_v41 }
 0x104   : > { %v723_v40 = vpop.f32.mrf.mxu0 }
 0x105   : > { %v724_v42 = vadd.f32 %v3572_v41, %v723_v40  ;;  %2930 = vmatprep.mubr.msk.f32.mxu1 %vm823_vm1, %v800_v38  ;;  %v803_v43 = vmax.f32 %v729_v39, 0.0 }
 0x106   : > { %v2886_v44 = vpop.f32.mrf.mxu0  ;;  %2931 = vmatmul.mubr.msk.f32.gmra.mxu1 %vm823_vm1, %v801_v36 }
 0x107   : > { %v802_v45 = vmax.f32 %v724_v42, 0.0  ;;  %v739_v46 = vadd.f32 %v2886_v44, %v3572_v41 }
 0x108   : > { %v733_v47 = vpop.f32.mrf.mxu0 }
 0x109   : > { %v734_v48 = vadd.f32 %v3572_v41, %v733_v47  ;;  %2933 = vmatprep.mubr.msk.f32.mxu1 %vm823_vm1, %v802_v45  ;;  %v805_v49 = vmax.f32 %v739_v46, 0.0 }
 0x10a   : > { %v2889_v50 = vpop.f32.mrf.mxu0  ;;  %2934 = vmatmul.mubr.msk.f32.gmra.mxu1 %vm823_vm1, %v803_v43 }
 0x10b   : > { %v804_v51 = vmax.f32 %v734_v48, 0.0  ;;  %v749_v52 = vadd.f32 %v2889_v50, %v3572_v41 }
 0x10c   : > { %v743_v53 = vpop.f32.mrf.mxu0 }
 0x10d   : > { %v744_v54 = vadd.f32 %v3572_v41, %v743_v53  ;;  %2936 = vmatprep.mubr.msk.f32.mxu1 %vm823_vm1, %v804_v51  ;;  %v807_v55 = vmax.f32 %v749_v52, 0.0 }
 0x10e   : > { %v2892_v56 = vpop.f32.mrf.mxu0  ;;  %2937 = vmatmul.mubr.msk.f32.gmra.mxu1 %vm823_vm1, %v805_v49 }
 0x10f   : > { %v806_v57 = vmax.f32 %v744_v54, 0.0  ;;  %v759_v58 = vadd.f32 %v2892_v56, %v3572_v41 }
 0x110   : > { %v753_v59 = vpop.f32.mrf.mxu0 }
 0x111   : > { %v754_v60 = vadd.f32 %v3572_v41, %v753_v59  ;;  %2939 = vmatprep.mubr.msk.f32.mxu1 %vm823_vm1, %v806_v57  ;;  %v809_v61 = vmax.f32 %v759_v58, 0.0 }
 0x112   : > { %v2895_v62 = vpop.f32.mrf.mxu0  ;;  %2940 = vmatmul.mubr.msk.f32.gmra.mxu1 %vm823_vm1, %v807_v55 }
 0x113   : > { %v808_v63 = vmax.f32 %v754_v60, 0.0  ;;  %v769_v0 = vadd.f32 %v2895_v62, %v3572_v41 }
 0x114   : > { %v763_v1 = vpop.f32.mrf.mxu0 }
 0x115   : > { %v764_v2 = vadd.f32 %v3572_v41, %v763_v1  ;;  %2942 = vmatprep.mubr.msk.f32.mxu1 %vm823_vm1, %v808_v63  ;;  %v811_v3 = vmax.f32 %v769_v0, 0.0 }
 0x116   : > { %v2898_v4 = vpop.f32.mrf.mxu0  ;;  %2943 = vmatmul.mubr.msk.f32.gmra.mxu1 %vm823_vm1, %v809_v61 }
 0x117   : > { %v810_v5 = vmax.f32 %v764_v2, 0.0  ;;  %v779_v6 = vadd.f32 %v2898_v4, %v3572_v41 }
 0x118   : > { %v773_v7 = vpop.f32.mrf.mxu0 }
 0x119   : > { %v774_v8 = vadd.f32 %v3572_v41, %v773_v7  ;;  %2945 = vmatprep.mubr.msk.f32.mxu1 %vm823_vm1, %v810_v5  ;;  %v813_v9 = vmax.f32 %v779_v6, 0.0 }
 0x11a   : > { %2946 = vmatmul.mubr.msk.f32.gmra.mxu1 %vm823_vm1, %v811_v3 }
 0x11b   : > { %v812_v10 = vmax.f32 %v774_v8, 0.0 }
 0x11d   : > { %2948 = vmatprep.mubr.msk.f32.mxu1 %vm823_vm1, %v812_v10 }
 0x11e   : > { %2949 = vmatmul.mubr.msk.f32.gmra.mxu1 %vm823_vm1, %v813_v9 }
 0x1a2   : > { %v2905_v11 = vpop.f32.mrf.mxu1 }
 0x1a3   : > { %v3647_v15 = vadd.f32 %v2905_v11, %v3641_v12 }
 0x1a4   : > { %v986_v13 = vpop.f32.mrf.mxu1 }
 0x1a5   : > { %v3644_v14 = vadd.f32 %v3641_v12, %v986_v13  ;;  %v1148_v22 = vsel %vm460_vm0, %v3647_v15, -inf }
 0x1a6   : > { %v2908_v41 = vpop.f32.mrf.mxu1 }
 0x1a7   : > { %v1145_v16 = vsel %vm460_vm0, %v3644_v14, -inf  ;;  %v3655_v20 = vadd.f32 %v2908_v41, %v3641_v12 }
 0x1a8   : > { %v996_v17 = vpop.f32.mrf.mxu1  ;;  %1146 = vmax.xlane.f32.xlu0 %v1145_v16 }
 0x1a9   : > { %v3652_v18 = vadd.f32 %v3641_v12, %v996_v17  ;;  %v1154_v27 = vsel %vm460_vm0, %v3655_v20, -inf }
 0x1aa   : > { %v2911_v19 = vpop.f32.mrf.mxu1 }
 0x1ab   : > { %v1151_v21 = vsel %vm460_vm0, %v3652_v18, -inf  ;;  %v3665_v26 = vadd.f32 %v2911_v19, %v3641_v12 }
 0x1ac   : > { %v1006_v23 = vpop.f32.mrf.mxu1  ;;  %1152 = vmax.xlane.f32.xlu1 %v1151_v21  ;;  %1149 = vmax.xlane.f32.xlu0 %v1148_v22 }
 0x1ad   : > { %v3662_v24 = vadd.f32 %v3641_v12, %v1006_v23  ;;  %v1160_v33 = vsel %vm460_vm0, %v3665_v26, -inf }
 0x1ae   : > { %v2914_v25 = vpop.f32.mrf.mxu1 }
 0x1af   : > { %v1157_v28 = vsel %vm460_vm0, %v3662_v24, -inf  ;;  %v3675_v32 = vadd.f32 %v2914_v25, %v3641_v12 }
 0x1b0   : > { %v1016_v29 = vpop.f32.mrf.mxu1  ;;  %1155 = vmax.xlane.f32.xlu1 %v1154_v27  ;;  %1158 = vmax.xlane.f32.xlu0 %v1157_v28 }
 0x1b1   : > { %v3672_v30 = vadd.f32 %v3641_v12, %v1016_v29  ;;  %v1166_v39 = vsel %vm460_vm0, %v3675_v32, -inf }
 0x1b2   : > { %v2917_v31 = vpop.f32.mrf.mxu1 }
 0x1b3   : > { %v1163_v34 = vsel %vm460_vm0, %v3672_v30, -inf  ;;  %v3685_v38 = vadd.f32 %v2917_v31, %v3641_v12 }
 0x1b4   : > { %v1026_v35 = vpop.f32.mrf.mxu1  ;;  %1161 = vmax.xlane.f32.xlu1 %v1160_v33  ;;  %1164 = vmax.xlane.f32.xlu0 %v1163_v34 }
 0x1b5   : > { %v3682_v36 = vadd.f32 %v3641_v12, %v1026_v35  ;;  %v1172_v46 = vsel %vm460_vm0, %v3685_v38, -inf }
 0x1b6   : > { %v2920_v37 = vpop.f32.mrf.mxu1 }
 0x1b7   : > { %v1169_v40 = vsel %vm460_vm0, %v3682_v36, -inf  ;;  %v3695_v45 = vadd.f32 %v2920_v37, %v3641_v12 }
 0x1b8   : > { %v1036_v42 = vpop.f32.mrf.mxu1  ;;  %1167 = vmax.xlane.f32.xlu1 %v1166_v39  ;;  %1170 = vmax.xlane.f32.xlu0 %v1169_v40 }
 0x1b9   : > { %v3692_v43 = vadd.f32 %v3641_v12, %v1036_v42  ;;  %v1178_v52 = vsel %vm460_vm0, %v3695_v45, -inf }
 0x1ba   : > { %v2923_v44 = vpop.f32.mrf.mxu1 }
 0x1bb   : > { %v1175_v47 = vsel %vm460_vm0, %v3692_v43, -inf  ;;  %v3705_v51 = vadd.f32 %v2923_v44, %v3641_v12 }
 0x1bc   : > { %v1046_v48 = vpop.f32.mrf.mxu1  ;;  %1173 = vmax.xlane.f32.xlu1 %v1172_v46  ;;  %1176 = vmax.xlane.f32.xlu0 %v1175_v47 }
 0x1bd   : > { %v3702_v49 = vadd.f32 %v3641_v12, %v1046_v48  ;;  %v1184_v58 = vsel %vm460_vm0, %v3705_v51, -inf }
 0x1be   : > { %v2926_v50 = vpop.f32.mrf.mxu1 }
 0x1bf   : > { %v1181_v53 = vsel %vm460_vm0, %v3702_v49, -inf  ;;  %v3715_v57 = vadd.f32 %v2926_v50, %v3641_v12 }
 0x1c0   : > { %v1056_v54 = vpop.f32.mrf.mxu1  ;;  %1179 = vmax.xlane.f32.xlu1 %v1178_v52  ;;  %1182 = vmax.xlane.f32.xlu0 %v1181_v53 }
 0x1c1   : > { %v3712_v55 = vadd.f32 %v3641_v12, %v1056_v54  ;;  %v1190_v0 = vsel %vm460_vm0, %v3715_v57, -inf }
 0x1c2   : > { %v2929_v56 = vpop.f32.mrf.mxu1 }
 0x1c3   : > { %v1187_v59 = vsel %vm460_vm0, %v3712_v55, -inf  ;;  %v3725_v63 = vadd.f32 %v2929_v56, %v3641_v12 }
 0x1c4   : > { %v1066_v60 = vpop.f32.mrf.mxu1  ;;  %1185 = vmax.xlane.f32.xlu1 %v1184_v58  ;;  %1188 = vmax.xlane.f32.xlu0 %v1187_v59 }
 0x1c5   : > { %v3722_v61 = vadd.f32 %v3641_v12, %v1066_v60  ;;  %v1196_v6 = vsel %vm460_vm0, %v3725_v63, -inf }
 0x1c6   : > { %v2932_v62 = vpop.f32.mrf.mxu1 }
 0x1c7   : > { %v1193_v1 = vsel %vm460_vm0, %v3722_v61, -inf  ;;  %v3735_v5 = vadd.f32 %v2932_v62, %v3641_v12  ;;  %v1534_v62 = vld [vmem:[%s4609_s5 + $0x28] sm:$0xff] }
 0x1c8   : > { %v1076_v2 = vpop.f32.mrf.mxu1  ;;  %1191 = vmax.xlane.f32.xlu1 %v1190_v0  ;;  %1194 = vmax.xlane.f32.xlu0 %v1193_v1  ;;  %v1532_v0 = vld [vmem:[%s4609_s5 + $0x18] sm:$0xff]  ;;  %v1531_v1 = vld [vmem:[%s4609_s5 + $0x10] sm:$0xff] }
 0x1c9   : > { %v3732_v3 = vadd.f32 %v3641_v12, %v1076_v2  ;;  %v1202_v13 = vsel %vm460_vm0, %v3735_v5, -inf  ;;  %2951 = vmatprep.subr.mxu1 %v1534_v62 }
 0x1ca   : > { %v2935_v4 = vpop.f32.mrf.mxu1  ;;  %2952 = vmatpush3.msra.mxu1 %v1534_v62 }
 0x1cb   : > { %v1199_v7 = vsel %vm460_vm0, %v3732_v3, -inf  ;;  %v3745_v11 = vadd.f32 %v2935_v4, %v3641_v12 }
 0x1cc   : > { %v1086_v8 = vpop.f32.mrf.mxu1  ;;  %1197 = vmax.xlane.f32.xlu1 %v1196_v6  ;;  %1200 = vmax.xlane.f32.xlu0 %v1199_v7 }
 0x1cd   : > { %v3742_v9 = vadd.f32 %v3641_v12, %v1086_v8  ;;  %v1208_v22 = vsel %vm460_vm0, %v3745_v11, -inf }
 0x1ce   : > { %v2938_v10 = vpop.f32.mrf.mxu1 }
 0x1cf   : > { %v1205_v41 = vsel %vm460_vm0, %v3742_v9, -inf  ;;  %v3755_v21 = vadd.f32 %v2938_v10, %v3641_v12 }
 0x1d0   : > { %v1096_v16 = vpop.f32.mrf.mxu1  ;;  %1203 = vmax.xlane.f32.xlu1 %v1202_v13  ;;  %1206 = vmax.xlane.f32.xlu0 %v1205_v41 }
 0x1d1   : > { %v3752_v17 = vadd.f32 %v3641_v12, %v1096_v16  ;;  %v1214_v31 = vsel %vm460_vm0, %v3755_v21, -inf }
 0x1d2   : > { %v2941_v19 = vpop.f32.mrf.mxu1 }
 0x1d3   : > { %v1211_v23 = vsel %vm460_vm0, %v3752_v17, -inf  ;;  %v3765_v29 = vadd.f32 %v2941_v19, %v3641_v12 }
 0x1d4   : > { %v1106_v25 = vpop.f32.mrf.mxu1  ;;  %1209 = vmax.xlane.f32.xlu1 %v1208_v22  ;;  %1212 = vmax.xlane.f32.xlu0 %v1211_v23 }
 0x1d5   : > { %v3762_v27 = vadd.f32 %v3641_v12, %v1106_v25  ;;  %v1220_v40 = vsel %vm460_vm0, %v3765_v29, -inf }
 0x1d6   : > { %v2944_v28 = vpop.f32.mrf.mxu1 }
 0x1d7   : > { %v1217_v33 = vsel %vm460_vm0, %v3762_v27, -inf  ;;  %v3775_v39 = vadd.f32 %v2944_v28, %v3641_v12 }
 0x1d8   : > { %v1116_v34 = vpop.f32.mrf.mxu1  ;;  %1215 = vmax.xlane.f32.xlu1 %v1214_v31  ;;  %1218 = vmax.xlane.f32.xlu0 %v1217_v33 }
 0x1d9   : > { %v3772_v35 = vadd.f32 %v3641_v12, %v1116_v34  ;;  %v1226_v50 = vsel %vm460_vm0, %v3775_v39, -inf }
 0x1da   : > { %v2947_v37 = vpop.f32.mrf.mxu1 }
 0x1db   : > { %v1223_v42 = vsel %vm460_vm0, %v3772_v35, -inf  ;;  %v3785_v48 = vadd.f32 %v2947_v37, %v3641_v12 }
 0x1dc   : > { %v1126_v44 = vpop.f32.mrf.mxu1  ;;  %1221 = vmax.xlane.f32.xlu1 %v1220_v40  ;;  %1224 = vmax.xlane.f32.xlu0 %v1223_v42 }
 0x1dd   : > { %v3782_v46 = vadd.f32 %v3641_v12, %v1126_v44  ;;  %v1232_v58 = vsel %vm460_vm0, %v3785_v48, -inf }
 0x1de   : > { %v2950_v47 = vpop.f32.mrf.mxu1 }
 0x1df   : > { %v1229_v52 = vsel %vm460_vm0, %v3782_v46, -inf  ;;  %v3795_v56 = vadd.f32 %v2950_v47, %v3641_v12 }
 0x1e0   : > { %v1136_v53 = vpop.f32.mrf.mxu1  ;;  %1227 = vmax.xlane.f32.xlu1 %v1226_v50  ;;  %1230 = vmax.xlane.f32.xlu0 %v1229_v52 }
 0x1e1   : > { %v3792_v54 = vadd.f32 %v3641_v12, %v1136_v53  ;;  %v1238_v60 = vsel %vm460_vm0, %v3795_v56, -inf  ;;  %v1533_v12 = vld [vmem:[%s4609_s5 + $0x20] sm:$0xff] }
 0x1e2   : > { %2953 = vmatprep.subr.mxu1 %v1533_v12 }
 0x1e3   : > { %v1235_v59 = vsel %vm460_vm0, %v3792_v54, -inf  ;;  %2954 = vmatpush3.msra.mxu1 %v1533_v12 }
 0x1e4   : > { %1233 = vmax.xlane.f32.xlu1 %v1232_v58  ;;  %1236 = vmax.xlane.f32.xlu0 %v1235_v59 }
 0x1e5   : > { %2955 = vmatprep.subr.mxu1 %v1532_v0 }
 0x1e6   : > { %2956 = vmatpush3.msra.mxu1 %v1532_v0 }
 0x1e7   : > { %2957 = vmatprep.subr.mxu1 %v1531_v1 }
 0x1e8   : > { %1239 = vmax.xlane.f32.xlu1 %v1238_v60  ;;  %2958 = vmatpush3.msra.mxu1 %v1531_v1 }
 0x231   : > { %v1147_v2 = vpop.xlane.xlu0 %1146 }
 0x232   : > { %v1241_v4 = vsub.f32 %v3644_v14, %v1147_v2 }
 0x234   : > { %v1273_v6 = vmul.f32 1.442695, %v1241_v4 }
 0x235   : > { %v1153_v7 = vpop.xlane.xlu1 %1152  ;;  %v1150_v8 = vpop.xlane.xlu0 %1149 }
 0x236   : > { %3147 = vpow2.f32 %v1273_v6  ;;  %v1243_v10 = vsub.f32 %v3652_v18, %v1153_v7  ;;  %v1242_v13 = vsub.f32 %v3647_v15, %v1150_v8 }
 0x238   : > { %v1277_v41 = vmul.f32 1.442695, %v1243_v10  ;;  %v1275_v16 = vmul.f32 1.442695, %v1242_v13 }
 0x239   : > { %v1156_v19 = vpop.xlane.xlu1 %1155  ;;  %v1159_v22 = vpop.xlane.xlu0 %1158 }
 0x23a   : > { %3149 = vpow2.f32 %v1277_v41  ;;  %v1244_v23 = vsub.f32 %v3655_v20, %v1156_v19  ;;  %v1245_v25 = vsub.f32 %v3662_v24, %v1159_v22  ;;  %v1530_v19 = vld [vmem:[%s4609_s5 + $0x8] sm:$0xff] }
 0x23b   : > { %3151 = vpow2.f32 %v1275_v16  ;;  %2959 = vmatprep.subr.mxu1 %v1530_v19 }
 0x23c   : > { %v1279_v28 = vmul.f32 1.442695, %v1244_v23  ;;  %v1281_v14 = vmul.f32 1.442695, %v1245_v25  ;;  %2960 = vmatpush3.msra.mxu1 %v1530_v19 }
 0x23d   : > { %v1162_v31 = vpop.xlane.xlu1 %1161  ;;  %v1165_v33 = vpop.xlane.xlu0 %1164 }
 0x23e   : > { %3153 = vpow2.f32 %v1279_v28  ;;  %v1246_v34 = vsub.f32 %v3665_v26, %v1162_v31  ;;  %v1247_v18 = vsub.f32 %v3672_v30, %v1165_v33 }
 0x23f   : > { %3155 = vpow2.f32 %v1281_v14 }
 0x240   : > { %v1283_v15 = vmul.f32 1.442695, %v1246_v34  ;;  %v1285_v37 = vmul.f32 1.442695, %v1247_v18 }
 0x241   : > { %v1168_v40 = vpop.xlane.xlu1 %1167  ;;  %v1171_v42 = vpop.xlane.xlu0 %1170 }
 0x242   : > { %3157 = vpow2.f32 %v1283_v15  ;;  %v1248_v20 = vsub.f32 %v3675_v32, %v1168_v40  ;;  %v1249_v24 = vsub.f32 %v3682_v36, %v1171_v42 }
 0x243   : > { %v3824_v44 = vpop.eup %3147  ;;  %3159 = vpow2.f32 %v1285_v37 }
 0x244   : > { %v1287_v47 = vmul.f32 1.442695, %v1248_v20  ;;  %v1289_v50 = vmul.f32 1.442695, %v1249_v24  ;;  %v1337_v26 = vsel %vm460_vm0, %v3824_v44, 0.0 }
 0x245   : > { %v1174_v52 = vpop.xlane.xlu1 %1173  ;;  %1338 = vadd.xlane.f32.xlu0 %v1337_v26  ;;  %v1177_v30 = vpop.xlane.xlu0 %1176 }
 0x246   : > { %3161 = vpow2.f32 %v1287_v47  ;;  %v1250_v53 = vsub.f32 %v3685_v38, %v1174_v52  ;;  %v1251_v58 = vsub.f32 %v3692_v43, %v1177_v30 }
 0x247   : > { %v3830_v59 = vpop.eup %3149  ;;  %3163 = vpow2.f32 %v1289_v50 }
 0x248   : > { %v3832_v32 = vpop.eup %3151  ;;  %v1291_v36 = vmul.f32 1.442695, %v1250_v53  ;;  %v1293_v60 = vmul.f32 1.442695, %v1251_v58  ;;  %v1343_v62 = vsel %vm460_vm0, %v3830_v59, 0.0 }
 0x249   : > { %v1180_v12 = vpop.xlane.xlu1 %1179  ;;  %1344 = vadd.xlane.f32.xlu0 %v1343_v62  ;;  %v1340_v0 = vsel %vm460_vm0, %v3832_v32, 0.0  ;;  %v1183_v1 = vpop.xlane.xlu0 %1182 }
 0x24a   : > { %3165 = vpow2.f32 %v1291_v36  ;;  %v1252_v38 = vsub.f32 %v3695_v45, %v1180_v12  ;;  %1341 = vadd.xlane.f32.xlu1 %v1340_v0  ;;  %v1253_v43 = vsub.f32 %v3702_v49, %v1183_v1 }
 0x24b   : > { %v3840_v2 = vpop.eup %3153  ;;  %3167 = vpow2.f32 %v1293_v60 }
 0x24c   : > { %v3842_v4 = vpop.eup %3155  ;;  %v1295_v6 = vmul.f32 1.442695, %v1252_v38  ;;  %v1297_v7 = vmul.f32 1.442695, %v1253_v43  ;;  %v1346_v8 = vsel %vm460_vm0, %v3840_v2, 0.0 }
 0x24d   : > { %v1186_v10 = vpop.xlane.xlu1 %1185  ;;  %v1349_v13 = vsel %vm460_vm0, %v3842_v4, 0.0  ;;  %v1189_v41 = vpop.xlane.xlu0 %1188 }
 0x24e   : > { %3169 = vpow2.f32 %v1295_v6  ;;  %v1254_v45 = vsub.f32 %v3705_v51, %v1186_v10  ;;  %1347 = vadd.xlane.f32.xlu1 %v1346_v8  ;;  %1350 = vadd.xlane.f32.xlu0 %v1349_v13  ;;  %v1255_v49 = vsub.f32 %v3712_v55, %v1189_v41 }
 0x24f   : > { %v3850_v16 = vpop.eup %3157  ;;  %3171 = vpow2.f32 %v1297_v7 }
 0x250   : > { %v3855_v22 = vpop.eup %3159  ;;  %v1299_v23 = vmul.f32 1.442695, %v1254_v45  ;;  %v1301_v25 = vmul.f32 1.442695, %v1255_v49  ;;  %v1352_v28 = vsel %vm460_vm0, %v3850_v16, 0.0 }
 0x251   : > { %v1192_v51 = vpop.xlane.xlu1 %1191  ;;  %v1355_v14 = vsel %vm460_vm0, %v3855_v22, 0.0  ;;  %v1195_v55 = vpop.xlane.xlu0 %1194 }
 0x252   : > { %3173 = vpow2.f32 %v1299_v23  ;;  %v1256_v31 = vsub.f32 %v3715_v57, %v1192_v51  ;;  %1353 = vadd.xlane.f32.xlu1 %v1352_v28  ;;  %1356 = vadd.xlane.f32.xlu0 %v1355_v14  ;;  %v1257_v33 = vsub.f32 %v3722_v61, %v1195_v55  ;;  %v1529_v55 = vld [vmem:[%s4609_s5] sm:$0xff] }
 0x253   : > { %v3863_v34 = vpop.eup %3161  ;;  %3175 = vpow2.f32 %v1301_v25  ;;  %2961 = vmatprep.subr.mxu1 %v1529_v55 }
 0x254   : > { %v3865_v18 = vpop.eup %3163  ;;  %v1303_v15 = vmul.f32 1.442695, %v1256_v31  ;;  %v1305_v37 = vmul.f32 1.442695, %v1257_v33  ;;  %v1358_v40 = vsel %vm460_vm0, %v3863_v34, 0.0  ;;  %2962 = vmatpush3.msra.mxu1 %v1529_v55 }
 0x255   : > { %v1198_v42 = vpop.xlane.xlu1 %1197  ;;  %v1361_v20 = vsel %vm460_vm0, %v3865_v18, 0.0  ;;  %v1201_v24 = vpop.xlane.xlu0 %1200 }
 0x256   : > { %3177 = vpow2.f32 %v1303_v15  ;;  %v1258_v57 = vsub.f32 %v3725_v63, %v1198_v42  ;;  %1359 = vadd.xlane.f32.xlu1 %v1358_v40  ;;  %1362 = vadd.xlane.f32.xlu0 %v1361_v20  ;;  %v1259_v61 = vsub.f32 %v3732_v3, %v1201_v24 }
 0x257   : > { %v3873_v47 = vpop.eup %3165  ;;  %3179 = vpow2.f32 %v1305_v37 }
 0x258   : > { %v3875_v50 = vpop.eup %3167  ;;  %v1307_v26 = vmul.f32 1.442695, %v1258_v57  ;;  %v1309_v52 = vmul.f32 1.442695, %v1259_v61  ;;  %v1364_v30 = vsel %vm460_vm0, %v3873_v47, 0.0 }
 0x259   : > { %v1204_v53 = vpop.xlane.xlu1 %1203  ;;  %v1367_v58 = vsel %vm460_vm0, %v3875_v50, 0.0  ;;  %v1207_v36 = vpop.xlane.xlu0 %1206 }
 0x25a   : > { %3181 = vpow2.f32 %v1307_v26  ;;  %v1260_v63 = vsub.f32 %v3735_v5, %v1204_v53  ;;  %1365 = vadd.xlane.f32.xlu1 %v1364_v30  ;;  %1368 = vadd.xlane.f32.xlu0 %v1367_v58  ;;  %v1261_v3 = vsub.f32 %v3742_v9, %v1207_v36 }
 0x25b   : > { %v3883_v60 = vpop.eup %3169  ;;  %3183 = vpow2.f32 %v1309_v52 }
 0x25c   : > { %v3885_v62 = vpop.eup %3171  ;;  %v1311_v12 = vmul.f32 1.442695, %v1260_v63  ;;  %v1313_v0 = vmul.f32 1.442695, %v1261_v3  ;;  %v1370_v1 = vsel %vm460_vm0, %v3883_v60, 0.0 }
 0x25d   : > { %v1210_v38 = vpop.xlane.xlu1 %1209  ;;  %v1373_v43 = vsel %vm460_vm0, %v3885_v62, 0.0  ;;  %v1213_v6 = vpop.xlane.xlu0 %1212 }
 0x25e   : > { %3185 = vpow2.f32 %v1311_v12  ;;  %v1262_v5 = vsub.f32 %v3745_v11, %v1210_v38  ;;  %1371 = vadd.xlane.f32.xlu1 %v1370_v1  ;;  %1374 = vadd.xlane.f32.xlu0 %v1373_v43  ;;  %v1263_v9 = vsub.f32 %v3752_v17, %v1213_v6 }
 0x25f   : > { %v3893_v7 = vpop.eup %3173  ;;  %3187 = vpow2.f32 %v1313_v0 }
 0x260   : > { %v3895_v8 = vpop.eup %3175  ;;  %v1315_v10 = vmul.f32 1.442695, %v1262_v5  ;;  %v1317_v13 = vmul.f32 1.442695, %v1263_v9  ;;  %v1376_v41 = vsel %vm460_vm0, %v3893_v7, 0.0 }
 0x261   : > { %v1216_v45 = vpop.xlane.xlu1 %1215  ;;  %v1379_v49 = vsel %vm460_vm0, %v3895_v8, 0.0  ;;  %v1219_v19 = vpop.xlane.xlu0 %1218 }
 0x262   : > { %3189 = vpow2.f32 %v1315_v10  ;;  %v1264_v11 = vsub.f32 %v3755_v21, %v1216_v45  ;;  %1377 = vadd.xlane.f32.xlu1 %v1376_v41  ;;  %1380 = vadd.xlane.f32.xlu0 %v1379_v49  ;;  %v1265_v17 = vsub.f32 %v3762_v27, %v1219_v19 }
 0x263   : > { %v3903_v23 = vpop.eup %3177  ;;  %3191 = vpow2.f32 %v1317_v13 }
 0x264   : > { %v3905_v25 = vpop.eup %3179  ;;  %v1319_v28 = vmul.f32 1.442695, %v1264_v11  ;;  %v1321_v51 = vmul.f32 1.442695, %v1265_v17  ;;  %v1382_v14 = vsel %vm460_vm0, %v3903_v23, 0.0 }
 0x265   : > { %v1222_v31 = vpop.xlane.xlu1 %1221  ;;  %v1385_v21 = vsel %vm460_vm0, %v3905_v25, 0.0  ;;  %v1225_v33 = vpop.xlane.xlu0 %1224 }
 0x266   : > { %3193 = vpow2.f32 %v1319_v28  ;;  %v1266_v27 = vsub.f32 %v3765_v29, %v1222_v31  ;;  %1383 = vadd.xlane.f32.xlu1 %v1382_v14  ;;  %1386 = vadd.xlane.f32.xlu0 %v1385_v21  ;;  %v1267_v15 = vsub.f32 %v3772_v35, %v1225_v33 }
 0x267   : > { %v3916_v37 = vpop.eup %3181  ;;  %3195 = vpow2.f32 %v1321_v51 }
 0x268   : > { %v3918_v40 = vpop.eup %3183  ;;  %v1323_v42 = vmul.f32 1.442695, %v1266_v27  ;;  %v1325_v20 = vmul.f32 1.442695, %v1267_v15  ;;  %v1388_v24 = vsel %vm460_vm0, %v3916_v37, 0.0 }
 0x269   : > { %v1228_v57 = vpop.xlane.xlu1 %1227  ;;  %v1391_v61 = vsel %vm460_vm0, %v3918_v40, 0.0  ;;  %v1231_v29 = vpop.xlane.xlu0 %1230 }
 0x26a   : > { %3197 = vpow2.f32 %v1323_v42  ;;  %v1268_v26 = vsub.f32 %v3775_v39, %v1228_v57  ;;  %1389 = vadd.xlane.f32.xlu1 %v1388_v24  ;;  %1392 = vadd.xlane.f32.xlu0 %v1391_v61  ;;  %v1269_v35 = vsub.f32 %v3782_v46, %v1231_v29  ;;  %v3984_v42 = vld [vmem:[%s4611_s7 + $0x78] sm:$0xff]  ;;  %v3997_v24 = vld [vmem:[%s4611_s7 + $0x68] sm:$0xff]  ;;  %v4004_v57 = vld [vmem:[%s4611_s7 + $0x60] sm:$0xff] }
 0x26b   : > { %v3926_v52 = vpop.eup %3185  ;;  %3199 = vpow2.f32 %v1325_v20  ;;  %v3989_v20 = vld [vmem:[%s4611_s7 + $0x70] sm:$0xff]  ;;  %3011 = vmatprep.subr.mxu0 %v3984_v42  ;;  %3091 = vmatprep.subr.mxu1 %v3984_v42  ;;  %v4011_v61 = vld [vmem:[%s4611_s7 + $0x58] sm:$0xff] }
 0x26c   : > { %v3928_v30 = vpop.eup %3187  ;;  %v1327_v53 = vmul.f32 1.442695, %v1268_v26  ;;  %v1329_v58 = vmul.f32 1.442695, %v1269_v35  ;;  %v1394_v36 = vsel %vm460_vm0, %v3926_v52, 0.0  ;;  %3012 = vmatpush3.msra.mxu0 %v3984_v42  ;;  %v4018_v29 = vld [vmem:[%s4611_s7 + $0x50] sm:$0xff] }
 0x26d   : > { %v1234_v63 = vpop.xlane.xlu1 %1233  ;;  %v1397_v3 = vsel %vm460_vm0, %v3928_v30, 0.0  ;;  %v1237_v12 = vpop.xlane.xlu0 %1236  ;;  %3013 = vmatprep.subr.mxu0 %v3989_v20  ;;  %v4025_v26 = vld [vmem:[%s4611_s7 + $0x48] sm:$0xff] }
 0x26e   : > { %3201 = vpow2.f32 %v1327_v53  ;;  %v1270_v39 = vsub.f32 %v3785_v48, %v1234_v63  ;;  %1395 = vadd.xlane.f32.xlu1 %v1394_v36  ;;  %1398 = vadd.xlane.f32.xlu0 %v1397_v3  ;;  %v1271_v46 = vsub.f32 %v3792_v54, %v1237_v12 }
 0x26f   : > { %v3936_v0 = vpop.eup %3189  ;;  %3203 = vpow2.f32 %v1329_v58  ;;  %3014 = vmatpush3.msra.mxu0 %v3989_v20 }
 0x270   : > { %v3938_v1 = vpop.eup %3191  ;;  %v1331_v38 = vmul.f32 1.442695, %v1270_v39  ;;  %v1333_v43 = vmul.f32 1.442695, %v1271_v46  ;;  %v1400_v6 = vsel %vm460_vm0, %v3936_v0, 0.0  ;;  %3015 = vmatprep.subr.mxu0 %v3997_v24 }
 0x271   : > { %v1240_v5 = vpop.xlane.xlu1 %1239  ;;  %v1403_v9 = vsel %vm460_vm0, %v3938_v1, 0.0  ;;  %3016 = vmatpush3.msra.mxu0 %v3997_v24 }
 0x272   : > { %3205 = vpow2.f32 %v1331_v38  ;;  %v1272_v48 = vsub.f32 %v3795_v56, %v1240_v5  ;;  %1401 = vadd.xlane.f32.xlu1 %v1400_v6  ;;  %1404 = vadd.xlane.f32.xlu0 %v1403_v9  ;;  %v3339_v6 = vld [vmem:[%s3491_s29] sm:$0xff] }
 0x273   : > { %v3945_v54 = vpop.eup %3193  ;;  %3207 = vpow2.f32 %v1333_v43  ;;  %3017 = vmatprep.subr.mxu0 %v4004_v57 }
 0x274   : > { %v3947_v10 = vpop.eup %3195  ;;  %v1335_v13 = vmul.f32 1.442695, %v1272_v48  ;;  %v1406_v41 = vsel %vm460_vm0, %v3945_v54, 0.0  ;;  %3018 = vmatpush3.msra.mxu0 %v4004_v57 }
 0x275   : > { %v1409_v45 = vsel %vm460_vm0, %v3947_v10, 0.0  ;;  %3019 = vmatprep.subr.mxu0 %v4011_v61 }
 0x276   : > { %3209 = vpow2.f32 %v1335_v13  ;;  %1407 = vadd.xlane.f32.xlu1 %v1406_v41  ;;  %1410 = vadd.xlane.f32.xlu0 %v1409_v45 }
 0x277   : > { %v3953_v49 = vpop.eup %3197  ;;  %3020 = vmatpush3.msra.mxu0 %v4011_v61 }
 0x278   : > { %v3955_v56 = vpop.eup %3199  ;;  %v1412_v19 = vsel %vm460_vm0, %v3953_v49, 0.0  ;;  %3021 = vmatprep.subr.mxu0 %v4018_v29 }
 0x279   : > { %v1415_v11 = vsel %vm460_vm0, %v3955_v56, 0.0  ;;  %3022 = vmatpush3.msra.mxu0 %v4018_v29 }
 0x27a   : > { %1413 = vadd.xlane.f32.xlu1 %v1412_v19  ;;  %1416 = vadd.xlane.f32.xlu0 %v1415_v11  ;;  %v3340_v11 = vld [vmem:[%s3491_s29 + $0x10] sm:$0xff] }
 0x27b   : > { %v3961_v17 = vpop.eup %3201  ;;  %3023 = vmatprep.subr.mxu0 %v4025_v26 }
 0x27c   : > { %v3963_v28 = vpop.eup %3203  ;;  %v1418_v51 = vsel %vm460_vm0, %v3961_v17, 0.0  ;;  %3024 = vmatpush3.msra.mxu0 %v4025_v26 }
 0x27d   : > { %v1421_v14 = vsel %vm460_vm0, %v3963_v28, 0.0 }
 0x27e   : > { %1419 = vadd.xlane.f32.xlu1 %v1418_v51  ;;  %1422 = vadd.xlane.f32.xlu0 %v1421_v14  ;;  %v3341_v51 = vld [vmem:[%s3491_s29 + $0x8] sm:$0xff] }
 0x27f   : > { %v3969_v55 = vpop.eup %3205 }
 0x280   : > { %v3971_v31 = vpop.eup %3207  ;;  %v1424_v21 = vsel %vm460_vm0, %v3969_v55, 0.0 }
 0x281   : > { %v1427_v33 = vsel %vm460_vm0, %v3971_v31, 0.0 }
 0x282   : > { %1425 = vadd.xlane.f32.xlu1 %v1424_v21  ;;  %1428 = vadd.xlane.f32.xlu0 %v1427_v33 }
 0x283   : > { %v3977_v27 = vpop.eup %3209 }
 0x284   : > { %v1430_v15 = vsel %vm460_vm0, %v3977_v27, 0.0 }
 0x286   : > { %1431 = vadd.xlane.f32.xlu1 %v1430_v15 }
 0x2ce   : > { %v1339_v35 = vpop.xlane.xlu0 %1338 }
 0x2cf   : > { %3211 = vrcp.f32 %v1339_v35 }
 0x2d2   : > { %v1345_v53 = vpop.xlane.xlu0 %1344 }
 0x2d3   : > { %v1342_v58 = vpop.xlane.xlu1 %1341  ;;  %3213 = vrcp.f32 %v1345_v53  ;;  %v3342_v53 = vld [vmem:[%s3491_s29 + $0x18] sm:$0xff] }
 0x2d4   : > { %3215 = vrcp.f32 %v1342_v58 }
 0x2d7   : > { %v1348_v36 = vpop.xlane.xlu1 %1347  ;;  %v1351_v63 = vpop.xlane.xlu0 %1350 }
 0x2d8   : > { %3217 = vrcp.f32 %v1348_v36 }
 0x2d9   : > { %3219 = vrcp.f32 %v1351_v63  ;;  %v3343_v63 = vld [vmem:[%s3491_s29 + $0x20] sm:$0xff] }
 0x2db   : > { %v1354_v3 = vpop.xlane.xlu1 %1353  ;;  %v1357_v12 = vpop.xlane.xlu0 %1356 }
 0x2dc   : > { %v3212_v39 = vpop.eup %3211  ;;  %3221 = vrcp.f32 %v1354_v3 }
 0x2dd   : > { %3223 = vrcp.f32 %v1357_v12  ;;  %v1465_v46 = vmul.f32 %v3212_v39, %v3824_v44 }
 0x2df   : > { %v1360_v38 = vpop.xlane.xlu1 %1359  ;;  %v1363_v43 = vpop.xlane.xlu0 %1362  ;;  %v1497_v5 = vmul.f32 %v3339_v6, %v1465_v46  ;;  %v3344_v46 = vld [vmem:[%s3491_s29 + $0x28] sm:$0xff] }
 0x2e0   : > { %v3214_v9 = vpop.eup %3213  ;;  %3225 = vrcp.f32 %v1360_v38 }
 0x2e1   : > { %v3216_v48 = vpop.eup %3215  ;;  %3227 = vrcp.f32 %v1363_v43  ;;  %2963 = vmatprep.mubr.msk.f32.mxu1 %vm460_vm0, %v1497_v5  ;;  %v1467_v13 = vmul.f32 %v3214_v9, %v3830_v59  ;;  %v3345_v43 = vld [vmem:[%s3491_s29 + $0x30] sm:$0xff] }
 0x2e2   : > { %v1466_v41 = vmul.f32 %v3216_v48, %v3832_v32  ;;  %v3346_v48 = vld [vmem:[%s3491_s29 + $0x38] sm:$0xff] }
 0x2e3   : > { %v1366_v45 = vpop.xlane.xlu1 %1365  ;;  %v1369_v19 = vpop.xlane.xlu0 %1368  ;;  %v1499_v44 = vmul.f32 %v3340_v11, %v1467_v13 }
 0x2e4   : > { %v1498_v14 = vmul.f32 %v3341_v51, %v1466_v41  ;;  %3229 = vrcp.f32 %v1366_v45  ;;  %v3347_v41 = vld [vmem:[%s3491_s29 + $0x40] sm:$0xff] }
 0x2e5   : > { %v3218_v21 = vpop.eup %3217  ;;  %3231 = vrcp.f32 %v1369_v19 }
 0x2e6   : > { %v3220_v33 = vpop.eup %3219  ;;  %2964 = vmatmul.mubr.msk.f32.vlgmr.msra.gmra.mxu1 %vm460_vm0, %v1498_v14  ;;  %v1468_v15 = vmul.f32 %v3218_v21, %v3840_v2  ;;  %v3349_v14 = vld [vmem:[%s3491_s29 + $0x50] sm:$0xff] }
 0x2e7   : > { %v1372_v35 = vpop.xlane.xlu1 %1371  ;;  %2966 = vmatprep.mubr.msk.f32.mxu1 %vm460_vm0, %v1499_v44  ;;  %v1375_v59 = vpop.xlane.xlu0 %1374  ;;  %v1469_v32 = vmul.f32 %v3220_v33, %v3842_v4  ;;  %3107 = vmatpush3.msra.mxu1 %v3984_v42  ;;  %v3348_v44 = vld [vmem:[%s3491_s29 + $0x48] sm:$0xff] }
 0x2e8   : > { %3233 = vrcp.f32 %v1372_v35  ;;  %v1500_v58 = vmul.f32 %v3342_v53, %v1468_v15  ;;  %3092 = vmatprep.subr.mxu1 %v3989_v20  ;;  %v3350_v35 = vld [vmem:[%s3491_s29 + $0x58] sm:$0xff]  ;;  %v3351_v53 = vld [vmem:[%s3491_s29 + $0x60] sm:$0xff] }
 0x2e9   : > { %v3222_v36 = vpop.eup %3221  ;;  %3235 = vrcp.f32 %v1375_v59  ;;  %v1501_v3 = vmul.f32 %v3343_v63, %v1469_v32  ;;  %3108 = vmatpush3.msra.mxu1 %v3989_v20 }
 0x2ea   : > { %v3224_v2 = vpop.eup %3223  ;;  %2967 = vmatmul.mubr.msk.f32.gmra.mxu1 %vm460_vm0, %v1500_v58  ;;  %v1470_v4 = vmul.f32 %v3222_v36, %v3850_v16  ;;  %3093 = vmatprep.subr.mxu1 %v3997_v24 }
 0x2eb   : > { %v1378_v42 = vpop.xlane.xlu1 %1377  ;;  %2969 = vmatprep.mubr.msk.f32.mxu1 %vm460_vm0, %v1501_v3  ;;  %v1381_v12 = vpop.xlane.xlu0 %1380  ;;  %v1471_v39 = vmul.f32 %v3224_v2, %v3855_v22  ;;  %3109 = vmatpush3.msra.mxu1 %v3997_v24  ;;  %v3352_v2 = vld [vmem:[%s3491_s29 + $0x68] sm:$0xff] }
 0x2ec   : > { %3237 = vrcp.f32 %v1378_v42  ;;  %v1502_v38 = vmul.f32 %v3344_v46, %v1470_v4  ;;  %3094 = vmatprep.subr.mxu1 %v4004_v57 }
 0x2ed   : > { %v3226_v20 = vpop.eup %3225  ;;  %3239 = vrcp.f32 %v1381_v12  ;;  %v1503_v16 = vmul.f32 %v3345_v43, %v1471_v39  ;;  %3110 = vmatpush3.msra.mxu1 %v4004_v57  ;;  %v3353_v12 = vld [vmem:[%s3491_s29 + $0x70] sm:$0xff]  ;;  %v3354_v43 = vld [vmem:[%s3491_s29 + $0x78] sm:$0xff] }
 0x2ee   : > { %v3228_v6 = vpop.eup %3227  ;;  %2970 = vmatmul.mubr.msk.f32.gmra.mxu1 %vm460_vm0, %v1502_v38  ;;  %v1472_v22 = vmul.f32 %v3226_v20, %v3863_v34  ;;  %3095 = vmatprep.subr.mxu1 %v4011_v61 }
 0x2ef   : > { %v1384_v24 = vpop.xlane.xlu1 %1383  ;;  %2972 = vmatprep.mubr.msk.f32.mxu1 %vm460_vm0, %v1503_v16  ;;  %v1387_v5 = vpop.xlane.xlu0 %1386  ;;  %v1473_v9 = vmul.f32 %v3228_v6, %v3865_v18  ;;  %3111 = vmatpush3.msra.mxu1 %v4011_v61 }
 0x2f0   : > { %3241 = vrcp.f32 %v1384_v24  ;;  %v1504_v13 = vmul.f32 %v3346_v48, %v1472_v22  ;;  %3096 = vmatprep.subr.mxu1 %v4018_v29  ;;  %v3355_v22 = vld [vmem:[%s3491_s29 + $0x80] sm:$0xff] }
 0x2f1   : > { %v3230_v57 = vpop.eup %3229  ;;  %3243 = vrcp.f32 %v1387_v5  ;;  %v1505_v34 = vmul.f32 %v3347_v41, %v1473_v9  ;;  %3112 = vmatpush3.msra.mxu1 %v4018_v29 }
 0x2f2   : > { %v3232_v45 = vpop.eup %3231  ;;  %2973 = vmatmul.mubr.msk.f32.gmra.mxu1 %vm460_vm0, %v1504_v13  ;;  %v1474_v18 = vmul.f32 %v3230_v57, %v3873_v47  ;;  %3097 = vmatprep.subr.mxu1 %v4025_v26  ;;  %v3356_v13 = vld [vmem:[%s3491_s29 + $0x88] sm:$0xff] }
 0x2f3   : > { %v1390_v61 = vpop.xlane.xlu1 %1389  ;;  %2975 = vmatprep.mubr.msk.f32.mxu1 %vm460_vm0, %v1505_v34  ;;  %v1393_v19 = vpop.xlane.xlu0 %1392  ;;  %v1475_v11 = vmul.f32 %v3232_v45, %v3875_v50  ;;  %3113 = vmatpush3.msra.mxu1 %v4025_v26  ;;  %v3357_v34 = vld [vmem:[%s3491_s29 + $0x90] sm:$0xff] }
 0x2f4   : > { %3245 = vrcp.f32 %v1390_v61  ;;  %v1506_v51 = vmul.f32 %v3348_v44, %v1474_v18 }
 0x2f5   : > { %v3234_v29 = vpop.eup %3233  ;;  %3247 = vrcp.f32 %v1393_v19  ;;  %v1507_v21 = vmul.f32 %v3349_v14, %v1475_v11  ;;  %v3358_v11 = vld [vmem:[%s3491_s29 + $0x98] sm:$0xff] }
 0x2f6   : > { %v3236_v47 = vpop.eup %3235  ;;  %2976 = vmatmul.mubr.msk.f32.gmra.mxu1 %vm460_vm0, %v1506_v51  ;;  %v1476_v33 = vmul.f32 %v3234_v29, %v3883_v60  ;;  %v3359_v29 = vld [vmem:[%s3491_s29 + $0xa0] sm:$0xff] }
 0x2f7   : > { %v1396_v15 = vpop.xlane.xlu1 %1395  ;;  %2978 = vmatprep.mubr.msk.f32.mxu1 %vm460_vm0, %v1507_v21  ;;  %v1399_v50 = vpop.xlane.xlu0 %1398  ;;  %v1477_v26 = vmul.f32 %v3236_v47, %v3885_v62 }
 0x2f8   : > { %3249 = vrcp.f32 %v1396_v15  ;;  %v1508_v59 = vmul.f32 %v3350_v35, %v1476_v33  ;;  %v3360_v15 = vld [vmem:[%s3491_s29 + $0xa8] sm:$0xff]  ;;  %v3361_v35 = vld [vmem:[%s3491_s29 + $0xb0] sm:$0xff] }
 0x2f9   : > { %v3238_v32 = vpop.eup %3237  ;;  %3251 = vrcp.f32 %v1399_v50  ;;  %v1509_v58 = vmul.f32 %v3351_v53, %v1477_v26 }
 0x2fa   : > { %v3240_v36 = vpop.eup %3239  ;;  %2979 = vmatmul.mubr.msk.f32.gmra.mxu1 %vm460_vm0, %v1508_v59  ;;  %v1478_v60 = vmul.f32 %v3238_v32, %v3893_v7 }
 0x2fb   : > { %v1402_v63 = vpop.xlane.xlu1 %1401  ;;  %2981 = vmatprep.mubr.msk.f32.mxu1 %vm460_vm0, %v1509_v58  ;;  %v1405_v3 = vpop.xlane.xlu0 %1404  ;;  %v1479_v62 = vmul.f32 %v3240_v36, %v3895_v8  ;;  %v3362_v58 = vld [vmem:[%s3491_s29 + $0xb8] sm:$0xff] }
 0x2fc   : > { %3253 = vrcp.f32 %v1402_v63  ;;  %v1510_v4 = vmul.f32 %v3352_v2, %v1478_v60  ;;  %v3363_v63 = vld [vmem:[%s3491_s29 + $0xc0] sm:$0xff] }
 0x2fd   : > { %v3242_v42 = vpop.eup %3241  ;;  %3255 = vrcp.f32 %v1405_v3  ;;  %v1511_v39 = vmul.f32 %v3353_v12, %v1479_v62  ;;  %v3365_v12 = vld [vmem:[%s3491_s29 + $0xd0] sm:$0xff] }
 0x2fe   : > { %v3244_v46 = vpop.eup %3243  ;;  %2982 = vmatmul.mubr.msk.f32.gmra.mxu1 %vm460_vm0, %v1510_v4  ;;  %v1480_v7 = vmul.f32 %v3242_v42, %v3903_v23  ;;  %v3364_v4 = vld [vmem:[%s3491_s29 + $0xc8] sm:$0xff] }
 0x2ff   : > { %v1408_v38 = vpop.xlane.xlu1 %1407  ;;  %2984 = vmatprep.mubr.msk.f32.mxu1 %vm460_vm0, %v1511_v39  ;;  %v1411_v20 = vpop.xlane.xlu0 %1410  ;;  %v1481_v8 = vmul.f32 %v3244_v46, %v3905_v25 }
 0x300   : > { %3257 = vrcp.f32 %v1408_v38  ;;  %v1512_v16 = vmul.f32 %v3354_v43, %v1480_v7  ;;  %v3366_v38 = vld [vmem:[%s3491_s29 + $0xd8] sm:$0xff] }
 0x301   : > { %v3246_v6 = vpop.eup %3245  ;;  %3259 = vrcp.f32 %v1411_v20  ;;  %v1513_v24 = vmul.f32 %v3355_v22, %v1481_v8  ;;  %v3368_v22 = vld [vmem:[%s3491_s29 + $0xe8] sm:$0xff] }
 0x302   : > { %v3248_v5 = vpop.eup %3247  ;;  %2985 = vmatmul.mubr.msk.f32.gmra.mxu1 %vm460_vm0, %v1512_v16  ;;  %v1482_v23 = vmul.f32 %v3246_v6, %v3916_v37 }
 0x303   : > { %v1414_v9 = vpop.xlane.xlu1 %1413  ;;  %2987 = vmatprep.mubr.msk.f32.mxu1 %vm460_vm0, %v1513_v24  ;;  %v1417_v48 = vpop.xlane.xlu0 %1416  ;;  %v1483_v25 = vmul.f32 %v3248_v5, %v3918_v40 }
 0x304   : > { %3261 = vrcp.f32 %v1414_v9  ;;  %v1514_v57 = vmul.f32 %v3356_v13, %v1482_v23  ;;  %v3369_v23 = vld [vmem:[%s3491_s29 + $0xf0] sm:$0xff]  ;;  %v2156_v13 = vld [vmem:[%s4611_s7 + $0x28] sm:$0xff] }
 0x305   : > { %v3250_v41 = vpop.eup %3249  ;;  %3263 = vrcp.f32 %v1417_v48  ;;  %v1515_v45 = vmul.f32 %v3357_v34, %v1483_v25  ;;  %v3370_v48 = vld [vmem:[%s3491_s29 + $0xf8] sm:$0xff]  ;;  %v2153_v34 = vld [vmem:[%s4611_s7 + $0x10] sm:$0xff] }
 0x306   : > { %v3252_v18 = vpop.eup %3251  ;;  %2988 = vmatmul.mubr.msk.f32.gmra.mxu1 %vm460_vm0, %v1514_v57  ;;  %v1484_v37 = vmul.f32 %v3250_v41, %v3926_v52  ;;  %v2155_v57 = vld [vmem:[%s4611_s7 + $0x20] sm:$0xff]  ;;  %v2154_v41 = vld [vmem:[%s4611_s7 + $0x18] sm:$0xff] }
 0x307   : > { %v1420_v61 = vpop.xlane.xlu1 %1419  ;;  %2990 = vmatprep.mubr.msk.f32.mxu1 %vm460_vm0, %v1515_v45  ;;  %v1423_v19 = vpop.xlane.xlu0 %1422  ;;  %v1485_v40 = vmul.f32 %v3252_v18, %v3928_v30  ;;  %v2152_v45 = vld [vmem:[%s4611_s7 + $0x8] sm:$0xff]  ;;  %v2151_v18 = vld [vmem:[%s4611_s7] sm:$0xff] }
 0x308   : > { %3265 = vrcp.f32 %v1420_v61  ;;  %v1516_v44 = vmul.f32 %v3358_v11, %v1484_v37  ;;  %v4170_v37 = vld [vmem:[%s4610_s6] ss:$0 sm:$0xff] }
 0x309   : > { %v3254_v51 = vpop.eup %3253  ;;  %3267 = vrcp.f32 %v1423_v19  ;;  %v1517_v14 = vmul.f32 %v3359_v29, %v1485_v40 }
 0x30a   : > { %v3256_v21 = vpop.eup %3255  ;;  %2991 = vmatmul.mubr.msk.f32.gmra.mxu1 %vm460_vm0, %v1516_v44  ;;  %v1486_v52 = vmul.f32 %v3254_v51, %v3936_v0 }
 0x30b   : > { %v1426_v47 = vpop.xlane.xlu1 %1425  ;;  %2993 = vmatprep.mubr.msk.f32.mxu1 %vm460_vm0, %v1517_v14  ;;  %v1429_v33 = vpop.xlane.xlu0 %1428  ;;  %v1487_v30 = vmul.f32 %v3256_v21, %v3938_v1 }
 0x30c   : > { %3269 = vrcp.f32 %v1426_v47  ;;  %v1518_v50 = vmul.f32 %v3360_v15, %v1486_v52 }
 0x30d   : > { %v3258_v26 = vpop.eup %3257  ;;  %3271 = vrcp.f32 %v1429_v33  ;;  %v1519_v59 = vmul.f32 %v3361_v35, %v1487_v30 }
 0x30e   : > { %v3260_v32 = vpop.eup %3259  ;;  %2994 = vmatmul.mubr.msk.f32.gmra.mxu1 %vm460_vm0, %v1518_v50  ;;  %v1488_v0 = vmul.f32 %v3258_v26, %v3945_v54 }
 0x30f   : > { %v1432_v53 = vpop.xlane.xlu1 %1431  ;;  %2996 = vmatprep.mubr.msk.f32.mxu1 %vm460_vm0, %v1519_v59  ;;  %v1489_v1 = vmul.f32 %v3260_v32, %v3947_v10 }
 0x310   : > { %3273 = vrcp.f32 %v1432_v53  ;;  %v1520_v36 = vmul.f32 %v3362_v58, %v1488_v0 }
 0x311   : > { %v3262_v60 = vpop.eup %3261  ;;  %v1521_v3 = vmul.f32 %v3363_v63, %v1489_v1 }
 0x312   : > { %v3264_v62 = vpop.eup %3263  ;;  %2997 = vmatmul.mubr.msk.f32.gmra.mxu1 %vm460_vm0, %v1520_v36  ;;  %v1490_v2 = vmul.f32 %v3262_v60, %v3953_v49 }
 0x313   : > { %2999 = vmatprep.mubr.msk.f32.mxu1 %vm460_vm0, %v1521_v3  ;;  %v1491_v54 = vmul.f32 %v3264_v62, %v3955_v56  ;;  %v3367_v56 = vld [vmem:[%s3491_s29 + $0xe0] sm:$0xff]  ;;  %s404_s29 = scalar_lea.vmem %s4613_s9, %s4620_s15 }
 0x314   : > { %v1522_v42 = vmul.f32 %v3364_v4, %v1490_v2 }
 0x315   : > { %v3266_v10 = vpop.eup %3265  ;;  %v1523_v39 = vmul.f32 %v3365_v12, %v1491_v54 }
 0x316   : > { %v3268_v46 = vpop.eup %3267  ;;  %3000 = vmatmul.mubr.msk.f32.gmra.mxu1 %vm460_vm0, %v1522_v42  ;;  %v1492_v7 = vmul.f32 %v3266_v10, %v3961_v17 }
 0x317   : > { %3002 = vmatprep.mubr.msk.f32.mxu1 %vm460_vm0, %v1523_v39  ;;  %v1493_v49 = vmul.f32 %v3268_v46, %v3963_v28 }
 0x318   : > { %v1524_v20 = vmul.f32 %v3366_v38, %v1492_v7 }
 0x319   : > { %v3270_v8 = vpop.eup %3269  ;;  %v1525_v43 = vmul.f32 %v3367_v56, %v1493_v49 }
 0x31a   : > { %v3272_v16 = vpop.eup %3271  ;;  %3003 = vmatmul.mubr.msk.f32.gmra.mxu1 %vm460_vm0, %v1524_v20  ;;  %v1494_v6 = vmul.f32 %v3270_v8, %v3969_v55  ;;  %v2159_v55 = vld [vmem:[%s4611_s7 + $0x40] sm:$0xff] }
 0x31b   : > { %3005 = vmatprep.mubr.msk.f32.mxu1 %vm460_vm0, %v1525_v43  ;;  %v1495_v17 = vmul.f32 %v3272_v16, %v3971_v31  ;;  %v2158_v31 = vld [vmem:[%s4611_s7 + $0x38] sm:$0xff]  ;;  %3025 = vmatprep.subr.mxu0 %v2159_v55 }
 0x31c   : > { %v1526_v24 = vmul.f32 %v3368_v22, %v1494_v6  ;;  %3098 = vmatprep.subr.mxu1 %v2159_v55  ;;  %3026 = vmatpush3.msra.mxu0 %v2159_v55 }
 0x31d   : > { %v3274_v5 = vpop.eup %3273  ;;  %v1527_v28 = vmul.f32 %v3369_v23, %v1495_v17  ;;  %3114 = vmatpush3.msra.mxu1 %v2159_v55  ;;  %3027 = vmatprep.subr.mxu0 %v2158_v31 }
 0x31e   : > { %3006 = vmatmul.mubr.msk.f32.gmra.mxu1 %vm460_vm0, %v1526_v24  ;;  %v1496_v9 = vmul.f32 %v3274_v5, %v3977_v27  ;;  %v2157_v27 = vld [vmem:[%s4611_s7 + $0x30] sm:$0xff]  ;;  %3099 = vmatprep.subr.mxu1 %v2158_v31 }
 0x31f   : > { %3008 = vmatprep.mubr.msk.f32.mxu1 %vm460_vm0, %v1527_v28  ;;  %3028 = vmatpush3.msra.mxu0 %v2158_v31 }
 0x320   : > { %v1528_v25 = vmul.f32 %v3370_v48, %v1496_v9  ;;  %3115 = vmatpush3.msra.mxu1 %v2158_v31  ;;  %3029 = vmatprep.subr.mxu0 %v2157_v27 }
 0x321   : > { %3100 = vmatprep.subr.mxu1 %v2157_v27  ;;  %3030 = vmatpush3.msra.mxu0 %v2157_v27 }
 0x322   : > { %3009 = vmatmul.mubr.msk.f32.gmra.mxu1 %vm460_vm0, %v1528_v25  ;;  %3031 = vmatprep.subr.mxu0 %v2156_v13 }
 0x323   : > { %3116 = vmatpush3.msra.mxu1 %v2157_v27  ;;  %3032 = vmatpush3.msra.mxu0 %v2156_v13 }
 0x324   : > { %3101 = vmatprep.subr.mxu1 %v2156_v13  ;;  %3033 = vmatprep.subr.mxu0 %v2155_v57 }
 0x325   : > { %3117 = vmatpush3.msra.mxu1 %v2156_v13  ;;  %3034 = vmatpush3.msra.mxu0 %v2155_v57 }
 0x326   : > { %3102 = vmatprep.subr.mxu1 %v2155_v57  ;;  %3035 = vmatprep.subr.mxu0 %v2154_v41 }
 0x327   : > { %3118 = vmatpush3.msra.mxu1 %v2155_v57  ;;  %3036 = vmatpush3.msra.mxu0 %v2154_v41 }
 0x328   : > { %3103 = vmatprep.subr.mxu1 %v2154_v41  ;;  %3037 = vmatprep.subr.mxu0 %v2153_v34 }
 0x329   : > { %3119 = vmatpush3.msra.mxu1 %v2154_v41  ;;  %3038 = vmatpush3.msra.mxu0 %v2153_v34 }
 0x32a   : > { %3104 = vmatprep.subr.mxu1 %v2153_v34  ;;  %3039 = vmatprep.subr.mxu0 %v2152_v45 }
 0x32b   : > { %3120 = vmatpush3.msra.mxu1 %v2153_v34  ;;  %3040 = vmatpush3.msra.mxu0 %v2152_v45 }
 0x32c   : > { %3105 = vmatprep.subr.mxu1 %v2152_v45  ;;  %3041 = vmatprep.subr.mxu0 %v2151_v18 }
 0x32d   : > { %3121 = vmatpush3.msra.mxu1 %v2152_v45  ;;  %3042 = vmatpush3.msra.mxu0 %v2151_v18 }
 0x32e   : > { %3106 = vmatprep.subr.mxu1 %v2151_v18 }
 0x32f   : > { %3122 = vmatpush3.msra.mxu1 %v2151_v18 }
 0x3a6   : > { %v2965_v61 = vpop.f32.mrf.mxu1 }
 0x3a7   : > { %v4173_v19 = vadd.f32 %v2965_v61, %v4170_v37 }
 0x3a8   : > { %v1704_v40 = vpop.f32.mrf.mxu1 }
 0x3a9   : > { %v1896_v11 = vmul.f32 0.044715, %v4173_v19  ;;  %v4177_v44 = vadd.f32 %v4170_v37, %v1704_v40 }
 0x3aa   : > { %v2968_v51 = vpop.f32.mrf.mxu1 }
 0x3ab   : > { %v1928_v29 = vmul.f32 %v1896_v11, %v4173_v19  ;;  %v1895_v14 = vmul.f32 0.044715, %v4177_v44  ;;  %v4182_v21 = vadd.f32 %v2968_v51, %v4170_v37 }
 0x3ac   : > { %v1714_v52 = vpop.f32.mrf.mxu1 }
 0x3ad   : > { %v1960_v47 = vmul.f32 %v1928_v29, %v4173_v19  ;;  %v1927_v33 = vmul.f32 %v1895_v14, %v4177_v44  ;;  %v1898_v30 = vmul.f32 0.044715, %v4182_v21  ;;  %v4188_v15 = vadd.f32 %v4170_v37, %v1714_v52 }
 0x3ae   : > { %v2971_v50 = vpop.f32.mrf.mxu1 }
 0x3af   : > { %v1992_v26 = vadd.f32 %v1960_v47, %v4173_v19  ;;  %v1930_v35 = vmul.f32 %v1898_v30, %v4182_v21  ;;  %v1897_v59 = vmul.f32 0.044715, %v4188_v15  ;;  %v4194_v32 = vadd.f32 %v2971_v50, %v4170_v37 }
 0x3b0   : > { %v1724_v0 = vpop.f32.mrf.mxu1  ;;  %v1959_v53 = vmul.f32 %v1927_v33, %v4177_v44 }
 0x3b1   : > { %v2024_v1 = vmul.f32 0.7978846, %v1992_v26  ;;  %v1929_v58 = vmul.f32 %v1897_v59, %v4188_v15  ;;  %v1900_v36 = vmul.f32 0.044715, %v4194_v32  ;;  %v4200_v60 = vadd.f32 %v4170_v37, %v1724_v0 }
 0x3b2   : > { %v2974_v63 = vpop.f32.mrf.mxu1  ;;  %v1991_v3 = vadd.f32 %v1959_v53, %v4177_v44  ;;  %v1962_v62 = vmul.f32 %v1930_v35, %v4182_v21  ;;  %v1864_v35 = vmul.f32 0.5, %v4173_v19 }
 0x3b3   : > { %3275 = vtanh.f32 %v2024_v1  ;;  %v1932_v2 = vmul.f32 %v1900_v36, %v4194_v32  ;;  %v1899_v54 = vmul.f32 0.044715, %v4200_v60  ;;  %v4207_v4 = vadd.f32 %v2974_v63, %v4170_v37 }
 0x3b4   : > { %v1734_v42 = vpop.f32.mrf.mxu1  ;;  %v2023_v10 = vmul.f32 0.7978846, %v1991_v3  ;;  %v1961_v12 = vmul.f32 %v1929_v58, %v4188_v15  ;;  %v1994_v39 = vadd.f32 %v1962_v62, %v4182_v21  ;;  %v1863_v36 = vmul.f32 0.5, %v4177_v44 }
 0x3b5   : > { %v1931_v46 = vmul.f32 %v1899_v54, %v4200_v60  ;;  %v1902_v7 = vmul.f32 0.044715, %v4207_v4  ;;  %v4214_v49 = vadd.f32 %v4170_v37, %v1734_v42  ;;  %v1964_v38 = vmul.f32 %v1932_v2, %v4194_v32 }
 0x3b6   : > { %v2977_v20 = vpop.f32.mrf.mxu1  ;;  %3277 = vtanh.f32 %v2023_v10  ;;  %v1993_v8 = vadd.f32 %v1961_v12, %v4188_v15  ;;  %v2026_v56 = vmul.f32 0.7978846, %v1994_v39  ;;  %v1866_v63 = vmul.f32 0.5, %v4182_v21 }
 0x3b7   : > { %v1934_v43 = vmul.f32 %v1902_v7, %v4207_v4  ;;  %v1901_v16 = vmul.f32 0.044715, %v4214_v49  ;;  %v4221_v6 = vadd.f32 %v2977_v20, %v4170_v37  ;;  %v1963_v17 = vmul.f32 %v1931_v46, %v4200_v60 }
 0x3b8   : > { %v1744_v22 = vpop.f32.mrf.mxu1  ;;  %v2025_v24 = vmul.f32 0.7978846, %v1993_v8  ;;  %3279 = vtanh.f32 %v2026_v56  ;;  %v1996_v5 = vadd.f32 %v1964_v38, %v4194_v32  ;;  %v1865_v39 = vmul.f32 0.5, %v4188_v15 }
 0x3b9   : > { %v1933_v23 = vmul.f32 %v1901_v16, %v4214_v49  ;;  %v1904_v28 = vmul.f32 0.044715, %v4221_v6  ;;  %v4228_v9 = vadd.f32 %v4170_v37, %v1744_v22  ;;  %v1995_v48 = vadd.f32 %v1963_v17, %v4200_v60 }
 0x3ba   : > { %v2980_v25 = vpop.f32.mrf.mxu1  ;;  %3281 = vtanh.f32 %v2025_v24  ;;  %v2028_v55 = vmul.f32 0.7978846, %v1996_v5  ;;  %v1966_v31 = vmul.f32 %v1934_v43, %v4207_v4  ;;  %v1868_v56 = vmul.f32 0.5, %v4194_v32 }
 0x3bb   : > { %v1936_v27 = vmul.f32 %v1904_v28, %v4221_v6  ;;  %v1903_v13 = vmul.f32 0.044715, %v4228_v9  ;;  %v4235_v57 = vadd.f32 %v2980_v25, %v4170_v37  ;;  %v2027_v41 = vmul.f32 0.7978846, %v1995_v48 }
 0x3bc   : > { %v1754_v34 = vpop.f32.mrf.mxu1  ;;  %3283 = vtanh.f32 %v2028_v55  ;;  %v1965_v45 = vmul.f32 %v1933_v23, %v4214_v49  ;;  %v1998_v18 = vadd.f32 %v1966_v31, %v4207_v4  ;;  %v1867_v31 = vmul.f32 0.5, %v4200_v60 }
 0x3bd   : > { %v1935_v61 = vmul.f32 %v1903_v13, %v4228_v9  ;;  %v1906_v40 = vmul.f32 0.044715, %v4235_v57  ;;  %v4242_v11 = vadd.f32 %v4170_v37, %v1754_v34  ;;  %3285 = vtanh.f32 %v2027_v41 }
 0x3be   : > { %v2983_v51 = vpop.f32.mrf.mxu1  ;;  %v1997_v29 = vadd.f32 %v1965_v45, %v4214_v49  ;;  %v2030_v14 = vmul.f32 0.7978846, %v1998_v18  ;;  %v1968_v52 = vmul.f32 %v1936_v27, %v4221_v6  ;;  %v1869_v34 = vmul.f32 0.5, %v4214_v49 }
 0x3bf   : > { %v1938_v47 = vmul.f32 %v1906_v40, %v4235_v57  ;;  %v1905_v33 = vmul.f32 0.044715, %v4242_v11  ;;  %v4249_v30 = vadd.f32 %v2983_v51, %v4170_v37  ;;  %v1967_v50 = vmul.f32 %v1935_v61, %v4228_v9 }
 0x3c0   : > { %v3276_v26 = vpop.eup %3275  ;;  %v1764_v59 = vpop.f32.mrf.mxu1  ;;  %v2029_v0 = vmul.f32 0.7978846, %v1997_v29  ;;  %3287 = vtanh.f32 %v2030_v14  ;;  %v2000_v53 = vadd.f32 %v1968_v52, %v4221_v6  ;;  %v1870_v45 = vmul.f32 0.5, %v4207_v4 }
 0x3c1   : > { %v1937_v1 = vmul.f32 %v1905_v33, %v4242_v11  ;;  %v4256_v58 = vadd.f32 %v4170_v37, %v1764_v59  ;;  %v1999_v62 = vadd.f32 %v1967_v50, %v4228_v9  ;;  %v1970_v19 = vmul.f32 %v1938_v47, %v4235_v57 }
 0x3c2   : > { %v2986_v3 = vpop.f32.mrf.mxu1  ;;  %3289 = vtanh.f32 %v2029_v0  ;;  %v2032_v2 = vmul.f32 0.7978846, %v2000_v53  ;;  %v1908_v42 = vmul.f32 0.044715, %v4249_v30  ;;  %v2088_v12 = vadd.f32 1.0, %v3276_v26 }
 0x3c3   : > { %v3278_v54 = vpop.eup %3277  ;;  %v1907_v10 = vmul.f32 0.044715, %v4256_v58  ;;  %v2031_v44 = vmul.f32 0.7978846, %v1999_v62  ;;  %v1969_v21 = vmul.f32 %v1937_v1, %v4242_v11  ;;  %v4267_v20 = vadd.f32 %v2986_v3, %v4170_v37 }
 0x3c4   : > { %v1774_v46 = vpop.f32.mrf.mxu1  ;;  %v2087_v7 = vadd.f32 1.0, %v3278_v54  ;;  %3291 = vtanh.f32 %v2032_v2  ;;  %v2002_v43 = vadd.f32 %v1970_v19, %v4235_v57  ;;  %v2120_v23 = vmul.f32 %v2088_v12, %v1864_v35 }
 0x3c5   : > { %v3280_v38 = vpop.eup %3279  ;;  %v4270_v8 = vadd.f32 %v4170_v37, %v1774_v46  ;;  %v1939_v16 = vmul.f32 %v1907_v10, %v4256_v58  ;;  %3293 = vtanh.f32 %v2031_v44  ;;  %v2001_v22 = vadd.f32 %v1969_v21, %v4242_v11 }
 0x3c6   : > { %v2989_v15 = vpop.f32.mrf.mxu1  ;;  %v2119_v17 = vmul.f32 %v2087_v7, %v1863_v36  ;;  %v2090_v28 = vadd.f32 1.0, %v3280_v38  ;;  %v2034_v48 = vmul.f32 0.7978846, %v2002_v43  ;;  %v1940_v25 = vmul.f32 %v1908_v42, %v4249_v30 }
 0x3c7   : > { %v3282_v24 = vpop.eup %3281  ;;  %v1909_v5 = vmul.f32 0.044715, %v4270_v8  ;;  %v2033_v27 = vmul.f32 0.7978846, %v2001_v22  ;;  %v1910_v41 = vmul.f32 0.044715, %v4267_v20  ;;  %v1971_v29 = vmul.f32 %v1939_v16, %v4256_v58 }
 0x3c8   : > { %3043 = vmatprep.mubr.f32.mxu0 %v2119_v17  ;;  %v1784_v55 = vpop.f32.mrf.mxu1  ;;  %v2089_v32 = vadd.f32 1.0, %v3282_v24  ;;  %3295 = vtanh.f32 %v2034_v48  ;;  %v2122_v14 = vmul.f32 %v2090_v28, %v1866_v63  ;;  %v4288_v33 = vadd.f32 %v2989_v15, %v4170_v37 }
 0x3c9   : > { %v3284_v13 = vpop.eup %3283  ;;  %3044 = vmatmul.mubr.f32.vlgmr.msra.gmra.mxu0 %v2120_v23  ;;  %v4283_v61 = vadd.f32 %v4170_v37, %v1784_v55  ;;  %3297 = vtanh.f32 %v2033_v27  ;;  %v1941_v60 = vmul.f32 %v1909_v5, %v4270_v8  ;;  %v1872_v49 = vmul.f32 0.5, %v4221_v6 }
 0x3ca   : > { %v3286_v18 = vpop.eup %3285  ;;  %v2992_v40 = vpop.f32.mrf.mxu1  ;;  %v2121_v51 = vmul.f32 %v2089_v32, %v1865_v39  ;;  %v2092_v47 = vadd.f32 1.0, %v3284_v13  ;;  %v2003_v50 = vadd.f32 %v1971_v29, %v4256_v58  ;;  %v1972_v26 = vmul.f32 %v1940_v25, %v4249_v30 }
 0x3cb   : > { %v2091_v52 = vadd.f32 1.0, %v3286_v18  ;;  %v1871_v53 = vmul.f32 0.5, %v4228_v9  ;;  %v4298_v1 = vmul.f32 0.5, %v4235_v57  ;;  %v1911_v36 = vmul.f32 0.044715, %v4283_v61 }
 0x3cc   : > { %3046 = vmatprep.mubr.f32.mxu0 %v2121_v51  ;;  %v1794_v4 = vpop.f32.mrf.mxu1  ;;  %v4302_v6 = vmul.f32 0.5, %v4242_v11  ;;  %v2035_v3 = vmul.f32 0.7978846, %v2003_v50  ;;  %v2004_v62 = vadd.f32 %v1972_v26, %v4249_v30  ;;  %v1942_v19 = vmul.f32 %v1910_v41, %v4267_v20 }
 0x3cd   : > { %v3288_v35 = vpop.eup %3287  ;;  %v4294_v59 = vadd.f32 %v4170_v37, %v1794_v4  ;;  %3047 = vmatmul.mubr.f32.gmra.mxu0 %v2122_v14  ;;  %v2123_v0 = vmul.f32 %v2091_v52, %v1867_v31  ;;  %v2124_v54 = vmul.f32 %v2092_v47, %v1868_v56  ;;  %v1973_v9 = vmul.f32 %v1941_v60, %v4270_v8 }
 0x3ce   : > { %v2995_v63 = vpop.f32.mrf.mxu1  ;;  %v2094_v42 = vadd.f32 1.0, %v3288_v35  ;;  %v1912_v57 = vmul.f32 0.044715, %v4288_v33  ;;  %3299 = vtanh.f32 %v2035_v3  ;;  %v2036_v39 = vmul.f32 0.7978846, %v2004_v62 }
 0x3cf   : > { %v3290_v2 = vpop.eup %3289  ;;  %3049 = vmatprep.mubr.f32.mxu0 %v2123_v0  ;;  %v4309_v11 = vadd.f32 %v2992_v40, %v4170_v37  ;;  %v1913_v7 = vmul.f32 0.044715, %v4294_v59  ;;  %v4313_v44 = vmul.f32 0.5, %v4256_v58  ;;  %v2005_v21 = vadd.f32 %v1973_v9, %v4270_v8 }
 0x3d0   : > { %v1804_v10 = vpop.f32.mrf.mxu1  ;;  %v2093_v12 = vadd.f32 1.0, %v3290_v2  ;;  %v1943_v38 = vmul.f32 %v1911_v36, %v4283_v61  ;;  %v4318_v56 = vadd.f32 %v2995_v63, %v4170_v37  ;;  %3301 = vtanh.f32 %v2036_v39 }
 0x3d1   : > { %v3292_v46 = vpop.eup %3291  ;;  %3050 = vmatmul.mubr.f32.gmra.mxu0 %v2124_v54  ;;  %v4321_v17 = vadd.f32 %v4170_v37, %v1804_v10  ;;  %v2126_v22 = vmul.f32 %v2094_v42, %v1870_v45  ;;  %v2037_v5 = vmul.f32 0.7978846, %v2005_v21  ;;  %v1944_v58 = vmul.f32 %v1912_v57, %v4288_v33 }
 0x3d2   : > { %v2998_v43 = vpop.f32.mrf.mxu1  ;;  %v2125_v16 = vmul.f32 %v2093_v12, %v1869_v34  ;;  %v3294_v15 = vpop.eup %3293  ;;  %v2096_v24 = vadd.f32 1.0, %v3292_v46  ;;  %v4325_v48 = vmul.f32 0.5, %v4249_v30  ;;  %v1974_v25 = vmul.f32 %v1942_v19, %v4267_v20 }
 0x3d3   : > { %v2095_v28 = vadd.f32 1.0, %v3294_v15  ;;  %v1914_v55 = vmul.f32 0.044715, %v4309_v11  ;;  %v1945_v32 = vmul.f32 %v1913_v7, %v4294_v59  ;;  %v4331_v31 = vmul.f32 0.5, %v4270_v8 }
 0x3d4   : > { %3052 = vmatprep.mubr.f32.mxu0 %v2125_v16  ;;  %v1814_v23 = vpop.f32.mrf.mxu1  ;;  %3303 = vtanh.f32 %v2037_v5  ;;  %v1916_v13 = vmul.f32 0.044715, %v4318_v56  ;;  %v2006_v45 = vadd.f32 %v1974_v25, %v4267_v20  ;;  %v1975_v30 = vmul.f32 %v1943_v38, %v4283_v61 }
 0x3d5   : > { %3053 = vmatmul.mubr.f32.gmra.mxu0 %v2126_v22  ;;  %v3296_v27 = vpop.eup %3295  ;;  %v2127_v34 = vmul.f32 %v2095_v28, %v1871_v53  ;;  %v1915_v40 = vmul.f32 0.044715, %v4321_v17  ;;  %v4338_v51 = vadd.f32 %v2998_v43, %v4170_v37  ;;  %v2128_v29 = vmul.f32 %v2096_v24, %v1872_v49 }
 0x3d6   : > { %v3001_v41 = vpop.f32.mrf.mxu1  ;;  %v3298_v18 = vpop.eup %3297  ;;  %v2098_v60 = vadd.f32 1.0, %v3296_v27  ;;  %v2038_v52 = vmul.f32 0.7978846, %v2006_v45  ;;  %v2007_v47 = vadd.f32 %v1975_v30, %v4283_v61  ;;  %v1976_v4 = vmul.f32 %v1944_v58, %v4288_v33 }
 0x3d7   : > { %3055 = vmatprep.mubr.f32.mxu0 %v2127_v34  ;;  %v2097_v14 = vadd.f32 1.0, %v3298_v18  ;;  %v1946_v50 = vmul.f32 %v1914_v55, %v4309_v11  ;;  %v4344_v26 = vadd.f32 %v4170_v37, %v1814_v23  ;;  %v4347_v35 = vadd.f32 %v3001_v41, %v4170_v37 }
 0x3d8   : > { %v1824_v8 = vpop.f32.mrf.mxu1  ;;  %v4350_v49 = vmul.f32 0.5, %v4267_v20  ;;  %3305 = vtanh.f32 %v2038_v52  ;;  %v2039_v36 = vmul.f32 0.7978846, %v2007_v47  ;;  %v2008_v63 = vadd.f32 %v1976_v4, %v4288_v33 }
 0x3d9   : > { %3056 = vmatmul.mubr.f32.gmra.mxu0 %v2128_v29  ;;  %v2129_v53 = vmul.f32 %v2097_v14, %v4302_v6  ;;  %v1948_v3 = vmul.f32 %v1916_v13, %v4318_v56  ;;  %v1918_v62 = vmul.f32 0.044715, %v4338_v51  ;;  %v2130_v2 = vmul.f32 %v2098_v60, %v4298_v1 }
 0x3da   : > { %v3004_v0 = vpop.f32.mrf.mxu1  ;;  %v4358_v19 = vmul.f32 0.5, %v4283_v61  ;;  %v1947_v54 = vmul.f32 %v1915_v40, %v4321_v17  ;;  %3307 = vtanh.f32 %v2039_v36  ;;  %v2040_v42 = vmul.f32 0.7978846, %v2008_v63 }
 0x3db   : > { %3058 = vmatprep.mubr.f32.mxu0 %v2129_v53  ;;  %v1977_v6 = vmul.f32 %v1945_v32, %v4294_v59  ;;  %v3300_v9 = vpop.eup %3299  ;;  %v1917_v57 = vmul.f32 0.044715, %v4344_v26  ;;  %v4364_v10 = vadd.f32 %v4170_v37, %v1824_v8  ;;  %v4367_v1 = vmul.f32 0.5, %v4288_v33 }
 0x3dc   : > { %v1834_v20 = vpop.f32.mrf.mxu1  ;;  %v1978_v61 = vmul.f32 %v1946_v50, %v4309_v11  ;;  %v1920_v12 = vmul.f32 0.044715, %v4347_v35  ;;  %v2099_v46 = vadd.f32 1.0, %v3300_v9  ;;  %3309 = vtanh.f32 %v2040_v42 }
 0x3dd   : > { %3059 = vmatmul.mubr.f32.gmra.mxu0 %v2130_v2  ;;  %v2009_v7 = vadd.f32 %v1977_v6, %v4294_v59  ;;  %v3302_v21 = vpop.eup %3301  ;;  %v1950_v38 = vmul.f32 %v1918_v62, %v4338_v51  ;;  %v4374_v43 = vadd.f32 %v3004_v0, %v4170_v37  ;;  %v4377_v16 = vadd.f32 %v4170_v37, %v1834_v20 }
 0x3de   : > { %v3007_v39 = vpop.f32.mrf.mxu1  ;;  %v2010_v33 = vadd.f32 %v1978_v61, %v4309_v11  ;;  %v2131_v15 = vmul.f32 %v2099_v46, %v4313_v44  ;;  %v2100_v24 = vadd.f32 1.0, %v3302_v21  ;;  %v1979_v58 = vmul.f32 %v1947_v54, %v4321_v17 }
 0x3df   : > { %v2041_v5 = vmul.f32 0.7978846, %v2009_v7  ;;  %v1949_v23 = vmul.f32 %v1917_v57, %v4344_v26  ;;  %v1919_v28 = vmul.f32 0.044715, %v4364_v10  ;;  %v4385_v25 = vadd.f32 %v3007_v39, %v4170_v37 }
 0x3e0   : > { %v1844_v22 = vpop.f32.mrf.mxu1  ;;  %v2042_v55 = vmul.f32 0.7978846, %v2010_v33  ;;  %v1952_v27 = vmul.f32 %v1920_v12, %v4347_v35  ;;  %3061 = vmatprep.mubr.f32.mxu0 %v2131_v15  ;;  %v2132_v13 = vmul.f32 %v2100_v24, %v4325_v48  ;;  %v2011_v41 = vadd.f32 %v1979_v58, %v4321_v17 }
 0x3e1   : > { %v3304_v32 = vpop.eup %3303  ;;  %3311 = vtanh.f32 %v2041_v5  ;;  %v1922_v34 = vmul.f32 0.044715, %v4374_v43  ;;  %v1921_v45 = vmul.f32 0.044715, %v4377_v16  ;;  %v4396_v40 = vadd.f32 %v4170_v37, %v1844_v22 }
 0x3e2   : > { %v3010_v44 = vpop.f32.mrf.mxu1  ;;  %v2101_v18 = vadd.f32 1.0, %v3304_v32  ;;  %3062 = vmatmul.mubr.f32.gmra.mxu0 %v2132_v13  ;;  %3313 = vtanh.f32 %v2042_v55  ;;  %v2043_v60 = vmul.f32 0.7978846, %v2011_v41  ;;  %v1980_v48 = vmul.f32 %v1948_v3, %v4318_v56 }
 0x3e3   : > { %v4393_v30 = vadd.f32 %v3010_v44, %v4170_v37  ;;  %v1951_v8 = vmul.f32 %v1919_v28, %v4364_v10  ;;  %v1924_v14 = vmul.f32 0.044715, %v4385_v25  ;;  %v1981_v0 = vmul.f32 %v1949_v23, %v4344_v26 }
 0x3e4   : > { %v1854_v29 = vpop.f32.mrf.mxu1  ;;  %v2133_v47 = vmul.f32 %v2101_v18, %v4331_v31  ;;  %3315 = vtanh.f32 %v2043_v60  ;;  %v2012_v50 = vadd.f32 %v1980_v48, %v4318_v56  ;;  %v1954_v36 = vmul.f32 %v1922_v34, %v4374_v43 }
 0x3e5   : > { %v1926_v52 = vmul.f32 0.044715, %v4393_v30  ;;  %v4404_v4 = vadd.f32 %v4170_v37, %v1854_v29  ;;  %v3306_v53 = vpop.eup %3305  ;;  %v1953_v63 = vmul.f32 %v1921_v45, %v4377_v16  ;;  %v1982_v62 = vmul.f32 %v1950_v38, %v4338_v51 }
 0x3e6   : > { %3064 = vmatprep.mubr.f32.mxu0 %v2133_v47  ;;  %v1923_v31 = vmul.f32 0.044715, %v4396_v40  ;;  %v2102_v2 = vadd.f32 1.0, %v3306_v53  ;;  %v2044_v37 = vmul.f32 0.7978846, %v2012_v50  ;;  %v2013_v54 = vadd.f32 %v1981_v0, %v4344_v26 }
 0x3e7   : > { %v1958_v3 = vmul.f32 %v1926_v52, %v4393_v30  ;;  %v3308_v20 = vpop.eup %3307  ;;  %v1956_v42 = vmul.f32 %v1924_v14, %v4385_v25  ;;  %v2014_v9 = vadd.f32 %v1982_v62, %v4338_v51  ;;  %v1983_v57 = vmul.f32 %v1951_v8, %v4364_v10 }
 0x3e8   : > { %v1925_v61 = vmul.f32 0.044715, %v4404_v4  ;;  %v2134_v12 = vmul.f32 %v2102_v2, %v4350_v49  ;;  %v2103_v39 = vadd.f32 1.0, %v3308_v20  ;;  %3317 = vtanh.f32 %v2044_v37 }
 0x3e9   : > { %v1990_v6 = vmul.f32 %v1958_v3, %v4393_v30  ;;  %v3310_v46 = vpop.eup %3309  ;;  %v2045_v21 = vmul.f32 0.7978846, %v2013_v54  ;;  %v2046_v38 = vmul.f32 0.7978846, %v2014_v9  ;;  %v2015_v33 = vadd.f32 %v1983_v57, %v4364_v10 }
 0x3ea   : > { %v1955_v15 = vmul.f32 %v1923_v31, %v4396_v40  ;;  %3065 = vmatmul.mubr.f32.gmra.mxu0 %v2134_v12  ;;  %v2135_v22 = vmul.f32 %v2103_v39, %v4358_v19  ;;  %v2104_v24 = vadd.f32 1.0, %v3310_v46  ;;  %v1984_v5 = vmul.f32 %v1952_v27, %v4347_v35 }
 0x3eb   : > { %v2022_v7 = vadd.f32 %v1990_v6, %v4393_v30  ;;  %3319 = vtanh.f32 %v2045_v21  ;;  %v2047_v49 = vmul.f32 0.7978846, %v2015_v33  ;;  %v1985_v23 = vmul.f32 %v1953_v63, %v4377_v16 }
 0x3ec   : > { %3067 = vmatprep.mubr.f32.mxu0 %v2135_v22  ;;  %v2136_v28 = vmul.f32 %v2104_v24, %v4367_v1  ;;  %v1881_v55 = vmul.f32 0.5, %v4294_v59  ;;  %3321 = vtanh.f32 %v2046_v38  ;;  %v2016_v32 = vadd.f32 %v1984_v5, %v4347_v35 }
 0x3ed   : > { %v2054_v58 = vmul.f32 0.7978846, %v2022_v7  ;;  %v1957_v44 = vmul.f32 %v1925_v61, %v4404_v4  ;;  %v1882_v19 = vmul.f32 0.5, %v4309_v11  ;;  %v2017_v27 = vadd.f32 %v1985_v23, %v4377_v16 }
 0x3ee   : > { %v3312_v13 = vpop.eup %3311  ;;  %v1986_v41 = vmul.f32 %v1954_v36, %v4374_v43  ;;  %3068 = vmatmul.mubr.f32.gmra.mxu0 %v2136_v28  ;;  %3323 = vtanh.f32 %v2047_v49  ;;  %v2048_v45 = vmul.f32 0.7978846, %v2016_v32  ;;  %v1987_v1 = vmul.f32 %v1955_v15, %v4396_v40 }
 0x3ef   : > { %v2105_v34 = vadd.f32 1.0, %v3312_v13  ;;  %v3314_v18 = vpop.eup %3313  ;;  %3325 = vtanh.f32 %v2054_v58  ;;  %v2049_v59 = vmul.f32 0.7978846, %v2017_v27  ;;  %v1988_v60 = vmul.f32 %v1956_v42, %v4385_v25 }
 0x3f0   : > { %v2018_v29 = vadd.f32 %v1986_v41, %v4374_v43  ;;  %v2106_v8 = vadd.f32 1.0, %v3314_v18  ;;  %3327 = vtanh.f32 %v2048_v45  ;;  %v2019_v11 = vadd.f32 %v1987_v1, %v4396_v40 }
 0x3f1   : > { %v2137_v48 = vmul.f32 %v2105_v34, %v1881_v55  ;;  %v3316_v14 = vpop.eup %3315  ;;  %v1883_v52 = vmul.f32 0.5, %v4321_v17  ;;  %3329 = vtanh.f32 %v2049_v59  ;;  %v2020_v50 = vadd.f32 %v1988_v60, %v4385_v25  ;;  %v4458_v60 = vld [vmem:[%s404_s29] ss:$0 sm:$0xff] }
 0x3f2   : > { %v2050_v47 = vmul.f32 0.7978846, %v2018_v29  ;;  %v2138_v0 = vmul.f32 %v2106_v8, %v1882_v19  ;;  %v2107_v53 = vadd.f32 1.0, %v3316_v14  ;;  %v2051_v36 = vmul.f32 0.7978846, %v2019_v11 }
 0x3f3   : > { %3070 = vmatprep.mubr.f32.mxu0 %v2137_v48  ;;  %v1989_v63 = vmul.f32 %v1957_v44, %v4404_v4  ;;  %v2052_v3 = vmul.f32 0.7978846, %v2020_v50  ;;  %v1884_v17 = vmul.f32 0.5, %v4318_v56  ;;  %v1885_v9 = vmul.f32 0.5, %v4344_v26  ;;  %v4456_v29 = vld [vmem:[#allocation2] ss:$0 sm:$0xff] }
 0x3f4   : > { %3331 = vtanh.f32 %v2050_v47  ;;  %3071 = vmatmul.mubr.f32.gmra.mxu0 %v2138_v0  ;;  %v2139_v62 = vmul.f32 %v2107_v53, %v1883_v52  ;;  %v1886_v61 = vmul.f32 0.5, %v4338_v51  ;;  %v1887_v38 = vmul.f32 0.5, %v4364_v10 }
 0x3f5   : > { %3333 = vtanh.f32 %v2051_v36  ;;  %v2021_v31 = vadd.f32 %v1989_v63, %v4404_v4  ;;  %v3318_v2 = vpop.eup %3317  ;;  %v1888_v24 = vmul.f32 0.5, %v4347_v35  ;;  %v1889_v5 = vmul.f32 0.5, %v4377_v16 }
 0x3f6   : > { %3335 = vtanh.f32 %v2052_v3  ;;  %3073 = vmatprep.mubr.f32.mxu0 %v2139_v62  ;;  %v2108_v37 = vadd.f32 1.0, %v3318_v2  ;;  %v1890_v10 = vmul.f32 0.5, %v4374_v43  ;;  %v1891_v13 = vmul.f32 0.5, %v4396_v40 }
 0x3f7   : > { %v2053_v54 = vmul.f32 0.7978846, %v2021_v31  ;;  %v1892_v34 = vmul.f32 0.5, %v4385_v25  ;;  %v1893_v45 = vmul.f32 0.5, %v4404_v4  ;;  %v1894_v18 = vmul.f32 0.5, %v4393_v30 }
 0x3f8   : > { %v3320_v20 = vpop.eup %3319  ;;  %v2140_v42 = vmul.f32 %v2108_v37, %v1884_v17 }
 0x3f9   : > { %3337 = vtanh.f32 %v2053_v54  ;;  %v3322_v6 = vpop.eup %3321  ;;  %v2109_v57 = vadd.f32 1.0, %v3320_v20 }
 0x3fa   : > { %3074 = vmatmul.mubr.f32.gmra.mxu0 %v2140_v42  ;;  %v2110_v12 = vadd.f32 1.0, %v3322_v6 }
 0x3fb   : > { %v3324_v39 = vpop.eup %3323  ;;  %v2141_v46 = vmul.f32 %v2109_v57, %v1885_v9 }
 0x3fc   : > { %v3326_v7 = vpop.eup %3325  ;;  %v2142_v21 = vmul.f32 %v2110_v12, %v1886_v61  ;;  %v2111_v56 = vadd.f32 1.0, %v3324_v39 }
 0x3fd   : > { %v3328_v33 = vpop.eup %3327  ;;  %3076 = vmatprep.mubr.f32.mxu0 %v2141_v46  ;;  %v2118_v41 = vadd.f32 1.0, %v3326_v7 }
 0x3fe   : > { %v3330_v15 = vpop.eup %3329  ;;  %3077 = vmatmul.mubr.f32.gmra.mxu0 %v2142_v21  ;;  %v2143_v22 = vmul.f32 %v2111_v56, %v1887_v38  ;;  %v2112_v26 = vadd.f32 1.0, %v3328_v33 }
 0x3ff   : > { %v2113_v58 = vadd.f32 1.0, %v3330_v15  ;;  %v2150_v59 = vmul.f32 %v2118_v41, %v1894_v18 }
 0x400   : > { %3079 = vmatprep.mubr.f32.mxu0 %v2143_v22  ;;  %v2144_v49 = vmul.f32 %v2112_v26, %v1888_v24 }
 0x401   : > { %v3332_v51 = vpop.eup %3331  ;;  %v2145_v28 = vmul.f32 %v2113_v58, %v1889_v5 }
 0x402   : > { %v3334_v23 = vpop.eup %3333  ;;  %v2114_v55 = vadd.f32 1.0, %v3332_v51  ;;  %3080 = vmatmul.mubr.f32.gmra.mxu0 %v2144_v49 }
 0x403   : > { %v3336_v32 = vpop.eup %3335  ;;  %v2115_v44 = vadd.f32 1.0, %v3334_v23  ;;  %3082 = vmatprep.mubr.f32.mxu0 %v2145_v28 }
 0x404   : > { %v2146_v19 = vmul.f32 %v2114_v55, %v1890_v10  ;;  %v2116_v27 = vadd.f32 1.0, %v3336_v32 }
 0x405   : > { %v2147_v35 = vmul.f32 %v2115_v44, %v1891_v13 }
 0x406   : > { %v3338_v16 = vpop.eup %3337  ;;  %3083 = vmatmul.mubr.f32.gmra.mxu0 %v2146_v19  ;;  %v2148_v43 = vmul.f32 %v2116_v27, %v1892_v34 }
 0x407   : > { %v2117_v1 = vadd.f32 1.0, %v3338_v16  ;;  %3085 = vmatprep.mubr.f32.mxu0 %v2147_v35 }
 0x409   : > { %v2149_v40 = vmul.f32 %v2117_v1, %v1893_v45 }
 0x40a   : > { %3086 = vmatmul.mubr.f32.gmra.mxu0 %v2148_v43 }
 0x40b   : > { %3088 = vmatprep.mubr.f32.mxu1 %v2149_v40 }
 0x40c   : > { %3089 = vmatmul.mubr.f32.vlgmr.msra.gmra.mxu1 %v2150_v59 }
 0x489   : > { %v3045_v25 = vpop.f32.mrf.mxu0 }
 0x48a   : > { %v2246_v4 = vadd.f32 %v3045_v25, %v4456_v29 }
 0x48b   : > { %v2240_v30 = vpop.f32.mrf.mxu0 }
 0x48c   : > { %v2407_v48 = vmul.f32 %v4458_v60, %v2246_v4  ;;  %v2241_v8 = vadd.f32 %v4456_v29, %v2240_v30 }
 0x48d   : > { %v3048_v11 = vpop.f32.mrf.mxu0 }
 0x48e   : > { %2440 = vst.msk [vmem:[%s4466_s11 + $0x8] sm:$0xff] %vm2438_vm2, %v2407_v48  ;;  %v2406_v14 = vmul.f32 %v4458_v60, %v2241_v8  ;;  %v2256_v52 = vadd.f32 %v3048_v11, %v4456_v29 }
 0x48f   : > { %v2250_v47 = vpop.f32.mrf.mxu0 }
 0x490   : > { %2439 = vst.msk [vmem:[%s4466_s11] sm:$0xff] %vm2438_vm2, %v2406_v14  ;;  %v2409_v50 = vmul.f32 %v4458_v60, %v2256_v52  ;;  %v2251_v0 = vadd.f32 %v4456_v29, %v2250_v47 }
 0x491   : > { %v3051_v53 = vpop.f32.mrf.mxu0 }
 0x492   : > { %2442 = vst.msk [vmem:[%s4466_s11 + $0x18] sm:$0xff] %vm2438_vm2, %v2409_v50  ;;  %v2408_v36 = vmul.f32 %v4458_v60, %v2251_v0  ;;  %v2266_v63 = vadd.f32 %v3051_v53, %v4456_v29 }
 0x493   : > { %v2260_v3 = vpop.f32.mrf.mxu0 }
 0x494   : > { %2441 = vst.msk [vmem:[%s4466_s11 + $0x10] sm:$0xff] %vm2438_vm2, %v2408_v36  ;;  %v2411_v62 = vmul.f32 %v4458_v60, %v2266_v63  ;;  %v2261_v31 = vadd.f32 %v4456_v29, %v2260_v3 }
 0x495   : > { %v3054_v2 = vpop.f32.mrf.mxu0 }
 0x496   : > { %2444 = vst.msk [vmem:[%s4466_s11 + $0x28] sm:$0xff] %vm2438_vm2, %v2411_v62  ;;  %v2410_v17 = vmul.f32 %v4458_v60, %v2261_v31  ;;  %v2276_v37 = vadd.f32 %v3054_v2, %v4456_v29 }
 0x497   : > { %v2270_v54 = vpop.f32.mrf.mxu0 }
 0x498   : > { %2443 = vst.msk [vmem:[%s4466_s11 + $0x20] sm:$0xff] %vm2438_vm2, %v2410_v17  ;;  %v2413_v20 = vmul.f32 %v4458_v60, %v2276_v37  ;;  %v2271_v42 = vadd.f32 %v4456_v29, %v2270_v54 }
 0x499   : > { %v3057_v6 = vpop.f32.mrf.mxu0 }
 0x49a   : > { %2446 = vst.msk [vmem:[%s4466_s11 + $0x38] sm:$0xff] %vm2438_vm2, %v2413_v20  ;;  %v2412_v9 = vmul.f32 %v4458_v60, %v2271_v42  ;;  %v2286_v57 = vadd.f32 %v3057_v6, %v4456_v29 }
 0x49b   : > { %v2280_v61 = vpop.f32.mrf.mxu0 }
 0x49c   : > { %2445 = vst.msk [vmem:[%s4466_s11 + $0x30] sm:$0xff] %vm2438_vm2, %v2412_v9  ;;  %v2415_v12 = vmul.f32 %v4458_v60, %v2286_v57  ;;  %v2281_v39 = vadd.f32 %v4456_v29, %v2280_v61 }
 0x49d   : > { %v3060_v46 = vpop.f32.mrf.mxu0 }
 0x49e   : > { %2448 = vst.msk [vmem:[%s4466_s11 + $0x48] sm:$0xff] %vm2438_vm2, %v2415_v12  ;;  %v2414_v7 = vmul.f32 %v4458_v60, %v2281_v39  ;;  %v2296_v21 = vadd.f32 %v3060_v46, %v4456_v29 }
 0x49f   : > { %v2290_v38 = vpop.f32.mrf.mxu0 }
 0x4a0   : > { %2447 = vst.msk [vmem:[%s4466_s11 + $0x40] sm:$0xff] %vm2438_vm2, %v2414_v7  ;;  %v2417_v56 = vmul.f32 %v4458_v60, %v2296_v21  ;;  %v2291_v33 = vadd.f32 %v4456_v29, %v2290_v38 }
 0x4a2   : > { %2450 = vst.msk [vmem:[%s4466_s11 + $0x58] sm:$0xff] %vm2438_vm2, %v2417_v56  ;;  %v2416_v15 = vmul.f32 %v4458_v60, %v2291_v33  ;;  %v3063_v22 = vpop.f32.mrf.mxu0 }
 0x4a3   : > { %v2306_v24 = vadd.f32 %v3063_v22, %v4456_v29 }
 0x4a4   : > { %2449 = vst.msk [vmem:[%s4466_s11 + $0x50] sm:$0xff] %vm2438_vm2, %v2416_v15  ;;  %v2300_v26 = vpop.f32.mrf.mxu0 }
 0x4a5   : > { %v2419_v5 = vmul.f32 %v4458_v60, %v2306_v24  ;;  %v2301_v58 = vadd.f32 %v4456_v29, %v2300_v26 }
 0x4a7   : > { %2452 = vst.msk [vmem:[%s4466_s11 + $0x68] sm:$0xff] %vm2438_vm2, %v2419_v5  ;;  %v2418_v51 = vmul.f32 %v4458_v60, %v2301_v58 }
 0x4a9   : > { %2451 = vst.msk [vmem:[%s4466_s11 + $0x60] sm:$0xff] %vm2438_vm2, %v2418_v51 }
 0x4aa   : > { %v3066_v49 = vpop.f32.mrf.mxu0 }
 0x4ab   : > { %v2316_v23 = vadd.f32 %v3066_v49, %v4456_v29 }
 0x4ac   : > { %v2310_v28 = vpop.f32.mrf.mxu0 }
 0x4ad   : > { %v2421_v55 = vmul.f32 %v4458_v60, %v2316_v23  ;;  %v2311_v32 = vadd.f32 %v4456_v29, %v2310_v28 }
 0x4ae   : > { %v3069_v10 = vpop.f32.mrf.mxu0 }
 0x4af   : > { %2454 = vst.msk [vmem:[%s4466_s11 + $0x78] sm:$0xff] %vm2438_vm2, %v2421_v55  ;;  %v2420_v13 = vmul.f32 %v4458_v60, %v2311_v32  ;;  %v2326_v44 = vadd.f32 %v3069_v10, %v4456_v29 }
 0x4b0   : > { %v2320_v19 = vpop.f32.mrf.mxu0 }
 0x4b1   : > { %2453 = vst.msk [vmem:[%s4466_s11 + $0x70] sm:$0xff] %vm2438_vm2, %v2420_v13  ;;  %v2423_v35 = vmul.f32 %v4458_v60, %v2326_v44  ;;  %v2321_v27 = vadd.f32 %v4456_v29, %v2320_v19 }
 0x4b3   : > { %2456 = vst.msk [vmem:[%s4466_s11 + $0x88] sm:$0xff] %vm2438_vm2, %v2423_v35  ;;  %v2422_v16 = vmul.f32 %v4458_v60, %v2321_v27 }
 0x4b4   : > { %v3072_v41 = vpop.f32.mrf.mxu0 }
 0x4b5   : > { %2455 = vst.msk [vmem:[%s4466_s11 + $0x80] sm:$0xff] %vm2438_vm2, %v2422_v16  ;;  %v2336_v34 = vadd.f32 %v3072_v41, %v4456_v29 }
 0x4b6   : > { %v2330_v45 = vpop.f32.mrf.mxu0 }
 0x4b7   : > { %v2425_v1 = vmul.f32 %v4458_v60, %v2336_v34  ;;  %v2331_v18 = vadd.f32 %v4456_v29, %v2330_v45 }
 0x4b9   : > { %2458 = vst.msk [vmem:[%s4466_s11 + $0x98] sm:$0xff] %vm2438_vm2, %v2425_v1  ;;  %v2424_v43 = vmul.f32 %v4458_v60, %v2331_v18 }
 0x4ba   : > { %v3075_v40 = vpop.f32.mrf.mxu0 }
 0x4bb   : > { %2457 = vst.msk [vmem:[%s4466_s11 + $0x90] sm:$0xff] %vm2438_vm2, %v2424_v43  ;;  %v2346_v59 = vadd.f32 %v3075_v40, %v4456_v29 }
 0x4bc   : > { %v2340_v25 = vpop.f32.mrf.mxu0 }
 0x4bd   : > { %v2427_v4 = vmul.f32 %v4458_v60, %v2346_v59  ;;  %v2341_v30 = vadd.f32 %v4456_v29, %v2340_v25 }
 0x4be   : > { %v3078_v48 = vpop.f32.mrf.mxu0 }
 0x4bf   : > { %2460 = vst.msk [vmem:[%s4466_s11 + $0xa8] sm:$0xff] %vm2438_vm2, %v2427_v4  ;;  %v2426_v8 = vmul.f32 %v4458_v60, %v2341_v30  ;;  %v2356_v11 = vadd.f32 %v3078_v48, %v4456_v29 }
 0x4c0   : > { %v2350_v14 = vpop.f32.mrf.mxu0 }
 0x4c1   : > { %2459 = vst.msk [vmem:[%s4466_s11 + $0xa0] sm:$0xff] %vm2438_vm2, %v2426_v8  ;;  %v2429_v52 = vmul.f32 %v4458_v60, %v2356_v11  ;;  %v2351_v47 = vadd.f32 %v4456_v29, %v2350_v14 }
 0x4c2   : > { %v3081_v50 = vpop.f32.mrf.mxu0 }
 0x4c3   : > { %2462 = vst.msk [vmem:[%s4466_s11 + $0xb8] sm:$0xff] %vm2438_vm2, %v2429_v52  ;;  %v2428_v0 = vmul.f32 %v4458_v60, %v2351_v47  ;;  %v2366_v53 = vadd.f32 %v3081_v50, %v4456_v29 }
 0x4c4   : > { %v2360_v36 = vpop.f32.mrf.mxu0 }
 0x4c5   : > { %2461 = vst.msk [vmem:[%s4466_s11 + $0xb0] sm:$0xff] %vm2438_vm2, %v2428_v0  ;;  %v2431_v63 = vmul.f32 %v4458_v60, %v2366_v53  ;;  %v2361_v3 = vadd.f32 %v4456_v29, %v2360_v36 }
 0x4c6   : > { %v3084_v62 = vpop.f32.mrf.mxu0 }
 0x4c7   : > { %2464 = vst.msk [vmem:[%s4466_s11 + $0xc8] sm:$0xff] %vm2438_vm2, %v2431_v63  ;;  %v2430_v31 = vmul.f32 %v4458_v60, %v2361_v3  ;;  %v2376_v2 = vadd.f32 %v3084_v62, %v4456_v29 }
 0x4c8   : > { %v2370_v17 = vpop.f32.mrf.mxu0 }
 0x4c9   : > { %2463 = vst.msk [vmem:[%s4466_s11 + $0xc0] sm:$0xff] %vm2438_vm2, %v2430_v31  ;;  %v2433_v37 = vmul.f32 %v4458_v60, %v2376_v2  ;;  %v2371_v54 = vadd.f32 %v4456_v29, %v2370_v17 }
 0x4ca   : > { %v3087_v20 = vpop.f32.mrf.mxu0 }
 0x4cb   : > { %2466 = vst.msk [vmem:[%s4466_s11 + $0xd8] sm:$0xff] %vm2438_vm2, %v2433_v37  ;;  %v2432_v42 = vmul.f32 %v4458_v60, %v2371_v54  ;;  %v2386_v6 = vadd.f32 %v3087_v20, %v4456_v29 }
 0x4cc   : > { %v3090_v9 = vpop.f32.mrf.mxu1  ;;  %v2380_v57 = vpop.f32.mrf.mxu0 }
 0x4cd   : > { %v2396_v61 = vadd.f32 %v3090_v9, %v4456_v29  ;;  %2465 = vst.msk [vmem:[%s4466_s11 + $0xd0] sm:$0xff] %vm2438_vm2, %v2432_v42  ;;  %v2435_v12 = vmul.f32 %v4458_v60, %v2386_v6  ;;  %v2381_v39 = vadd.f32 %v4456_v29, %v2380_v57 }
 0x4ce   : > { %v2390_v46 = vpop.f32.mrf.mxu1 }
 0x4cf   : > { %v2437_v7 = vmul.f32 %v4458_v60, %v2396_v61  ;;  %v2391_v21 = vadd.f32 %v4456_v29, %v2390_v46  ;;  %2468 = vst.msk [vmem:[%s4466_s11 + $0xe8] sm:$0xff] %vm2438_vm2, %v2435_v12  ;;  %v2434_v38 = vmul.f32 %v4458_v60, %v2381_v39 }
 0x4d1   : > { %2470 = vst.msk [vmem:[%s4466_s11 + $0xf8] sm:$0xff] %vm2438_vm2, %v2437_v7  ;;  %v2436_v56 = vmul.f32 %v4458_v60, %v2391_v21  ;;  %2467 = vst.msk [vmem:[%s4466_s11 + $0xe0] sm:$0xff] %vm2438_vm2, %v2434_v38 }
 0x4d3   : > { %2469 = vst.msk [vmem:[%s4466_s11 + $0xf0] sm:$0xff] %vm2438_vm2, %v2436_v56 }
 0x4d4 PF: > { %s22_s17 = sadd.s32 1, %s3393_s17   ;;  %s4615_s15 = smov %s3389_s16 }
 0x4d5   : > { %p19_p5 = scmp.ge.s32.totalorder %s22_s17, 4   ;;  %s4616_s16 = smov %s4618_s8 }
 0x4d7   :  { %21 = sbr.rel (!%p19_p5) target bundleno = 3 (0x3), region = 93 }

</bundles_post_ra>
